<compile_context>
chip_gen: v5e
topology: v5e:2x2
jax: 0.10.0
libtpu: 0.0.40
codegen_flags: <defaults>
</compile_context>

<pallas_src>
import functools

import jax
import jax.numpy as jnp
from jax.experimental import pallas as pl
from jax.experimental.pallas import tpu as pltpu


# Tap order t = 3*(dy+1) + (dx+1); matches the [3,3,Cin,Cout] HWIO layout of the reference.
_TAP_OFFSETS = tuple((dy, dx) for dy in (-1, 0, 1) for dx in (-1, 0, 1))


# ----------------------------- Pallas kernel --------------------------------

def _inception_a_kernel(x_ref, cmask_ref, poolw_ref,
                        wh_ref, sh_ref, bh_ref,
                        w1b_ref, s1b_ref, b1b_ref,
                        w2b_ref, s2b_ref, b2b_ref,
                        w2c_ref, s2c_ref, b2c_ref,
                        out_ref, *, img_w, b_tile, hw):
    m = b_tile * hw
    cin = x_ref.shape[-1]
    x_bf = x_ref[...].reshape(m, cin)                          # [M, Cin] bf16

    # Fused 1x1 heads: [branch0 (96) | branch1 head (64) | branch2 head (64) | branch3 1x1 (96)].
    head = jnp.dot(x_bf, wh_ref[...], preferred_element_type=jnp.float32)
    head = head * sh_ref[...] + bh_ref[...]                    # [M, 320] f32 (BN folded)

    y0 = jnp.maximum(head[:, 0:96], 0.0)                       # branch 0 done
    a1 = jnp.maximum(head[:, 96:160], 0.0)                     # branch 1 intermediate
    a2 = jnp.maximum(head[:, 160:224], 0.0)                    # branch 2 intermediate
    z3 = head[:, 224:320]                                      # branch 3: pool next, ReLU after

    # Branch 3: 3x3 avg-pool (stride 1, pad 1, count_include_pad=False) via rolls.
    # poolw_ref[t] = valid_t / count  (1/count already folded in).
    psum = None
    for t, (dy, dx) in enumerate(_TAP_OFFSETS):
        off = dy * img_w + dx
        rolled = z3 if off == 0 else pltpu.roll(z3, (-off) % m, 0)
        term = rolled * poolw_ref[t, :, :]
        psum = term if psum is None else psum + term
    y3 = jnp.maximum(psum, 0.0)

    # 3x3 conv + BN + ReLU: 9 roll+mask taps concatenated along K -> one MXU matmul.
    def conv3x3(a_f32, w_ref, s_ref, b_ref):
        taps = []
        for t, (dy, dx) in enumerate(_TAP_OFFSETS):
            off = dy * img_w + dx
            if off == 0:
                taps.append(a_f32)                             # centre tap: always valid
            else:
                rolled = pltpu.roll(a_f32, (-off) % m, 0)
                taps.append(rolled * cmask_ref[t, :, :])
        big = jnp.concatenate(taps, axis=-1).astype(jnp.bfloat16)   # [M, 9*Cin] bf16
        acc = jnp.dot(big, w_ref[...], preferred_element_type=jnp.float32)
        return jnp.maximum(acc * s_ref[...] + b_ref[...], 0.0)

    y1 = conv3x3(a1, w1b_ref, s1b_ref, b1b_ref)                # branch 1
    a2b = conv3x3(a2, w2b_ref, s2b_ref, b2b_ref)               # branch 2, first 3x3
    y2 = conv3x3(a2b, w2c_ref, s2c_ref, b2c_ref)               # branch 2, second 3x3

    # Single lane-dense [M, 384] store in torch.cat order.
    out = jnp.concatenate([y0, y1, y2, y3], axis=-1)
    out_ref[...] = out.reshape(b_tile, hw, 384)


# ------------------------------- JAX glue -----------------------------------

def _make_masks(h, w, b_tile):
    """[9, M, 1] f32 validity masks (0/1) and pool weights (valid/count), M = b_tile*H*W."""
    hw = h * w
    idx = jnp.arange(hw, dtype=jnp.int32)
    yy = idx // w
    xx = idx % w
    valid = []
    for dy, dx in _TAP_OFFSETS:
        v = (yy + dy >= 0) & (yy + dy < h) & (xx + dx >= 0) & (xx + dx < w)
        valid.append(v.astype(jnp.float32))
    valid = jnp.stack(valid, axis=0)                           # [9, HW] 0/1
    count = jnp.sum(valid, axis=0, keepdims=True)              # valid taps per pixel
    poolw = valid / count                                      # fold 1/count into pool taps
    conv_mask = jnp.tile(valid, (1, b_tile)).reshape(9, b_tile * hw, 1)
    pool_w = jnp.tile(poolw, (1, b_tile)).reshape(9, b_tile * hw, 1)
    return conv_mask, pool_w


def inception_a_forward(params, x_nchw):
    n, c, h, w = x_nchw.shape
    hw = h * w
    assert hw % 8 == 0, "H*W must be a multiple of 8 for this kernel"
    # TODO(synk): real Inception-A input is 35x35 (HW=1225); that size needs explicit spatial
    # padding of the rows and masks to a multiple of 8 before this kernel applies.

    # Batch-tile so the matmul M dimension is >= 256 rows when possible (MXU fill on v6e/v7x).
    b_tile = n
    for d in range(1, n + 1):
        if n % d == 0 and d * hw >= 256:
            b_tile = d
            break

    x2d = jnp.transpose(x_nchw, (0, 2, 3, 1)).reshape(n, hw, c).astype(jnp.bfloat16)
    conv_mask, pool_w = _make_masks(h, w, b_tile)

    # Fused 1x1 head weight / folded-BN scale / bias: [Cin, 96+64+64+96].
    heads = ("b0", "b1a", "b2a", "b3")
    wh = jnp.concatenate([params[k]["w"] for k in heads], axis=1)
    sh = jnp.concatenate([params[k]["scale"] for k in heads], axis=1)
    bh = jnp.concatenate([params[k]["bias"] for k in heads], axis=1)

    def flat3(p):   # [9, Cin, Cout] -> [9*Cin, Cout] (tap-major K)
        wt = p["w"]
        return wt.reshape(wt.shape[0] * wt.shape[1], wt.shape[2])

    inputs = [x2d, conv_mask, pool_w, wh, sh, bh,
              flat3(params["b1b"]), params["b1b"]["scale"], params["b1b"]["bias"],
              flat3(params["b2b"]), params["b2b"]["scale"], params["b2b"]["bias"],
              flat3(params["b2c"]), params["b2c"]["scale"], params["b2c"]["bias"]]

    def const_spec(arr):   # grid-invariant operand: same block every step -> DMA'd once
        nd = arr.ndim
        return pl.BlockSpec(arr.shape, lambda i, _z=(0,) * nd: _z)

    in_specs = [pl.BlockSpec((b_tile, hw, c), lambda i: (i, 0, 0))]
    in_specs += [const_spec(a) for a in inputs[1:]]

    kernel = functools.partial(_inception_a_kernel, img_w=w, b_tile=b_tile, hw=hw)

    out = pl.pallas_call(
        kernel,
        out_shape=jax.ShapeDtypeStruct((n, hw, 384), jnp.float32),
        grid_spec=pltpu.PrefetchScalarGridSpec(
            num_scalar_prefetch=0,
            grid=(n // b_tile,),
            in_specs=in_specs,
            out_specs=pl.BlockSpec((b_tile, hw, 384), lambda i: (i, 0, 0)),
        ),
        compiler_params=pltpu.CompilerParams(
            dimension_semantics=("parallel",)),
    )(*inputs)

    # [N, HW, 384] (branch-major channels, matching torch.cat) -> NCHW
    out = out.reshape(n, h, w, 384)
    return jnp.transpose(out, (0, 3, 1, 2))


# --------------------------- parameter creation -----------------------------

def _init_conv_bn(key, taps, cin, cout, eps=1e-3):
    k1, k2, k3, k4, k5 = jax.random.split(key, 5)
    fan_in = taps * cin
    wshape = (cin, cout) if taps == 1 else (taps, cin, cout)
    w = jax.random.normal(k1, wshape, jnp.float32) / jnp.sqrt(fan_in)
    gamma = 1.0 + 0.1 * jax.random.normal(k2, (cout,), jnp.float32)
    beta = 0.1 * jax.random.normal(k3, (cout,), jnp.float32)
    mean = 0.1 * jax.random.normal(k4, (cout,), jnp.float32)
    var = jnp.abs(1.0 + 0.1 * jax.random.normal(k5, (cout,), jnp.float32))
    scale = gamma / jnp.sqrt(var + eps)        # folded BN (inference mode)
    bias = beta - mean * scale
    return {"w": w.astype(jnp.bfloat16),       # bf16 MXU operands, folded at init
            "scale": scale.reshape(1, cout),
            "bias": bias.reshape(1, cout)}


def init_inception_a_params(key, in_channels):
    ks = jax.random.split(key, 7)
    return {
        "b0":  _init_conv_bn(ks[0], 1, in_channels, 96),
        "b1a": _init_conv_bn(ks[1], 1, in_channels, 64),
        "b1b": _init_conv_bn(ks[2], 9, 64, 96),
        "b2a": _init_conv_bn(ks[3], 1, in_channels, 64),
        "b2b": _init_conv_bn(ks[4], 9, 64, 96),
        "b2c": _init_conv_bn(ks[5], 9, 96, 96),
        "b3":  _init_conv_bn(ks[6], 1, 384, 96),   # pool-branch conv is hard-wired 384-in
    }


# --------------------------- pure-JAX reference ------------------------------

def _ref_forward(params, x_nchw):
    x = jnp.transpose(x_nchw, (0, 2, 3, 1))   # NHWC, f32

    def conv_bn_relu(a, p):
        w = p["w"].astype(jnp.float32)
        if w.ndim == 2:
            w4 = w.reshape(1, 1, w.shape[0], w.shape[1])
            pad = "VALID"
        else:
            w4 = w.reshape(3, 3, w.shape[1], w.shape[2])
            pad = "SAME"
        z = jax.lax.conv_general_dilated(
            a, w4, window_strides=(1, 1), padding=pad,
            dimension_numbers=("NHWC", "HWIO", "NHWC"))
        return jnp.maximum(z * p["scale"] + p["bias"], 0.0)

    def avg_pool(a):   # 3x3, stride 1, pad 1, count_include_pad=False
        s = jax.lax.reduce_window(a, 0.0, jax.lax.add,
                                  (1, 3, 3, 1), (1, 1, 1, 1), "SAME")
        cnt = jax.lax.reduce_window(jnp.ones_like(a[..., :1]), 0.0, jax.lax.add,
                                    (1, 3, 3, 1), (1, 1, 1, 1), "SAME")
        return s / cnt

    y0 = conv_bn_relu(x, params["b0"])
    y1 = conv_bn_relu(conv_bn_relu(x, params["b1a"]), params["b1b"])
    y2 = conv_bn_relu(conv_bn_relu(conv_bn_relu(x, params["b2a"]),
                                   params["b2b"]), params["b2c"])
    y3 = conv_bn_relu(avg_pool(x), params["b3"])
    y = jnp.concatenate([y0, y1, y2, y3], axis=-1)
    return jnp.transpose(y, (0, 3, 1, 2))


# ---------------------------------- main -------------------------------------

if __name__ == "__main__":
    key = jax.random.PRNGKey(0)
    k_param, k_input = jax.random.split(key)

    in_channels = 384            # branch_3's 1x1 conv is hard-wired to 384 inputs
    N, H, W = 2, 8, 8
    x = jax.random.normal(k_input, (N, in_channels, H, W), jnp.float32)

    params = init_inception_a_params(k_param, in_channels)

    fwd = jax.jit(inception_a_forward)
    out = jax.block_until_ready(fwd(params, x))

    assert out.shape == (N, 4 * 96, H, W), out.shape
    assert bool(jnp.all(jnp.isfinite(out)))

    # bf16 GEMM operands vs f32 reference -> loose tolerance.
    ref = _ref_forward(params, x)
    err = float(jnp.max(jnp.abs(out - ref)))
    assert err < 0.25, f"max abs error vs reference: {err}"

    print("KERNEL_OK")
</pallas_src>

<mosaic_0001>
module attributes {stable_mosaic.version = 11 : i64} {
  func.func @_inception_a_kernel(%arg0: i32, %arg1: memref<2x64x384xbf16, #tpu.memory_space<vmem>>, %arg2: memref<9x128x1xf32, #tpu.memory_space<vmem>>, %arg3: memref<9x128x1xf32, #tpu.memory_space<vmem>>, %arg4: memref<384x320xbf16, #tpu.memory_space<vmem>>, %arg5: memref<1x320xf32, #tpu.memory_space<vmem>>, %arg6: memref<1x320xf32, #tpu.memory_space<vmem>>, %arg7: memref<576x96xbf16, #tpu.memory_space<vmem>>, %arg8: memref<1x96xf32, #tpu.memory_space<vmem>>, %arg9: memref<1x96xf32, #tpu.memory_space<vmem>>, %arg10: memref<576x96xbf16, #tpu.memory_space<vmem>>, %arg11: memref<1x96xf32, #tpu.memory_space<vmem>>, %arg12: memref<1x96xf32, #tpu.memory_space<vmem>>, %arg13: memref<864x96xbf16, #tpu.memory_space<vmem>>, %arg14: memref<1x96xf32, #tpu.memory_space<vmem>>, %arg15: memref<1x96xf32, #tpu.memory_space<vmem>>, %arg16: memref<2x64x384xf32, #tpu.memory_space<vmem>>) attributes {dimension_semantics = [#tpu.dimension_semantics<parallel>], iteration_bounds = array<i64: 1>, scalar_prefetch = 0 : i64, scratch_operands = 0 : i64, tpu.core_type = #tpu.core_type<tc>, window_params = [{transform_indices = @transform_0, window_bounds = array<i64: 2, 64, 384>}, {pipeline_mode = #tpu.pipeline_mode<synchronous>, transform_indices = @transform_1, window_bounds = array<i64: 9, 128, 1>}, {pipeline_mode = #tpu.pipeline_mode<synchronous>, transform_indices = @transform_2, window_bounds = array<i64: 9, 128, 1>}, {pipeline_mode = #tpu.pipeline_mode<synchronous>, transform_indices = @transform_3, window_bounds = array<i64: 384, 320>}, {pipeline_mode = #tpu.pipeline_mode<synchronous>, transform_indices = @transform_4, window_bounds = array<i64: 1, 320>}, {pipeline_mode = #tpu.pipeline_mode<synchronous>, transform_indices = @transform_5, window_bounds = array<i64: 1, 320>}, {pipeline_mode = #tpu.pipeline_mode<synchronous>, transform_indices = @transform_6, window_bounds = array<i64: 576, 96>}, {pipeline_mode = #tpu.pipeline_mode<synchronous>, transform_indices = @transform_7, window_bounds = array<i64: 1, 96>}, {pipeline_mode = #tpu.pipeline_mode<synchronous>, transform_indices = @transform_8, window_bounds = array<i64: 1, 96>}, {pipeline_mode = #tpu.pipeline_mode<synchronous>, transform_indices = @transform_9, window_bounds = array<i64: 576, 96>}, {pipeline_mode = #tpu.pipeline_mode<synchronous>, transform_indices = @transform_10, window_bounds = array<i64: 1, 96>}, {pipeline_mode = #tpu.pipeline_mode<synchronous>, transform_indices = @transform_11, window_bounds = array<i64: 1, 96>}, {pipeline_mode = #tpu.pipeline_mode<synchronous>, transform_indices = @transform_12, window_bounds = array<i64: 864, 96>}, {pipeline_mode = #tpu.pipeline_mode<synchronous>, transform_indices = @transform_13, window_bounds = array<i64: 1, 96>}, {pipeline_mode = #tpu.pipeline_mode<synchronous>, transform_indices = @transform_14, window_bounds = array<i64: 1, 96>}, {transform_indices = @transform_15, window_bounds = array<i64: 2, 64, 384>}]} {
    %c0 = arith.constant 0 : index
    %c0_0 = arith.constant 0 : index
    %c0_1 = arith.constant 0 : index
    %0 = vector.load %arg1[%c0, %c0_0, %c0_1] : memref<2x64x384xbf16, #tpu.memory_space<vmem>>, vector<2x64x384xbf16>
    %1 = vector.shape_cast %0 : vector<2x64x384xbf16> to vector<128x384xbf16>
    %c0_2 = arith.constant 0 : index
    %c0_3 = arith.constant 0 : index
    %2 = vector.load %arg4[%c0_2, %c0_3] : memref<384x320xbf16, #tpu.memory_space<vmem>>, vector<384x320xbf16>
    %cst = arith.constant dense<0.000000e+00> : vector<128x320xf32>
    %3 = tpu.matmul %1, %2, %cst {dimension_numbers = #tpu.dot_dimension_numbers<[1], [0], [0], [1], [0, 0, 1, 1], [], []>} : vector<128x384xbf16>, vector<384x320xbf16>, vector<128x320xf32> -> vector<128x320xf32>
    %c0_4 = arith.constant 0 : index
    %c0_5 = arith.constant 0 : index
    %4 = vector.load %arg5[%c0_4, %c0_5] : memref<1x320xf32, #tpu.memory_space<vmem>>, vector<1x320xf32>
    %5 = vector.broadcast %4 : vector<1x320xf32> to vector<128x320xf32>
    %6 = arith.mulf %3, %5 : vector<128x320xf32>
    %c0_6 = arith.constant 0 : index
    %c0_7 = arith.constant 0 : index
    %7 = vector.load %arg6[%c0_6, %c0_7] : memref<1x320xf32, #tpu.memory_space<vmem>>, vector<1x320xf32>
    %8 = vector.broadcast %7 : vector<1x320xf32> to vector<128x320xf32>
    %9 = arith.addf %6, %8 : vector<128x320xf32>
    %10 = vector.extract_strided_slice %9 {offsets = [0, 0], sizes = [128, 96], strides = [1, 1]} : vector<128x320xf32> to vector<128x96xf32>
    %cst_8 = arith.constant 0.000000e+00 : f32
    %11 = vector.broadcast %cst_8 : f32 to vector<128x96xf32>
    %12 = arith.maximumf %10, %11 : vector<128x96xf32>
    %13 = vector.extract_strided_slice %9 {offsets = [0, 96], sizes = [128, 64], strides = [1, 1]} : vector<128x320xf32> to vector<128x64xf32>
    %cst_9 = arith.constant 0.000000e+00 : f32
    %14 = vector.broadcast %cst_9 : f32 to vector<128x64xf32>
    %15 = arith.maximumf %13, %14 : vector<128x64xf32>
    %16 = vector.extract_strided_slice %9 {offsets = [0, 160], sizes = [128, 64], strides = [1, 1]} : vector<128x320xf32> to vector<128x64xf32>
    %cst_10 = arith.constant 0.000000e+00 : f32
    %17 = vector.broadcast %cst_10 : f32 to vector<128x64xf32>
    %18 = arith.maximumf %16, %17 : vector<128x64xf32>
    %19 = vector.extract_strided_slice %9 {offsets = [0, 224], sizes = [128, 96], strides = [1, 1]} : vector<128x320xf32> to vector<128x96xf32>
    %c9_i32 = arith.constant 9 : i32
    %20 = tpu.dynamic_rotate %19 by %c9_i32 dim 0 : vector<128x96xf32>, i32 -> vector<128x96xf32>
    %c0_11 = arith.constant 0 : index
    %c0_12 = arith.constant 0 : index
    %c0_13 = arith.constant 0 : index
    %21 = vector.load %arg3[%c0_11, %c0_12, %c0_13] : memref<9x128x1xf32, #tpu.memory_space<vmem>>, vector<1x128x1xf32>
    %22 = vector.shape_cast %21 : vector<1x128x1xf32> to vector<128x1xf32>
    %23 = vector.broadcast %22 : vector<128x1xf32> to vector<128x96xf32>
    %24 = arith.mulf %20, %23 : vector<128x96xf32>
    %c8_i32 = arith.constant 8 : i32
    %25 = tpu.dynamic_rotate %19 by %c8_i32 dim 0 : vector<128x96xf32>, i32 -> vector<128x96xf32>
    %c1 = arith.constant 1 : index
    %c0_14 = arith.constant 0 : index
    %c0_15 = arith.constant 0 : index
    %26 = vector.load %arg3[%c1, %c0_14, %c0_15] : memref<9x128x1xf32, #tpu.memory_space<vmem>>, vector<1x128x1xf32>
    %27 = vector.shape_cast %26 : vector<1x128x1xf32> to vector<128x1xf32>
    %28 = vector.broadcast %27 : vector<128x1xf32> to vector<128x96xf32>
    %29 = arith.mulf %25, %28 : vector<128x96xf32>
    %30 = arith.addf %24, %29 : vector<128x96xf32>
    %c7_i32 = arith.constant 7 : i32
    %31 = tpu.dynamic_rotate %19 by %c7_i32 dim 0 : vector<128x96xf32>, i32 -> vector<128x96xf32>
    %c2 = arith.constant 2 : index
    %c0_16 = arith.constant 0 : index
    %c0_17 = arith.constant 0 : index
    %32 = vector.load %arg3[%c2, %c0_16, %c0_17] : memref<9x128x1xf32, #tpu.memory_space<vmem>>, vector<1x128x1xf32>
    %33 = vector.shape_cast %32 : vector<1x128x1xf32> to vector<128x1xf32>
    %34 = vector.broadcast %33 : vector<128x1xf32> to vector<128x96xf32>
    %35 = arith.mulf %31, %34 : vector<128x96xf32>
    %36 = arith.addf %30, %35 : vector<128x96xf32>
    %c1_i32 = arith.constant 1 : i32
    %37 = tpu.dynamic_rotate %19 by %c1_i32 dim 0 : vector<128x96xf32>, i32 -> vector<128x96xf32>
    %c3 = arith.constant 3 : index
    %c0_18 = arith.constant 0 : index
    %c0_19 = arith.constant 0 : index
    %38 = vector.load %arg3[%c3, %c0_18, %c0_19] : memref<9x128x1xf32, #tpu.memory_space<vmem>>, vector<1x128x1xf32>
    %39 = vector.shape_cast %38 : vector<1x128x1xf32> to vector<128x1xf32>
    %40 = vector.broadcast %39 : vector<128x1xf32> to vector<128x96xf32>
    %41 = arith.mulf %37, %40 : vector<128x96xf32>
    %42 = arith.addf %36, %41 : vector<128x96xf32>
    %c4 = arith.constant 4 : index
    %c0_20 = arith.constant 0 : index
    %c0_21 = arith.constant 0 : index
    %43 = vector.load %arg3[%c4, %c0_20, %c0_21] : memref<9x128x1xf32, #tpu.memory_space<vmem>>, vector<1x128x1xf32>
    %44 = vector.shape_cast %43 : vector<1x128x1xf32> to vector<128x1xf32>
    %45 = vector.broadcast %44 : vector<128x1xf32> to vector<128x96xf32>
    %46 = arith.mulf %19, %45 : vector<128x96xf32>
    %47 = arith.addf %42, %46 : vector<128x96xf32>
    %c127_i32 = arith.constant 127 : i32
    %48 = tpu.dynamic_rotate %19 by %c127_i32 dim 0 : vector<128x96xf32>, i32 -> vector<128x96xf32>
    %c5 = arith.constant 5 : index
    %c0_22 = arith.constant 0 : index
    %c0_23 = arith.constant 0 : index
    %49 = vector.load %arg3[%c5, %c0_22, %c0_23] : memref<9x128x1xf32, #tpu.memory_space<vmem>>, vector<1x128x1xf32>
    %50 = vector.shape_cast %49 : vector<1x128x1xf32> to vector<128x1xf32>
    %51 = vector.broadcast %50 : vector<128x1xf32> to vector<128x96xf32>
    %52 = arith.mulf %48, %51 : vector<128x96xf32>
    %53 = arith.addf %47, %52 : vector<128x96xf32>
    %c121_i32 = arith.constant 121 : i32
    %54 = tpu.dynamic_rotate %19 by %c121_i32 dim 0 : vector<128x96xf32>, i32 -> vector<128x96xf32>
    %c6 = arith.constant 6 : index
    %c0_24 = arith.constant 0 : index
    %c0_25 = arith.constant 0 : index
    %55 = vector.load %arg3[%c6, %c0_24, %c0_25] : memref<9x128x1xf32, #tpu.memory_space<vmem>>, vector<1x128x1xf32>
    %56 = vector.shape_cast %55 : vector<1x128x1xf32> to vector<128x1xf32>
    %57 = vector.broadcast %56 : vector<128x1xf32> to vector<128x96xf32>
    %58 = arith.mulf %54, %57 : vector<128x96xf32>
    %59 = arith.addf %53, %58 : vector<128x96xf32>
    %c120_i32 = arith.constant 120 : i32
    %60 = tpu.dynamic_rotate %19 by %c120_i32 dim 0 : vector<128x96xf32>, i32 -> vector<128x96xf32>
    %c7 = arith.constant 7 : index
    %c0_26 = arith.constant 0 : index
    %c0_27 = arith.constant 0 : index
    %61 = vector.load %arg3[%c7, %c0_26, %c0_27] : memref<9x128x1xf32, #tpu.memory_space<vmem>>, vector<1x128x1xf32>
    %62 = vector.shape_cast %61 : vector<1x128x1xf32> to vector<128x1xf32>
    %63 = vector.broadcast %62 : vector<128x1xf32> to vector<128x96xf32>
    %64 = arith.mulf %60, %63 : vector<128x96xf32>
    %65 = arith.addf %59, %64 : vector<128x96xf32>
    %c119_i32 = arith.constant 119 : i32
    %66 = tpu.dynamic_rotate %19 by %c119_i32 dim 0 : vector<128x96xf32>, i32 -> vector<128x96xf32>
    %c8 = arith.constant 8 : index
    %c0_28 = arith.constant 0 : index
    %c0_29 = arith.constant 0 : index
    %67 = vector.load %arg3[%c8, %c0_28, %c0_29] : memref<9x128x1xf32, #tpu.memory_space<vmem>>, vector<1x128x1xf32>
    %68 = vector.shape_cast %67 : vector<1x128x1xf32> to vector<128x1xf32>
    %69 = vector.broadcast %68 : vector<128x1xf32> to vector<128x96xf32>
    %70 = arith.mulf %66, %69 : vector<128x96xf32>
    %71 = arith.addf %65, %70 : vector<128x96xf32>
    %cst_30 = arith.constant 0.000000e+00 : f32
    %72 = vector.broadcast %cst_30 : f32 to vector<128x96xf32>
    %73 = arith.maximumf %71, %72 : vector<128x96xf32>
    %c9_i32_31 = arith.constant 9 : i32
    %74 = tpu.dynamic_rotate %15 by %c9_i32_31 dim 0 : vector<128x64xf32>, i32 -> vector<128x64xf32>
    %c0_32 = arith.constant 0 : index
    %c0_33 = arith.constant 0 : index
    %c0_34 = arith.constant 0 : index
    %75 = vector.load %arg2[%c0_32, %c0_33, %c0_34] : memref<9x128x1xf32, #tpu.memory_space<vmem>>, vector<1x128x1xf32>
    %76 = vector.shape_cast %75 : vector<1x128x1xf32> to vector<128x1xf32>
    %77 = vector.broadcast %76 : vector<128x1xf32> to vector<128x64xf32>
    %78 = arith.mulf %74, %77 : vector<128x64xf32>
    %c8_i32_35 = arith.constant 8 : i32
    %79 = tpu.dynamic_rotate %15 by %c8_i32_35 dim 0 : vector<128x64xf32>, i32 -> vector<128x64xf32>
    %c1_36 = arith.constant 1 : index
    %c0_37 = arith.constant 0 : index
    %c0_38 = arith.constant 0 : index
    %80 = vector.load %arg2[%c1_36, %c0_37, %c0_38] : memref<9x128x1xf32, #tpu.memory_space<vmem>>, vector<1x128x1xf32>
    %81 = vector.shape_cast %80 : vector<1x128x1xf32> to vector<128x1xf32>
    %82 = vector.broadcast %81 : vector<128x1xf32> to vector<128x64xf32>
    %83 = arith.mulf %79, %82 : vector<128x64xf32>
    %c7_i32_39 = arith.constant 7 : i32
    %84 = tpu.dynamic_rotate %15 by %c7_i32_39 dim 0 : vector<128x64xf32>, i32 -> vector<128x64xf32>
    %c2_40 = arith.constant 2 : index
    %c0_41 = arith.constant 0 : index
    %c0_42 = arith.constant 0 : index
    %85 = vector.load %arg2[%c2_40, %c0_41, %c0_42] : memref<9x128x1xf32, #tpu.memory_space<vmem>>, vector<1x128x1xf32>
    %86 = vector.shape_cast %85 : vector<1x128x1xf32> to vector<128x1xf32>
    %87 = vector.broadcast %86 : vector<128x1xf32> to vector<128x64xf32>
    %88 = arith.mulf %84, %87 : vector<128x64xf32>
    %c1_i32_43 = arith.constant 1 : i32
    %89 = tpu.dynamic_rotate %15 by %c1_i32_43 dim 0 : vector<128x64xf32>, i32 -> vector<128x64xf32>
    %c3_44 = arith.constant 3 : index
    %c0_45 = arith.constant 0 : index
    %c0_46 = arith.constant 0 : index
    %90 = vector.load %arg2[%c3_44, %c0_45, %c0_46] : memref<9x128x1xf32, #tpu.memory_space<vmem>>, vector<1x128x1xf32>
    %91 = vector.shape_cast %90 : vector<1x128x1xf32> to vector<128x1xf32>
    %92 = vector.broadcast %91 : vector<128x1xf32> to vector<128x64xf32>
    %93 = arith.mulf %89, %92 : vector<128x64xf32>
    %c127_i32_47 = arith.constant 127 : i32
    %94 = tpu.dynamic_rotate %15 by %c127_i32_47 dim 0 : vector<128x64xf32>, i32 -> vector<128x64xf32>
    %c5_48 = arith.constant 5 : index
    %c0_49 = arith.constant 0 : index
    %c0_50 = arith.constant 0 : index
    %95 = vector.load %arg2[%c5_48, %c0_49, %c0_50] : memref<9x128x1xf32, #tpu.memory_space<vmem>>, vector<1x128x1xf32>
    %96 = vector.shape_cast %95 : vector<1x128x1xf32> to vector<128x1xf32>
    %97 = vector.broadcast %96 : vector<128x1xf32> to vector<128x64xf32>
    %98 = arith.mulf %94, %97 : vector<128x64xf32>
    %c121_i32_51 = arith.constant 121 : i32
    %99 = tpu.dynamic_rotate %15 by %c121_i32_51 dim 0 : vector<128x64xf32>, i32 -> vector<128x64xf32>
    %c6_52 = arith.constant 6 : index
    %c0_53 = arith.constant 0 : index
    %c0_54 = arith.constant 0 : index
    %100 = vector.load %arg2[%c6_52, %c0_53, %c0_54] : memref<9x128x1xf32, #tpu.memory_space<vmem>>, vector<1x128x1xf32>
    %101 = vector.shape_cast %100 : vector<1x128x1xf32> to vector<128x1xf32>
    %102 = vector.broadcast %101 : vector<128x1xf32> to vector<128x64xf32>
    %103 = arith.mulf %99, %102 : vector<128x64xf32>
    %c120_i32_55 = arith.constant 120 : i32
    %104 = tpu.dynamic_rotate %15 by %c120_i32_55 dim 0 : vector<128x64xf32>, i32 -> vector<128x64xf32>
    %c7_56 = arith.constant 7 : index
    %c0_57 = arith.constant 0 : index
    %c0_58 = arith.constant 0 : index
    %105 = vector.load %arg2[%c7_56, %c0_57, %c0_58] : memref<9x128x1xf32, #tpu.memory_space<vmem>>, vector<1x128x1xf32>
    %106 = vector.shape_cast %105 : vector<1x128x1xf32> to vector<128x1xf32>
    %107 = vector.broadcast %106 : vector<128x1xf32> to vector<128x64xf32>
    %108 = arith.mulf %104, %107 : vector<128x64xf32>
    %c119_i32_59 = arith.constant 119 : i32
    %109 = tpu.dynamic_rotate %15 by %c119_i32_59 dim 0 : vector<128x64xf32>, i32 -> vector<128x64xf32>
    %c8_60 = arith.constant 8 : index
    %c0_61 = arith.constant 0 : index
    %c0_62 = arith.constant 0 : index
    %110 = vector.load %arg2[%c8_60, %c0_61, %c0_62] : memref<9x128x1xf32, #tpu.memory_space<vmem>>, vector<1x128x1xf32>
    %111 = vector.shape_cast %110 : vector<1x128x1xf32> to vector<128x1xf32>
    %112 = vector.broadcast %111 : vector<128x1xf32> to vector<128x64xf32>
    %113 = arith.mulf %109, %112 : vector<128x64xf32>
    %114 = tpu.concatenate %78, %83, %88, %93, %15, %98, %103, %108, %113 in 1 : vector<128x64xf32>, vector<128x64xf32>, vector<128x64xf32>, vector<128x64xf32>, vector<128x64xf32>, vector<128x64xf32>, vector<128x64xf32>, vector<128x64xf32>, vector<128x64xf32> -> vector<128x576xf32>
    %115 = arith.truncf %114 : vector<128x576xf32> to vector<128x576xbf16>
    %c0_63 = arith.constant 0 : index
    %c0_64 = arith.constant 0 : index
    %116 = vector.load %arg7[%c0_63, %c0_64] : memref<576x96xbf16, #tpu.memory_space<vmem>>, vector<576x96xbf16>
    %cst_65 = arith.constant dense<0.000000e+00> : vector<128x96xf32>
    %117 = tpu.matmul %115, %116, %cst_65 {dimension_numbers = #tpu.dot_dimension_numbers<[1], [0], [0], [1], [0, 0, 1, 1], [], []>} : vector<128x576xbf16>, vector<576x96xbf16>, vector<128x96xf32> -> vector<128x96xf32>
    %c0_66 = arith.constant 0 : index
    %c0_67 = arith.constant 0 : index
    %118 = vector.load %arg8[%c0_66, %c0_67] : memref<1x96xf32, #tpu.memory_space<vmem>>, vector<1x96xf32>
    %119 = vector.broadcast %118 : vector<1x96xf32> to vector<128x96xf32>
    %120 = arith.mulf %117, %119 : vector<128x96xf32>
    %c0_68 = arith.constant 0 : index
    %c0_69 = arith.constant 0 : index
    %121 = vector.load %arg9[%c0_68, %c0_69] : memref<1x96xf32, #tpu.memory_space<vmem>>, vector<1x96xf32>
    %122 = vector.broadcast %121 : vector<1x96xf32> to vector<128x96xf32>
    %123 = arith.addf %120, %122 : vector<128x96xf32>
    %cst_70 = arith.constant 0.000000e+00 : f32
    %124 = vector.broadcast %cst_70 : f32 to vector<128x96xf32>
    %125 = arith.maximumf %123, %124 : vector<128x96xf32>
    %c9_i32_71 = arith.constant 9 : i32
    %126 = tpu.dynamic_rotate %18 by %c9_i32_71 dim 0 : vector<128x64xf32>, i32 -> vector<128x64xf32>
    %c0_72 = arith.constant 0 : index
    %c0_73 = arith.constant 0 : index
    %c0_74 = arith.constant 0 : index
    %127 = vector.load %arg2[%c0_72, %c0_73, %c0_74] : memref<9x128x1xf32, #tpu.memory_space<vmem>>, vector<1x128x1xf32>
    %128 = vector.shape_cast %127 : vector<1x128x1xf32> to vector<128x1xf32>
    %129 = vector.broadcast %128 : vector<128x1xf32> to vector<128x64xf32>
    %130 = arith.mulf %126, %129 : vector<128x64xf32>
    %c8_i32_75 = arith.constant 8 : i32
    %131 = tpu.dynamic_rotate %18 by %c8_i32_75 dim 0 : vector<128x64xf32>, i32 -> vector<128x64xf32>
    %c1_76 = arith.constant 1 : index
    %c0_77 = arith.constant 0 : index
    %c0_78 = arith.constant 0 : index
    %132 = vector.load %arg2[%c1_76, %c0_77, %c0_78] : memref<9x128x1xf32, #tpu.memory_space<vmem>>, vector<1x128x1xf32>
    %133 = vector.shape_cast %132 : vector<1x128x1xf32> to vector<128x1xf32>
    %134 = vector.broadcast %133 : vector<128x1xf32> to vector<128x64xf32>
    %135 = arith.mulf %131, %134 : vector<128x64xf32>
    %c7_i32_79 = arith.constant 7 : i32
    %136 = tpu.dynamic_rotate %18 by %c7_i32_79 dim 0 : vector<128x64xf32>, i32 -> vector<128x64xf32>
    %c2_80 = arith.constant 2 : index
    %c0_81 = arith.constant 0 : index
    %c0_82 = arith.constant 0 : index
    %137 = vector.load %arg2[%c2_80, %c0_81, %c0_82] : memref<9x128x1xf32, #tpu.memory_space<vmem>>, vector<1x128x1xf32>
    %138 = vector.shape_cast %137 : vector<1x128x1xf32> to vector<128x1xf32>
    %139 = vector.broadcast %138 : vector<128x1xf32> to vector<128x64xf32>
    %140 = arith.mulf %136, %139 : vector<128x64xf32>
    %c1_i32_83 = arith.constant 1 : i32
    %141 = tpu.dynamic_rotate %18 by %c1_i32_83 dim 0 : vector<128x64xf32>, i32 -> vector<128x64xf32>
    %c3_84 = arith.constant 3 : index
    %c0_85 = arith.constant 0 : index
    %c0_86 = arith.constant 0 : index
    %142 = vector.load %arg2[%c3_84, %c0_85, %c0_86] : memref<9x128x1xf32, #tpu.memory_space<vmem>>, vector<1x128x1xf32>
    %143 = vector.shape_cast %142 : vector<1x128x1xf32> to vector<128x1xf32>
    %144 = vector.broadcast %143 : vector<128x1xf32> to vector<128x64xf32>
    %145 = arith.mulf %141, %144 : vector<128x64xf32>
    %c127_i32_87 = arith.constant 127 : i32
    %146 = tpu.dynamic_rotate %18 by %c127_i32_87 dim 0 : vector<128x64xf32>, i32 -> vector<128x64xf32>
    %c5_88 = arith.constant 5 : index
    %c0_89 = arith.constant 0 : index
    %c0_90 = arith.constant 0 : index
    %147 = vector.load %arg2[%c5_88, %c0_89, %c0_90] : memref<9x128x1xf32, #tpu.memory_space<vmem>>, vector<1x128x1xf32>
    %148 = vector.shape_cast %147 : vector<1x128x1xf32> to vector<128x1xf32>
    %149 = vector.broadcast %148 : vector<128x1xf32> to vector<128x64xf32>
    %150 = arith.mulf %146, %149 : vector<128x64xf32>
    %c121_i32_91 = arith.constant 121 : i32
    %151 = tpu.dynamic_rotate %18 by %c121_i32_91 dim 0 : vector<128x64xf32>, i32 -> vector<128x64xf32>
    %c6_92 = arith.constant 6 : index
    %c0_93 = arith.constant 0 : index
    %c0_94 = arith.constant 0 : index
    %152 = vector.load %arg2[%c6_92, %c0_93, %c0_94] : memref<9x128x1xf32, #tpu.memory_space<vmem>>, vector<1x128x1xf32>
    %153 = vector.shape_cast %152 : vector<1x128x1xf32> to vector<128x1xf32>
    %154 = vector.broadcast %153 : vector<128x1xf32> to vector<128x64xf32>
    %155 = arith.mulf %151, %154 : vector<128x64xf32>
    %c120_i32_95 = arith.constant 120 : i32
    %156 = tpu.dynamic_rotate %18 by %c120_i32_95 dim 0 : vector<128x64xf32>, i32 -> vector<128x64xf32>
    %c7_96 = arith.constant 7 : index
    %c0_97 = arith.constant 0 : index
    %c0_98 = arith.constant 0 : index
    %157 = vector.load %arg2[%c7_96, %c0_97, %c0_98] : memref<9x128x1xf32, #tpu.memory_space<vmem>>, vector<1x128x1xf32>
    %158 = vector.shape_cast %157 : vector<1x128x1xf32> to vector<128x1xf32>
    %159 = vector.broadcast %158 : vector<128x1xf32> to vector<128x64xf32>
    %160 = arith.mulf %156, %159 : vector<128x64xf32>
    %c119_i32_99 = arith.constant 119 : i32
    %161 = tpu.dynamic_rotate %18 by %c119_i32_99 dim 0 : vector<128x64xf32>, i32 -> vector<128x64xf32>
    %c8_100 = arith.constant 8 : index
    %c0_101 = arith.constant 0 : index
    %c0_102 = arith.constant 0 : index
    %162 = vector.load %arg2[%c8_100, %c0_101, %c0_102] : memref<9x128x1xf32, #tpu.memory_space<vmem>>, vector<1x128x1xf32>
    %163 = vector.shape_cast %162 : vector<1x128x1xf32> to vector<128x1xf32>
    %164 = vector.broadcast %163 : vector<128x1xf32> to vector<128x64xf32>
    %165 = arith.mulf %161, %164 : vector<128x64xf32>
    %166 = tpu.concatenate %130, %135, %140, %145, %18, %150, %155, %160, %165 in 1 : vector<128x64xf32>, vector<128x64xf32>, vector<128x64xf32>, vector<128x64xf32>, vector<128x64xf32>, vector<128x64xf32>, vector<128x64xf32>, vector<128x64xf32>, vector<128x64xf32> -> vector<128x576xf32>
    %167 = arith.truncf %166 : vector<128x576xf32> to vector<128x576xbf16>
    %c0_103 = arith.constant 0 : index
    %c0_104 = arith.constant 0 : index
    %168 = vector.load %arg10[%c0_103, %c0_104] : memref<576x96xbf16, #tpu.memory_space<vmem>>, vector<576x96xbf16>
    %cst_105 = arith.constant dense<0.000000e+00> : vector<128x96xf32>
    %169 = tpu.matmul %167, %168, %cst_105 {dimension_numbers = #tpu.dot_dimension_numbers<[1], [0], [0], [1], [0, 0, 1, 1], [], []>} : vector<128x576xbf16>, vector<576x96xbf16>, vector<128x96xf32> -> vector<128x96xf32>
    %c0_106 = arith.constant 0 : index
    %c0_107 = arith.constant 0 : index
    %170 = vector.load %arg11[%c0_106, %c0_107] : memref<1x96xf32, #tpu.memory_space<vmem>>, vector<1x96xf32>
    %171 = vector.broadcast %170 : vector<1x96xf32> to vector<128x96xf32>
    %172 = arith.mulf %169, %171 : vector<128x96xf32>
    %c0_108 = arith.constant 0 : index
    %c0_109 = arith.constant 0 : index
    %173 = vector.load %arg12[%c0_108, %c0_109] : memref<1x96xf32, #tpu.memory_space<vmem>>, vector<1x96xf32>
    %174 = vector.broadcast %173 : vector<1x96xf32> to vector<128x96xf32>
    %175 = arith.addf %172, %174 : vector<128x96xf32>
    %cst_110 = arith.constant 0.000000e+00 : f32
    %176 = vector.broadcast %cst_110 : f32 to vector<128x96xf32>
    %177 = arith.maximumf %175, %176 : vector<128x96xf32>
    %c9_i32_111 = arith.constant 9 : i32
    %178 = tpu.dynamic_rotate %177 by %c9_i32_111 dim 0 : vector<128x96xf32>, i32 -> vector<128x96xf32>
    %c0_112 = arith.constant 0 : index
    %c0_113 = arith.constant 0 : index
    %c0_114 = arith.constant 0 : index
    %179 = vector.load %arg2[%c0_112, %c0_113, %c0_114] : memref<9x128x1xf32, #tpu.memory_space<vmem>>, vector<1x128x1xf32>
    %180 = vector.shape_cast %179 : vector<1x128x1xf32> to vector<128x1xf32>
    %181 = vector.broadcast %180 : vector<128x1xf32> to vector<128x96xf32>
    %182 = arith.mulf %178, %181 : vector<128x96xf32>
    %c8_i32_115 = arith.constant 8 : i32
    %183 = tpu.dynamic_rotate %177 by %c8_i32_115 dim 0 : vector<128x96xf32>, i32 -> vector<128x96xf32>
    %c1_116 = arith.constant 1 : index
    %c0_117 = arith.constant 0 : index
    %c0_118 = arith.constant 0 : index
    %184 = vector.load %arg2[%c1_116, %c0_117, %c0_118] : memref<9x128x1xf32, #tpu.memory_space<vmem>>, vector<1x128x1xf32>
    %185 = vector.shape_cast %184 : vector<1x128x1xf32> to vector<128x1xf32>
    %186 = vector.broadcast %185 : vector<128x1xf32> to vector<128x96xf32>
    %187 = arith.mulf %183, %186 : vector<128x96xf32>
    %c7_i32_119 = arith.constant 7 : i32
    %188 = tpu.dynamic_rotate %177 by %c7_i32_119 dim 0 : vector<128x96xf32>, i32 -> vector<128x96xf32>
    %c2_120 = arith.constant 2 : index
    %c0_121 = arith.constant 0 : index
    %c0_122 = arith.constant 0 : index
    %189 = vector.load %arg2[%c2_120, %c0_121, %c0_122] : memref<9x128x1xf32, #tpu.memory_space<vmem>>, vector<1x128x1xf32>
    %190 = vector.shape_cast %189 : vector<1x128x1xf32> to vector<128x1xf32>
    %191 = vector.broadcast %190 : vector<128x1xf32> to vector<128x96xf32>
    %192 = arith.mulf %188, %191 : vector<128x96xf32>
    %c1_i32_123 = arith.constant 1 : i32
    %193 = tpu.dynamic_rotate %177 by %c1_i32_123 dim 0 : vector<128x96xf32>, i32 -> vector<128x96xf32>
    %c3_124 = arith.constant 3 : index
    %c0_125 = arith.constant 0 : index
    %c0_126 = arith.constant 0 : index
    %194 = vector.load %arg2[%c3_124, %c0_125, %c0_126] : memref<9x128x1xf32, #tpu.memory_space<vmem>>, vector<1x128x1xf32>
    %195 = vector.shape_cast %194 : vector<1x128x1xf32> to vector<128x1xf32>
    %196 = vector.broadcast %195 : vector<128x1xf32> to vector<128x96xf32>
    %197 = arith.mulf %193, %196 : vector<128x96xf32>
    %c127_i32_127 = arith.constant 127 : i32
    %198 = tpu.dynamic_rotate %177 by %c127_i32_127 dim 0 : vector<128x96xf32>, i32 -> vector<128x96xf32>
    %c5_128 = arith.constant 5 : index
    %c0_129 = arith.constant 0 : index
    %c0_130 = arith.constant 0 : index
    %199 = vector.load %arg2[%c5_128, %c0_129, %c0_130] : memref<9x128x1xf32, #tpu.memory_space<vmem>>, vector<1x128x1xf32>
    %200 = vector.shape_cast %199 : vector<1x128x1xf32> to vector<128x1xf32>
    %201 = vector.broadcast %200 : vector<128x1xf32> to vector<128x96xf32>
    %202 = arith.mulf %198, %201 : vector<128x96xf32>
    %c121_i32_131 = arith.constant 121 : i32
    %203 = tpu.dynamic_rotate %177 by %c121_i32_131 dim 0 : vector<128x96xf32>, i32 -> vector<128x96xf32>
    %c6_132 = arith.constant 6 : index
    %c0_133 = arith.constant 0 : index
    %c0_134 = arith.constant 0 : index
    %204 = vector.load %arg2[%c6_132, %c0_133, %c0_134] : memref<9x128x1xf32, #tpu.memory_space<vmem>>, vector<1x128x1xf32>
    %205 = vector.shape_cast %204 : vector<1x128x1xf32> to vector<128x1xf32>
    %206 = vector.broadcast %205 : vector<128x1xf32> to vector<128x96xf32>
    %207 = arith.mulf %203, %206 : vector<128x96xf32>
    %c120_i32_135 = arith.constant 120 : i32
    %208 = tpu.dynamic_rotate %177 by %c120_i32_135 dim 0 : vector<128x96xf32>, i32 -> vector<128x96xf32>
    %c7_136 = arith.constant 7 : index
    %c0_137 = arith.constant 0 : index
    %c0_138 = arith.constant 0 : index
    %209 = vector.load %arg2[%c7_136, %c0_137, %c0_138] : memref<9x128x1xf32, #tpu.memory_space<vmem>>, vector<1x128x1xf32>
    %210 = vector.shape_cast %209 : vector<1x128x1xf32> to vector<128x1xf32>
    %211 = vector.broadcast %210 : vector<128x1xf32> to vector<128x96xf32>
    %212 = arith.mulf %208, %211 : vector<128x96xf32>
    %c119_i32_139 = arith.constant 119 : i32
    %213 = tpu.dynamic_rotate %177 by %c119_i32_139 dim 0 : vector<128x96xf32>, i32 -> vector<128x96xf32>
    %c8_140 = arith.constant 8 : index
    %c0_141 = arith.constant 0 : index
    %c0_142 = arith.constant 0 : index
    %214 = vector.load %arg2[%c8_140, %c0_141, %c0_142] : memref<9x128x1xf32, #tpu.memory_space<vmem>>, vector<1x128x1xf32>
    %215 = vector.shape_cast %214 : vector<1x128x1xf32> to vector<128x1xf32>
    %216 = vector.broadcast %215 : vector<128x1xf32> to vector<128x96xf32>
    %217 = arith.mulf %213, %216 : vector<128x96xf32>
    %218 = tpu.concatenate %182, %187, %192, %197, %177, %202, %207, %212, %217 in 1 : vector<128x96xf32>, vector<128x96xf32>, vector<128x96xf32>, vector<128x96xf32>, vector<128x96xf32>, vector<128x96xf32>, vector<128x96xf32>, vector<128x96xf32>, vector<128x96xf32> -> vector<128x864xf32>
    %219 = arith.truncf %218 : vector<128x864xf32> to vector<128x864xbf16>
    %c0_143 = arith.constant 0 : index
    %c0_144 = arith.constant 0 : index
    %220 = vector.load %arg13[%c0_143, %c0_144] : memref<864x96xbf16, #tpu.memory_space<vmem>>, vector<864x96xbf16>
    %cst_145 = arith.constant dense<0.000000e+00> : vector<128x96xf32>
    %221 = tpu.matmul %219, %220, %cst_145 {dimension_numbers = #tpu.dot_dimension_numbers<[1], [0], [0], [1], [0, 0, 1, 1], [], []>} : vector<128x864xbf16>, vector<864x96xbf16>, vector<128x96xf32> -> vector<128x96xf32>
    %c0_146 = arith.constant 0 : index
    %c0_147 = arith.constant 0 : index
    %222 = vector.load %arg14[%c0_146, %c0_147] : memref<1x96xf32, #tpu.memory_space<vmem>>, vector<1x96xf32>
    %223 = vector.broadcast %222 : vector<1x96xf32> to vector<128x96xf32>
    %224 = arith.mulf %221, %223 : vector<128x96xf32>
    %c0_148 = arith.constant 0 : index
    %c0_149 = arith.constant 0 : index
    %225 = vector.load %arg15[%c0_148, %c0_149] : memref<1x96xf32, #tpu.memory_space<vmem>>, vector<1x96xf32>
    %226 = vector.broadcast %225 : vector<1x96xf32> to vector<128x96xf32>
    %227 = arith.addf %224, %226 : vector<128x96xf32>
    %cst_150 = arith.constant 0.000000e+00 : f32
    %228 = vector.broadcast %cst_150 : f32 to vector<128x96xf32>
    %229 = arith.maximumf %227, %228 : vector<128x96xf32>
    %230 = tpu.concatenate %12, %125, %229, %73 in 1 : vector<128x96xf32>, vector<128x96xf32>, vector<128x96xf32>, vector<128x96xf32> -> vector<128x384xf32>
    %231 = vector.shape_cast %230 : vector<128x384xf32> to vector<2x64x384xf32>
    %c0_151 = arith.constant 0 : index
    %c0_152 = arith.constant 0 : index
    %c0_153 = arith.constant 0 : index
    %232 = vector.load %arg16[%c0_151, %c0_152, %c0_153] : memref<2x64x384xf32, #tpu.memory_space<vmem>>, vector<2x64x384xf32>
    tpu.vector_store %arg16[%c0_151, %c0_152, %c0_153], %231 {strides = array<i32>} : memref<2x64x384xf32, #tpu.memory_space<vmem>>, vector<2x64x384xf32>,
    return
  }
  func.func @transform_0(%arg0: i32) -> (i32, i32, i32) {
    %c0_i32 = arith.constant 0 : i32
    %c0_i32_0 = arith.constant 0 : i32
    %c0_i32_1 = arith.constant 0 : i32
    return %arg0, %c0_i32, %c0_i32_0 : i32, i32, i32
  }
  func.func @transform_1(%arg0: i32) -> (i32, i32, i32) {
    %c0_i32 = arith.constant 0 : i32
    %c0_i32_0 = arith.constant 0 : i32
    %c0_i32_1 = arith.constant 0 : i32
    %c0_i32_2 = arith.constant 0 : i32
    return %c0_i32, %c0_i32_0, %c0_i32_1 : i32, i32, i32
  }
  func.func @transform_2(%arg0: i32) -> (i32, i32, i32) {
    %c0_i32 = arith.constant 0 : i32
    %c0_i32_0 = arith.constant 0 : i32
    %c0_i32_1 = arith.constant 0 : i32
    %c0_i32_2 = arith.constant 0 : i32
    return %c0_i32, %c0_i32_0, %c0_i32_1 : i32, i32, i32
  }
  func.func @transform_3(%arg0: i32) -> (i32, i32) {
    %c0_i32 = arith.constant 0 : i32
    %c0_i32_0 = arith.constant 0 : i32
    %c0_i32_1 = arith.constant 0 : i32
    return %c0_i32, %c0_i32_0 : i32, i32
  }
  func.func @transform_4(%arg0: i32) -> (i32, i32) {
    %c0_i32 = arith.constant 0 : i32
    %c0_i32_0 = arith.constant 0 : i32
    %c0_i32_1 = arith.constant 0 : i32
    return %c0_i32, %c0_i32_0 : i32, i32
  }
  func.func @transform_5(%arg0: i32) -> (i32, i32) {
    %c0_i32 = arith.constant 0 : i32
    %c0_i32_0 = arith.constant 0 : i32
    %c0_i32_1 = arith.constant 0 : i32
    return %c0_i32, %c0_i32_0 : i32, i32
  }
  func.func @transform_6(%arg0: i32) -> (i32, i32) {
    %c0_i32 = arith.constant 0 : i32
    %c0_i32_0 = arith.constant 0 : i32
    %c0_i32_1 = arith.constant 0 : i32
    return %c0_i32, %c0_i32_0 : i32, i32
  }
  func.func @transform_7(%arg0: i32) -> (i32, i32) {
    %c0_i32 = arith.constant 0 : i32
    %c0_i32_0 = arith.constant 0 : i32
    %c0_i32_1 = arith.constant 0 : i32
    return %c0_i32, %c0_i32_0 : i32, i32
  }
  func.func @transform_8(%arg0: i32) -> (i32, i32) {
    %c0_i32 = arith.constant 0 : i32
    %c0_i32_0 = arith.constant 0 : i32
    %c0_i32_1 = arith.constant 0 : i32
    return %c0_i32, %c0_i32_0 : i32, i32
  }
  func.func @transform_9(%arg0: i32) -> (i32, i32) {
    %c0_i32 = arith.constant 0 : i32
    %c0_i32_0 = arith.constant 0 : i32
    %c0_i32_1 = arith.constant 0 : i32
    return %c0_i32, %c0_i32_0 : i32, i32
  }
  func.func @transform_10(%arg0: i32) -> (i32, i32) {
    %c0_i32 = arith.constant 0 : i32
    %c0_i32_0 = arith.constant 0 : i32
    %c0_i32_1 = arith.constant 0 : i32
    return %c0_i32, %c0_i32_0 : i32, i32
  }
  func.func @transform_11(%arg0: i32) -> (i32, i32) {
    %c0_i32 = arith.constant 0 : i32
    %c0_i32_0 = arith.constant 0 : i32
    %c0_i32_1 = arith.constant 0 : i32
    return %c0_i32, %c0_i32_0 : i32, i32
  }
  func.func @transform_12(%arg0: i32) -> (i32, i32) {
    %c0_i32 = arith.constant 0 : i32
    %c0_i32_0 = arith.constant 0 : i32
    %c0_i32_1 = arith.constant 0 : i32
    return %c0_i32, %c0_i32_0 : i32, i32
  }
  func.func @transform_13(%arg0: i32) -> (i32, i32) {
    %c0_i32 = arith.constant 0 : i32
    %c0_i32_0 = arith.constant 0 : i32
    %c0_i32_1 = arith.constant 0 : i32
    return %c0_i32, %c0_i32_0 : i32, i32
  }
  func.func @transform_14(%arg0: i32) -> (i32, i32) {
    %c0_i32 = arith.constant 0 : i32
    %c0_i32_0 = arith.constant 0 : i32
    %c0_i32_1 = arith.constant 0 : i32
    return %c0_i32, %c0_i32_0 : i32, i32
  }
  func.func @transform_15(%arg0: i32) -> (i32, i32, i32) {
    %c0_i32 = arith.constant 0 : i32
    %c0_i32_0 = arith.constant 0 : i32
    %c0_i32_1 = arith.constant 0 : i32
    return %arg0, %c0_i32, %c0_i32_0 : i32, i32, i32
  }
}

</mosaic_0001>

<bundles_post_ra>
// kernel: inception_a_forward.1
= control target key start
LH: loop header
LB: loop body
LE: loop exit
PB: predicated region body
PF: predicated region fallthrough
CT: control target
= control target key end

     0   :  { %v9944_v3 = vmov 0   ;;  %s17204_s0 = inlined_call_operand.vmem [shape: bf16[2,64,384], index: 0, kind: input, shape index: {}]   ;;  %s17205_s1 = inlined_call_operand.vmem [shape: f32[9,128,1], index: 1, kind: input, shape index: {}]   ;;  %s17206_s2 = inlined_call_operand.vmem [shape: f32[9,128,1], index: 2, kind: input, shape index: {}]   ;;  %s17207_s3 = inlined_call_operand.vmem [shape: bf16[384,320], index: 3, kind: input, shape index: {}]   ;;  %s17208_s4 = inlined_call_operand.vmem [shape: f32[1,320], index: 4, kind: input, shape index: {}]   ;;  %s17209_s5 = inlined_call_operand.vmem [shape: f32[1,320], index: 5, kind: input, shape index: {}]   ;;  %s17210_s6 = inlined_call_operand.vmem [shape: bf16[576,96], index: 6, kind: input, shape index: {}]   ;;  %s17211_s7 = inlined_call_operand.vmem [shape: f32[1,96], index: 7, kind: input, shape index: {}]   ;;  %s17212_s8 = inlined_call_operand.vmem [shape: f32[1,96], index: 8, kind: input, shape index: {}]   ;;  %s17213_s9 = inlined_call_operand.vmem [shape: bf16[576,96], index: 9, kind: input, shape index: {}]   ;;  %s17214_s10 = inlined_call_operand.vmem [shape: f32[1,96], index: 10, kind: input, shape index: {}]   ;;  %s17215_s11 = inlined_call_operand.vmem [shape: f32[1,96], index: 11, kind: input, shape index: {}]   ;;  %s17216_s12 = inlined_call_operand.vmem [shape: bf16[864,96], index: 12, kind: input, shape index: {}]   ;;  %s17217_s13 = inlined_call_operand.vmem [shape: f32[1,96], index: 13, kind: input, shape index: {}]   ;;  %s17218_s14 = inlined_call_operand.vmem [shape: f32[1,96], index: 14, kind: input, shape index: {}]   ;;  %s17219_s15 = inlined_call_operand.hbm [shape: f32[2,64,384], index: 15, kind: output, shape index: {}]  }
   0x1   :  { %v1443_v0 = vld [vmem:[%s17206_s2 + $0x10] sm:$0xff]  ;;  %v1442_v1 = vld [vmem:[%s17206_s2 + $0x8] sm:$0xff]  ;;  %v1441_v2 = vld [vmem:[%s17206_s2] sm:$0xff]  ;;  %9349 = vset.pattern.permute.xlu1 %v9944_v3  ;;  %9348 = vset.pattern.permute.xlu0 %v9944_v3 }
   0x2   :  { %v8132_v4 = vld [vmem:[%s17207_s3 + $0xa8] sm:$0xf]  ;;  %v9148_v5 = vld [vmem:[%s17207_s3 + $0xb0] sm:$0xf0]  ;;  %9347 = vset.pattern.permute.xlu2 %v9944_v3  ;;  %1469 = vperm.xlu1 %9349, %v1443_v0   ;;  %v8120_v9 = vld [vmem:[%s17207_s3 + $0x90] sm:$0xf] }
   0x3   :  { %v8228_v6 = vld [vmem:[%s17207_s3 + $0x168] sm:$0xf]  ;;  %v8133_v7 = vor.u32 %v9148_v5, %v8132_v4  ;;  %v9172_v8 = vld [vmem:[%s17207_s3 + $0x170] sm:$0xf0]  ;;  %v9145_v10 = vld [vmem:[%s17207_s3 + $0x98] sm:$0xf0]  ;;  %1464 = vperm.xlu0 %9348, %v1442_v1   ;;  %1459 = vperm.xlu2 %9347, %v1441_v2  }
   0x4   :  { %v8229_v11 = vor.u32 %v9172_v8, %v8228_v6  ;;  %v8216_v12 = vld [vmem:[%s17207_s3 + $0x150] sm:$0xf]  ;;  %v9169_v13 = vld [vmem:[%s17207_s3 + $0x158] sm:$0xf0]  ;;  %v8121_v14 = vor.u32 %v9145_v10, %v8120_v9  ;;  %v8108_v16 = vld [vmem:[%s17207_s3 + $0x78] sm:$0xf] }
   0x5   :  { %9324 = vmatpush.bf16.msra.mxu2 %v8133_v7  ;;  %692 = vmatpush.bf16.msra.mxu0 %v8133_v7  ;;  %v8217_v15 = vor.u32 %v9169_v13, %v8216_v12  ;;  %v9142_v17 = vld [vmem:[%s17207_s3 + $0x80] sm:$0xf0]  ;;  %v8204_v18 = vld [vmem:[%s17207_s3 + $0x138] sm:$0xf]  ;;  %v1447_v21 = vld [vmem:[%s17206_s2 + $0x30] sm:$0xff] }
   0x6   :  { %9332 = vmatpush.bf16.msra.mxu3 %v8229_v11  ;;  %741 = vmatpush.bf16.msra.mxu1 %v8229_v11  ;;  %v9166_v19 = vld [vmem:[%s17207_s3 + $0x140] sm:$0xf0]  ;;  %v1444_v22 = vld [vmem:[%s17206_s2 + $0x18] sm:$0xff]  ;;  %v8109_v23 = vor.u32 %v9142_v17, %v8108_v16  ;;  %v8096_v25 = vld [vmem:[%s17207_s3 + $0x60] sm:$0xf] }
   0x7   :  { %v1445_v20 = vld [vmem:[%s17206_s2 + $0x20] sm:$0xff]  ;;  %v8205_v24 = vor.u32 %v9166_v19, %v8204_v18  ;;  %v9139_v26 = vld [vmem:[%s17207_s3 + $0x68] sm:$0xf0]  ;;  %v8084_v31 = vld [vmem:[%s17207_s3 + $0x48] sm:$0xf] }
   0x8   :  { %v8192_v27 = vld [vmem:[%s17207_s3 + $0x120] sm:$0xf]  ;;  %v9163_v28 = vld [vmem:[%s17207_s3 + $0x128] sm:$0xf0]  ;;  %v8097_v29 = vor.u32 %v9139_v26, %v8096_v25  ;;  %v9136_v32 = vld [vmem:[%s17207_s3 + $0x50] sm:$0xf0] }
   0x9   :  { %9325 = vmatpush.bf16.msra.mxu2 %v8121_v14  ;;  %693 = vmatpush.bf16.msra.mxu0 %v8121_v14  ;;  %v8193_v30 = vor.u32 %v9163_v28, %v8192_v27  ;;  %v8180_v33 = vld [vmem:[%s17207_s3 + $0x108] sm:$0xf]  ;;  %v9160_v34 = vld [vmem:[%s17207_s3 + $0x110] sm:$0xf0]  ;;  %v1448_v35 = vld [vmem:[%s17206_s2 + $0x38] sm:$0xff]  ;;  %v8085_v38 = vor.u32 %v9136_v32, %v8084_v31 }
   0xa   :  { %9333 = vmatpush.bf16.msra.mxu3 %v8217_v15  ;;  %742 = vmatpush.bf16.msra.mxu1 %v8217_v15  ;;  %v1450_v36 = vld [vmem:[%s17206_s2 + $0x48] sm:$0xff]  ;;  %v8181_v39 = vor.u32 %v9160_v34, %v8180_v33  ;;  %v8072_v40 = vld [vmem:[%s17207_s3 + $0x30] sm:$0xf]  ;;  %v9133_v41 = vld [vmem:[%s17207_s3 + $0x38] sm:$0xf0] }
   0xb   :  { %1479 = vperm.xlu1 %9349, %v1445_v20   ;;  %1489 = vperm.xlu0 %9348, %v1447_v21   ;;  %v1446_v37 = vld [vmem:[%s17206_s2 + $0x28] sm:$0xff]  ;;  %v8168_v42 = vld [vmem:[%s17207_s3 + $0xf0] sm:$0xf]  ;;  %v9157_v43 = vld [vmem:[%s17207_s3 + $0xf8] sm:$0xf0]  ;;  %v8073_v44 = vor.u32 %v9133_v41, %v8072_v40 }
   0xc   :  { %1474 = vperm.xlu2 %9347, %v1444_v22   ;;  %v8169_v45 = vor.u32 %v9157_v43, %v8168_v42  ;;  %v1451_v46 = vld [vmem:[%s17206_s2 + $0x50] sm:$0xff]  ;;  %v8060_v47 = vld [vmem:[%s17207_s3 + $0x18] sm:$0xf]  ;;  %v9130_v48 = vld [vmem:[%s17207_s3 + $0x20] sm:$0xf0] }
   0xd   :  { %9326 = vmatpush.bf16.msra.mxu2 %v8109_v23  ;;  %694 = vmatpush.bf16.msra.mxu0 %v8109_v23  ;;  %v1453_v49 = vld [vmem:[%s17206_s2 + $0x60] sm:$0xff]  ;;  %v8156_v51 = vld [vmem:[%s17207_s3 + $0xd8] sm:$0xf]  ;;  %v8061_v53 = vor.u32 %v9130_v48, %v8060_v47 }
   0xe   :  { %9334 = vmatpush.bf16.msra.mxu3 %v8205_v24  ;;  %743 = vmatpush.bf16.msra.mxu1 %v8205_v24  ;;  %v1449_v50 = vld [vmem:[%s17206_s2 + $0x40] sm:$0xff] }
   0xf   :  { %v9154_v52 = vld [vmem:[%s17207_s3 + $0xe0] sm:$0xf0] }
  0x11   :  { %9327 = vmatpush.bf16.msra.mxu2 %v8097_v29  ;;  %695 = vmatpush.bf16.msra.mxu0 %v8097_v29 }
  0x12   :  { %9335 = vmatpush.bf16.msra.mxu3 %v8193_v30  ;;  %744 = vmatpush.bf16.msra.mxu1 %v8193_v30 }
  0x13   :  { %1494 = vperm.xlu1 %9349, %v1448_v35   ;;  %1504 = vperm.xlu0 %9348, %v1450_v36  }
  0x14   :  { %1484 = vperm.xlu2 %9347, %v1446_v37  }
  0x15   :  { %9328 = vmatpush.bf16.msra.mxu2 %v8085_v38  ;;  %696 = vmatpush.bf16.msra.mxu0 %v8085_v38 }
  0x16   :  { %9336 = vmatpush.bf16.msra.mxu3 %v8181_v39  ;;  %745 = vmatpush.bf16.msra.mxu1 %v8181_v39 }
  0x19   :  { %9329 = vmatpush.bf16.msra.mxu2 %v8073_v44  ;;  %697 = vmatpush.bf16.msra.mxu0 %v8073_v44 }
  0x1a   :  { %20 = vsyncpa [#allocation3], 0  ;;  %9337 = vmatpush.bf16.msra.mxu3 %v8169_v45  ;;  %v8157_v54 = vor.u32 %v9154_v52, %v8156_v51  ;;  %v8048_v55 = vld [vmem:[%s17207_s3] sm:$0xf]  ;;  %v9127_v56 = vld [vmem:[%s17207_s3 + $0x8] sm:$0xf0]  ;;  %746 = vmatpush.bf16.msra.mxu1 %v8169_v45 }
  0x1b   :  { %1509 = vperm.xlu1 %9349, %v1451_v46   ;;  %v8144_v57 = vld [vmem:[%s17207_s3 + $0xc0] sm:$0xf]  ;;  %v9151_v58 = vld [vmem:[%s17207_s3 + $0xc8] sm:$0xf0]  ;;  %1519 = vperm.xlu0 %9348, %v1453_v49   ;;  %v8324_v59 = vld [vmem:[%s17207_s3 + $0x228] sm:$0xf]  ;;  %v8049_v61 = vor.u32 %v9127_v56, %v8048_v55 }
  0x1c   :  { %1499 = vperm.xlu2 %9347, %v1449_v50   ;;  %v9196_v60 = vld [vmem:[%s17207_s3 + $0x230] sm:$0xf0]  ;;  %v8000_v62 = vld [vmem:[%s17204_s0 + $0x60] sm:$0xf]  ;;  %v9115_v63 = vld [vmem:[%s17204_s0 + $0x68] sm:$0xf0]  ;;  %v8145_v0 = vor.u32 %v9151_v58, %v8144_v57 }
  0x1d   :  { %9330 = vmatpush.bf16.msra.mxu2 %v8061_v53  ;;  %698 = vmatpush.bf16.msra.mxu0 %v8061_v53  ;;  %v9114_v1 = vld [vmem:[%s17204_s0 + $0x64] sm:$0xf]  ;;  %v8002_v2 = vld [vmem:[%s17204_s0 + $0x6c] sm:$0xf0]  ;;  %v7952_v3 = vld [vmem:[%s17204_s0] sm:$0xf]  ;;  %v8325_v7 = vor.u32 %v9196_v60, %v8324_v59  ;;  %v10208_v13 = vor.u32 %v9115_v63, %v8000_v62 }
  0x1e   :  { %9338 = vmatpush.bf16.msra.mxu3 %v8157_v54  ;;  %747 = vmatpush.bf16.msra.mxu1 %v8157_v54  ;;  %v9103_v4 = vld [vmem:[%s17204_s0 + $0x8] sm:$0xf0]  ;;  %v9102_v5 = vld [vmem:[%s17204_s0 + $0x4] sm:$0xf]  ;;  %v7954_v6 = vld [vmem:[%s17204_s0 + $0xc] sm:$0xf0]  ;;  %v10210_v14 = vor.u32 %v9114_v1, %v8002_v2 }
  0x1f   :  { %v1454_v8 = vld [vmem:[%s17206_s2 + $0x68] sm:$0xff]  ;;  %v8134_v10 = vld [vmem:[%s17207_s3 + $0xb4] sm:$0xf0]  ;;  %v10212_v15 = vor.u32 %v9103_v4, %v7952_v3  ;;  %v10214_v16 = vor.u32 %v9102_v5, %v7954_v6  ;;  %v8312_v18 = vld [vmem:[%s17207_s3 + $0x210] sm:$0xf]  ;;  %s9945_s22 = smov 32  }
  0x20   :  { %v9147_v9 = vld [vmem:[%s17207_s3 + $0xac] sm:$0xf]  ;;  %v1456_v11 = vld [vmem:[%s17206_s2 + $0x78] sm:$0xff]  ;;  %v9144_v20 = vld [vmem:[%s17207_s3 + $0x94] sm:$0xf]  ;;  %vm1373_vm0 = vcmask 261120  }
  0x21   :  { %9331 = vmatpush.bf16.msra.mxu2 %v8049_v61  ;;  %v1452_v12 = vld [vmem:[%s17206_s2 + $0x58] sm:$0xff]  ;;  %699 = vmatpush.bf16.msra.mxu0 %v8049_v61  ;;  %v8137_v17 = vor.u32 %v9147_v9, %v8134_v10  ;;  %v8122_v22 = vld [vmem:[%s17207_s3 + $0x9c] sm:$0xf0]  ;;  %v9171_v23 = vld [vmem:[%s17207_s3 + $0x16c] sm:$0xf]  ;;  %s9946_s18 = smov 64  }
  0x22   :  { %9339 = vmatpush.bf16.msra.mxu3 %v8145_v0  ;;  %748 = vmatpush.bf16.msra.mxu1 %v8145_v0  ;;  %v9193_v19 = vld [vmem:[%s17207_s3 + $0x218] sm:$0xf0]  ;;  %v8230_v24 = vld [vmem:[%s17207_s3 + $0x174] sm:$0xf0]  ;;  %v8125_v25 = vor.u32 %v9144_v20, %v8122_v22  ;;  %v9195_v27 = vld [vmem:[%s17207_s3 + $0x22c] sm:$0xf] }
  0x23   :  { %1524 = vperm.xlu1 %9349, %v1454_v8   ;;  %1534 = vperm.xlu0 %9348, %v1456_v11   ;;  %v8313_v21 = vor.u32 %v9193_v19, %v8312_v18  ;;  %v8233_v26 = vor.u32 %v9171_v23, %v8230_v24  ;;  %v8334_v28 = vld [vmem:[%s17206_s2 + $0x80] sm:$0xff]  ;;  %v8326_v29 = vld [vmem:[%s17207_s3 + $0x234] sm:$0xf0]  ;;  %v8336_v30 = vld [vmem:[%s17206_s2 + $0x90] sm:$0xff]  ;;  %s9947_s24 = smov 96   ;;  %vm4129_vm3 = vcmask 523264  }
  0x24   :  { %1514 = vperm.xlu2 %9347, %v1452_v12   ;;  %720 = vmatmul.bf16.vlgmr.msra.gmra.mxu2 %v10208_v13  ;;  %v1455_v31 = vld [vmem:[%s17206_s2 + $0x70] sm:$0xff]  ;;  %v8329_v32 = vor.u32 %v9195_v27, %v8326_v29  ;;  %v8300_v33 = vld [vmem:[%s17207_s3 + $0x1f8] sm:$0xf]  ;;  %v9190_v34 = vld [vmem:[%s17207_s3 + $0x200] sm:$0xf0]  ;;  %vm6636_vm4 = vcmask 785408  }
  0x25   :  { %790 = vmatpush.bf16.msrb.mxu2 %v8325_v7  ;;  %769 = vmatmul.bf16.vlgmr.msra.gmra.mxu3 %v10210_v14  ;;  %v8012_v35 = vld [vmem:[%s17204_s0 + $0x78] sm:$0xf]  ;;  %v9118_v36 = vld [vmem:[%s17204_s0 + $0x80] sm:$0xf0]  ;;  %v9117_v37 = vld [vmem:[%s17204_s0 + $0x7c] sm:$0xf]  ;;  %v8301_v39 = vor.u32 %v9190_v34, %v8300_v33 }
  0x26   :  { %700 = vmatmul.bf16.vlgmr.msra.gmra.mxu0 %v10212_v15  ;;  %749 = vmatmul.bf16.vlgmr.msra.gmra.mxu1 %v10214_v16  ;;  %v8014_v38 = vld [vmem:[%s17204_s0 + $0x84] sm:$0xf0]  ;;  %v9141_v40 = vld [vmem:[%s17207_s3 + $0x7c] sm:$0xf]  ;;  %v7964_v42 = vld [vmem:[%s17204_s0 + $0x18] sm:$0xf]  ;;  %v10328_v0 = vor.u32 %v9118_v36, %v8012_v35 }
  0x27   :  { %839 = vmatpush.bf16.msrb.mxu3 %v8137_v17  ;;  %888 = vmatpush.bf16.msrb.mxu0 %v8233_v26  ;;  %v8110_v41 = vld [vmem:[%s17207_s3 + $0x84] sm:$0xf0]  ;;  %v9106_v43 = vld [vmem:[%s17204_s0 + $0x20] sm:$0xf0]  ;;  %v9105_v44 = vld [vmem:[%s17204_s0 + $0x1c] sm:$0xf]  ;;  %v10330_v1 = vor.u32 %v9117_v37, %v8014_v38 }
  0x28   :  { %937 = vmatpush.bf16.msrb.mxu1 %v8329_v32  ;;  %v8113_v45 = vor.u32 %v9141_v40, %v8110_v41  ;;  %v9168_v46 = vld [vmem:[%s17207_s3 + $0x154] sm:$0xf]  ;;  %v8218_v47 = vld [vmem:[%s17207_s3 + $0x15c] sm:$0xf0]  ;;  %v9187_v50 = vld [vmem:[%s17207_s3 + $0x1e8] sm:$0xf0]  ;;  %v10332_v2 = vor.u32 %v9106_v43, %v7964_v42 }
  0x29   :  { %791 = vmatpush.bf16.msrb.mxu2 %v8313_v21  ;;  %v8288_v48 = vld [vmem:[%s17207_s3 + $0x1e0] sm:$0xf]  ;;  %v8221_v49 = vor.u32 %v9168_v46, %v8218_v47  ;;  %v9138_v51 = vld [vmem:[%s17207_s3 + $0x64] sm:$0xf]  ;;  %v8098_v52 = vld [vmem:[%s17207_s3 + $0x6c] sm:$0xf0] }
  0x2a   :  { %v7966_v53 = vld [vmem:[%s17204_s0 + $0x24] sm:$0xf0]  ;;  %v8289_v54 = vor.u32 %v9187_v50, %v8288_v48  ;;  %v8101_v55 = vor.u32 %v9138_v51, %v8098_v52  ;;  %v9192_v56 = vld [vmem:[%s17207_s3 + $0x214] sm:$0xf]  ;;  %v8314_v57 = vld [vmem:[%s17207_s3 + $0x21c] sm:$0xf0] }
  0x2b   :  { %1572 = vperm.xlu1 %9349, %v8334_v28   ;;  %840 = vmatpush.bf16.msrb.mxu3 %v8125_v25  ;;  %v8337_v58 = vld [vmem:[%s17206_s2 + $0x98] sm:$0xff]  ;;  %v8317_v59 = vor.u32 %v9192_v56, %v8314_v57  ;;  %v8206_v61 = vld [vmem:[%s17207_s3 + $0x144] sm:$0xf0]  ;;  %v10334_v3 = vor.u32 %v9105_v44, %v7966_v53  ;;  %v9184_v6 = vld [vmem:[%s17207_s3 + $0x1d0] sm:$0xf0]  ;;  %s9950_s26 = smov 24  }
  0x2c   :  { %1582 = vperm.xlu0 %9348, %v8336_v30   ;;  %1529 = vperm.xlu2 %9347, %v1455_v31   ;;  %v9165_v60 = vld [vmem:[%s17207_s3 + $0x13c] sm:$0xf]  ;;  %v8339_v62 = vld [vmem:[%s17206_s2 + $0xa8] sm:$0xff]  ;;  %v8086_v9 = vld [vmem:[%s17207_s3 + $0x54] sm:$0xf0] }
  0x2d   :  { %792 = vmatpush.bf16.msrb.mxu2 %v8301_v39  ;;  %889 = vmatpush.bf16.msrb.mxu0 %v8221_v49  ;;  %v8335_v63 = vld [vmem:[%s17206_s2 + $0x88] sm:$0xff]  ;;  %v8209_v4 = vor.u32 %v9165_v60, %v8206_v61  ;;  %v9189_v10 = vld [vmem:[%s17207_s3 + $0x1fc] sm:$0xf]  ;;  %v8340_v12 = vld [vmem:[%s17206_s2 + $0xb0] sm:$0xff] }
  0x2e   :  { %938 = vmatpush.bf16.msrb.mxu1 %v8317_v59  ;;  %v8276_v5 = vld [vmem:[%s17207_s3 + $0x1c8] sm:$0xf]  ;;  %v9135_v7 = vld [vmem:[%s17207_s3 + $0x4c] sm:$0xf]  ;;  %v9162_v19 = vld [vmem:[%s17207_s3 + $0x124] sm:$0xf] }
  0x2f   :  { %841 = vmatpush.bf16.msrb.mxu3 %v8113_v45  ;;  %v8277_v8 = vor.u32 %v9184_v6, %v8276_v5  ;;  %v8302_v11 = vld [vmem:[%s17207_s3 + $0x204] sm:$0xf0]  ;;  %v8089_v17 = vor.u32 %v9135_v7, %v8086_v9  ;;  %v8194_v20 = vld [vmem:[%s17207_s3 + $0x12c] sm:$0xf0]  ;;  %v9181_v23 = vld [vmem:[%s17207_s3 + $0x1b8] sm:$0xf0] }
  0x30   :  { %v8305_v18 = vor.u32 %v9189_v10, %v8302_v11  ;;  %v8264_v21 = vld [vmem:[%s17207_s3 + $0x1b0] sm:$0xf]  ;;  %v8197_v22 = vor.u32 %v9162_v19, %v8194_v20  ;;  %v9132_v24 = vld [vmem:[%s17207_s3 + $0x34] sm:$0xf]  ;;  %v8074_v25 = vld [vmem:[%s17207_s3 + $0x3c] sm:$0xf0] }
  0x31   :  { %793 = vmatpush.bf16.msrb.mxu2 %v8289_v54  ;;  %890 = vmatpush.bf16.msrb.mxu0 %v8209_v4  ;;  %v8342_v26 = vld [vmem:[%s17206_s2 + $0xc0] sm:$0xff]  ;;  %v8290_v28 = vld [vmem:[%s17207_s3 + $0x1ec] sm:$0xf0]  ;;  %v8265_v30 = vor.u32 %v9181_v23, %v8264_v21  ;;  %v8077_v31 = vor.u32 %v9132_v24, %v8074_v25  ;;  %v9159_v32 = vld [vmem:[%s17207_s3 + $0x10c] sm:$0xf] }
  0x32   :  { %939 = vmatpush.bf16.msrb.mxu1 %v8305_v18  ;;  %v9186_v27 = vld [vmem:[%s17207_s3 + $0x1e4] sm:$0xf]  ;;  %v8182_v33 = vld [vmem:[%s17207_s3 + $0x114] sm:$0xf0]  ;;  %v8024_v38 = vld [vmem:[%s17204_s0 + $0x90] sm:$0xf] }
  0x33   :  { %1587 = vperm.xlu1 %9349, %v8337_v58   ;;  %842 = vmatpush.bf16.msrb.mxu3 %v8101_v55  ;;  %v8338_v29 = vld [vmem:[%s17206_s2 + $0xa0] sm:$0xff]  ;;  %v8293_v34 = vor.u32 %v9186_v27, %v8290_v28  ;;  %v8185_v35 = vor.u32 %v9159_v32, %v8182_v33  ;;  %v8252_v36 = vld [vmem:[%s17207_s3 + $0x198] sm:$0xf]  ;;  %v9121_v39 = vld [vmem:[%s17204_s0 + $0x98] sm:$0xf0] }
  0x34   :  { %1597 = vperm.xlu0 %9348, %v8339_v62   ;;  %1577 = vperm.xlu2 %9347, %v8335_v63   ;;  %v9178_v37 = vld [vmem:[%s17207_s3 + $0x1a0] sm:$0xf0]  ;;  %v9120_v40 = vld [vmem:[%s17204_s0 + $0x94] sm:$0xf]  ;;  %v8026_v41 = vld [vmem:[%s17204_s0 + $0x9c] sm:$0xf0]  ;;  %v10469_v4 = vor.u32 %v9121_v39, %v8024_v38 }
  0x35   :  { %725 = vmatmul.bf16.gmra.mxu2 %v10328_v0  ;;  %774 = vmatmul.bf16.gmra.mxu3 %v10330_v1  ;;  %v9129_v42 = vld [vmem:[%s17207_s3 + $0x1c] sm:$0xf]  ;;  %v8062_v43 = vld [vmem:[%s17207_s3 + $0x24] sm:$0xf0]  ;;  %v7976_v44 = vld [vmem:[%s17204_s0 + $0x30] sm:$0xf]  ;;  %v8253_v45 = vor.u32 %v9178_v37, %v8252_v36  ;;  %v10471_v5 = vor.u32 %v9120_v40, %v8026_v41 }
  0x36   :  { %705 = vmatmul.bf16.gmra.mxu0 %v10332_v2  ;;  %754 = vmatmul.bf16.gmra.mxu1 %v10334_v3  ;;  %v8065_v46 = vor.u32 %v9129_v42, %v8062_v43  ;;  %v9183_v47 = vld [vmem:[%s17207_s3 + $0x1cc] sm:$0xf]  ;;  %v8278_v48 = vld [vmem:[%s17207_s3 + $0x1d4] sm:$0xf0]  ;;  %v9156_v49 = vld [vmem:[%s17207_s3 + $0xf4] sm:$0xf] }
  0x37   :  { %794 = vmatpush.bf16.msrb.mxu2 %v8277_v8  ;;  %843 = vmatpush.bf16.msrb.mxu3 %v8089_v17  ;;  %v8343_v50 = vld [vmem:[%s17206_s2 + $0xc8] sm:$0xff]  ;;  %v9109_v51 = vld [vmem:[%s17204_s0 + $0x38] sm:$0xf0]  ;;  %v9108_v52 = vld [vmem:[%s17204_s0 + $0x34] sm:$0xf]  ;;  %v8281_v53 = vor.u32 %v9183_v47, %v8278_v48 }
  0x38   :  { %891 = vmatpush.bf16.msrb.mxu0 %v8197_v22  ;;  %940 = vmatpush.bf16.msrb.mxu1 %v8293_v34  ;;  %v8170_v54 = vld [vmem:[%s17207_s3 + $0xfc] sm:$0xf0]  ;;  %v8345_v55 = vld [vmem:[%s17206_s2 + $0xd8] sm:$0xff]  ;;  %v9175_v60 = vld [vmem:[%s17207_s3 + $0x188] sm:$0xf0]  ;;  %v10482_v9 = vor.u32 %v9109_v51, %v7976_v44 }
  0x39   :  { %v8341_v56 = vld [vmem:[%s17206_s2 + $0xb8] sm:$0xff]  ;;  %v7978_v57 = vld [vmem:[%s17204_s0 + $0x3c] sm:$0xf0]  ;;  %v8173_v58 = vor.u32 %v9156_v49, %v8170_v54  ;;  %v9126_v61 = vld [vmem:[%s17207_s3 + $0x4] sm:$0xf] }
  0x3a   :  { %v8240_v59 = vld [vmem:[%s17207_s3 + $0x180] sm:$0xf]  ;;  %v8050_v62 = vld [vmem:[%s17207_s3 + $0xc] sm:$0xf0]  ;;  %v9180_v63 = vld [vmem:[%s17207_s3 + $0x1b4] sm:$0xf]  ;;  %v10484_v10 = vor.u32 %v9108_v52, %v7978_v57 }
  0x3b   :  { %1602 = vperm.xlu1 %9349, %v8340_v12   ;;  %795 = vmatpush.bf16.msrb.mxu2 %v8265_v30  ;;  %v8266_v6 = vld [vmem:[%s17207_s3 + $0x1bc] sm:$0xf0]  ;;  %v9153_v7 = vld [vmem:[%s17207_s3 + $0xdc] sm:$0xf]  ;;  %v8158_v8 = vld [vmem:[%s17207_s3 + $0xe4] sm:$0xf0]  ;;  %v8241_v11 = vor.u32 %v9175_v60, %v8240_v59  ;;  %v8053_v12 = vor.u32 %v9126_v61, %v8050_v62 }
  0x3c   :  { %1612 = vperm.xlu0 %9348, %v8342_v26   ;;  %1592 = vperm.xlu2 %9347, %v8338_v29   ;;  %v8269_v17 = vor.u32 %v9180_v63, %v8266_v6  ;;  %v8161_v18 = vor.u32 %v9153_v7, %v8158_v8  ;;  %v9177_v19 = vld [vmem:[%s17207_s3 + $0x19c] sm:$0xf]  ;;  %v8254_v20 = vld [vmem:[%s17207_s3 + $0x1a4] sm:$0xf0]  ;;  %v9150_v21 = vld [vmem:[%s17207_s3 + $0xc4] sm:$0xf] }
  0x3d   :  { %844 = vmatpush.bf16.msrb.mxu3 %v8077_v31  ;;  %892 = vmatpush.bf16.msrb.mxu0 %v8185_v35  ;;  %v8146_v22 = vld [vmem:[%s17207_s3 + $0xcc] sm:$0xf0]  ;;  %v8346_v23 = vld [vmem:[%s17206_s2 + $0xe0] sm:$0xff]  ;;  %v8257_v26 = vor.u32 %v9177_v19, %v8254_v20  ;;  %v8036_v30 = vld [vmem:[%s17204_s0 + $0xa8] sm:$0xf] }
  0x3e   :  { %941 = vmatpush.bf16.msrb.mxu1 %v8281_v53  ;;  %v8348_v24 = vld [vmem:[%s17206_s2 + $0xf0] sm:$0xff]  ;;  %v8149_v27 = vor.u32 %v9150_v21, %v8146_v22  ;;  %v9174_v28 = vld [vmem:[%s17207_s3 + $0x184] sm:$0xf]  ;;  %v9123_v33 = vld [vmem:[%s17204_s0 + $0xac] sm:$0xf] }
  0x3f   :  { %796 = vmatpush.bf16.msrb.mxu2 %v8253_v45  ;;  %v8344_v25 = vld [vmem:[%s17206_s2 + $0xd0] sm:$0xff]  ;;  %v8038_v34 = vld [vmem:[%s17204_s0 + $0xb4] sm:$0xf0]  ;;  %v7988_v35 = vld [vmem:[%s17204_s0 + $0x48] sm:$0xf] }
  0x40   :  { %v8242_v29 = vld [vmem:[%s17207_s3 + $0x18c] sm:$0xf0]  ;;  %v9124_v31 = vld [vmem:[%s17204_s0 + $0xb0] sm:$0xf0]  ;;  %v9111_v37 = vld [vmem:[%s17204_s0 + $0x4c] sm:$0xf]  ;;  %v10552_v43 = vor.u32 %v9123_v33, %v8038_v34 }
  0x41   :  { %845 = vmatpush.bf16.msrb.mxu3 %v8065_v46  ;;  %893 = vmatpush.bf16.msrb.mxu0 %v8173_v58  ;;  %v8245_v32 = vor.u32 %v9174_v28, %v8242_v29  ;;  %v9112_v36 = vld [vmem:[%s17204_s0 + $0x50] sm:$0xf0]  ;;  %v7990_v38 = vld [vmem:[%s17204_s0 + $0x54] sm:$0xf0]  ;;  %v8351_v40 = vld [vmem:[%s17206_s2 + $0x108] sm:$0xff]  ;;  %v10550_v42 = vor.u32 %v9124_v31, %v8036_v30 }
  0x42   :  { %942 = vmatpush.bf16.msrb.mxu1 %v8269_v17  ;;  %v8349_v39 = vld [vmem:[%s17206_s2 + $0xf8] sm:$0xff]  ;;  %v8347_v41 = vld [vmem:[%s17206_s2 + $0xe8] sm:$0xff]  ;;  %v10554_v44 = vor.u32 %v9112_v36, %v7988_v35  ;;  %v10556_v45 = vor.u32 %v9111_v37, %v7990_v38  ;;  %v8352_v46 = vld [vmem:[%s17206_s2 + $0x110] sm:$0xff] }
  0x43   :  { %1617 = vperm.xlu1 %9349, %v8343_v50   ;;  %797 = vmatpush.bf16.msrb.mxu2 %v8241_v11  ;;  %v8354_v47 = vld [vmem:[%s17206_s2 + $0x120] sm:$0xff]  ;;  %v7960_v49 = vld [vmem:[%s17204_s0 + $0x8] sm:$0xf]  ;;  %v9104_v50 = vld [vmem:[%s17204_s0 + $0x10] sm:$0xf0] }
  0x44   :  { %1627 = vperm.xlu0 %9348, %v8345_v55   ;;  %1607 = vperm.xlu2 %9347, %v8341_v56   ;;  %v8350_v48 = vld [vmem:[%s17206_s2 + $0x100] sm:$0xff]  ;;  %v8140_v52 = vld [vmem:[%s17207_s3 + $0xb0] sm:$0xf]  ;;  %v9149_v53 = vld [vmem:[%s17207_s3 + $0xb8] sm:$0xf0]  ;;  %v10600_v61 = vor.u32 %v9104_v50, %v7960_v49 }
  0x45   :  { %730 = vmatmul.bf16.gmra.mxu2 %v10469_v4  ;;  %779 = vmatmul.bf16.gmra.mxu3 %v10471_v5  ;;  %v8236_v54 = vld [vmem:[%s17207_s3 + $0x170] sm:$0xf]  ;;  %v8141_v55 = vor.u32 %v9149_v53, %v8140_v52  ;;  %v9173_v56 = vld [vmem:[%s17207_s3 + $0x178] sm:$0xf0]  ;;  %v8355_v57 = vld [vmem:[%s17206_s2 + $0x128] sm:$0xff] }
  0x46   :  { %710 = vmatmul.bf16.gmra.mxu0 %v10482_v9  ;;  %759 = vmatmul.bf16.gmra.mxu1 %v10484_v10  ;;  %v8237_v58 = vor.u32 %v9173_v56, %v8236_v54  ;;  %v8357_v59 = vld [vmem:[%s17206_s2 + $0x138] sm:$0xff]  ;;  %v8332_v63 = vld [vmem:[%s17207_s3 + $0x230] sm:$0xf]  ;;  %v8358_v8 = vld [vmem:[%s17206_s2 + $0x140] sm:$0xff] }
  0x47   :  { %846 = vmatpush.bf16.msrb.mxu3 %v8053_v12  ;;  %894 = vmatpush.bf16.msrb.mxu0 %v8161_v18  ;;  %v8353_v60 = vld [vmem:[%s17206_s2 + $0x118] sm:$0xff]  ;;  %v8360_v11 = vld [vmem:[%s17206_s2 + $0x150] sm:$0xff]  ;;  %v7972_v17 = vld [vmem:[%s17204_s0 + $0x20] sm:$0xf] }
  0x48   :  { %943 = vmatpush.bf16.msrb.mxu1 %v8257_v26  ;;  %986 = vmatpush.bf16.msra.mxu2 %v8141_v55  ;;  %v9197_v6 = vld [vmem:[%s17207_s3 + $0x238] sm:$0xf0]  ;;  %v8356_v12 = vld [vmem:[%s17206_s2 + $0x130] sm:$0xff]  ;;  %v9107_v18 = vld [vmem:[%s17204_s0 + $0x28] sm:$0xf0] }
  0x49   :  { %v8333_v7 = vor.u32 %v9197_v6, %v8332_v63  ;;  %v8128_v20 = vld [vmem:[%s17207_s3 + $0x98] sm:$0xf]  ;;  %v9146_v21 = vld [vmem:[%s17207_s3 + $0xa0] sm:$0xf0]  ;;  %v8359_v28 = vld [vmem:[%s17206_s2 + $0x148] sm:$0xff]  ;;  %v10652_v29 = vor.u32 %v9107_v18, %v7972_v17 }
  0x4a   :  { %v8224_v22 = vld [vmem:[%s17207_s3 + $0x158] sm:$0xf]  ;;  %v9194_v34 = vld [vmem:[%s17207_s3 + $0x220] sm:$0xf0]  ;;  %v8364_v36 = vld [vmem:[%s17206_s2 + $0x170] sm:$0xff] }
  0x4b   :  { %1632 = vperm.xlu1 %9349, %v8346_v23   ;;  %895 = vmatpush.bf16.msrb.mxu0 %v8149_v27  ;;  %v8129_v23 = vor.u32 %v9146_v21, %v8128_v20  ;;  %v8363_v27 = vld [vmem:[%s17206_s2 + $0x168] sm:$0xff]  ;;  %v8320_v33 = vld [vmem:[%s17207_s3 + $0x218] sm:$0xf]  ;;  %v8366_v37 = vld [vmem:[%s17206_s2 + $0x180] sm:$0xff] }
  0x4c   :  { %1642 = vperm.xlu0 %9348, %v8348_v24   ;;  %1622 = vperm.xlu2 %9347, %v8344_v25   ;;  %v9170_v24 = vld [vmem:[%s17207_s3 + $0x160] sm:$0xf0]  ;;  %v8361_v25 = vld [vmem:[%s17206_s2 + $0x158] sm:$0xff]  ;;  %v8321_v35 = vor.u32 %v9194_v34, %v8320_v33  ;;  %v9143_v49 = vld [vmem:[%s17207_s3 + $0x88] sm:$0xf0] }
  0x4d   :  { %944 = vmatpush.bf16.msrb.mxu1 %v8245_v32  ;;  %1035 = vmatpush.bf16.msra.mxu3 %v8237_v58  ;;  %v8225_v26 = vor.u32 %v9170_v24, %v8224_v22  ;;  %v8362_v38 = vld [vmem:[%s17206_s2 + $0x160] sm:$0xff]  ;;  %v9167_v53 = vld [vmem:[%s17207_s3 + $0x148] sm:$0xf0]  ;;  %v8369_v56 = vld [vmem:[%s17206_s2 + $0x198] sm:$0xff] }
  0x4e   :  { %987 = vmatpush.bf16.msra.mxu2 %v8129_v23  ;;  %v8212_v50 = vld [vmem:[%s17207_s3 + $0x140] sm:$0xf]  ;;  %v8367_v54 = vld [vmem:[%s17206_s2 + $0x188] sm:$0xff]  ;;  %v7996_v22 = vld [vmem:[%s17204_s0 + $0x50] sm:$0xf] }
  0x4f   :  { %1084 = vmatpush.bf16.msra.mxu0 %v8333_v7  ;;  %v8213_v55 = vor.u32 %v9167_v53, %v8212_v50  ;;  %v8370_v6 = vld [vmem:[%s17206_s2 + $0x1a0] sm:$0xff]  ;;  %v8372_v7 = vld [vmem:[%s17206_s2 + $0x1b0] sm:$0xff]  ;;  %v9113_v23 = vld [vmem:[%s17204_s0 + $0x58] sm:$0xf0] }
  0x50   :  { %v8373_v24 = vld [vmem:[%s17206_s2 + $0x1b8] sm:$0xff]  ;;  %v9140_v33 = vld [vmem:[%s17207_s3 + $0x70] sm:$0xf0]  ;;  %v8200_v34 = vld [vmem:[%s17207_s3 + $0x128] sm:$0xf] }
  0x51   :  { %1036 = vmatpush.bf16.msra.mxu3 %v8225_v26  ;;  %v8371_v26 = vld [vmem:[%s17206_s2 + $0x1a8] sm:$0xff]  ;;  %v8374_v50 = vld [vmem:[%s17206_s2 + $0x1c0] sm:$0xff]  ;;  %v9188_v53 = vld [vmem:[%s17207_s3 + $0x1f0] sm:$0xf0] }
  0x53   :  { %1647 = vperm.xlu1 %9349, %v8349_v39   ;;  %1085 = vmatpush.bf16.msra.mxu0 %v8321_v35  ;;  %v9164_v35 = vld [vmem:[%s17207_s3 + $0x130] sm:$0xf0] }
  0x54   :  { %1739 = vperm.xlu0 %9348, %v8351_v40   ;;  %1637 = vperm.xlu2 %9347, %v8347_v41   ;;  %v7984_v40 = vld [vmem:[%s17204_s0 + $0x38] sm:$0xf]  ;;  %v9110_v41 = vld [vmem:[%s17204_s0 + $0x40] sm:$0xf0] }
  0x55   :  { %735 = vmatmul.bf16.gmra.mxu2 %v10550_v42  ;;  %784 = vmatmul.bf16.gmra.mxu3 %v10552_v43  ;;  %v10712_v58 = vor.u32 %v9110_v41, %v7984_v40 }
  0x56   :  { %715 = vmatmul.bf16.gmra.mxu0 %v10554_v44  ;;  %764 = vmatmul.bf16.gmra.mxu1 %v10556_v45 }
  0x57   :  { %1037 = vmatpush.bf16.msra.mxu3 %v8213_v55 }
  0x5b   :  { %1744 = vperm.xlu1 %9349, %v8352_v46  }
  0x5c   :  { %1754 = vperm.xlu0 %9348, %v8354_v47   ;;  %1734 = vperm.xlu2 %9347, %v8350_v48   ;;  %v8116_v48 = vld [vmem:[%s17207_s3 + $0x80] sm:$0xf] }
  0x5d   :  { %v10577_v51 = vpop.permute.xlu2 %1459  ;;  %v8117_v52 = vor.u32 %v9143_v49, %v8116_v48  ;;  %v8376_v48 = vld [vmem:[%s17206_s2 + $0x1d0] sm:$0xff]  ;;  %v8378_v49 = vld [vmem:[%s17206_s2 + $0x1e0] sm:$0xff] }
  0x5e   :  { %17701 = vst [vmem:[#allocation5_spill] sm:$0xff] %v10577_v51 }
  0x5f   :  { %988 = vmatpush.bf16.msra.mxu2 %v8117_v52  ;;  %v8296_v52 = vld [vmem:[%s17207_s3 + $0x1e8] sm:$0xf] }
  0x63   :  { %1759 = vperm.xlu1 %9349, %v8355_v57   ;;  %v8365_v57 = vld [vmem:[%s17206_s2 + $0x178] sm:$0xff] }
  0x64   :  { %1769 = vperm.xlu0 %9348, %v8357_v59   ;;  %1749 = vperm.xlu2 %9347, %v8353_v60  }
  0x65   :  { %798 = vmatmul.bf16.vlgmr.msrb.gmra.mxu2 %v10600_v61  ;;  %847 = vmatmul.bf16.vlgmr.msrb.gmra.mxu3 %v10212_v15 }
  0x66   :  { %v10604_v62 = vpop.permute.xlu2 %1474  ;;  %896 = vmatmul.bf16.vlgmr.msrb.gmra.mxu0 %v10214_v16  ;;  %945 = vmatmul.bf16.vlgmr.msrb.gmra.mxu1 %v10600_v61 }
  0x67   :  { %17702 = vst [vmem:[#allocation6_spill] sm:$0xff] %v10604_v62 }
  0x6b   :  { %1774 = vperm.xlu1 %9349, %v8358_v8   ;;  %v8368_v8 = vld [vmem:[%s17206_s2 + $0x190] sm:$0xff] }
  0x6c   :  { %1784 = vperm.xlu0 %9348, %v8360_v11   ;;  %1764 = vperm.xlu2 %9347, %v8356_v12   ;;  %v8308_v11 = vld [vmem:[%s17207_s3 + $0x200] sm:$0xf]  ;;  %v9191_v12 = vld [vmem:[%s17207_s3 + $0x208] sm:$0xf0] }
  0x6d   :  { %v8309_v17 = vor.u32 %v9191_v12, %v8308_v11  ;;  %v8381_v11 = vld [vmem:[%s17206_s2 + $0x1f8] sm:$0xff] }
  0x6e   :  { %v10629_v19 = vpop.permute.xlu2 %1484  ;;  %v8377_v12 = vld [vmem:[%s17206_s2 + $0x1d8] sm:$0xff] }
  0x6f   :  { %17703 = vst [vmem:[#allocation7_spill] sm:$0xff] %v10629_v19  ;;  %1086 = vmatpush.bf16.msra.mxu0 %v8309_v17 }
  0x73   :  { %1789 = vperm.xlu1 %9349, %v8361_v25   ;;  %v8375_v25 = vld [vmem:[%s17206_s2 + $0x1c8] sm:$0xff] }
  0x74   :  { %1799 = vperm.xlu0 %9348, %v8363_v27   ;;  %1779 = vperm.xlu2 %9347, %v8359_v28   ;;  %v10656_v30 = vpop.permute.xlu1 %1469  ;;  %v10760_v27 = vor.u32 %v9113_v23, %v7996_v22  ;;  %v8104_v28 = vld [vmem:[%s17207_s3 + $0x68] sm:$0xf]  ;;  %v8092_v22 = vld [vmem:[%s17207_s3 + $0x50] sm:$0xf]  ;;  %v9137_v23 = vld [vmem:[%s17207_s3 + $0x58] sm:$0xf0] }
  0x75   :  { %803 = vmatmul.bf16.gmra.mxu2 %v10652_v29  ;;  %852 = vmatmul.bf16.gmra.mxu3 %v10332_v2  ;;  %17704 = vst [vmem:[#allocation8_spill] sm:$0xff] %v10656_v30  ;;  %v10658_v31 = vpop.permute.xlu0 %1464 }
  0x76   :  { %17705 = vst [vmem:[#allocation9_spill] sm:$0xff] %v10658_v31  ;;  %v10660_v32 = vpop.permute.xlu2 %1499  ;;  %901 = vmatmul.bf16.gmra.mxu0 %v10334_v3  ;;  %950 = vmatmul.bf16.gmra.mxu1 %v10652_v29  ;;  %v9158_v31 = vld [vmem:[%s17207_s3 + $0x100] sm:$0xf0] }
  0x77   :  { %17706 = vst [vmem:[#allocation10_spill] sm:$0xff] %v10660_v32 }
  0x7b   :  { %1804 = vperm.xlu1 %9349, %v8364_v36   ;;  %v8105_v36 = vor.u32 %v9140_v33, %v8104_v28  ;;  %v8093_v33 = vor.u32 %v9137_v23, %v8092_v22 }
  0x7c   :  { %1863 = vperm.xlu0 %9348, %v8366_v37   ;;  %1794 = vperm.xlu2 %9347, %v8362_v38   ;;  %v8201_v37 = vor.u32 %v9164_v35, %v8200_v34 }
  0x7d   :  { %v10679_v39 = vpop.permute.xlu1 %1479  ;;  %v10687_v46 = vpop.permute.xlu0 %1489  ;;  %989 = vmatpush.bf16.msra.mxu2 %v8105_v36 }
  0x7e   :  { %17707 = vst [vmem:[#allocation11_spill] sm:$0xff] %v10679_v39  ;;  %v10689_v47 = vpop.permute.xlu2 %1514  ;;  %1038 = vmatpush.bf16.msra.mxu3 %v8201_v37 }
  0x7f   :  { %17708 = vst [vmem:[#allocation12_spill] sm:$0xff] %v10687_v46 }
  0x80   :  { %17709 = vst [vmem:[#allocation13_spill] sm:$0xff] %v10689_v47 }
  0x81   :  { %990 = vmatpush.bf16.msra.mxu2 %v8093_v33 }
  0x83   :  { %1868 = vperm.xlu1 %9349, %v8367_v54   ;;  %v8297_v54 = vor.u32 %v9188_v53, %v8296_v52  ;;  %v8382_v52 = vld [vmem:[%s17206_s2 + $0x200] sm:$0xff]  ;;  %v8384_v53 = vld [vmem:[%s17206_s2 + $0x210] sm:$0xff] }
  0x84   :  { %1878 = vperm.xlu0 %9348, %v8369_v56   ;;  %1809 = vperm.xlu2 %9347, %v8365_v57  }
  0x85   :  { %808 = vmatmul.bf16.gmra.mxu2 %v10712_v58  ;;  %857 = vmatmul.bf16.gmra.mxu3 %v10482_v9  ;;  %v10716_v59 = vpop.permute.xlu1 %1494  ;;  %v10718_v60 = vpop.permute.xlu0 %1504 }
  0x86   :  { %17710 = vst [vmem:[#allocation14_spill] sm:$0xff] %v10716_v59  ;;  %v10720_v63 = vpop.permute.xlu2 %1529  ;;  %906 = vmatmul.bf16.gmra.mxu0 %v10484_v10  ;;  %955 = vmatmul.bf16.gmra.mxu1 %v10712_v58 }
  0x87   :  { %17711 = vst [vmem:[#allocation15_spill] sm:$0xff] %v10718_v60  ;;  %1087 = vmatpush.bf16.msra.mxu0 %v8297_v54  ;;  %v8393_v60 = vld [vmem:[%s17206_s2 + $0x258] sm:$0xff] }
  0x8b   :  { %1883 = vperm.xlu1 %9349, %v8370_v6   ;;  %v8008_v6 = vld [vmem:[%s17204_s0 + $0x68] sm:$0xf] }
  0x8c   :  { %1893 = vperm.xlu0 %9348, %v8372_v7   ;;  %1873 = vperm.xlu2 %9347, %v8368_v8   ;;  %v9116_v7 = vld [vmem:[%s17204_s0 + $0x70] sm:$0xf0]  ;;  %v8379_v8 = vld [vmem:[%s17206_s2 + $0x1e8] sm:$0xff] }
  0x8d   :  { %v10739_v18 = vpop.permute.xlu1 %1509  ;;  %v10741_v20 = vpop.permute.xlu0 %1519  ;;  %v10820_v17 = vor.u32 %v9116_v7, %v8008_v6  ;;  %v8380_v6 = vld [vmem:[%s17206_s2 + $0x1f0] sm:$0xff] }
  0x8e   :  { %17712 = vst [vmem:[#allocation16_spill] sm:$0xff] %v10739_v18  ;;  %v10743_v21 = vpop.permute.xlu2 %1577  ;;  %v8284_v7 = vld [vmem:[%s17207_s3 + $0x1d0] sm:$0xf] }
  0x8f   :  { %17713 = vst [vmem:[#allocation17_spill] sm:$0xff] %v10741_v20 }
  0x90   :  { %17714 = vst [vmem:[#allocation18_spill] sm:$0xff] %v10743_v21 }
  0x93   :  { %1898 = vperm.xlu1 %9349, %v8373_v24   ;;  %v8188_v24 = vld [vmem:[%s17207_s3 + $0x110] sm:$0xf] }
  0x94   :  { %1908 = vperm.xlu0 %9348, %v8375_v25   ;;  %1888 = vperm.xlu2 %9347, %v8371_v26   ;;  %v9161_v25 = vld [vmem:[%s17207_s3 + $0x118] sm:$0xf0] }
  0x95   :  { %813 = vmatmul.bf16.gmra.mxu2 %v10760_v27  ;;  %862 = vmatmul.bf16.gmra.mxu3 %v10554_v44  ;;  %v10776_v38 = vpop.permute.xlu1 %1524  ;;  %v10778_v40 = vpop.permute.xlu0 %1534  ;;  %v8189_v34 = vor.u32 %v9161_v25, %v8188_v24 }
  0x96   :  { %17715 = vst [vmem:[#allocation19_spill] sm:$0xff] %v10778_v40  ;;  %v10780_v41 = vpop.permute.xlu2 %1592  ;;  %911 = vmatmul.bf16.gmra.mxu0 %v10556_v45  ;;  %960 = vmatmul.bf16.gmra.mxu1 %v10760_v27 }
  0x97   :  { %17716 = vst [vmem:[#allocation20_spill] sm:$0xff] %v10780_v41  ;;  %1039 = vmatpush.bf16.msra.mxu3 %v8189_v34 }
  0x9b   :  { %1913 = vperm.xlu1 %9349, %v8376_v48  }
  0x9c   :  { %1923 = vperm.xlu0 %9348, %v8378_v49   ;;  %1903 = vperm.xlu2 %9347, %v8374_v50  }
  0x9d   :  { %v10799_v55 = vpop.permute.xlu1 %1572 }
  0x9e   :  { %17717 = vst [vmem:[#allocation21_spill] sm:$0xff] %v10799_v55  ;;  %v10801_v56 = vpop.permute.xlu0 %1582  ;;  %v10803_v57 = vpop.permute.xlu2 %1607 }
  0x9f   :  { %17718 = vst [vmem:[#allocation22_spill] sm:$0xff] %v10801_v56 }
  0xa0   :  { %17719 = vst [vmem:[#allocation23_spill] sm:$0xff] %v10803_v57 }
  0xa3   :  { %1928 = vperm.xlu1 %9349, %v8379_v8   ;;  %v701_v26 = vpop.f32.mrf.mxu0  ;;  %v750_v28 = vpop.f32.mrf.mxu1  ;;  %v9185_v8 = vld [vmem:[%s17207_s3 + $0x1d8] sm:$0xf0] }
  0xa4   :  { %1938 = vperm.xlu0 %9348, %v8381_v11   ;;  %1918 = vperm.xlu2 %9347, %v8377_v12   ;;  %v10834_v35 = vadd.f32 %v750_v28, %v701_v26  ;;  %v8285_v11 = vor.u32 %v9185_v8, %v8284_v7  ;;  %v8020_v26 = vld [vmem:[%s17204_s0 + $0x80] sm:$0xf]  ;;  %v9119_v28 = vld [vmem:[%s17204_s0 + $0x88] sm:$0xf0]  ;;  %v8080_v7 = vld [vmem:[%s17207_s3 + $0x38] sm:$0xf] }
  0xa5   :  { %818 = vmatmul.bf16.gmra.mxu2 %v10820_v17  ;;  %867 = vmatmul.bf16.gmra.mxu3 %v10208_v13  ;;  %v10838_v36 = vpop.permute.xlu1 %1587  ;;  %v9134_v8 = vld [vmem:[%s17207_s3 + $0x40] sm:$0xf0] }
  0xa6   :  { %17720 = vst [vmem:[#allocation24_spill] sm:$0xff] %v10838_v36  ;;  %v10840_v37 = vpop.permute.xlu0 %1597  ;;  %v10842_v48 = vpop.permute.xlu2 %1622  ;;  %916 = vmatmul.bf16.gmra.mxu0 %v10210_v14  ;;  %965 = vmatmul.bf16.gmra.mxu1 %v10820_v17  ;;  %v8401_v36 = vld [vmem:[%s17206_s2 + $0x298] sm:$0xff] }
  0xa7   :  { %17721 = vst [vmem:[#allocation25_spill] sm:$0xff] %v10840_v37  ;;  %v721_v49 = vpop.f32.mrf.mxu2  ;;  %1088 = vmatpush.bf16.msra.mxu0 %v8285_v11  ;;  %v8176_v11 = vld [vmem:[%s17207_s3 + $0xf8] sm:$0xf] }
  0xa8   :  { %17722 = vst [vmem:[#allocation26_spill] sm:$0xff] %v10842_v48  ;;  %v770_v50 = vpop.f32.mrf.mxu3 }
  0xa9   :  { %v10852_v54 = vadd.f32 %v770_v50, %v721_v49  ;;  %v8385_v49 = vld [vmem:[%s17206_s2 + $0x218] sm:$0xff]  ;;  %v8387_v50 = vld [vmem:[%s17206_s2 + $0x228] sm:$0xff] }
  0xab   :  { %1992 = vperm.xlu1 %9349, %v8382_v52   ;;  %v10863_v12 = vpop.f32.mrf.mxu0  ;;  %v10865_v22 = vpop.f32.mrf.mxu1  ;;  %v8383_v52 = vld [vmem:[%s17206_s2 + $0x208] sm:$0xff] }
  0xac   :  { %2002 = vperm.xlu0 %9348, %v8384_v53   ;;  %1933 = vperm.xlu2 %9347, %v8380_v6   ;;  %v10890_v6 = vor.u32 %v9119_v28, %v8020_v26  ;;  %v8081_v28 = vor.u32 %v9134_v8, %v8080_v7  ;;  %v8386_v8 = vld [vmem:[%s17206_s2 + $0x220] sm:$0xff] }
  0xad   :  { %v10867_v23 = vpop.permute.xlu1 %1602 }
  0xae   :  { %17723 = vst [vmem:[#allocation27_spill] sm:$0xff] %v10867_v23  ;;  %v10869_v24 = vpop.permute.xlu0 %1612  ;;  %v10871_v25 = vpop.permute.xlu2 %1637  ;;  %991 = vmatpush.bf16.msra.mxu2 %v8081_v28 }
  0xaf   :  { %17724 = vst [vmem:[#allocation28_spill] sm:$0xff] %v10869_v24  ;;  %v723_v33 = vpop.f32.mrf.mxu2  ;;  %v8389_v24 = vld [vmem:[%s17206_s2 + $0x238] sm:$0xff] }
  0xb0   :  { %v772_v34 = vpop.f32.mrf.mxu3 }
  0xb1   :  { %v10888_v53 = vadd.f32 %v772_v34, %v723_v33  ;;  %v8177_v34 = vor.u32 %v9158_v31, %v8176_v11  ;;  %v8272_v11 = vld [vmem:[%s17207_s3 + $0x1b8] sm:$0xf] }
  0xb3   :  { %17725 = vst [vmem:[#allocation29_spill] sm:$0xff] %v10888_v53  ;;  %2007 = vperm.xlu1 %9349, %v8385_v49   ;;  %v706_v33 = vpop.f32.mrf.mxu0  ;;  %v755_v26 = vpop.f32.mrf.mxu1  ;;  %1040 = vmatpush.bf16.msra.mxu3 %v8177_v34 }
  0xb4   :  { %2017 = vperm.xlu0 %9348, %v8387_v50   ;;  %1997 = vperm.xlu2 %9347, %v8383_v52   ;;  %v10904_v55 = vadd.f32 %v755_v26, %v706_v33  ;;  %v8388_v50 = vld [vmem:[%s17206_s2 + $0x230] sm:$0xff]  ;;  %v8390_v52 = vld [vmem:[%s17206_s2 + $0x240] sm:$0xff] }
  0xb5   :  { %823 = vmatmul.bf16.gmra.mxu2 %v10890_v6  ;;  %872 = vmatmul.bf16.gmra.mxu3 %v10328_v0  ;;  %v10908_v51 = vpop.permute.xlu1 %1617  ;;  %v9182_v33 = vld [vmem:[%s17207_s3 + $0x1c0] sm:$0xf0] }
  0xb6   :  { %17726 = vst [vmem:[#allocation30_spill] sm:$0xff] %v10908_v51  ;;  %v10910_v20 = vpop.permute.xlu0 %1627  ;;  %v10912_v47 = vpop.permute.xlu2 %1734  ;;  %921 = vmatmul.bf16.gmra.mxu0 %v10330_v1  ;;  %970 = vmatmul.bf16.gmra.mxu1 %v10890_v6  ;;  %v8273_v26 = vor.u32 %v9182_v33, %v8272_v11  ;;  %v8164_v11 = vld [vmem:[%s17207_s3 + $0xe0] sm:$0xf] }
  0xb7   :  { %17727 = vst [vmem:[#allocation31_spill] sm:$0xff] %v10910_v20 }
  0xb8   :  { %17728 = vst [vmem:[#allocation32_spill] sm:$0xff] %v10912_v47  ;;  %v726_v31 = vpop.f32.mrf.mxu2  ;;  %v775_v49 = vpop.f32.mrf.mxu3  ;;  %1089 = vmatpush.bf16.msra.mxu0 %v8273_v26  ;;  %v9128_v26 = vld [vmem:[%s17207_s3 + $0x10] sm:$0xf0] }
  0xb9   :  { %v10922_v7 = vadd.f32 %v775_v49, %v726_v31  ;;  %v8068_v31 = vld [vmem:[%s17207_s3 + $0x20] sm:$0xf]  ;;  %v9131_v49 = vld [vmem:[%s17207_s3 + $0x28] sm:$0xf0] }
  0xba   :  { %v8069_v47 = vor.u32 %v9131_v49, %v8068_v31  ;;  %v8056_v31 = vld [vmem:[%s17207_s3 + $0x8] sm:$0xf] }
  0xbb   :  { %2022 = vperm.xlu1 %9349, %v8388_v50   ;;  %v10933_v28 = vpop.f32.mrf.mxu0  ;;  %v10935_v34 = vpop.f32.mrf.mxu1  ;;  %v9155_v50 = vld [vmem:[%s17207_s3 + $0xe8] sm:$0xf0]  ;;  %v8152_v49 = vld [vmem:[%s17207_s3 + $0xc8] sm:$0xf] }
  0xbc   :  { %2032 = vperm.xlu0 %9348, %v8390_v52   ;;  %2012 = vperm.xlu2 %9347, %v8386_v8   ;;  %v8165_v20 = vor.u32 %v9155_v50, %v8164_v11  ;;  %v8032_v52 = vld [vmem:[%s17204_s0 + $0x98] sm:$0xf]  ;;  %v9122_v8 = vld [vmem:[%s17204_s0 + $0xa0] sm:$0xf0] }
  0xbd   :  { %v10949_v33 = vpop.permute.xlu1 %1632  ;;  %992 = vmatpush.bf16.msra.mxu2 %v8069_v47  ;;  %v8057_v47 = vor.u32 %v9128_v26, %v8056_v31  ;;  %v10984_v32 = vor.u32 %v9122_v8, %v8032_v52 }
  0xbe   :  { %17729 = vst [vmem:[#allocation33_spill] sm:$0xff] %v10949_v33  ;;  %v10951_v18 = vpop.permute.xlu0 %1642  ;;  %v10953_v51 = vpop.permute.xlu2 %1749  ;;  %1041 = vmatpush.bf16.msra.mxu3 %v8165_v20  ;;  %v8391_v33 = vld [vmem:[%s17206_s2 + $0x248] sm:$0xff]  ;;  %v9152_v20 = vld [vmem:[%s17207_s3 + $0xd0] sm:$0xf0] }
  0xbf   :  { %17730 = vst [vmem:[#allocation34_spill] sm:$0xff] %v10951_v18  ;;  %v8153_v59 = vor.u32 %v9152_v20, %v8152_v49  ;;  %v8394_v20 = vld [vmem:[%s17206_s2 + $0x260] sm:$0xff] }
  0xc0   :  { %17731 = vst [vmem:[#allocation35_spill] sm:$0xff] %v10953_v51  ;;  %v728_v11 = vpop.f32.mrf.mxu2  ;;  %v777_v50 = vpop.f32.mrf.mxu3 }
  0xc1   :  { %v10976_v48 = vadd.f32 %v777_v50, %v728_v11  ;;  %993 = vmatpush.bf16.msra.mxu2 %v8057_v47  ;;  %v8260_v11 = vld [vmem:[%s17207_s3 + $0x1a0] sm:$0xf]  ;;  %v9179_v50 = vld [vmem:[%s17207_s3 + $0x1a8] sm:$0xf0] }
  0xc2   :  { %1042 = vmatpush.bf16.msra.mxu3 %v8153_v59  ;;  %v8261_v52 = vor.u32 %v9179_v50, %v8260_v11  ;;  %v8396_v11 = vld [vmem:[%s17206_s2 + $0x270] sm:$0xff] }
  0xc3   :  { %17732 = vst [vmem:[#allocation36_spill] sm:$0xff] %v10976_v48  ;;  %2037 = vperm.xlu1 %9349, %v8391_v33   ;;  %v711_v31 = vpop.f32.mrf.mxu0  ;;  %v760_v26 = vpop.f32.mrf.mxu1  ;;  %v8392_v50 = vld [vmem:[%s17206_s2 + $0x250] sm:$0xff] }
  0xc4   :  { %2047 = vperm.xlu0 %9348, %v8393_v60   ;;  %2027 = vperm.xlu2 %9347, %v8389_v24   ;;  %v10992_v57 = vadd.f32 %v760_v26, %v711_v31  ;;  %v8248_v60 = vld [vmem:[%s17207_s3 + $0x188] sm:$0xf]  ;;  %v9176_v24 = vld [vmem:[%s17207_s3 + $0x190] sm:$0xf0] }
  0xc5   :  { %828 = vmatmul.bf16.gmra.mxu2 %v10984_v32  ;;  %877 = vmatmul.bf16.gmra.mxu3 %v10469_v4  ;;  %v10996_v33 = vpop.permute.xlu1 %1647  ;;  %v8249_v31 = vor.u32 %v9176_v24, %v8248_v60 }
  0xc6   :  { %17733 = vst [vmem:[#allocation37_spill] sm:$0xff] %v10996_v33  ;;  %v10998_v59 = vpop.permute.xlu0 %1739  ;;  %v11000_v8 = vpop.permute.xlu2 %1764  ;;  %926 = vmatmul.bf16.gmra.mxu0 %v10471_v5  ;;  %975 = vmatmul.bf16.gmra.mxu1 %v10984_v32  ;;  %v8422_v33 = vld [vmem:[%s17206_s2 + $0x340] sm:$0xff] }
  0xc7   :  { %17734 = vst [vmem:[#allocation38_spill] sm:$0xff] %v10998_v59  ;;  %1090 = vmatpush.bf16.msra.mxu0 %v8261_v52 }
  0xc8   :  { %17735 = vst [vmem:[#allocation39_spill] sm:$0xff] %v11000_v8  ;;  %v731_v49 = vpop.f32.mrf.mxu2  ;;  %v780_v47 = vpop.f32.mrf.mxu3 }
  0xc9   :  { %v11013_v26 = vadd.f32 %v780_v47, %v731_v49  ;;  %v8044_v49 = vld [vmem:[%s17204_s0 + $0xb0] sm:$0xf]  ;;  %v9125_v47 = vld [vmem:[%s17204_s0 + $0xb8] sm:$0xf0] }
  0xca   :  { %v11048_v37 = vor.u32 %v9125_v47, %v8044_v49 }
  0xcb   :  { %2052 = vperm.xlu1 %9349, %v8394_v20   ;;  %v11021_v52 = vpop.f32.mrf.mxu0  ;;  %v11023_v8 = vpop.f32.mrf.mxu1  ;;  %1091 = vmatpush.bf16.msra.mxu0 %v8249_v31  ;;  %v8397_v31 = vld [vmem:[%s17206_s2 + $0x278] sm:$0xff] }
  0xcc   :  { %2062 = vperm.xlu0 %9348, %v8396_v11   ;;  %2042 = vperm.xlu2 %9347, %v8392_v50   ;;  %v8400_v50 = vld [vmem:[%s17206_s2 + $0x290] sm:$0xff] }
  0xcd   :  { %v11025_v23 = vpop.permute.xlu1 %1744 }
  0xce   :  { %17736 = vst [vmem:[#allocation40_spill] sm:$0xff] %v11025_v23  ;;  %v11027_v60 = vpop.permute.xlu0 %1754  ;;  %v11029_v24 = vpop.permute.xlu2 %1779 }
  0xcf   :  { %17737 = vst [vmem:[#allocation41_spill] sm:$0xff] %v11027_v60 }
  0xd0   :  { %17738 = vst [vmem:[#allocation42_spill] sm:$0xff] %v11029_v24  ;;  %v733_v20 = vpop.f32.mrf.mxu2  ;;  %v782_v46 = vpop.f32.mrf.mxu3  ;;  %v8395_v24 = vld [vmem:[%s17206_s2 + $0x268] sm:$0xff] }
  0xd1   :  { %v11040_v11 = vadd.f32 %v782_v46, %v733_v20 }
  0xd3   :  { %17739 = vst [vmem:[#allocation43_spill] sm:$0xff] %v11040_v11  ;;  %2067 = vperm.xlu1 %9349, %v8397_v31   ;;  %v716_v60 = vpop.f32.mrf.mxu0  ;;  %v765_v19 = vpop.f32.mrf.mxu1  ;;  %v8399_v31 = vld [vmem:[%s17206_s2 + $0x288] sm:$0xff] }
  0xd4   :  { %2275 = vperm.xlu0 %9348, %v8400_v50   ;;  %2057 = vperm.xlu2 %9347, %v8395_v24   ;;  %v11050_v39 = vadd.f32 %v765_v19, %v716_v60  ;;  %v8398_v19 = vld [vmem:[%s17206_s2 + $0x280] sm:$0xff]  ;;  %v8403_v24 = vld [vmem:[%s17206_s2 + $0x2a8] sm:$0xff] }
  0xd5   :  { %833 = vmatmul.bf16.gmra.mxu2 %v11048_v37  ;;  %882 = vmatmul.bf16.gmra.mxu3 %v10550_v42  ;;  %v11054_v46 = vpop.permute.xlu1 %1759 }
  0xd6   :  { %17740 = vst [vmem:[#allocation44_spill] sm:$0xff] %v11054_v46  ;;  %v11056_v20 = vpop.permute.xlu0 %1769  ;;  %v11058_v51 = vpop.permute.xlu2 %1794  ;;  %931 = vmatmul.bf16.gmra.mxu0 %v10552_v43  ;;  %980 = vmatmul.bf16.gmra.mxu1 %v11048_v37 }
  0xd7   :  { %17741 = vst [vmem:[#allocation45_spill] sm:$0xff] %v11056_v20 }
  0xd8   :  { %17742 = vst [vmem:[#allocation46_spill] sm:$0xff] %v11058_v51  ;;  %v736_v49 = vpop.f32.mrf.mxu2  ;;  %v785_v47 = vpop.f32.mrf.mxu3 }
  0xd9   :  { %v11065_v60 = vadd.f32 %v785_v47, %v736_v49 }
  0xdb   :  { %2265 = vperm.xlu1 %9349, %v8398_v19   ;;  %v11073_v50 = vpop.f32.mrf.mxu0  ;;  %v11075_v51 = vpop.f32.mrf.mxu1  ;;  %v8402_v19 = vld [vmem:[%s17206_s2 + $0x2a0] sm:$0xff] }
  0xdc   :  { %2290 = vperm.xlu0 %9348, %v8403_v24   ;;  %2270 = vperm.xlu2 %9347, %v8399_v31  }
  0xdd   :  { %v11077_v20 = vpop.permute.xlu1 %1774 }
  0xde   :  { %17743 = vst [vmem:[#allocation47_spill] sm:$0xff] %v11077_v20  ;;  %v11079_v46 = vpop.permute.xlu0 %1784  ;;  %v11081_v49 = vpop.permute.xlu2 %1809 }
  0xdf   :  { %17744 = vst [vmem:[#allocation48_spill] sm:$0xff] %v11079_v46 }
  0xe0   :  { %17745 = vst [vmem:[#allocation49_spill] sm:$0xff] %v11081_v49  ;;  %v738_v47 = vpop.f32.mrf.mxu2  ;;  %v787_v41 = vpop.f32.mrf.mxu3 }
  0xe1   :  { %v11086_v59 = vadd.f32 %v787_v41, %v738_v47 }
  0xe3   :  { %17746 = vst [vmem:[#allocation50_spill] sm:$0xff] %v11086_v59  ;;  %2280 = vperm.xlu1 %9349, %v8401_v36   ;;  %v897_v24 = vpop.f32.mrf.mxu0  ;;  %v946_v31 = vpop.f32.mrf.mxu1  ;;  %v11103_v36 = vld [vmem:[%s17208_s4] sm:$0x7] }
  0xe4   :  { %2285 = vperm.xlu2 %9347, %v8402_v19  }
  0xe5   :  { %994 = vmatmul.bf16.vlgmr.msra.gmra.mxu2 %v10212_v15  ;;  %1043 = vmatmul.bf16.vlgmr.msra.gmra.mxu3 %v10214_v16  ;;  %v11093_v46 = vpop.permute.xlu1 %1789  ;;  %v8404_v15 = vld [vmem:[%s17206_s2 + $0x2b0] sm:$0xff] }
  0xe6   :  { %17747 = vst [vmem:[#allocation51_spill] sm:$0xff] %v11093_v46  ;;  %v11095_v20 = vpop.permute.xlu0 %1799  ;;  %v11097_v62 = vpop.permute.xlu2 %1873  ;;  %1092 = vmatmul.bf16.vlgmr.msra.gmra.mxu0 %v10600_v61  ;;  %v11112_v46 = vperm.slane %v11103_v36, 1  ;;  %v11117_v61 = vld [vmem:[%s17209_s5] sm:$0x7] }
  0xe7   :  { %17748 = vst [vmem:[#allocation52_spill] sm:$0xff] %v11095_v20  ;;  %v11120_v23 = vperm.slane %v11117_v61, 1 }
  0xe8   :  { %17749 = vst [vmem:[#allocation53_spill] sm:$0xff] %v11097_v62  ;;  %v799_v41 = vpop.f32.mrf.mxu2  ;;  %v848_v47 = vpop.f32.mrf.mxu3 }
  0xe9   :  { %v11109_v16 = vadd.f32 %v799_v41, %v10834_v35  ;;  %v898_v19 = vadd.f32 %v897_v24, %v848_v47  ;;  %v753_v47 = vadd.f32 %v10865_v22, %v10863_v12 }
  0xeb   :  { %v947_v62 = vadd.f32 %v946_v31, %v898_v19  ;;  %2295 = vperm.xlu1 %9349, %v8404_v15   ;;  %v899_v21 = vpop.f32.mrf.mxu0  ;;  %v948_v56 = vpop.f32.mrf.mxu1 }
  0xed   :  { %v1142_v30 = vmul.f32 %v11112_v46, %v947_v62  ;;  %v11123_v35 = vpop.permute.xlu1 %1804 }
  0xee   :  { %17750 = vst [vmem:[#allocation54_spill] sm:$0xff] %v11123_v35  ;;  %v11125_v24 = vpop.permute.xlu0 %1863  ;;  %v11127_v41 = vpop.permute.xlu2 %1888 }
  0xef   :  { %17751 = vst [vmem:[#allocation55_spill] sm:$0xff] %v11125_v24  ;;  %v11132_v59 = vadd.f32 %v11120_v23, %v1142_v30 }
  0xf0   :  { %17752 = vst [vmem:[#allocation56_spill] sm:$0xff] %v11127_v41  ;;  %v801_v31 = vpop.f32.mrf.mxu2  ;;  %v850_v15 = vpop.f32.mrf.mxu3 }
  0xf1   :  { %v11134_v19 = vadd.f32 %v801_v31, %v753_v47  ;;  %v900_v48 = vadd.f32 %v899_v21, %v850_v15  ;;  %1309 = vrot.lane.b32.xlu0 %v11132_v59, %s9945_s22  ;;  %v8406_v21 = vld [vmem:[%s17206_s2 + $0x2c0] sm:$0xff] }
  0xf3   :  { %v949_v62 = vadd.f32 %v948_v56, %v900_v48  ;;  %v902_v53 = vpop.f32.mrf.mxu0  ;;  %v951_v24 = vpop.f32.mrf.mxu1 }
  0xf5   :  { %v1145_v41 = vmul.f32 %v11112_v46, %v949_v62  ;;  %999 = vmatmul.bf16.gmra.mxu2 %v10332_v2  ;;  %1048 = vmatmul.bf16.gmra.mxu3 %v10334_v3  ;;  %v11141_v30 = vpop.permute.xlu1 %1868 }
  0xf6   :  { %17753 = vst [vmem:[#allocation57_spill] sm:$0xff] %v11141_v30  ;;  %v11143_v12 = vpop.permute.xlu0 %1878  ;;  %v11145_v22 = vpop.permute.xlu2 %1903  ;;  %1097 = vmatmul.bf16.gmra.mxu0 %v10652_v29  ;;  %v758_v29 = vadd.f32 %v10935_v34, %v10933_v28 }
  0xf7   :  { %17754 = vst [vmem:[#allocation58_spill] sm:$0xff] %v11143_v12  ;;  %v11152_v56 = vadd.f32 %v11120_v23, %v1145_v41 }
  0xf8   :  { %17755 = vst [vmem:[#allocation59_spill] sm:$0xff] %v11145_v22  ;;  %v804_v48 = vpop.f32.mrf.mxu2  ;;  %v853_v47 = vpop.f32.mrf.mxu3 }
  0xf9   :  { %17756 = vst [vmem:[#allocation60_spill] sm:$0xff] %v11152_v56  ;;  %v11155_v2 = vadd.f32 %v804_v48, %v10904_v55  ;;  %2305 = vperm.xlu0 %9348, %v8406_v21   ;;  %1313 = vrot.lane.b32.xlu1 %v11152_v56, %s9945_s22 }
  0xfb   :  { %v904_v3 = vpop.f32.mrf.mxu0  ;;  %v953_v31 = vpop.f32.mrf.mxu1 }
  0xfd   :  { %v11159_v15 = vpop.permute.xlu1 %1883 }
  0xfe   :  { %17757 = vst [vmem:[#allocation61_spill] sm:$0xff] %v11159_v15  ;;  %v11161_v62 = vpop.permute.xlu0 %1893  ;;  %v11163_v22 = vpop.permute.xlu2 %1918 }
  0xff   :  { %17758 = vst [vmem:[#allocation62_spill] sm:$0xff] %v11161_v62 }
 0x100   :  { %17759 = vst [vmem:[#allocation63_spill] sm:$0xff] %v11163_v22  ;;  %v806_v41 = vpop.f32.mrf.mxu2  ;;  %v855_v12 = vpop.f32.mrf.mxu3 }
 0x101   :  { %v11167_v30 = vadd.f32 %v806_v41, %v758_v29 }
 0x103   :  { %v907_v55 = vpop.f32.mrf.mxu0  ;;  %v956_v21 = vpop.f32.mrf.mxu1 }
 0x105   :  { %1004 = vmatmul.bf16.gmra.mxu2 %v10482_v9  ;;  %1053 = vmatmul.bf16.gmra.mxu3 %v10484_v10  ;;  %v11171_v48 = vpop.permute.xlu1 %1898 }
 0x106   :  { %17760 = vst [vmem:[#allocation64_spill] sm:$0xff] %v11171_v48  ;;  %v11173_v15 = vpop.permute.xlu0 %1908  ;;  %v11175_v62 = vpop.permute.xlu2 %1933  ;;  %1102 = vmatmul.bf16.gmra.mxu0 %v10712_v58  ;;  %v903_v48 = vadd.f32 %v902_v53, %v853_v47 }
 0x107   :  { %17761 = vst [vmem:[#allocation65_spill] sm:$0xff] %v11173_v15  ;;  %v763_v15 = vadd.f32 %v11023_v8, %v11021_v52  ;;  %v8407_v52 = vld [vmem:[%s17206_s2 + $0x2c8] sm:$0xff] }
 0x108   :  { %17762 = vst [vmem:[#allocation66_spill] sm:$0xff] %v11175_v62  ;;  %v809_v22 = vpop.f32.mrf.mxu2  ;;  %v858_v28 = vpop.f32.mrf.mxu3 }
 0x109   :  { %v11179_v34 = vadd.f32 %v809_v22, %v10992_v57  ;;  %v908_v49 = vadd.f32 %v907_v55, %v858_v28  ;;  %v952_v22 = vadd.f32 %v951_v24, %v903_v48 }
 0x10b   :  { %v909_v29 = vpop.f32.mrf.mxu0  ;;  %v958_v41 = vpop.f32.mrf.mxu1 }
 0x10d   :  { %v11181_v11 = vpop.permute.xlu1 %1913 }
 0x10e   :  { %17763 = vst [vmem:[#allocation67_spill] sm:$0xff] %v11181_v11  ;;  %v11183_v9 = vpop.permute.xlu0 %1923  ;;  %v11185_v10 = vpop.permute.xlu2 %1997  ;;  %v957_v11 = vadd.f32 %v956_v21, %v908_v49  ;;  %v1148_v49 = vmul.f32 %v11112_v46, %v952_v22 }
 0x10f   :  { %17764 = vst [vmem:[#allocation68_spill] sm:$0xff] %v11183_v9  ;;  %v2072_v58 = vmul.f32 %v11185_v10, %v11152_v56 }
 0x110   :  { %v811_v62 = vpop.f32.mrf.mxu2  ;;  %v860_v35 = vpop.f32.mrf.mxu3  ;;  %v1154_v24 = vmul.f32 %v11112_v46, %v957_v11  ;;  %v768_v11 = vadd.f32 %v11075_v51, %v11073_v50 }
 0x111   :  { %v11191_v57 = vadd.f32 %v811_v62, %v763_v15  ;;  %2138 = vrot.lane.b32.xlu1 %v2072_v58, %s9945_s22  ;;  %v905_v62 = vadd.f32 %v904_v3, %v855_v12  ;;  %v910_v21 = vadd.f32 %v909_v29, %v860_v35 }
 0x112   :  { %v11217_v55 = vadd.f32 %v11120_v23, %v1154_v24 }
 0x113   :  { %v11194_v20 = vpop.f32.mrf.mxu0  ;;  %v11196_v9 = vpop.f32.mrf.mxu1  ;;  %v959_v12 = vadd.f32 %v958_v41, %v910_v21 }
 0x114   :  { %17768 = vst [vmem:[#allocation72_spill] sm:$0xff] %v11217_v55 }
 0x115   :  { %1009 = vmatmul.bf16.gmra.mxu2 %v10554_v44  ;;  %1058 = vmatmul.bf16.gmra.mxu3 %v10556_v45  ;;  %v11200_v53 = vpop.permute.xlu1 %1928  ;;  %v11214_v45 = vadd.f32 %v11120_v23, %v1148_v49  ;;  %v1157_v50 = vmul.f32 %v11112_v46, %v959_v12 }
 0x116   :  { %17765 = vst [vmem:[#allocation69_spill] sm:$0xff] %v11200_v53  ;;  %v11202_v8 = vpop.permute.xlu0 %1938  ;;  %1107 = vmatmul.bf16.gmra.mxu0 %v10760_v27  ;;  %v11219_v28 = vpop.permute.xlu2 %2012 }
 0x117   :  { %17766 = vst [vmem:[#allocation70_spill] sm:$0xff] %v11202_v8  ;;  %v2078_v3 = vmul.f32 %v11219_v28, %v11217_v55  ;;  %v11250_v21 = vadd.f32 %v11120_v23, %v1157_v50 }
 0x118   :  { %v814_v47 = vpop.f32.mrf.mxu2  ;;  %v863_v15 = vpop.f32.mrf.mxu3 }
 0x119   :  { %v11211_v44 = vadd.f32 %v814_v47, %v11050_v39  ;;  %2310 = vperm.xlu1 %9349, %v8407_v52   ;;  %v954_v52 = vadd.f32 %v953_v31, %v905_v62  ;;  %v8405_v47 = vld [vmem:[%s17206_s2 + $0x2b8] sm:$0xff]  ;;  %17769 = vst [vmem:[#allocation73_spill] sm:$0xff] %v11250_v21 }
 0x11b   :  { %17767 = vst [vmem:[#allocation71_spill] sm:$0xff] %v11211_v44  ;;  %v914_v48 = vpop.f32.mrf.mxu0  ;;  %v963_v27 = vpop.f32.mrf.mxu1  ;;  %v1151_v51 = vmul.f32 %v11112_v46, %v954_v52 }
 0x11d   :  { %v11221_v58 = vpop.permute.xlu1 %1992  ;;  %v11247_v62 = vadd.f32 %v11120_v23, %v1151_v51 }
 0x11e   :  { %v2070_v39 = vmul.f32 %v11221_v58, %v11132_v59  ;;  %v11227_v22 = vpop.permute.xlu0 %2002 }
 0x11f   :  { %v2074_v35 = vmul.f32 %v11227_v22, %v11214_v45 }
 0x120   :  { %v816_v29 = vpop.f32.mrf.mxu2  ;;  %v865_v49 = vpop.f32.mrf.mxu3  ;;  %2134 = vrot.lane.b32.xlu2 %v2070_v39, %s9945_s22 }
 0x121   :  { %v11234_v24 = vadd.f32 %v816_v29, %v768_v11  ;;  %2150 = vrot.lane.b32.xlu1 %v2078_v3, %s9945_s22  ;;  %2142 = vrot.lane.b32.xlu0 %v2074_v35, %s9945_s22  ;;  %v915_v11 = vadd.f32 %v914_v48, %v865_v49  ;;  %v8410_v48 = vld [vmem:[%s17206_s2 + $0x2e0] sm:$0xff]  ;;  %v8409_v3 = vld [vmem:[%s17206_s2 + $0x2d8] sm:$0xff] }
 0x123   :  { %v917_v31 = vpop.f32.mrf.mxu0  ;;  %v966_v41 = vpop.f32.mrf.mxu1 }
 0x125   :  { %1014 = vmatmul.bf16.gmra.mxu2 %v10208_v13  ;;  %1063 = vmatmul.bf16.gmra.mxu3 %v10210_v14  ;;  %v964_v14 = vadd.f32 %v963_v27, %v915_v11  ;;  %v913_v27 = vadd.f32 %v11194_v20, %v863_v15 }
 0x126   :  { %1112 = vmatmul.bf16.gmra.mxu0 %v10820_v17  ;;  %v11259_v17 = vpop.permute.xlu1 %2007  ;;  %v11278_v11 = vpop.permute.xlu0 %2017 }
 0x127   :  { %v962_v20 = vadd.f32 %v11196_v9, %v913_v27  ;;  %v2080_v15 = vmul.f32 %v11278_v11, %v11250_v21 }
 0x128   :  { %v819_v39 = vpop.f32.mrf.mxu2  ;;  %v868_v52 = vpop.f32.mrf.mxu3  ;;  %2300 = vperm.xlu2 %9347, %v8405_v47  }
 0x129   :  { %v11253_v13 = vadd.f32 %v819_v39, %v10852_v54  ;;  %1329 = vrot.lane.b32.xlu1 %v11250_v21, %s9945_s22  ;;  %1321 = vrot.lane.b32.xlu0 %v11247_v62, %s9945_s22  ;;  %v1163_v54 = vmul.f32 %v11112_v46, %v964_v14  ;;  %v918_v50 = vadd.f32 %v917_v31, %v868_v52  ;;  %v11284_v14 = vpop.permute.xlu2 %2027 }
 0x12b   :  { %17770 = vst [vmem:[#allocation74_spill] sm:$0xff] %v11253_v13  ;;  %v919_v12 = vpop.f32.mrf.mxu0  ;;  %v11268_v35 = vpop.f32.mrf.mxu1  ;;  %v11276_v51 = vadd.f32 %v11120_v23, %v1163_v54  ;;  %v967_v31 = vadd.f32 %v966_v41, %v918_v50 }
 0x12d   :  { %17772 = vst [vmem:[#allocation76_spill] sm:$0xff] %v11276_v51  ;;  %v2084_v52 = vmul.f32 %v11284_v14, %v11276_v51  ;;  %v1166_v9 = vmul.f32 %v11112_v46, %v967_v31 }
 0x12e   :  { %v11280_v39 = vpop.permute.xlu1 %2022  ;;  %v11341_v44 = vpop.permute.xlu0 %2032 }
 0x12f   :  { %v11306_v50 = vadd.f32 %v11120_v23, %v1166_v9 }
 0x130   :  { %v11270_v29 = vpop.f32.mrf.mxu2  ;;  %v870_v49 = vpop.f32.mrf.mxu3  ;;  %1317 = vrot.lane.b32.xlu2 %v11214_v45, %s9945_s22 }
 0x131   :  { %17771 = vst [vmem:[#allocation75_spill] sm:$0xff] %v11270_v29  ;;  %2325 = vperm.xlu1 %9349, %v8410_v48   ;;  %2320 = vperm.xlu0 %9348, %v8409_v3   ;;  %v2076_v48 = vmul.f32 %v11259_v17, %v11247_v62 }
 0x132   :  { %17774 = vst [vmem:[#allocation78_spill] sm:$0xff] %v11306_v50 }
 0x133   :  { %v922_v47 = vpop.f32.mrf.mxu0  ;;  %v971_v54 = vpop.f32.mrf.mxu1 }
 0x135   :  { %1019 = vmatmul.bf16.gmra.mxu2 %v10328_v0  ;;  %1068 = vmatmul.bf16.gmra.mxu3 %v10330_v1 }
 0x136   :  { %1117 = vmatmul.bf16.gmra.mxu0 %v10890_v6  ;;  %v1160_v6 = vmul.f32 %v11112_v46, %v962_v20 }
 0x138   :  { %v824_v3 = vpop.f32.mrf.mxu2  ;;  %v873_v0 = vpop.f32.mrf.mxu3  ;;  %2146 = vrot.lane.b32.xlu2 %v2076_v48, %s9945_s22  ;;  %v11303_v27 = vadd.f32 %v11120_v23, %v1160_v6 }
 0x139   :  { %v11296_v1 = vadd.f32 %v824_v3, %v10922_v7  ;;  %2162 = vrot.lane.b32.xlu1 %v2084_v52, %s9945_s22  ;;  %2154 = vrot.lane.b32.xlu0 %v2080_v15, %s9945_s22  ;;  %v11308_v48 = vpop.permute.xlu1 %2037  ;;  %v923_v7 = vadd.f32 %v922_v47, %v873_v0  ;;  %v8408_v47 = vld [vmem:[%s17206_s2 + $0x2d0] sm:$0xff]  ;;  %v8413_v52 = vld [vmem:[%s17206_s2 + $0x2f8] sm:$0xff] }
 0x13a   :  { %17773 = vst [vmem:[#allocation77_spill] sm:$0xff] %v11303_v27  ;;  %v8412_v0 = vld [vmem:[%s17206_s2 + $0x2f0] sm:$0xff] }
 0x13b   :  { %v924_v41 = vpop.f32.mrf.mxu0  ;;  %v972_v20 = vadd.f32 %v971_v54, %v923_v7  ;;  %v973_v15 = vpop.f32.mrf.mxu1  ;;  %v920_v7 = vadd.f32 %v919_v12, %v870_v49 }
 0x13d   :  { %v1172_v54 = vmul.f32 %v11112_v46, %v972_v20  ;;  %v11343_v20 = vpop.permute.xlu2 %2042 }
 0x140   :  { %v11310_v3 = vpop.f32.mrf.mxu2  ;;  %v875_v29 = vpop.f32.mrf.mxu3  ;;  %1325 = vrot.lane.b32.xlu2 %v11217_v55, %s9945_s22 }
 0x141   :  { %17775 = vst [vmem:[#allocation79_spill] sm:$0xff] %v11310_v3  ;;  %1341 = vrot.lane.b32.xlu1 %v11306_v50, %s9945_s22  ;;  %1333 = vrot.lane.b32.xlu0 %v11303_v27, %s9945_s22  ;;  %v11339_v3 = vadd.f32 %v11120_v23, %v1172_v54  ;;  %v925_v8 = vadd.f32 %v924_v41, %v875_v29 }
 0x143   :  { %v11318_v31 = vpop.f32.mrf.mxu0  ;;  %17777 = vst [vmem:[#allocation81_spill] sm:$0xff] %v11339_v3  ;;  %v2090_v12 = vmul.f32 %v11343_v20, %v11339_v3 }
 0x145   :  { %1024 = vmatmul.bf16.gmra.mxu2 %v10469_v4  ;;  %1073 = vmatmul.bf16.gmra.mxu3 %v10471_v5  ;;  %v11333_v5 = vpop.permute.xlu1 %2052 }
 0x146   :  { %1122 = vmatmul.bf16.gmra.mxu0 %v10984_v32  ;;  %v976_v32 = vpop.f32.mrf.mxu1 }
 0x148   :  { %v829_v6 = vpop.f32.mrf.mxu2  ;;  %v878_v4 = vpop.f32.mrf.mxu3  ;;  %2315 = vperm.xlu2 %9347, %v8408_v47   ;;  %v2082_v47 = vmul.f32 %v11280_v39, %v11303_v27 }
 0x149   :  { %v11336_v9 = vadd.f32 %v829_v6, %v11013_v26  ;;  %2340 = vperm.xlu1 %9349, %v8413_v52   ;;  %2335 = vperm.xlu0 %9348, %v8412_v0   ;;  %v2086_v26 = vmul.f32 %v11341_v44, %v11306_v50  ;;  %v969_v52 = vadd.f32 %v11268_v35, %v920_v7 }
 0x14a   :  { %v974_v0 = vadd.f32 %v973_v15, %v925_v8 }
 0x14b   :  { %17776 = vst [vmem:[#allocation80_spill] sm:$0xff] %v11336_v9  ;;  %v929_v13 = vpop.f32.mrf.mxu0  ;;  %v1169_v41 = vmul.f32 %v11112_v46, %v969_v52 }
 0x14c   :  { %v1175_v54 = vmul.f32 %v11112_v46, %v974_v0  ;;  %v11372_v0 = vpop.permute.xlu0 %2047 }
 0x14d   :  { %v11359_v6 = vpop.permute.xlu1 %2067  ;;  %v11365_v8 = vadd.f32 %v11120_v23, %v1169_v41  ;;  %v8415_v41 = vld [vmem:[%s17206_s2 + $0x308] sm:$0xff] }
 0x14e   :  { %v978_v7 = vpop.f32.mrf.mxu1 }
 0x14f   :  { %17779 = vst [vmem:[#allocation83_spill] sm:$0xff] %v11365_v8 }
 0x150   :  { %v11352_v49 = vpop.f32.mrf.mxu2  ;;  %v880_v29 = vpop.f32.mrf.mxu3  ;;  %2158 = vrot.lane.b32.xlu2 %v2082_v47, %s9945_s22  ;;  %v11368_v47 = vadd.f32 %v11120_v23, %v1175_v54 }
 0x151   :  { %17778 = vst [vmem:[#allocation82_spill] sm:$0xff] %v11352_v49  ;;  %2174 = vrot.lane.b32.xlu1 %v2090_v12, %s9945_s22  ;;  %2166 = vrot.lane.b32.xlu0 %v2086_v26, %s9945_s22  ;;  %v930_v15 = vadd.f32 %v929_v13, %v880_v29  ;;  %v11381_v13 = vpop.permute.xlu2 %2057  ;;  %v8411_v29 = vld [vmem:[%s17206_s2 + $0x2e8] sm:$0xff] }
 0x152   :  { %17780 = vst [vmem:[#allocation84_spill] sm:$0xff] %v11368_v47 }
 0x153   :  { %v932_v35 = vpop.f32.mrf.mxu0 }
 0x155   :  { %1029 = vmatmul.bf16.gmra.mxu2 %v10550_v42  ;;  %1078 = vmatmul.bf16.gmra.mxu3 %v10552_v43  ;;  %v979_v43 = vadd.f32 %v978_v7, %v930_v15  ;;  %v11383_v12 = vpop.permute.xlu1 %2265 }
 0x156   :  { %1127 = vmatmul.bf16.gmra.mxu0 %v11048_v37  ;;  %17782 = vst [vmem:[#allocation86_spill] sm:$0xff] %v11383_v12  ;;  %v928_v12 = vadd.f32 %v11318_v31, %v878_v4  ;;  %v981_v49 = vpop.f32.mrf.mxu1  ;;  %v2092_v31 = vmul.f32 %v11372_v0, %v11368_v47 }
 0x157   :  { %v1181_v54 = vmul.f32 %v11112_v46, %v979_v43  ;;  %v2088_v43 = vmul.f32 %v11308_v48, %v11365_v8 }
 0x158   :  { %v834_v26 = vpop.f32.mrf.mxu2  ;;  %v883_v52 = vpop.f32.mrf.mxu3  ;;  %1337 = vrot.lane.b32.xlu2 %v11276_v51, %s9945_s22 }
 0x159   :  { %v11375_v42 = vadd.f32 %v834_v26, %v11065_v60  ;;  %1353 = vrot.lane.b32.xlu1 %v11368_v47, %s9945_s22  ;;  %1345 = vrot.lane.b32.xlu0 %v11365_v8, %s9945_s22  ;;  %v8416_v60 = vld [vmem:[%s17206_s2 + $0x310] sm:$0xff]  ;;  %v11397_v26 = vpop.permute.xlu0 %2062  ;;  %v933_v9 = vadd.f32 %v932_v35, %v883_v52  ;;  %v11407_v27 = vpop.permute.xlu2 %2270 }
 0x15a   :  { %17785 = vst [vmem:[#allocation89_spill] sm:$0xff] %v11407_v27 }
 0x15b   :  { %17781 = vst [vmem:[#allocation85_spill] sm:$0xff] %v11375_v42  ;;  %v934_v37 = vpop.f32.mrf.mxu0  ;;  %v11401_v42 = vadd.f32 %v11120_v23, %v1181_v54 }
 0x15d   :  { %17784 = vst [vmem:[#allocation88_spill] sm:$0xff] %v11401_v42 }
 0x15e   :  { %v983_v53 = vpop.f32.mrf.mxu1 }
 0x160   :  { %v11395_v15 = vpop.f32.mrf.mxu2  ;;  %v885_v7 = vpop.f32.mrf.mxu3  ;;  %2330 = vperm.xlu2 %9347, %v8411_v29  }
 0x161   :  { %17783 = vst [vmem:[#allocation87_spill] sm:$0xff] %v11395_v15  ;;  %2404 = vperm.xlu1 %9349, %v8416_v60   ;;  %2399 = vperm.xlu0 %9348, %v8415_v41   ;;  %v977_v15 = vadd.f32 %v976_v32, %v928_v12  ;;  %v11409_v29 = vpop.permute.xlu1 %2280  ;;  %v982_v60 = vadd.f32 %v981_v49, %v933_v9  ;;  %v11420_v9 = vpop.permute.xlu0 %2275 }
 0x162   :  { %17786 = vst [vmem:[#allocation90_spill] sm:$0xff] %v11409_v29  ;;  %v2096_v41 = vmul.f32 %v11381_v13, %v11401_v42  ;;  %v935_v8 = vadd.f32 %v934_v37, %v885_v7 }
 0x163   :  { %v11403_v51 = vpop.f32.mrf.mxu0  ;;  %v1178_v52 = vmul.f32 %v11112_v46, %v977_v15  ;;  %v1184_v32 = vmul.f32 %v11112_v46, %v982_v60  ;;  %17787 = vst [vmem:[#allocation91_spill] sm:$0xff] %v11420_v9  ;;  %v11436_v15 = vpop.permute.xlu2 %2285 }
 0x164   :  { %17791 = vst [vmem:[#allocation95_spill] sm:$0xff] %v11436_v15  ;;  %v984_v40 = vadd.f32 %v983_v53, %v935_v8 }
 0x165   :  { %v11423_v49 = vadd.f32 %v11120_v23, %v1184_v32  ;;  %v11426_v54 = vadd.f32 %v11120_v23, %v1178_v52  ;;  %v8418_v52 = vld [vmem:[%s17206_s2 + $0x320] sm:$0xff] }
 0x166   :  { %v1187_v53 = vmul.f32 %v11112_v46, %v984_v40 }
 0x167   :  { %17788 = vst [vmem:[#allocation92_spill] sm:$0xff] %v11423_v49 }
 0x168   :  { %v995_v4 = vpop.f32.mrf.mxu2  ;;  %v1044_v35 = vpop.f32.mrf.mxu3  ;;  %2170 = vrot.lane.b32.xlu2 %v2088_v43, %s9945_s22  ;;  %17789 = vst [vmem:[#allocation93_spill] sm:$0xff] %v11426_v54 }
 0x169   :  { %2186 = vrot.lane.b32.xlu1 %v2096_v41, %s9945_s22  ;;  %2178 = vrot.lane.b32.xlu0 %v2092_v31, %s9945_s22  ;;  %v11430_v43 = vpop.permute.xlu1 %2295  ;;  %v8414_v41 = vld [vmem:[%s17206_s2 + $0x300] sm:$0xff]  ;;  %v8419_v31 = vld [vmem:[%s17206_s2 + $0x328] sm:$0xff]  ;;  %v11447_v32 = vpop.permute.xlu0 %2290  ;;  %v1045_v8 = vadd.f32 %v1044_v35, %v995_v4 }
 0x16a   :  { %17790 = vst [vmem:[#allocation94_spill] sm:$0xff] %v11430_v43 }
 0x16b   :  { %v1095_v12 = vpop.f32.mrf.mxu0  ;;  %17792 = vst [vmem:[#allocation96_spill] sm:$0xff] %v11447_v32  ;;  %v2094_v32 = vmul.f32 %v11333_v5, %v11426_v54 }
 0x170   :  { %v997_v29 = vpop.f32.mrf.mxu2  ;;  %v1046_v27 = vpop.f32.mrf.mxu3  ;;  %1349 = vrot.lane.b32.xlu2 %v11339_v3, %s9945_s22 }
 0x171   :  { %1365 = vrot.lane.b32.xlu1 %v11423_v49, %s9945_s22  ;;  %1357 = vrot.lane.b32.xlu0 %v11426_v54, %s9945_s22  ;;  %v11449_v15 = vpop.permute.xlu1 %1313  ;;  %v1047_v47 = vadd.f32 %v1046_v27, %v997_v29  ;;  %v11458_v18 = vpop.permute.xlu0 %1309  ;;  %v11464_v27 = vperm.slane %v11103_v36, 2  ;;  %v1094_v36 = vadd.f32 %v11403_v51, %v1045_v8 }
 0x172   :  { %17793 = vst [vmem:[#allocation97_spill] sm:$0xff] %v11449_v15 }
 0x173   :  { %v1098_v60 = vpop.f32.mrf.mxu0  ;;  %v1143_v4 = vmul.f32 %v11464_v27, %v1094_v36 }
 0x178   :  { %v1000_v43 = vpop.f32.mrf.mxu2  ;;  %v1049_v9 = vpop.f32.mrf.mxu3  ;;  %2394 = vperm.xlu2 %9347, %v8414_v41   ;;  %v1096_v41 = vadd.f32 %v1095_v12, %v1047_v47 }
 0x179   :  { %2419 = vperm.xlu1 %9349, %v8419_v31   ;;  %2414 = vperm.xlu0 %9348, %v8418_v52   ;;  %v1050_v31 = vadd.f32 %v1049_v9, %v1000_v43  ;;  %v2098_v52 = vmul.f32 %v11397_v26, %v11423_v49  ;;  %v11476_v43 = vperm.slane %v11117_v61, 2  ;;  %v11489_v61 = vpop.permute.xlu0 %2305 }
 0x17a   :  { %v11451_v3 = vpop.permute.xlu2 %2134  ;;  %v1146_v47 = vmul.f32 %v11464_v27, %v1096_v41  ;;  %17797 = vst [vmem:[#allocation101_spill] sm:$0xff] %v11489_v61 }
 0x17b   :  { %17794 = vst [vmem:[#allocation98_spill] sm:$0xff] %v11451_v3  ;;  %v1100_v55 = vpop.f32.mrf.mxu0  ;;  %v1099_v29 = vadd.f32 %v1098_v60, %v1050_v31  ;;  %v8417_v31 = vld [vmem:[%s17206_s2 + $0x318] sm:$0xff] }
 0x180   :  { %v1002_v3 = vpop.f32.mrf.mxu2  ;;  %v1051_v37 = vpop.f32.mrf.mxu3  ;;  %2182 = vrot.lane.b32.xlu2 %v2094_v32, %s9945_s22  ;;  %v1202_v32 = vadd.f32 %v11476_v43, %v1146_v47  ;;  %v1199_v47 = vadd.f32 %v11476_v43, %v1143_v4 }
 0x181   :  { %2434 = vperm.xlu1 %9349, %v8422_v33   ;;  %2190 = vrot.lane.b32.xlu0 %v2098_v52, %s9945_s22  ;;  %v1149_v33 = vmul.f32 %v11464_v27, %v1099_v29  ;;  %v11482_v52 = vadd.f32 %v11120_v23, %v1187_v53  ;;  %v1052_v23 = vadd.f32 %v1051_v37, %v1002_v3 }
 0x182   :  { %v11467_v7 = vpop.permute.xlu2 %2300 }
 0x183   :  { %17795 = vst [vmem:[#allocation99_spill] sm:$0xff] %v11467_v7  ;;  %v11471_v12 = vpop.permute.xlu1 %2138  ;;  %v11473_v9 = vpop.f32.mrf.mxu0  ;;  %v11495_v35 = vadd.f32 %v11476_v43, %v1149_v33  ;;  %v1101_v53 = vadd.f32 %v1100_v55, %v1052_v23 }
 0x184   :  { %17796 = vst [vmem:[#allocation100_spill] sm:$0xff] %v11471_v12 }
 0x185   :  { %v2075_v8 = vmul.f32 %v11227_v22, %v11495_v35  ;;  %v1152_v37 = vmul.f32 %v11464_v27, %v1101_v53  ;;  %v8420_v22 = vld [vmem:[%s17206_s2 + $0x330] sm:$0xff] }
 0x187   :  { %v1208_v23 = vadd.f32 %v11476_v43, %v1152_v37 }
 0x188   :  { %v1005_v40 = vpop.f32.mrf.mxu2  ;;  %v1054_v46 = vpop.f32.mrf.mxu3  ;;  %1361 = vrot.lane.b32.xlu2 %v11401_v42, %s9945_s22 }
 0x189   :  { %1315 = vrot.lane.b32.xlu1 %v1202_v32, %s9945_s22  ;;  %1369 = vrot.lane.b32.xlu0 %v11482_v52, %s9945_s22 }
 0x18a   :  { %v11491_v51 = vpop.permute.xlu2 %1317 }
 0x18b   :  { %17798 = vst [vmem:[#allocation102_spill] sm:$0xff] %v11491_v51  ;;  %v11497_v60 = vpop.permute.xlu1 %2310  ;;  %v1105_v41 = vpop.f32.mrf.mxu0 }
 0x18c   :  { %17799 = vst [vmem:[#allocation103_spill] sm:$0xff] %v11497_v60 }
 0x190   :  { %v1007_v29 = vpop.f32.mrf.mxu2  ;;  %v1056_v61 = vpop.f32.mrf.mxu3  ;;  %2409 = vperm.xlu2 %9347, %v8417_v31   ;;  %v2071_v31 = vmul.f32 %v11221_v58, %v1199_v47  ;;  %v8425_v58 = vld [vmem:[%s17206_s2 + $0x358] sm:$0xff] }
 0x191   :  { %2144 = vrot.lane.b32.xlu1 %v2075_v8, %s9945_s22  ;;  %1311 = vrot.lane.b32.xlu0 %v1199_v47, %s9945_s22  ;;  %v1057_v4 = vadd.f32 %v1056_v61, %v1007_v29  ;;  %v8421_v61 = vld [vmem:[%s17206_s2 + $0x338] sm:$0xff]  ;;  %v2100_v47 = vmul.f32 %v11359_v6, %v11482_v52 }
 0x192   :  { %v11507_v3 = vpop.permute.xlu2 %2146 }
 0x193   :  { %17800 = vst [vmem:[#allocation104_spill] sm:$0xff] %v11507_v3  ;;  %v11510_v36 = vpop.permute.xlu1 %2150  ;;  %v11512_v33 = vpop.permute.xlu0 %2142  ;;  %v1106_v7 = vadd.f32 %v1105_v41, %v1057_v4  ;;  %v1055_v4 = vadd.f32 %v1054_v46, %v1005_v40 }
 0x194   :  { %17801 = vst [vmem:[#allocation105_spill] sm:$0xff] %v11510_v36  ;;  %v1108_v55 = vpop.f32.mrf.mxu0 }
 0x195   :  { %17802 = vst [vmem:[#allocation106_spill] sm:$0xff] %v11512_v33  ;;  %v1158_v29 = vmul.f32 %v11464_v27, %v1106_v7  ;;  %v2073_v7 = vmul.f32 %v11185_v10, %v1202_v32  ;;  %v1104_v51 = vadd.f32 %v11473_v9, %v1055_v4 }
 0x197   :  { %v1155_v10 = vmul.f32 %v11464_v27, %v1104_v51 }
 0x198   :  { %v1010_v8 = vpop.f32.mrf.mxu2  ;;  %v1059_v60 = vpop.f32.mrf.mxu3  ;;  %2424 = vperm.xlu2 %9347, %v8420_v22  }
 0x199   :  { %1323 = vrot.lane.b32.xlu1 %v1208_v23, %s9945_s22  ;;  %2136 = vrot.lane.b32.xlu0 %v2071_v31, %s9945_s22  ;;  %v11542_v31 = vadd.f32 %v11476_v43, %v1158_v29 }
 0x19a   :  { %v11521_v53 = vpop.permute.xlu2 %1325 }
 0x19b   :  { %17803 = vst [vmem:[#allocation107_spill] sm:$0xff] %v11521_v53  ;;  %v11523_v36 = vpop.permute.xlu1 %1329  ;;  %v11525_v3 = vpop.permute.xlu0 %1321 }
 0x19c   :  { %17804 = vst [vmem:[#allocation108_spill] sm:$0xff] %v11523_v36  ;;  %v11527_v12 = vpop.f32.mrf.mxu0  ;;  %v1060_v36 = vadd.f32 %v1059_v60, %v1010_v8 }
 0x19d   :  { %17805 = vst [vmem:[#allocation109_spill] sm:$0xff] %v11525_v3 }
 0x19e   :  { %v1109_v15 = vadd.f32 %v1108_v55, %v1060_v36 }
 0x1a0   :  { %v1012_v41 = vpop.f32.mrf.mxu2  ;;  %v1061_v37 = vpop.f32.mrf.mxu3  ;;  %2194 = vrot.lane.b32.xlu2 %v2100_v47, %s9945_s22  ;;  %v1161_v9 = vmul.f32 %v11464_v27, %v1109_v15 }
 0x1a1   :  { %2449 = vperm.xlu1 %9349, %v8425_v58   ;;  %2429 = vperm.xlu0 %9348, %v8421_v61   ;;  %v2081_v58 = vmul.f32 %v11278_v11, %v11542_v31  ;;  %v2077_v61 = vmul.f32 %v11259_v17, %v1208_v23  ;;  %v1211_v23 = vadd.f32 %v11476_v43, %v1155_v10 }
 0x1a2   :  { %v11539_v22 = vpop.permute.xlu2 %2315  ;;  %v1217_v17 = vadd.f32 %v11476_v43, %v1161_v9  ;;  %v1062_v9 = vadd.f32 %v1061_v37, %v1012_v41 }
 0x1a3   :  { %17806 = vst [vmem:[#allocation110_spill] sm:$0xff] %v11539_v22  ;;  %v11544_v53 = vpop.permute.xlu1 %2325  ;;  %v11546_v33 = vpop.permute.xlu0 %2320 }
 0x1a4   :  { %17807 = vst [vmem:[#allocation111_spill] sm:$0xff] %v11544_v53  ;;  %v1113_v3 = vpop.f32.mrf.mxu0 }
 0x1a5   :  { %17808 = vst [vmem:[#allocation112_spill] sm:$0xff] %v11546_v33 }
 0x1a8   :  { %v1015_v40 = vpop.f32.mrf.mxu2  ;;  %v1064_v46 = vpop.f32.mrf.mxu3  ;;  %2140 = vrot.lane.b32.xlu2 %v2073_v7, %s9945_s22  ;;  %v8423_v7 = vld [vmem:[%s17206_s2 + $0x348] sm:$0xff] }
 0x1a9   :  { %2156 = vrot.lane.b32.xlu1 %v2081_v58, %s9945_s22  ;;  %2148 = vrot.lane.b32.xlu0 %v2077_v61, %s9945_s22  ;;  %v1065_v55 = vadd.f32 %v1064_v46, %v1015_v40  ;;  %v8428_v58 = vld [vmem:[%s17206_s2 + $0x370] sm:$0xff] }
 0x1aa   :  { %v11556_v60 = vpop.permute.xlu2 %2158 }
 0x1ab   :  { %17809 = vst [vmem:[#allocation113_spill] sm:$0xff] %v11556_v60  ;;  %v11560_v32 = vpop.permute.xlu1 %2162  ;;  %v11562_v36 = vpop.permute.xlu0 %2154  ;;  %v1114_v51 = vadd.f32 %v1113_v3, %v1065_v55  ;;  %v1111_v60 = vadd.f32 %v11527_v12, %v1062_v9 }
 0x1ac   :  { %17810 = vst [vmem:[#allocation114_spill] sm:$0xff] %v11560_v32  ;;  %v1115_v11 = vpop.f32.mrf.mxu0  ;;  %v2079_v32 = vmul.f32 %v11219_v28, %v1211_v23 }
 0x1ad   :  { %17811 = vst [vmem:[#allocation115_spill] sm:$0xff] %v11562_v36  ;;  %v1167_v61 = vmul.f32 %v11464_v27, %v1114_v51  ;;  %v2083_v51 = vmul.f32 %v11280_v39, %v1217_v17  ;;  %v1164_v28 = vmul.f32 %v11464_v27, %v1111_v60  ;;  %v17882_v36 = vld [vmem:[#allocation37_spill] sm:$0xff] }
 0x1af   :  { %v11589_v55 = vadd.f32 %v11476_v43, %v1167_v61 }
 0x1b0   :  { %v1017_v8 = vpop.f32.mrf.mxu2  ;;  %v1066_v47 = vpop.f32.mrf.mxu3  ;;  %1319 = vrot.lane.b32.xlu2 %v11495_v35, %s9945_s22  ;;  %v8424_v35 = vld [vmem:[%s17206_s2 + $0x350] sm:$0xff] }
 0x1b1   :  { %1335 = vrot.lane.b32.xlu1 %v1217_v17, %s9945_s22  ;;  %1327 = vrot.lane.b32.xlu0 %v1211_v23, %s9945_s22  ;;  %v1067_v53 = vadd.f32 %v1066_v47, %v1017_v8 }
 0x1b2   :  { %v11570_v15 = vpop.permute.xlu2 %1337 }
 0x1b3   :  { %17812 = vst [vmem:[#allocation116_spill] sm:$0xff] %v11570_v15  ;;  %v11572_v29 = vpop.permute.xlu1 %1341  ;;  %v11574_v4 = vpop.permute.xlu0 %1333 }
 0x1b4   :  { %17813 = vst [vmem:[#allocation117_spill] sm:$0xff] %v11572_v29  ;;  %v1118_v40 = vpop.f32.mrf.mxu0 }
 0x1b5   :  { %17814 = vst [vmem:[#allocation118_spill] sm:$0xff] %v11574_v4 }
 0x1b8   :  { %v1020_v3 = vpop.f32.mrf.mxu2  ;;  %v1069_v46 = vpop.f32.mrf.mxu3  ;;  %2439 = vperm.xlu2 %9347, %v8423_v7   ;;  %v2087_v7 = vmul.f32 %v11341_v44, %v11589_v55  ;;  %v1220_v44 = vadd.f32 %v11476_v43, %v1164_v28 }
 0x1b9   :  { %2464 = vperm.xlu1 %9349, %v8428_v58   ;;  %2444 = vperm.xlu0 %9348, %v8424_v35   ;;  %v1116_v58 = vadd.f32 %v1115_v11, %v1067_v53 }
 0x1ba   :  { %v11586_v10 = vpop.permute.xlu2 %2330 }
 0x1bb   :  { %v11591_v33 = vpop.permute.xlu1 %2340  ;;  %v11593_v22 = vpop.permute.xlu0 %2335  ;;  %v1170_v39 = vmul.f32 %v11464_v27, %v1116_v58  ;;  %v8427_v58 = vld [vmem:[%s17206_s2 + $0x368] sm:$0xff] }
 0x1bc   :  { %v1120_v37 = vpop.f32.mrf.mxu0 }
 0x1bd   :  { %v1226_v53 = vadd.f32 %v11476_v43, %v1170_v39  ;;  %v1070_v39 = vadd.f32 %v1069_v46, %v1020_v3 }
 0x1bf   :  { %v1119_v29 = vadd.f32 %v1118_v40, %v1070_v39  ;;  %v8434_v39 = vld [vmem:[%s17206_s2 + $0x3a0] sm:$0xff] }
 0x1c0   :  { %v1022_v35 = vpop.f32.mrf.mxu2  ;;  %v1071_v41 = vpop.f32.mrf.mxu3  ;;  %2152 = vrot.lane.b32.xlu2 %v2079_v32, %s9945_s22 }
 0x1c1   :  { %2168 = vrot.lane.b32.xlu1 %v2087_v7, %s9945_s22  ;;  %2160 = vrot.lane.b32.xlu0 %v2083_v51, %s9945_s22  ;;  %v1072_v32 = vadd.f32 %v1071_v41, %v1022_v35  ;;  %v8426_v7 = vld [vmem:[%s17206_s2 + $0x360] sm:$0xff]  ;;  %v1173_v46 = vmul.f32 %v11464_v27, %v1119_v29 }
 0x1c2   :  { %v11603_v8 = vpop.permute.xlu2 %2170 }
 0x1c3   :  { %17815 = vst [vmem:[#allocation119_spill] sm:$0xff] %v11603_v8  ;;  %v11607_v12 = vpop.permute.xlu1 %2174  ;;  %v11609_v17 = vpop.permute.xlu0 %2166  ;;  %v1121_v47 = vadd.f32 %v1120_v37, %v1072_v32 }
 0x1c4   :  { %17816 = vst [vmem:[#allocation120_spill] sm:$0xff] %v11607_v12  ;;  %v1123_v51 = vpop.f32.mrf.mxu0 }
 0x1c5   :  { %17817 = vst [vmem:[#allocation121_spill] sm:$0xff] %v11609_v17  ;;  %v1176_v35 = vmul.f32 %v11464_v27, %v1121_v47 }
 0x1c7   :  { %v1232_v32 = vadd.f32 %v11476_v43, %v1176_v35  ;;  %v8429_v35 = vld [vmem:[%s17206_s2 + $0x378] sm:$0xff] }
 0x1c8   :  { %v1025_v11 = vpop.f32.mrf.mxu2  ;;  %v1074_v23 = vpop.f32.mrf.mxu3  ;;  %1331 = vrot.lane.b32.xlu2 %v11542_v31, %s9945_s22  ;;  %v8431_v31 = vld [vmem:[%s17206_s2 + $0x388] sm:$0xff] }
 0x1c9   :  { %1347 = vrot.lane.b32.xlu1 %v1226_v53, %s9945_s22  ;;  %1339 = vrot.lane.b32.xlu0 %v1220_v44, %s9945_s22  ;;  %v1075_v12 = vadd.f32 %v1074_v23, %v1025_v11 }
 0x1ca   :  { %v11617_v60 = vpop.permute.xlu2 %1349 }
 0x1cb   :  { %17818 = vst [vmem:[#allocation122_spill] sm:$0xff] %v11617_v60  ;;  %v11619_v61 = vpop.permute.xlu1 %1353  ;;  %v11621_v9 = vpop.permute.xlu0 %1345  ;;  %v1124_v47 = vadd.f32 %v1123_v51, %v1075_v12 }
 0x1cc   :  { %17819 = vst [vmem:[#allocation123_spill] sm:$0xff] %v11621_v9  ;;  %v1125_v17 = vpop.f32.mrf.mxu0  ;;  %v2085_v9 = vmul.f32 %v11284_v14, %v1220_v44 }
 0x1cd   :  { %v1179_v11 = vmul.f32 %v11464_v27, %v1124_v47 }
 0x1cf   :  { %v1235_v12 = vadd.f32 %v11476_v43, %v1179_v11 }
 0x1d0   :  { %2454 = vperm.xlu2 %9347, %v8426_v7   ;;  %v1027_v41 = vpop.f32.mrf.mxu2  ;;  %v1076_v37 = vpop.f32.mrf.mxu3  ;;  %v2093_v7 = vmul.f32 %v11372_v0, %v1232_v32 }
 0x1d1   :  { %2528 = vperm.xlu1 %9349, %v8431_v31   ;;  %2459 = vperm.xlu0 %9348, %v8427_v58   ;;  %v2089_v31 = vmul.f32 %v11308_v48, %v1226_v53  ;;  %v1229_v48 = vadd.f32 %v11476_v43, %v1173_v46  ;;  %v1077_v11 = vadd.f32 %v1076_v37, %v1027_v41 }
 0x1d2   :  { %v11633_v28 = vpop.permute.xlu2 %2394 }
 0x1d3   :  { %17820 = vst [vmem:[#allocation124_spill] sm:$0xff] %v11633_v28  ;;  %v11636_v8 = vpop.permute.xlu1 %2404  ;;  %v11638_v60 = vpop.permute.xlu0 %2399  ;;  %v1126_v15 = vadd.f32 %v1125_v17, %v1077_v11 }
 0x1d4   :  { %17821 = vst [vmem:[#allocation125_spill] sm:$0xff] %v11636_v8  ;;  %v1128_v53 = vpop.f32.mrf.mxu0 }
 0x1d5   :  { %17822 = vst [vmem:[#allocation126_spill] sm:$0xff] %v11638_v60  ;;  %v1182_v37 = vmul.f32 %v11464_v27, %v1126_v15  ;;  %v8491_v60 = vld [vmem:[%s17205_s1 + $0x168] sm:$0xff] }
 0x1d8   :  { %2164 = vrot.lane.b32.xlu2 %v2085_v9, %s9945_s22  ;;  %v1030_v40 = vpop.f32.mrf.mxu2  ;;  %v1079_v0 = vpop.f32.mrf.mxu3 }
 0x1d9   :  { %2180 = vrot.lane.b32.xlu1 %v2093_v7, %s9945_s22  ;;  %2172 = vrot.lane.b32.xlu0 %v2089_v31, %s9945_s22  ;;  %v1080_v44 = vadd.f32 %v1079_v0, %v1030_v40 }
 0x1da   :  { %v11646_v3 = vpop.permute.xlu2 %2182 }
 0x1db   :  { %17823 = vst [vmem:[#allocation127_spill] sm:$0xff] %v11646_v3  ;;  %v11650_v23 = vpop.permute.xlu1 %2186  ;;  %v11652_v14 = vpop.permute.xlu0 %2178  ;;  %v1129_v9 = vadd.f32 %v1128_v53, %v1080_v44 }
 0x1dc   :  { %17824 = vst [vmem:[#allocation128_spill] sm:$0xff] %v11652_v14  ;;  %v1130_v3 = vpop.f32.mrf.mxu0  ;;  %v2091_v14 = vmul.f32 %v11343_v20, %v1229_v48 }
 0x1dd   :  { %v1185_v47 = vmul.f32 %v11464_v27, %v1129_v9  ;;  %v2095_v9 = vmul.f32 %v11333_v5, %v1235_v12  ;;  %v1238_v5 = vadd.f32 %v11476_v43, %v1182_v37 }
 0x1df   :  { %v1241_v40 = vadd.f32 %v11476_v43, %v1185_v47  ;;  %v2097_v11 = vmul.f32 %v11381_v13, %v1238_v5 }
 0x1e0   :  { %1343 = vrot.lane.b32.xlu2 %v11589_v55, %s9945_s22  ;;  %v8430_v55 = vld [vmem:[%s17206_s2 + $0x380] sm:$0xff]  ;;  %v1032_v7 = vpop.f32.mrf.mxu2  ;;  %v1081_v31 = vpop.f32.mrf.mxu3 }
 0x1e1   :  { %1359 = vrot.lane.b32.xlu1 %v1235_v12, %s9945_s22  ;;  %1351 = vrot.lane.b32.xlu0 %v1229_v48, %s9945_s22  ;;  %v1082_v0 = vadd.f32 %v1081_v31, %v1032_v7  ;;  %v8440_v7 = vld [vmem:[%s17206_s2 + $0x3d0] sm:$0xff] }
 0x1e2   :  { %v11660_v29 = vpop.permute.xlu2 %1361  ;;  %v8436_v31 = vld [vmem:[%s17206_s2 + $0x3b0] sm:$0xff] }
 0x1e3   :  { %v11662_v51 = vpop.permute.xlu1 %1365  ;;  %v11664_v58 = vpop.permute.xlu0 %1357 }
 0x1e8   :  { %2469 = vperm.xlu2 %9347, %v8429_v35   ;;  %v2099_v35 = vmul.f32 %v11397_v26, %v1241_v40 }
 0x1e9   :  { %2543 = vperm.xlu1 %9349, %v8434_v39   ;;  %2523 = vperm.xlu0 %9348, %v8430_v55   ;;  %v1131_v39 = vadd.f32 %v1130_v3, %v1082_v0 }
 0x1ea   :  { %v11676_v46 = vpop.permute.xlu2 %2409 }
 0x1eb   :  { %17825 = vst [vmem:[#allocation129_spill] sm:$0xff] %v11676_v46  ;;  %v11679_v44 = vpop.permute.xlu1 %2419  ;;  %v11681_v53 = vpop.permute.xlu0 %2414  ;;  %v1188_v55 = vmul.f32 %v11464_v27, %v1131_v39  ;;  %v8432_v27 = vld [vmem:[%s17206_s2 + $0x390] sm:$0xff]  ;;  %v8443_v39 = vld [vmem:[%s17206_s2 + $0x3e8] sm:$0xff] }
 0x1ec   :  { %17826 = vst [vmem:[#allocation130_spill] sm:$0xff] %v11679_v44 }
 0x1ed   :  { %17827 = vst [vmem:[#allocation131_spill] sm:$0xff] %v11681_v53  ;;  %v1244_v26 = vadd.f32 %v11476_v43, %v1188_v55  ;;  %v8437_v43 = vld [vmem:[%s17206_s2 + $0x3b8] sm:$0xff] }
 0x1ef   :  { %v2101_v37 = vmul.f32 %v11359_v6, %v1244_v26  ;;  %v8439_v6 = vld [vmem:[%s17206_s2 + $0x3c8] sm:$0xff] }
 0x1f0   :  { %2176 = vrot.lane.b32.xlu2 %v2091_v14, %s9945_s22 }
 0x1f1   :  { %2192 = vrot.lane.b32.xlu1 %v2099_v35, %s9945_s22  ;;  %2184 = vrot.lane.b32.xlu0 %v2095_v9, %s9945_s22 }
 0x1f2   :  { %v11689_v41 = vpop.permute.xlu2 %2424 }
 0x1f3   :  { %17828 = vst [vmem:[#allocation132_spill] sm:$0xff] %v11689_v41  ;;  %v11693_v47 = vpop.permute.xlu1 %2434  ;;  %v11695_v20 = vpop.permute.xlu0 %2190  ;;  %v8458_v41 = vld [vmem:[%s17206_s2 + $0x460] sm:$0xff] }
 0x1f4   :  { %17829 = vst [vmem:[#allocation133_spill] sm:$0xff] %v11693_v47  ;;  %v8455_v47 = vld [vmem:[%s17206_s2 + $0x448] sm:$0xff] }
 0x1f8   :  { %1355 = vrot.lane.b32.xlu2 %v1232_v32, %s9945_s22  ;;  %v8433_v32 = vld [vmem:[%s17206_s2 + $0x398] sm:$0xff] }
 0x1f9   :  { %1371 = vrot.lane.b32.xlu1 %v1244_v26, %s9945_s22  ;;  %1363 = vrot.lane.b32.xlu0 %v1238_v5, %s9945_s22 }
 0x1fa   :  { %v11702_v17 = vpop.permute.xlu2 %2194 }
 0x1fb   :  { %v11704_v3 = vpop.permute.xlu1 %1315  ;;  %v11706_v15 = vpop.permute.xlu0 %1369 }
 0x1fc   :  { %17830 = vst [vmem:[#allocation134_spill] sm:$0xff] %v11704_v3  ;;  %v8492_v3 = vld [vmem:[%s17205_s1 + $0x170] sm:$0xff] }
 0x200   :  { %2533 = vperm.xlu2 %9347, %v8432_v27   ;;  %v8435_v27 = vld [vmem:[%s17206_s2 + $0x3a8] sm:$0xff] }
 0x201   :  { %2558 = vperm.xlu1 %9349, %v8437_v43   ;;  %2538 = vperm.xlu0 %9348, %v8433_v32   ;;  %v8446_v43 = vld [vmem:[%s17206_s2 + $0x400] sm:$0xff] }
 0x202   :  { %v11717_v14 = vpop.permute.xlu2 %2140 }
 0x203   :  { %17831 = vst [vmem:[#allocation135_spill] sm:$0xff] %v11717_v14  ;;  %v11719_v48 = vpop.permute.xlu1 %2144  ;;  %v11721_v12 = vpop.permute.xlu0 %1311  ;;  %v8497_v14 = vld [vmem:[%s17205_s1 + $0x198] sm:$0xff] }
 0x204   :  { %17832 = vst [vmem:[#allocation136_spill] sm:$0xff] %v11719_v48 }
 0x208   :  { %2188 = vrot.lane.b32.xlu2 %v2097_v11, %s9945_s22  ;;  %v8442_v11 = vld [vmem:[%s17206_s2 + $0x3e0] sm:$0xff] }
 0x209   :  { %2573 = vperm.xlu1 %9349, %v8440_v7   ;;  %2553 = vperm.xlu0 %9348, %v8436_v31   ;;  %v8438_v7 = vld [vmem:[%s17206_s2 + $0x3c0] sm:$0xff]  ;;  %v8449_v31 = vld [vmem:[%s17206_s2 + $0x418] sm:$0xff] }
 0x20a   :  { %v11731_v0 = vpop.permute.xlu2 %1319 }
 0x20b   :  { %17833 = vst [vmem:[#allocation137_spill] sm:$0xff] %v11731_v0  ;;  %v11733_v9 = vpop.permute.xlu1 %1323  ;;  %v11735_v35 = vpop.permute.xlu0 %2136 }
 0x20c   :  { %17834 = vst [vmem:[#allocation138_spill] sm:$0xff] %v11733_v9  ;;  %v8489_v9 = vld [vmem:[%s17205_s1 + $0x158] sm:$0xff] }
 0x20d   :  { %17835 = vst [vmem:[#allocation139_spill] sm:$0xff] %v11735_v35  ;;  %v8494_v35 = vld [vmem:[%s17205_s1 + $0x180] sm:$0xff] }
 0x210   :  { %1367 = vrot.lane.b32.xlu2 %v1241_v40, %s9945_s22 }
 0x211   :  { %2588 = vperm.xlu1 %9349, %v8443_v39   ;;  %2196 = vrot.lane.b32.xlu0 %v2101_v37, %s9945_s22 }
 0x212   :  { %v11743_v13 = vpop.permute.xlu2 %2439 }
 0x213   :  { %17836 = vst [vmem:[#allocation140_spill] sm:$0xff] %v11743_v13  ;;  %v11745_v55 = vpop.permute.xlu1 %2449  ;;  %v11747_v5 = vpop.permute.xlu0 %2429 }
 0x214   :  { %17837 = vst [vmem:[#allocation141_spill] sm:$0xff] %v11745_v55  ;;  %v8444_v55 = vld [vmem:[%s17206_s2 + $0x3f0] sm:$0xff] }
 0x215   :  { %17838 = vst [vmem:[#allocation142_spill] sm:$0xff] %v11747_v5 }
 0x218   :  { %2548 = vperm.xlu2 %9347, %v8435_v27  }
 0x219   :  { %2652 = vperm.xlu1 %9349, %v8446_v43   ;;  %2568 = vperm.xlu0 %9348, %v8439_v6   ;;  %v8441_v43 = vld [vmem:[%s17206_s2 + $0x3d8] sm:$0xff]  ;;  %v8452_v6 = vld [vmem:[%s17206_s2 + $0x430] sm:$0xff] }
 0x21a   :  { %v11758_v40 = vpop.permute.xlu2 %2152 }
 0x21b   :  { %17839 = vst [vmem:[#allocation143_spill] sm:$0xff] %v11758_v40  ;;  %v11760_v26 = vpop.permute.xlu1 %2156  ;;  %v11762_v32 = vpop.permute.xlu0 %2148 }
 0x21c   :  { %17840 = vst [vmem:[#allocation144_spill] sm:$0xff] %v11760_v26 }
 0x21d   :  { %17841 = vst [vmem:[#allocation145_spill] sm:$0xff] %v11762_v32 }
 0x220   :  { %2563 = vperm.xlu2 %9347, %v8438_v7   ;;  %v8445_v7 = vld [vmem:[%s17206_s2 + $0x3f8] sm:$0xff] }
 0x221   :  { %2667 = vperm.xlu1 %9349, %v8449_v31   ;;  %2583 = vperm.xlu0 %9348, %v8442_v11  }
 0x222   :  { %v11773_v39 = vpop.permute.xlu2 %1331 }
 0x223   :  { %17842 = vst [vmem:[#allocation146_spill] sm:$0xff] %v11773_v39  ;;  %v11775_v37 = vpop.permute.xlu1 %1335  ;;  %v11777_v27 = vpop.permute.xlu0 %1327  ;;  %v8483_v39 = vld [vmem:[%s17205_s1 + $0x128] sm:$0xff] }
 0x224   :  { %17843 = vst [vmem:[#allocation147_spill] sm:$0xff] %v11775_v37  ;;  %v17894_v37 = vld [vmem:[#allocation71_spill] sm:$0xff] }
 0x225   :  { %17844 = vst [vmem:[#allocation148_spill] sm:$0xff] %v11777_v27  ;;  %v8486_v27 = vld [vmem:[%s17205_s1 + $0x140] sm:$0xff] }
 0x228   :  { %2578 = vperm.xlu2 %9347, %v8441_v43   ;;  %v8448_v43 = vld [vmem:[%s17206_s2 + $0x410] sm:$0xff] }
 0x229   :  { %2682 = vperm.xlu1 %9349, %v8452_v6   ;;  %2598 = vperm.xlu0 %9348, %v8445_v7  }
 0x22a   :  { %v11788_v31 = vpop.permute.xlu2 %2454 }
 0x22b   :  { %17845 = vst [vmem:[#allocation149_spill] sm:$0xff] %v11788_v31  ;;  %v11790_v11 = vpop.permute.xlu1 %2464  ;;  %v11792_v13 = vpop.permute.xlu0 %2444 }
 0x22c   :  { %17846 = vst [vmem:[#allocation150_spill] sm:$0xff] %v11792_v13  ;;  %v8447_v13 = vld [vmem:[%s17206_s2 + $0x408] sm:$0xff] }
 0x230   :  { %2593 = vperm.xlu2 %9347, %v8444_v55   ;;  %v8451_v55 = vld [vmem:[%s17206_s2 + $0x428] sm:$0xff] }
 0x231   :  { %2697 = vperm.xlu1 %9349, %v8455_v47   ;;  %2662 = vperm.xlu0 %9348, %v8448_v43  }
 0x232   :  { %v11803_v6 = vpop.permute.xlu2 %2164 }
 0x233   :  { %17847 = vst [vmem:[#allocation151_spill] sm:$0xff] %v11803_v6  ;;  %v11805_v7 = vpop.permute.xlu1 %2168  ;;  %v11807_v31 = vpop.permute.xlu0 %2160 }
 0x234   :  { %17848 = vst [vmem:[#allocation152_spill] sm:$0xff] %v11805_v7  ;;  %v9916_v7 = vld [vmem:[%s17208_s4] sm:$0x7] }
 0x235   :  { %17849 = vst [vmem:[#allocation153_spill] sm:$0xff] %v11807_v31  ;;  %v11827_v6 = vperm.slane %v9916_v7, 0  ;;  %v8450_v31 = vld [vmem:[%s17206_s2 + $0x420] sm:$0xff] }
 0x236   :  { %v9917_v7 = vld [vmem:[%s17209_s5] sm:$0x7] }
 0x237   :  { %v1153_v40 = vmul.f32 %v11827_v6, %v11179_v34 }
 0x238   :  { %2657 = vperm.xlu2 %9347, %v8447_v13   ;;  %v1144_v13 = vmul.f32 %v11827_v6, %v11134_v19 }
 0x239   :  { %2712 = vperm.xlu1 %9349, %v8458_v41   ;;  %2677 = vperm.xlu0 %9348, %v8451_v55   ;;  %v8461_v41 = vld [vmem:[%s17206_s2 + $0x478] sm:$0xff]  ;;  %v8454_v55 = vld [vmem:[%s17206_s2 + $0x440] sm:$0xff] }
 0x23a   :  { %v11818_v47 = vpop.permute.xlu2 %1343 }
 0x23b   :  { %17850 = vst [vmem:[#allocation154_spill] sm:$0xff] %v11818_v47  ;;  %v11820_v43 = vpop.permute.xlu1 %1347  ;;  %v11822_v5 = vpop.permute.xlu0 %1339 }
 0x23c   :  { %17851 = vst [vmem:[#allocation155_spill] sm:$0xff] %v11820_v43  ;;  %v11843_v43 = vperm.slane %v9917_v7, 0 }
 0x23d   :  { %17852 = vst [vmem:[#allocation156_spill] sm:$0xff] %v11822_v5  ;;  %v1422_v5 = vlaneseq }
 0x23e   :  { %v11848_v47 = vadd.f32 %v11843_v43, %v1144_v13 }
 0x240   :  { %2672 = vperm.xlu2 %9347, %v8450_v31   ;;  %17853 = vst [vmem:[#allocation157_spill] sm:$0xff] %v11848_v47  ;;  %v8453_v31 = vld [vmem:[%s17206_s2 + $0x438] sm:$0xff]  ;;  %v17232_v53 = vmax.f32 %v11848_v47, 0.0 }
 0x241   :  { %2727 = vperm.xlu1 %9349, %v8461_v41   ;;  %2692 = vperm.xlu0 %9348, %v8454_v55   ;;  %v8457_v41 = vld [vmem:[%s17206_s2 + $0x458] sm:$0xff] }
 0x242   :  { %v11845_v44 = vpop.permute.xlu2 %2469 }
 0x243   :  { %v11850_v46 = vpop.permute.xlu1 %2528  ;;  %v11852_v19 = vpop.permute.xlu0 %2459 }
 0x244   :  { %17854 = vst [vmem:[#allocation158_spill] sm:$0xff] %v11850_v46  ;;  %v8456_v46 = vld [vmem:[%s17206_s2 + $0x450] sm:$0xff] }
 0x248   :  { %2687 = vperm.xlu2 %9347, %v8453_v31   ;;  %v8460_v31 = vld [vmem:[%s17206_s2 + $0x470] sm:$0xff] }
 0x249   :  { %2814 = vrot.lane.b32.xlu1 %v17232_v53, %s9945_s22  ;;  %2707 = vperm.xlu0 %9348, %v8457_v41   ;;  %v17234_v41 = vmax.f32 %v11214_v45, 0.0  ;;  %v11882_v53 = vshrl.u32 %v1422_v5, 7 }
 0x24a   :  { %v11864_v13 = vpop.permute.xlu2 %2176 }
 0x24b   :  { %17855 = vst [vmem:[#allocation159_spill] sm:$0xff] %v11864_v13  ;;  %v11866_v55 = vpop.permute.xlu1 %2180  ;;  %v11868_v7 = vpop.permute.xlu0 %2172  ;;  %vm1424_vm1 = vcmp.lt.s32.totalorder %v11882_v53, 1  ;;  %vm1698_vm2 = vcmp.lt.s32.totalorder %v11882_v53, 7 }
 0x24c   :  { %17856 = vst [vmem:[#allocation160_spill] sm:$0xff] %v11866_v55  ;;  %v11885_v55 = vadd.f32 %v11843_v43, %v1153_v40  ;;  %v8459_v40 = vld [vmem:[%s17206_s2 + $0x468] sm:$0xff] }
 0x24d   :  { %17857 = vst [vmem:[#allocation161_spill] sm:$0xff] %v11868_v7 }
 0x24e   :  { %17858 = vst [vmem:[#allocation162_spill] sm:$0xff] %v11882_v53 }
 0x24f   :  { %17859 = vst [vmem:[#allocation163_spill] sm:$0xff] %v11885_v55 }
 0x250   :  { %2702 = vperm.xlu2 %9347, %v8456_v46  }
 0x251   :  { %2820 = vrot.lane.b32.xlu1 %v17234_v41, %s9945_s22  ;;  %2722 = vperm.xlu0 %9348, %v8460_v31   ;;  %v1141_v31 = vmul.f32 %v11827_v6, %v11109_v16 }
 0x252   :  { %v1356_v47 = vpop.permute.xlu2 %1355 }
 0x253   :  { %v1360_v34 = vpop.permute.xlu1 %1359  ;;  %v11887_v13 = vpop.permute.xlu0 %1351  ;;  %v11891_v7 = vsel %vm1373_vm0, %v11619_v61, %v1356_v47  ;;  %v17238_v61 = vmax.f32 %v11885_v55, 0.0  ;;  %v1147_v47 = vmul.f32 %v11827_v6, %v11155_v2  ;;  %v11919_v16 = vadd.f32 %v11843_v43, %v1141_v31 }
 0x254   :  { %17860 = vst [vmem:[#allocation164_spill] sm:$0xff] %v11887_v13  ;;  %v11895_v46 = vsel %vm1373_vm0, %v11664_v58, %v1360_v34  ;;  %v17237_v41 = vrot.slane %v11891_v7, 7  ;;  %v17240_v34 = vmax.f32 %v11132_v59, 0.0 }
 0x255   :  { %17861 = vst [vmem:[#allocation165_spill] sm:$0xff] %v11891_v7  ;;  %v1418_v5 = vrot.slane %v11895_v46, 7  ;;  %v1663_v7 = vmul.f32 %v10871_v25, %v11895_v46  ;;  %v17241_v55 = vmax.f32 %v11919_v16, 0.0  ;;  %v1162_v25 = vmul.f32 %v11827_v6, %v11234_v24 }
 0x256   :  { %17862 = vst [vmem:[#allocation166_spill] sm:$0xff] %v11895_v46 }
 0x257   :  { %v11910_v58 = vsel %vm1424_vm1, %v17237_v41, %v1418_v5  ;;  %17864 = vst [vmem:[#allocation168_spill] sm:$0xff] %v11919_v16 }
 0x258   :  { %17863 = vst [vmem:[#allocation167_spill] sm:$0xff] %v11910_v58  ;;  %2717 = vperm.xlu2 %9347, %v8459_v40   ;;  %v1550_v2 = vmul.f32 %v10776_v38, %v11910_v58  ;;  %v17879_v58 = vrot.slane %v11895_v46, 1 }
 0x259   :  { %2826 = vrot.lane.b32.xlu1 %v17238_v61, %s9945_s22  ;;  %2812 = vrot.lane.b32.xlu0 %v17240_v34, %s9945_s22  ;;  %v11935_v61 = vadd.f32 %v11843_v43, %v1147_v47  ;;  %v17242_v34 = vmax.f32 %v11250_v21, 0.0  ;;  %v8516_v21 = vld [vmem:[%s17205_s1 + $0x2b0] sm:$0xff] }
 0x25a   :  { %v11926_v41 = vpop.permute.xlu2 %2533  ;;  %v1679_v31 = vadd.f32 %v1663_v7, %v1550_v2  ;;  %v11952_v7 = vadd.f32 %v11843_v43, %v1162_v25  ;;  %v1150_v2 = vmul.f32 %v11827_v6, %v11167_v30 }
 0x25b   :  { %17865 = vst [vmem:[#allocation169_spill] sm:$0xff] %v11926_v41  ;;  %v11930_v40 = vpop.permute.xlu1 %2543  ;;  %v11932_v13 = vpop.permute.xlu0 %2523  ;;  %v17244_v41 = vmax.f32 %v11935_v61, 0.0 }
 0x25c   :  { %17866 = vst [vmem:[#allocation170_spill] sm:$0xff] %v11930_v40  ;;  %v17247_v16 = vmax.f32 %v11952_v7, 0.0  ;;  %v11972_v25 = vadd.f32 %v11843_v43, %v1150_v2 }
 0x25d   :  { %17867 = vst [vmem:[#allocation171_spill] sm:$0xff] %v11932_v13 }
 0x25e   :  { %17868 = vst [vmem:[#allocation172_spill] sm:$0xff] %v11935_v61 }
 0x25f   :  { %17869 = vst [vmem:[#allocation173_spill] sm:$0xff] %v11952_v7 }
 0x260   :  { %2810 = vrot.lane.b32.xlu2 %v17241_v55, %s9945_s22  ;;  %v1156_v55 = vmul.f32 %v11827_v6, %v11191_v57  ;;  %17871 = vst [vmem:[#allocation175_spill] sm:$0xff] %v11972_v25 }
 0x261   :  { %2832 = vrot.lane.b32.xlu1 %v17242_v34, %s9945_s22  ;;  %2818 = vrot.lane.b32.xlu0 %v17244_v41, %s9945_s22  ;;  %v17246_v34 = vmax.f32 %v11152_v56, 0.0  ;;  %v17248_v41 = vmax.f32 %v11247_v62, 0.0 }
 0x262   :  { %v2189_v38 = vpop.permute.xlu2 %2188  ;;  %v11975_v30 = vadd.f32 %v11843_v43, %v1156_v55 }
 0x263   :  { %v11954_v24 = vpop.permute.xlu1 %2192  ;;  %v11956_v47 = vpop.permute.xlu0 %2184 }
 0x264   :  { %17870 = vst [vmem:[#allocation174_spill] sm:$0xff] %v11956_v47 }
 0x265   :  { %17872 = vst [vmem:[#allocation176_spill] sm:$0xff] %v11975_v30 }
 0x268   :  { %2816 = vrot.lane.b32.xlu2 %v17246_v34, %s9945_s22 }
 0x269   :  { %2838 = vrot.lane.b32.xlu1 %v17247_v16, %s9945_s22  ;;  %2824 = vrot.lane.b32.xlu0 %v17248_v41, %s9945_s22  ;;  %v1171_v16 = vmul.f32 %v11827_v6, %v11296_v1 }
 0x26a   :  { %v1368_v57 = vpop.permute.xlu2 %1367 }
 0x26b   :  { %v1372_v61 = vpop.permute.xlu1 %1371  ;;  %v1364_v47 = vpop.permute.xlu0 %1363  ;;  %v11982_v34 = vsel %vm1373_vm0, %v11662_v51, %v1368_v57  ;;  %v12010_v7 = vadd.f32 %v11843_v43, %v1171_v16  ;;  %v17877_v51 = vld [vmem:[#allocation34_spill] sm:$0xff]  ;;  %v17881_v16 = vld [vmem:[#allocation19_spill] sm:$0xff] }
 0x26c   :  { %v11988_v2 = vsel %vm1373_vm0, %v11706_v15, %v1372_v61  ;;  %v11992_v55 = vsel %vm1373_vm0, %v11660_v29, %v1364_v47  ;;  %v1420_v41 = vrot.slane %v11982_v34, 7  ;;  %v1696_v40 = vrot.slane %v11982_v34, 1 }
 0x26d   :  { %17873 = vst [vmem:[#allocation177_spill] sm:$0xff] %v11988_v2  ;;  %v1419_v13 = vrot.slane %v11992_v55, 7  ;;  %v1695_v1 = vrot.slane %v11992_v55, 1  ;;  %v1664_v15 = vmul.f32 %v17877_v51, %v11992_v55  ;;  %v1665_v26 = vmul.f32 %v17882_v36, %v11982_v34 }
 0x26e   :  { %17874 = vst [vmem:[#allocation178_spill] sm:$0xff] %v11992_v55  ;;  %v17887_v36 = vmax.f32 %v11975_v30, 0.0  ;;  %v1159_v30 = vmul.f32 %v11827_v6, %v17894_v37 }
 0x26f   :  { %v12004_v29 = vsel %vm1424_vm1, %v1418_v5, %v1419_v13  ;;  %v1426_v61 = vsel %vm1424_vm1, %v1419_v13, %v1420_v41  ;;  %17876 = vst [vmem:[#allocation180_spill] sm:$0xff] %v12010_v7  ;;  %v17878_v5 = vmax.f32 %v11972_v25, 0.0  ;;  %v12024_v13 = vsel %vm1698_vm2, %v17879_v58, %v1695_v1  ;;  %v17885_v58 = vld [vmem:[#allocation52_spill] sm:$0xff] }
 0x270   :  { %17875 = vst [vmem:[#allocation179_spill] sm:$0xff] %v12004_v29  ;;  %v1551_v57 = vmul.f32 %v10720_v63, %v12004_v29  ;;  %v1552_v47 = vmul.f32 %v17881_v16, %v1426_v61  ;;  %v17883_v63 = vrot.slane %v11988_v2, 1  ;;  %v1825_v46 = vmul.f32 %v17885_v58, %v12024_v13  ;;  %v17892_v58 = vld [vmem:[#allocation54_spill] sm:$0xff] }
 0x271   :  { %2822 = vrot.lane.b32.xlu2 %v17878_v5, %s9945_s22  ;;  %17880 = vst [vmem:[#allocation34_spill] sm:$0xff] %v12024_v13  ;;  %v17884_v5 = vmax.f32 %v11306_v50, 0.0  ;;  %v12043_v16 = vsel %vm1698_vm2, %v1695_v1, %v1696_v40  ;;  %2830 = vrot.lane.b32.xlu0 %v17887_v36, %s9945_s22  ;;  %v17900_v36 = vld [vmem:[#allocation77_spill] sm:$0xff]  ;;  %v8513_v50 = vld [vmem:[%s17205_s1 + $0x298] sm:$0xff] }
 0x272   :  { %v12033_v51 = vsel %vm1698_vm2, %v1696_v40, %v17883_v63  ;;  %v1680_v55 = vadd.f32 %v1664_v15, %v1551_v57  ;;  %17886 = vst [vmem:[#allocation19_spill] sm:$0xff] %v12043_v16  ;;  %v12048_v63 = vpop.permute.xlu2 %2548  ;;  %v1681_v32 = vadd.f32 %v1665_v26, %v1552_v47  ;;  %v17891_v57 = vld [vmem:[#allocation69_spill] sm:$0xff]  ;;  %v1841_v25 = vadd.f32 %v1825_v46, %v1679_v31  ;;  %v17893_v40 = vld [vmem:[#allocation72_spill] sm:$0xff]  ;;  %v17897_v31 = vld [vmem:[#allocation66_spill] sm:$0xff] }
 0x273   :  { %2844 = vrot.lane.b32.xlu1 %v17884_v5, %s9945_s22  ;;  %17888 = vst [vmem:[#allocation37_spill] sm:$0xff] %v12048_v63  ;;  %v12050_v4 = vpop.permute.xlu1 %2558  ;;  %v12052_v5 = vpop.permute.xlu0 %2538  ;;  %v1954_v15 = vmul.f32 %v17891_v57, %v12004_v29  ;;  %v1826_v13 = vmul.f32 %v17892_v58, %v12043_v16  ;;  %v17895_v26 = vrot.slane %v11988_v2, 7  ;;  %v2211_v46 = vsel %vm1373_vm0, %v11650_v23, %v2189_v38  ;;  %v17898_v58 = vld [vmem:[#allocation49_spill] sm:$0xff] }
 0x274   :  { %17889 = vst [vmem:[#allocation52_spill] sm:$0xff] %v12050_v4  ;;  %v1955_v57 = vmul.f32 %v17897_v31, %v1426_v61  ;;  %v1827_v1 = vmul.f32 %v17898_v58, %v12033_v51  ;;  %v17899_v4 = vld [vmem:[#allocation74_spill] sm:$0xff]  ;;  %v17902_v23 = vmax.f32 %v12010_v7, 0.0  ;;  %v2212_v58 = vsel %vm1373_vm0, %v11695_v20, %v11954_v24 }
 0x275   :  { %17890 = vst [vmem:[#allocation181_spill] sm:$0xff] %v12052_v5  ;;  %v1970_v63 = vadd.f32 %v1954_v15, %v1841_v25  ;;  %v12066_v47 = vsel %vm1424_vm1, %v1420_v41, %v17895_v26  ;;  %v1842_v29 = vadd.f32 %v1826_v13, %v1680_v55  ;;  %v1165_v37 = vmul.f32 %v11827_v6, %v17899_v4  ;;  %v17903_v55 = vld [vmem:[#allocation70_spill] sm:$0xff] }
 0x276   :  { %17896 = vst [vmem:[#allocation69_spill] sm:$0xff] %v12066_v47  ;;  %v17264_v25 = vmax.f32 %v17900_v36, 0.0  ;;  %v17901_v15 = vmax.f32 %v17893_v40, 0.0  ;;  %v2356_v26 = vmul.f32 %v11586_v10, %v12043_v16  ;;  %v1843_v38 = vadd.f32 %v1827_v1, %v1681_v32  ;;  %v17906_v1 = vld [vmem:[#allocation43_spill] sm:$0xff]  ;;  %v8467_v16 = vld [vmem:[%s17205_s1 + $0xa8] sm:$0xff]  ;;  %v8530_v40 = vld [vmem:[%s17205_s1 + $0x320] sm:$0xff] }
 0x277   :  { %v2243_v41 = vadd.f32 %v2211_v46, %v1970_v63  ;;  %v1956_v13 = vmul.f32 %v17903_v55, %v12066_v47  ;;  %v1971_v31 = vadd.f32 %v1955_v57, %v1842_v29  ;;  %v12087_v4 = vadd.f32 %v11843_v43, %v1159_v30  ;;  %v17907_v46 = vld [vmem:[#allocation82_spill] sm:$0xff]  ;;  %v8542_v36 = vld [vmem:[%s17205_s1 + $0x380] sm:$0xff] }
 0x278   :  { %v2485_v32 = vmul.f32 %v11852_v19, %v1426_v61  ;;  %v2357_v20 = vmul.f32 %v11593_v22, %v12033_v51  ;;  %v12107_v24 = vadd.f32 %v11843_v43, %v1165_v37  ;;  %v12112_v19 = vsel %vm1373_vm0, %v11458_v18, %v11721_v12  ;;  %v17913_v18 = vld [vmem:[#allocation29_spill] sm:$0xff]  ;;  %v17914_v12 = vld [vmem:[#allocation75_spill] sm:$0xff] }
 0x279   :  { %2828 = vrot.lane.b32.xlu2 %v17901_v15, %s9945_s22  ;;  %17904 = vst [vmem:[#allocation54_spill] sm:$0xff] %v12087_v4  ;;  %2836 = vrot.lane.b32.xlu0 %v17264_v25, %s9945_s22  ;;  %v2372_v63 = vadd.f32 %v2356_v26, %v2243_v41  ;;  %v832_v15 = vadd.f32 %v17907_v46, %v17906_v1  ;;  %v17261_v26 = vmax.f32 %v12087_v4, 0.0  ;;  %v2939_v4 = vld [vmem:[%s17205_s1 + $0x8] sm:$0xff] }
 0x27a   :  { %v12095_v10 = vpop.permute.xlu2 %2563  ;;  %v1972_v57 = vadd.f32 %v1956_v13, %v1843_v38  ;;  %17910 = vst [vmem:[#allocation74_spill] sm:$0xff] %v12107_v24  ;;  %v2486_v41 = vmul.f32 %v11790_v11, %v12066_v47  ;;  %v17912_v13 = vld [vmem:[#allocation84_spill] sm:$0xff]  ;;  %v17260_v37 = vmax.f32 %v12107_v24, 0.0  ;;  %v822_v11 = vadd.f32 %v17914_v12, %v17913_v18  ;;  %v8480_v47 = vld [vmem:[%s17205_s1 + $0x110] sm:$0xff] }
 0x27b   :  { %2850 = vrot.lane.b32.xlu1 %v17902_v23, %s9945_s22  ;;  %17905 = vst [vmem:[#allocation71_spill] sm:$0xff] %v12095_v10  ;;  %v12100_v29 = vpop.permute.xlu1 %2573  ;;  %v12102_v30 = vpop.permute.xlu0 %2553  ;;  %v2244_v23 = vadd.f32 %v2212_v58, %v1971_v31  ;;  %v2501_v55 = vadd.f32 %v2485_v32, %v2372_v63  ;;  %v1180_v38 = vmul.f32 %v11827_v6, %v832_v15  ;;  %v17263_v31 = vmax.f32 %v17912_v13, 0.0  ;;  %v8479_v10 = vld [vmem:[%s17205_s1 + $0x108] sm:$0xff] }
 0x27c   :  { %17908 = vst [vmem:[#allocation66_spill] sm:$0xff] %v12100_v29  ;;  %v17262_v58 = vrot.slane %v12112_v19, 1  ;;  %v17269_v63 = vrot.slane %v12112_v19, 7  ;;  %v17915_v32 = vrot.slane %v11988_v2, 1  ;;  %v17921_v12 = vrot.slane %v11988_v2, 7  ;;  %v8470_v29 = vld [vmem:[%s17205_s1 + $0xc0] sm:$0xff] }
 0x27d   :  { %17909 = vst [vmem:[#allocation49_spill] sm:$0xff] %v12102_v30  ;;  %v2373_v61 = vadd.f32 %v2357_v20, %v2244_v23  ;;  %v12144_v15 = vadd.f32 %v11843_v43, %v1180_v38 }
 0x27e   :  { %17911 = vst [vmem:[#allocation70_spill] sm:$0xff] %v12112_v19  ;;  %v12136_v1 = vsel %vm1698_vm2, %v17915_v32, %v17262_v58  ;;  %v12154_v32 = vsel %vm1424_vm1, %v17921_v12, %v17269_v63  ;;  %v8500_v19 = vld [vmem:[%s17205_s1 + $0x1b0] sm:$0xff] }
 0x27f   :  { %v2502_v22 = vadd.f32 %v2486_v41, %v2373_v61  ;;  %17916 = vst [vmem:[#allocation43_spill] sm:$0xff] %v12136_v1  ;;  %v17919_v61 = vld [vmem:[#allocation36_spill] sm:$0xff]  ;;  %v17920_v41 = vld [vmem:[#allocation79_spill] sm:$0xff]  ;;  %v2358_v38 = vmul.f32 %v11591_v33, %v12136_v1  ;;  %v17267_v7 = vmax.f32 %v12144_v15, 0.0  ;;  %v2487_v12 = vmul.f32 %v11845_v44, %v12154_v32 }
 0x280   :  { %17918 = vst [vmem:[#allocation29_spill] sm:$0xff] %v12144_v15  ;;  %v827_v18 = vadd.f32 %v17920_v41, %v17919_v61  ;;  %v17923_v41 = vld [vmem:[#allocation76_spill] sm:$0xff] }
 0x281   :  { %2834 = vrot.lane.b32.xlu2 %v17261_v26, %s9945_s22  ;;  %2842 = vrot.lane.b32.xlu0 %v17260_v37, %s9945_s22  ;;  %17922 = vst [vmem:[#allocation75_spill] sm:$0xff] %v12154_v32  ;;  %v17272_v25 = vmax.f32 %v17923_v41, 0.0  ;;  %v8477_v1 = vld [vmem:[%s17205_s1 + $0xf8] sm:$0xff]  ;;  %v8488_v32 = vld [vmem:[%s17205_s1 + $0x150] sm:$0xff] }
 0x282   :  { %v12141_v46 = vpop.permute.xlu2 %2578  ;;  %v8501_v41 = vld [vmem:[%s17205_s1 + $0x1b8] sm:$0xff] }
 0x283   :  { %2856 = vrot.lane.b32.xlu1 %v17263_v31, %s9945_s22  ;;  %17917 = vst [vmem:[#allocation82_spill] sm:$0xff] %v12141_v46  ;;  %v2589_v23 = vpop.permute.xlu1 %2588  ;;  %v2197_v20 = vpop.permute.xlu0 %2196  ;;  %v1168_v31 = vmul.f32 %v11827_v6, %v822_v11  ;;  %v8473_v46 = vld [vmem:[%s17205_s1 + $0xd8] sm:$0xff] }
 0x284   :  { %v2614_v37 = vmul.f32 %v2589_v23, %v11982_v34  ;;  %v2213_v26 = vsel %vm1373_vm0, %v11702_v17, %v2197_v20  ;;  %v1174_v34 = vmul.f32 %v11827_v6, %v827_v18  ;;  %v17924_v23 = vld [vmem:[#allocation83_spill] sm:$0xff] }
 0x285   :  { %v2245_v58 = vadd.f32 %v2213_v26, %v1972_v57  ;;  %v17271_v17 = vmax.f32 %v17924_v23, 0.0  ;;  %v12179_v57 = vadd.f32 %v11843_v43, %v1168_v31  ;;  %v17273_v31 = vmax.f32 %v11423_v49, 0.0  ;;  %v8495_v23 = vld [vmem:[%s17205_s1 + $0x188] sm:$0xff] }
 0x286   :  { %v12162_v61 = vadd.f32 %v2614_v37, %v2501_v55 }
 0x287   :  { %v2374_v24 = vadd.f32 %v2358_v38, %v2245_v58  ;;  %17926 = vst [vmem:[#allocation79_spill] sm:$0xff] %v12179_v57  ;;  %v12190_v58 = vadd.f32 %v11843_v43, %v1174_v34 }
 0x289   :  { %2840 = vrot.lane.b32.xlu2 %v17272_v25, %s9945_s22  ;;  %v12176_v33 = vadd.f32 %v2487_v12, %v2374_v24  ;;  %2848 = vrot.lane.b32.xlu0 %v17271_v17, %s9945_s22  ;;  %17929 = vst [vmem:[#allocation184_spill] sm:$0xff] %v12190_v58  ;;  %v17268_v24 = vmax.f32 %v12179_v57, 0.0  ;;  %v17270_v20 = vmax.f32 %v12190_v58, 0.0  ;;  %v17934_v12 = vld [vmem:[#allocation80_spill] sm:$0xff] }
 0x28a   :  { %v2594_v44 = vpop.permute.xlu2 %2593  ;;  %v1177_v34 = vmul.f32 %v11827_v6, %v17934_v12 }
 0x28b   :  { %2862 = vrot.lane.b32.xlu1 %v17267_v7, %s9945_s22  ;;  %17925 = vst [vmem:[#allocation36_spill] sm:$0xff] %v12176_v33  ;;  %v12184_v55 = vpop.permute.xlu1 %2652  ;;  %v12186_v26 = vpop.permute.xlu0 %2568  ;;  %v2615_v37 = vmul.f32 %v2594_v44, %v11988_v2  ;;  %v2938_v44 = vld [vmem:[%s17205_s1] sm:$0xff] }
 0x28c   :  { %17927 = vst [vmem:[#allocation182_spill] sm:$0xff] %v12184_v55  ;;  %v12225_v17 = vadd.f32 %v11843_v43, %v1177_v34  ;;  %v2941_v34 = vld [vmem:[%s17205_s1 + $0x18] sm:$0xff] }
 0x28d   :  { %17928 = vst [vmem:[#allocation183_spill] sm:$0xff] %v12186_v26  ;;  %v12192_v11 = vadd.f32 %v2615_v37, %v2502_v22  ;;  %v17935_v37 = vld [vmem:[#allocation81_spill] sm:$0xff]  ;;  %v8465_v26 = vld [vmem:[%s17205_s1 + $0x98] sm:$0xff] }
 0x28e   :  { %v17275_v7 = vmax.f32 %v17935_v37, 0.0  ;;  %17937 = vst [vmem:[#allocation80_spill] sm:$0xff] %v12225_v17  ;;  %v8518_v37 = vld [vmem:[%s17205_s1 + $0x2c0] sm:$0xff] }
 0x28f   :  { %17930 = vst [vmem:[#allocation185_spill] sm:$0xff] %v12192_v11  ;;  %v17278_v11 = vmax.f32 %v12225_v17, 0.0 }
 0x291   :  { %2846 = vrot.lane.b32.xlu2 %v17268_v24, %s9945_s22  ;;  %2854 = vrot.lane.b32.xlu0 %v17270_v20, %s9945_s22  ;;  %v17936_v24 = vld [vmem:[#allocation85_spill] sm:$0xff]  ;;  %v17274_v20 = vmax.f32 %v11426_v54, 0.0  ;;  %v8515_v54 = vld [vmem:[%s17205_s1 + $0x2a8] sm:$0xff] }
 0x292   :  { %v12206_v22 = vpop.permute.xlu2 %2657  ;;  %v1183_v63 = vmul.f32 %v11827_v6, %v17936_v24 }
 0x293   :  { %2868 = vrot.lane.b32.xlu1 %v17273_v31, %s9945_s22  ;;  %17931 = vst [vmem:[#allocation186_spill] sm:$0xff] %v12206_v22  ;;  %v12208_v18 = vpop.permute.xlu1 %2667  ;;  %v12210_v38 = vpop.permute.xlu0 %2583  ;;  %v8474_v22 = vld [vmem:[%s17205_s1 + $0xe0] sm:$0xff] }
 0x294   :  { %17932 = vst [vmem:[#allocation187_spill] sm:$0xff] %v12208_v18  ;;  %v12235_v24 = vadd.f32 %v11843_v43, %v1183_v63  ;;  %v8482_v18 = vld [vmem:[%s17205_s1 + $0x120] sm:$0xff] }
 0x295   :  { %17933 = vst [vmem:[#allocation188_spill] sm:$0xff] %v12210_v38  ;;  %v2951_v38 = vld [vmem:[%s17205_s1 + $0x68] sm:$0xff] }
 0x296   :  { %17940 = vst [vmem:[#allocation190_spill] sm:$0xff] %v12235_v24 }
 0x299   :  { %2852 = vrot.lane.b32.xlu2 %v17275_v7, %s9945_s22  ;;  %2860 = vrot.lane.b32.xlu0 %v17274_v20, %s9945_s22  ;;  %v17942_v20 = vld [vmem:[#allocation50_spill] sm:$0xff]  ;;  %v17943_v7 = vld [vmem:[#allocation87_spill] sm:$0xff] }
 0x29a   :  { %v12230_v12 = vpop.permute.xlu2 %2672  ;;  %v837_v33 = vadd.f32 %v17943_v7, %v17942_v20  ;;  %v17282_v7 = vmax.f32 %v11482_v52, 0.0 }
 0x29b   :  { %2956 = vperm.xlu1 %9349, %v2938_v44   ;;  %17938 = vst [vmem:[#allocation85_spill] sm:$0xff] %v12230_v12  ;;  %v12232_v25 = vpop.permute.xlu1 %2682  ;;  %v12237_v31 = vpop.permute.xlu0 %2598  ;;  %v17279_v44 = vmax.f32 %v12235_v24, 0.0  ;;  %v8468_v12 = vld [vmem:[%s17205_s1 + $0xb0] sm:$0xff] }
 0x29c   :  { %17939 = vst [vmem:[#allocation189_spill] sm:$0xff] %v12232_v25  ;;  %v1186_v58 = vmul.f32 %v11827_v6, %v837_v33 }
 0x29d   :  { %17941 = vst [vmem:[#allocation191_spill] sm:$0xff] %v12237_v31 }
 0x29e   :  { %v12268_v20 = vadd.f32 %v11843_v43, %v1186_v58  ;;  %v2940_v43 = vld [vmem:[%s17205_s1 + $0x10] sm:$0xff] }
 0x2a0   :  { %17947 = vst [vmem:[#allocation193_spill] sm:$0xff] %v12268_v20  ;;  %v17286_v24 = vmax.f32 %v12268_v20, 0.0  ;;  %v8464_v20 = vld [vmem:[%s17205_s1 + $0x90] sm:$0xff] }
 0x2a1   :  { %2858 = vrot.lane.b32.xlu2 %v17278_v11, %s9945_s22  ;;  %2866 = vrot.lane.b32.xlu0 %v17279_v44, %s9945_s22  ;;  %v2944_v11 = vld [vmem:[%s17205_s1 + $0x30] sm:$0xff] }
 0x2a2   :  { %v12252_v63 = vpop.permute.xlu2 %2687 }
 0x2a3   :  { %2971 = vperm.xlu1 %9349, %v2941_v34   ;;  %17944 = vst [vmem:[#allocation50_spill] sm:$0xff] %v12252_v63  ;;  %v12254_v31 = vpop.permute.xlu1 %2697  ;;  %v12256_v15 = vpop.permute.xlu0 %2662  ;;  %v17281_v34 = vmax.f32 %v11401_v42, 0.0  ;;  %v8503_v42 = vld [vmem:[%s17205_s1 + $0x1c8] sm:$0xff] }
 0x2a4   :  { %17945 = vst [vmem:[#allocation87_spill] sm:$0xff] %v12254_v31  ;;  %v8462_v31 = vld [vmem:[%s17205_s1 + $0x80] sm:$0xff] }
 0x2a5   :  { %17946 = vst [vmem:[#allocation192_spill] sm:$0xff] %v12256_v15  ;;  %v8485_v15 = vld [vmem:[%s17205_s1 + $0x138] sm:$0xff] }
 0x2a9   :  { %2864 = vrot.lane.b32.xlu2 %v17281_v34, %s9945_s22  ;;  %2872 = vrot.lane.b32.xlu0 %v17282_v7, %s9945_s22  ;;  %v2947_v34 = vld [vmem:[%s17205_s1 + $0x48] sm:$0xff] }
 0x2aa   :  { %v12273_v6 = vpop.permute.xlu2 %2702 }
 0x2ab   :  { %2986 = vperm.xlu1 %9349, %v2944_v11   ;;  %17948 = vst [vmem:[#allocation194_spill] sm:$0xff] %v12273_v6  ;;  %v12275_v33 = vpop.permute.xlu1 %2712  ;;  %v12277_v44 = vpop.permute.xlu0 %2677 }
 0x2ac   :  { %17949 = vst [vmem:[#allocation195_spill] sm:$0xff] %v12275_v33  ;;  %v2948_v33 = vld [vmem:[%s17205_s1 + $0x50] sm:$0xff] }
 0x2ad   :  { %17950 = vst [vmem:[#allocation196_spill] sm:$0xff] %v12277_v44  ;;  %v8471_v44 = vld [vmem:[%s17205_s1 + $0xc8] sm:$0xff] }
 0x2b1   :  { %2870 = vrot.lane.b32.xlu2 %v17286_v24, %s9945_s22  ;;  %2966 = vperm.xlu0 %9348, %v2940_v43   ;;  %v2950_v24 = vld [vmem:[%s17205_s1 + $0x60] sm:$0xff] }
 0x2b2   :  { %v2718_v58 = vpop.permute.xlu2 %2717 }
 0x2b3   :  { %3001 = vperm.xlu1 %9349, %v2947_v34   ;;  %v12289_v11 = vpop.permute.xlu1 %2727  ;;  %v2743_v7 = vmul.f32 %v2718_v58, %v12033_v51  ;;  %v12292_v17 = vpop.permute.xlu0 %2692  ;;  %v2943_v34 = vld [vmem:[%s17205_s1 + $0x28] sm:$0xff]  ;;  %v2953_v58 = vld [vmem:[%s17205_s1 + $0x78] sm:$0xff] }
 0x2b4   :  { %17951 = vst [vmem:[#allocation197_spill] sm:$0xff] %v12289_v11  ;;  %v2945_v11 = vld [vmem:[%s17205_s1 + $0x38] sm:$0xff] }
 0x2b5   :  { %17952 = vst [vmem:[#allocation198_spill] sm:$0xff] %v12292_v17  ;;  %v12295_v57 = vadd.f32 %v2743_v7, %v12162_v61  ;;  %v2942_v7 = vld [vmem:[%s17205_s1 + $0x20] sm:$0xff]  ;;  %v8476_v17 = vld [vmem:[%s17205_s1 + $0xf0] sm:$0xff] }
 0x2b7   :  { %17953 = vst [vmem:[#allocation199_spill] sm:$0xff] %v12295_v57 }
 0x2b9   :  { %2961 = vperm.xlu2 %9347, %v2939_v4   ;;  %2981 = vperm.xlu0 %9348, %v2943_v34   ;;  %v2946_v4 = vld [vmem:[%s17205_s1 + $0x40] sm:$0xff] }
 0x2ba   :  { %v12306_v51 = vpop.permute.xlu2 %2810 }
 0x2bb   :  { %3016 = vperm.xlu1 %9349, %v2950_v24   ;;  %v12308_v43 = vpop.permute.xlu1 %2814  ;;  %v12310_v61 = vpop.permute.xlu0 %2707 }
 0x2bc   :  { %17954 = vst [vmem:[#allocation200_spill] sm:$0xff] %v12310_v61 }
 0x2c1   :  { %2976 = vperm.xlu2 %9347, %v2942_v7   ;;  %2996 = vperm.xlu0 %9348, %v2946_v4   ;;  %v2949_v7 = vld [vmem:[%s17205_s1 + $0x58] sm:$0xff] }
 0x2c2   :  { %v12321_v24 = vpop.permute.xlu2 %2816 }
 0x2c3   :  { %3031 = vperm.xlu1 %9349, %v2953_v58   ;;  %v12323_v34 = vpop.permute.xlu1 %2820  ;;  %v12325_v57 = vpop.permute.xlu0 %2722 }
 0x2c4   :  { %17955 = vst [vmem:[#allocation201_spill] sm:$0xff] %v12325_v57 }
 0x2c9   :  { %2991 = vperm.xlu2 %9347, %v2945_v11   ;;  %3011 = vperm.xlu0 %9348, %v2949_v7   ;;  %v2952_v11 = vld [vmem:[%s17205_s1 + $0x70] sm:$0xff] }
 0x2cb   :  { %3079 = vperm.xlu1 %9349, %v8464_v20   ;;  %v12336_v58 = vpop.permute.xlu2 %2822  ;;  %v12338_v4 = vpop.permute.xlu1 %2826 }
 0x2cc   :  { %v12340_v57 = vpop.permute.xlu0 %2812 }
 0x2d1   :  { %3006 = vperm.xlu2 %9347, %v2948_v33   ;;  %3026 = vperm.xlu0 %9348, %v2952_v11   ;;  %v8463_v33 = vld [vmem:[%s17205_s1 + $0x88] sm:$0xff] }
 0x2d3   :  { %3094 = vperm.xlu1 %9349, %v8467_v16   ;;  %v12351_v20 = vpop.permute.xlu2 %2828  ;;  %v12353_v7 = vpop.permute.xlu1 %2832 }
 0x2d4   :  { %v12355_v6 = vpop.permute.xlu0 %2818 }
 0x2d9   :  { %3021 = vperm.xlu2 %9347, %v2951_v38   ;;  %3074 = vperm.xlu0 %9348, %v8463_v33   ;;  %v8466_v38 = vld [vmem:[%s17205_s1 + $0xa0] sm:$0xff] }
 0x2db   :  { %3109 = vperm.xlu1 %9349, %v8470_v29   ;;  %v12366_v16 = vpop.permute.xlu2 %2834  ;;  %v12368_v11 = vpop.permute.xlu1 %2838 }
 0x2dc   :  { %v12370_v61 = vpop.permute.xlu0 %2824 }
 0x2e1   :  { %3069 = vperm.xlu2 %9347, %v8462_v31   ;;  %3089 = vperm.xlu0 %9348, %v8466_v38   ;;  %v8469_v31 = vld [vmem:[%s17205_s1 + $0xb8] sm:$0xff] }
 0x2e3   :  { %3124 = vperm.xlu1 %9349, %v8473_v46   ;;  %v12381_v29 = vpop.permute.xlu2 %2840 }
 0x2e4   :  { %v12385_v63 = vpop.permute.xlu0 %2830 }
 0x2e5   :  { %v12383_v33 = vpop.permute.xlu1 %2844  ;;  %v12755_v56 = vsel %vm1373_vm0, %v12385_v63, %v12353_v7 }
 0x2e9   :  { %3084 = vperm.xlu2 %9347, %v8465_v26   ;;  %3104 = vperm.xlu0 %9348, %v8469_v31   ;;  %v8472_v26 = vld [vmem:[%s17205_s1 + $0xd0] sm:$0xff] }
 0x2eb   :  { %3139 = vperm.xlu1 %9349, %v8476_v17   ;;  %v12396_v46 = vpop.permute.xlu2 %2846 }
 0x2ec   :  { %v12400_v25 = vpop.permute.xlu0 %2836 }
 0x2ed   :  { %v12398_v38 = vpop.permute.xlu1 %2850 }
 0x2f1   :  { %3099 = vperm.xlu2 %9347, %v8468_v12   ;;  %3119 = vperm.xlu0 %9348, %v8472_v26   ;;  %v8475_v12 = vld [vmem:[%s17205_s1 + $0xe8] sm:$0xff] }
 0x2f3   :  { %3219 = vperm.xlu1 %9349, %v8479_v10   ;;  %v12411_v17 = vpop.permute.xlu2 %2852 }
 0x2f4   :  { %v12415_v30 = vpop.permute.xlu0 %2842 }
 0x2f5   :  { %v12413_v31 = vpop.permute.xlu1 %2856 }
 0x2f9   :  { %3114 = vperm.xlu2 %9347, %v8471_v44   ;;  %3134 = vperm.xlu0 %9348, %v8475_v12   ;;  %v8478_v44 = vld [vmem:[%s17205_s1 + $0x100] sm:$0xff] }
 0x2fb   :  { %3234 = vperm.xlu1 %9349, %v8482_v18   ;;  %v12426_v10 = vpop.permute.xlu2 %2858 }
 0x2fc   :  { %v12430_v5 = vpop.permute.xlu0 %2848 }
 0x2fd   :  { %v12428_v26 = vpop.permute.xlu1 %2862 }
 0x301   :  { %3129 = vperm.xlu2 %9347, %v8474_v22   ;;  %3214 = vperm.xlu0 %9348, %v8478_v44   ;;  %v8481_v22 = vld [vmem:[%s17205_s1 + $0x118] sm:$0xff] }
 0x303   :  { %3249 = vperm.xlu1 %9349, %v8485_v15   ;;  %v12441_v18 = vpop.permute.xlu2 %2864 }
 0x304   :  { %v12445_v55 = vpop.permute.xlu0 %2854 }
 0x305   :  { %v12443_v12 = vpop.permute.xlu1 %2868 }
 0x306   :  { %17956 = vst [vmem:[#allocation202_spill] sm:$0xff] %v12443_v12  ;;  %v8540_v12 = vld [vmem:[%s17205_s1 + $0x370] sm:$0xff] }
 0x309   :  { %3144 = vperm.xlu2 %9347, %v8477_v1   ;;  %3229 = vperm.xlu0 %9348, %v8481_v22   ;;  %v8484_v1 = vld [vmem:[%s17205_s1 + $0x130] sm:$0xff] }
 0x30b   :  { %3264 = vperm.xlu1 %9349, %v8488_v32   ;;  %v12456_v15 = vpop.permute.xlu2 %2870 }
 0x30c   :  { %v12460_v2 = vpop.permute.xlu0 %2860 }
 0x30d   :  { %v12458_v44 = vpop.permute.xlu1 %2956 }
 0x30e   :  { %17957 = vst [vmem:[#allocation203_spill] sm:$0xff] %v12458_v44  ;;  %v8524_v44 = vld [vmem:[%s17205_s1 + $0x2f0] sm:$0xff] }
 0x311   :  { %3224 = vperm.xlu2 %9347, %v8480_v47   ;;  %3244 = vperm.xlu0 %9348, %v8484_v1   ;;  %v8487_v47 = vld [vmem:[%s17205_s1 + $0x148] sm:$0xff] }
 0x313   :  { %3279 = vperm.xlu1 %9349, %v8491_v60   ;;  %v12471_v32 = vpop.permute.xlu2 %2961 }
 0x314   :  { %17958 = vst [vmem:[#allocation204_spill] sm:$0xff] %v12471_v32  ;;  %v12475_v8 = vpop.permute.xlu0 %2866 }
 0x315   :  { %v12473_v22 = vpop.permute.xlu1 %2971  ;;  %17960 = vst [vmem:[#allocation206_spill] sm:$0xff] %v12475_v8 }
 0x316   :  { %17959 = vst [vmem:[#allocation205_spill] sm:$0xff] %v12473_v22 }
 0x319   :  { %3239 = vperm.xlu2 %9347, %v8483_v39   ;;  %3259 = vperm.xlu0 %9348, %v8487_v47   ;;  %v8490_v39 = vld [vmem:[%s17205_s1 + $0x160] sm:$0xff] }
 0x31b   :  { %3327 = vperm.xlu1 %9349, %v8494_v35   ;;  %v12486_v60 = vpop.permute.xlu2 %2976 }
 0x31c   :  { %17961 = vst [vmem:[#allocation207_spill] sm:$0xff] %v12486_v60  ;;  %v12490_v28 = vpop.permute.xlu0 %2872  ;;  %v8510_v60 = vld [vmem:[%s17205_s1 + $0x280] sm:$0xff] }
 0x31d   :  { %v12488_v1 = vpop.permute.xlu1 %2986 }
 0x31e   :  { %17962 = vst [vmem:[#allocation208_spill] sm:$0xff] %v12488_v1  ;;  %v8507_v1 = vld [vmem:[%s17205_s1 + $0x1e8] sm:$0xff] }
 0x321   :  { %3254 = vperm.xlu2 %9347, %v8486_v27   ;;  %3274 = vperm.xlu0 %9348, %v8490_v39   ;;  %v8493_v27 = vld [vmem:[%s17205_s1 + $0x178] sm:$0xff] }
 0x323   :  { %3342 = vperm.xlu1 %9349, %v8497_v14   ;;  %v12501_v35 = vpop.permute.xlu2 %2991 }
 0x324   :  { %17963 = vst [vmem:[#allocation209_spill] sm:$0xff] %v12501_v35  ;;  %v12505_v48 = vpop.permute.xlu0 %2966 }
 0x325   :  { %v12503_v47 = vpop.permute.xlu1 %3001  ;;  %17965 = vst [vmem:[#allocation211_spill] sm:$0xff] %v12505_v48  ;;  %v8521_v48 = vld [vmem:[%s17205_s1 + $0x2d8] sm:$0xff] }
 0x326   :  { %17964 = vst [vmem:[#allocation210_spill] sm:$0xff] %v12503_v47  ;;  %v8504_v47 = vld [vmem:[%s17205_s1 + $0x1d0] sm:$0xff] }
 0x329   :  { %3269 = vperm.xlu2 %9347, %v8489_v9   ;;  %3289 = vperm.xlu0 %9348, %v8493_v27   ;;  %v8496_v9 = vld [vmem:[%s17205_s1 + $0x190] sm:$0xff] }
 0x32b   :  { %3357 = vperm.xlu1 %9349, %v8500_v19   ;;  %v12516_v14 = vpop.permute.xlu2 %3006 }
 0x32c   :  { %17966 = vst [vmem:[#allocation212_spill] sm:$0xff] %v12516_v14  ;;  %v12520_v0 = vpop.permute.xlu0 %2981  ;;  %v8509_v14 = vld [vmem:[%s17205_s1 + $0x1f8] sm:$0xff] }
 0x32d   :  { %v12518_v39 = vpop.permute.xlu1 %3016  ;;  %17968 = vst [vmem:[#allocation214_spill] sm:$0xff] %v12520_v0 }
 0x32e   :  { %17967 = vst [vmem:[#allocation213_spill] sm:$0xff] %v12518_v39  ;;  %v8506_v39 = vld [vmem:[%s17205_s1 + $0x1e0] sm:$0xff] }
 0x331   :  { %3284 = vperm.xlu2 %9347, %v8492_v3   ;;  %3337 = vperm.xlu0 %9348, %v8496_v9   ;;  %v8499_v3 = vld [vmem:[%s17205_s1 + $0x1a8] sm:$0xff] }
 0x333   :  { %3372 = vperm.xlu1 %9349, %v8503_v42   ;;  %v12531_v19 = vpop.permute.xlu2 %3021 }
 0x334   :  { %17969 = vst [vmem:[#allocation215_spill] sm:$0xff] %v12531_v19  ;;  %v12535_v13 = vpop.permute.xlu0 %2996  ;;  %v8498_v19 = vld [vmem:[%s17205_s1 + $0x1a0] sm:$0xff] }
 0x335   :  { %v12533_v27 = vpop.permute.xlu1 %3031  ;;  %17971 = vst [vmem:[#allocation217_spill] sm:$0xff] %v12535_v13  ;;  %v8512_v13 = vld [vmem:[%s17205_s1 + $0x290] sm:$0xff] }
 0x336   :  { %17970 = vst [vmem:[#allocation216_spill] sm:$0xff] %v12533_v27 }
 0x339   :  { %3332 = vperm.xlu2 %9347, %v8495_v23   ;;  %3352 = vperm.xlu0 %9348, %v8499_v3   ;;  %v8502_v23 = vld [vmem:[%s17205_s1 + $0x1c0] sm:$0xff] }
 0x33b   :  { %3387 = vperm.xlu1 %9349, %v8506_v39   ;;  %v12546_v42 = vpop.permute.xlu2 %3069 }
 0x33c   :  { %17972 = vst [vmem:[#allocation218_spill] sm:$0xff] %v12546_v42  ;;  %v12550_v27 = vpop.permute.xlu0 %3011 }
 0x33d   :  { %v12548_v9 = vpop.permute.xlu1 %3079  ;;  %17974 = vst [vmem:[#allocation220_spill] sm:$0xff] %v12550_v27 }
 0x33e   :  { %17973 = vst [vmem:[#allocation219_spill] sm:$0xff] %v12548_v9 }
 0x341   :  { %3347 = vperm.xlu2 %9347, %v8498_v19   ;;  %3367 = vperm.xlu0 %9348, %v8502_v23   ;;  %v8505_v19 = vld [vmem:[%s17205_s1 + $0x1d8] sm:$0xff] }
 0x343   :  { %3402 = vperm.xlu1 %9349, %v8509_v14   ;;  %v12561_v39 = vpop.permute.xlu2 %3084 }
 0x344   :  { %17975 = vst [vmem:[#allocation221_spill] sm:$0xff] %v12561_v39  ;;  %v12565_v27 = vpop.permute.xlu0 %3026 }
 0x345   :  { %v12563_v3 = vpop.permute.xlu1 %3094  ;;  %17977 = vst [vmem:[#allocation223_spill] sm:$0xff] %v12565_v27 }
 0x346   :  { %17976 = vst [vmem:[#allocation222_spill] sm:$0xff] %v12563_v3 }
 0x349   :  { %3362 = vperm.xlu2 %9347, %v8501_v41   ;;  %3382 = vperm.xlu0 %9348, %v8505_v19   ;;  %v8508_v41 = vld [vmem:[%s17205_s1 + $0x1f0] sm:$0xff] }
 0x34b   :  { %3450 = vperm.xlu1 %9349, %v8512_v13   ;;  %v12576_v14 = vpop.permute.xlu2 %3099 }
 0x34c   :  { %17978 = vst [vmem:[#allocation224_spill] sm:$0xff] %v12576_v14  ;;  %v12580_v27 = vpop.permute.xlu0 %3074 }
 0x34d   :  { %v12578_v23 = vpop.permute.xlu1 %3109  ;;  %17980 = vst [vmem:[#allocation226_spill] sm:$0xff] %v12580_v27 }
 0x34e   :  { %17979 = vst [vmem:[#allocation225_spill] sm:$0xff] %v12578_v23 }
 0x351   :  { %3377 = vperm.xlu2 %9347, %v8504_v47   ;;  %3397 = vperm.xlu0 %9348, %v8508_v41   ;;  %v8511_v47 = vld [vmem:[%s17205_s1 + $0x288] sm:$0xff] }
 0x353   :  { %3465 = vperm.xlu1 %9349, %v8515_v54   ;;  %v12591_v13 = vpop.permute.xlu2 %3114 }
 0x354   :  { %17981 = vst [vmem:[#allocation227_spill] sm:$0xff] %v12591_v13  ;;  %v12595_v35 = vpop.permute.xlu0 %3089 }
 0x355   :  { %v12593_v19 = vpop.permute.xlu1 %3124  ;;  %17983 = vst [vmem:[#allocation229_spill] sm:$0xff] %v12595_v35 }
 0x356   :  { %17982 = vst [vmem:[#allocation228_spill] sm:$0xff] %v12593_v19 }
 0x359   :  { %3392 = vperm.xlu2 %9347, %v8507_v1   ;;  %3445 = vperm.xlu0 %9348, %v8511_v47   ;;  %v8514_v1 = vld [vmem:[%s17205_s1 + $0x2a0] sm:$0xff] }
 0x35b   :  { %3480 = vperm.xlu1 %9349, %v8518_v37   ;;  %v12606_v54 = vpop.permute.xlu2 %3129 }
 0x35c   :  { %17984 = vst [vmem:[#allocation230_spill] sm:$0xff] %v12606_v54  ;;  %v12610_v0 = vpop.permute.xlu0 %3104  ;;  %v12750_v54 = vsel %vm1373_vm0, %v12336_v58, %v12370_v61  ;;  %v8541_v61 = vld [vmem:[%s17205_s1 + $0x378] sm:$0xff]  ;;  %v2911_v58 = vrot.slane %v12755_v56, 7 }
 0x35d   :  { %v12608_v41 = vpop.permute.xlu1 %3139  ;;  %17986 = vst [vmem:[#allocation232_spill] sm:$0xff] %v12610_v0  ;;  %v17344_v63 = vrot.slane %v12750_v54, 7 }
 0x35e   :  { %17985 = vst [vmem:[#allocation231_spill] sm:$0xff] %v12608_v41  ;;  %v8534_v41 = vld [vmem:[%s17205_s1 + $0x340] sm:$0xff] }
 0x361   :  { %3440 = vperm.xlu2 %9347, %v8510_v60   ;;  %3460 = vperm.xlu0 %9348, %v8514_v1   ;;  %v8517_v60 = vld [vmem:[%s17205_s1 + $0x2b8] sm:$0xff] }
 0x363   :  { %3495 = vperm.xlu1 %9349, %v8521_v48   ;;  %v12621_v37 = vpop.permute.xlu2 %3144 }
 0x364   :  { %17987 = vst [vmem:[#allocation233_spill] sm:$0xff] %v12621_v37  ;;  %v12625_v22 = vpop.permute.xlu0 %3119  ;;  %v8545_v37 = vld [vmem:[%s17205_s1 + $0x398] sm:$0xff] }
 0x365   :  { %v12623_v47 = vpop.permute.xlu1 %3219  ;;  %17989 = vst [vmem:[#allocation235_spill] sm:$0xff] %v12625_v22 }
 0x366   :  { %17988 = vst [vmem:[#allocation234_spill] sm:$0xff] %v12623_v47  ;;  %v8527_v47 = vld [vmem:[%s17205_s1 + $0x308] sm:$0xff] }
 0x369   :  { %3455 = vperm.xlu2 %9347, %v8513_v50   ;;  %3475 = vperm.xlu0 %9348, %v8517_v60   ;;  %v8520_v50 = vld [vmem:[%s17205_s1 + $0x2d0] sm:$0xff] }
 0x36b   :  { %3510 = vperm.xlu1 %9349, %v8524_v44   ;;  %v12636_v48 = vpop.permute.xlu2 %3224 }
 0x36c   :  { %17990 = vst [vmem:[#allocation236_spill] sm:$0xff] %v12636_v48  ;;  %v12640_v32 = vpop.permute.xlu0 %3134  ;;  %v8519_v48 = vld [vmem:[%s17205_s1 + $0x2c8] sm:$0xff] }
 0x36d   :  { %v12638_v1 = vpop.permute.xlu1 %3234  ;;  %17992 = vst [vmem:[#allocation238_spill] sm:$0xff] %v12640_v32 }
 0x36e   :  { %17991 = vst [vmem:[#allocation237_spill] sm:$0xff] %v12638_v1 }
 0x371   :  { %3470 = vperm.xlu2 %9347, %v8516_v21   ;;  %3490 = vperm.xlu0 %9348, %v8520_v50   ;;  %v8523_v21 = vld [vmem:[%s17205_s1 + $0x2e8] sm:$0xff] }
 0x373   :  { %3558 = vperm.xlu1 %9349, %v8527_v47   ;;  %v12651_v44 = vpop.permute.xlu2 %3239 }
 0x374   :  { %17993 = vst [vmem:[#allocation239_spill] sm:$0xff] %v12651_v44  ;;  %v12655_v1 = vpop.permute.xlu0 %3214  ;;  %v8522_v44 = vld [vmem:[%s17205_s1 + $0x2e0] sm:$0xff] }
 0x375   :  { %v12653_v60 = vpop.permute.xlu1 %3249  ;;  %17995 = vst [vmem:[#allocation241_spill] sm:$0xff] %v12655_v1  ;;  %v8533_v1 = vld [vmem:[%s17205_s1 + $0x338] sm:$0xff] }
 0x376   :  { %17994 = vst [vmem:[#allocation240_spill] sm:$0xff] %v12653_v60 }
 0x379   :  { %3485 = vperm.xlu2 %9347, %v8519_v48   ;;  %3505 = vperm.xlu0 %9348, %v8523_v21   ;;  %v8526_v48 = vld [vmem:[%s17205_s1 + $0x300] sm:$0xff] }
 0x37b   :  { %3573 = vperm.xlu1 %9349, %v8530_v40   ;;  %v12666_v47 = vpop.permute.xlu2 %3254 }
 0x37c   :  { %17996 = vst [vmem:[#allocation242_spill] sm:$0xff] %v12666_v47  ;;  %v12670_v60 = vpop.permute.xlu0 %3229  ;;  %v8525_v47 = vld [vmem:[%s17205_s1 + $0x2f8] sm:$0xff] }
 0x37d   :  { %v12668_v50 = vpop.permute.xlu1 %3264  ;;  %17998 = vst [vmem:[#allocation244_spill] sm:$0xff] %v12670_v60  ;;  %v8536_v60 = vld [vmem:[%s17205_s1 + $0x350] sm:$0xff] }
 0x37e   :  { %17997 = vst [vmem:[#allocation243_spill] sm:$0xff] %v12668_v50 }
 0x381   :  { %3500 = vperm.xlu2 %9347, %v8522_v44   ;;  %3553 = vperm.xlu0 %9348, %v8526_v48   ;;  %v8529_v44 = vld [vmem:[%s17205_s1 + $0x318] sm:$0xff] }
 0x383   :  { %3588 = vperm.xlu1 %9349, %v8533_v1   ;;  %v12681_v40 = vpop.permute.xlu2 %3269 }
 0x384   :  { %17999 = vst [vmem:[#allocation245_spill] sm:$0xff] %v12681_v40  ;;  %v12685_v50 = vpop.permute.xlu0 %3244  ;;  %v8528_v40 = vld [vmem:[%s17205_s1 + $0x310] sm:$0xff] }
 0x385   :  { %v12683_v21 = vpop.permute.xlu1 %3279  ;;  %18001 = vst [vmem:[#allocation247_spill] sm:$0xff] %v12685_v50  ;;  %v8539_v50 = vld [vmem:[%s17205_s1 + $0x368] sm:$0xff] }
 0x386   :  { %18000 = vst [vmem:[#allocation246_spill] sm:$0xff] %v12683_v21 }
 0x389   :  { %3515 = vperm.xlu2 %9347, %v8525_v47   ;;  %3568 = vperm.xlu0 %9348, %v8529_v44   ;;  %v8532_v47 = vld [vmem:[%s17205_s1 + $0x330] sm:$0xff] }
 0x38b   :  { %3603 = vperm.xlu1 %9349, %v8536_v60   ;;  %v12696_v1 = vpop.permute.xlu2 %3284 }
 0x38c   :  { %18002 = vst [vmem:[#allocation248_spill] sm:$0xff] %v12696_v1  ;;  %v12700_v21 = vpop.permute.xlu0 %3259 }
 0x38d   :  { %v12698_v48 = vpop.permute.xlu1 %3327  ;;  %18004 = vst [vmem:[#allocation250_spill] sm:$0xff] %v12700_v21  ;;  %v8531_v21 = vld [vmem:[%s17205_s1 + $0x328] sm:$0xff] }
 0x38e   :  { %18003 = vst [vmem:[#allocation249_spill] sm:$0xff] %v12698_v48 }
 0x391   :  { %3563 = vperm.xlu2 %9347, %v8528_v40   ;;  %3583 = vperm.xlu0 %9348, %v8532_v47   ;;  %v8535_v40 = vld [vmem:[%s17205_s1 + $0x348] sm:$0xff] }
 0x393   :  { %3618 = vperm.xlu1 %9349, %v8539_v50   ;;  %v12711_v60 = vpop.permute.xlu2 %3332 }
 0x394   :  { %18005 = vst [vmem:[#allocation251_spill] sm:$0xff] %v12711_v60  ;;  %v12715_v1 = vpop.permute.xlu0 %3274 }
 0x395   :  { %v12713_v44 = vpop.permute.xlu1 %3342  ;;  %18007 = vst [vmem:[#allocation253_spill] sm:$0xff] %v12715_v1 }
 0x396   :  { %18006 = vst [vmem:[#allocation252_spill] sm:$0xff] %v12713_v44 }
 0x399   :  { %3578 = vperm.xlu2 %9347, %v8531_v21   ;;  %3598 = vperm.xlu0 %9348, %v8535_v40   ;;  %v8538_v21 = vld [vmem:[%s17205_s1 + $0x360] sm:$0xff] }
 0x39b   :  { %3666 = vperm.xlu1 %9349, %v8542_v36   ;;  %v12726_v50 = vpop.permute.xlu2 %3347 }
 0x39c   :  { %18008 = vst [vmem:[#allocation254_spill] sm:$0xff] %v12726_v50  ;;  %v12730_v1 = vpop.permute.xlu0 %3289 }
 0x39d   :  { %v12728_v47 = vpop.permute.xlu1 %3357  ;;  %18010 = vst [vmem:[#allocation256_spill] sm:$0xff] %v12730_v1 }
 0x39e   :  { %18009 = vst [vmem:[#allocation255_spill] sm:$0xff] %v12728_v47 }
 0x3a1   :  { %3593 = vperm.xlu2 %9347, %v8534_v41   ;;  %3613 = vperm.xlu0 %9348, %v8538_v21   ;;  %v8537_v41 = vld [vmem:[%s17205_s1 + $0x358] sm:$0xff]  ;;  %v12766_v21 = vsel %vm1373_vm0, %v12338_v4, %v12351_v20  ;;  %v12779_v4 = vsel %vm1373_vm0, %v12366_v16, %v12400_v25 }
 0x3a2   :  { %v2910_v7 = vrot.slane %v12766_v21, 7 }
 0x3a3   :  { %3681 = vperm.xlu1 %9349, %v8545_v37   ;;  %v12741_v36 = vpop.permute.xlu2 %3362  ;;  %v8546_v37 = vld [vmem:[%s17205_s1 + $0x3a0] sm:$0xff] }
 0x3a4   :  { %18011 = vst [vmem:[#allocation257_spill] sm:$0xff] %v12741_v36  ;;  %v12745_v1 = vpop.permute.xlu0 %3337  ;;  %v12785_v8 = vsel %vm1424_vm1, %v2910_v7, %v2911_v58 }
 0x3a5   :  { %v12743_v40 = vpop.permute.xlu1 %3372  ;;  %18013 = vst [vmem:[#allocation259_spill] sm:$0xff] %v12745_v1 }
 0x3a6   :  { %18012 = vst [vmem:[#allocation258_spill] sm:$0xff] %v12743_v40 }
 0x3a7   :  { %18016 = vst [vmem:[#allocation262_spill] sm:$0xff] %v12785_v8 }
 0x3a9   :  { %3608 = vperm.xlu2 %9347, %v8537_v41   ;;  %3628 = vperm.xlu0 %9348, %v8541_v61   ;;  %v12791_v41 = vsel %vm1424_vm1, %v17344_v63, %v2910_v7  ;;  %v12798_v61 = vsel %vm1373_vm0, %v12368_v11, %v12381_v29  ;;  %v2912_v7 = vrot.slane %v12779_v4, 7  ;;  %v8544_v63 = vld [vmem:[%s17205_s1 + $0x390] sm:$0xff]  ;;  %v12816_v29 = vsel %vm1373_vm0, %v12306_v51, %v12340_v57 }
 0x3aa   :  { %18018 = vst [vmem:[#allocation264_spill] sm:$0xff] %v12798_v61  ;;  %v3409_v25 = vmul.f32 %v12726_v50, %v12791_v41  ;;  %v2913_v11 = vrot.slane %v12798_v61, 7  ;;  %v12836_v57 = vsel %vm1373_vm0, %v12308_v43, %v12321_v24  ;;  %v12841_v51 = vsel %vm1373_vm0, %v12456_v15, %v12490_v28  ;;  %v8543_v24 = vld [vmem:[%s17205_s1 + $0x388] sm:$0xff] }
 0x3ab   :  { %3686 = vperm.xlu1 %9349, %v8546_v37   ;;  %v12774_v32 = vpop.permute.xlu2 %3377  ;;  %v12855_v43 = vsel %vm1373_vm0, %v12396_v46, %v12430_v5 }
 0x3ac   :  { %18014 = vst [vmem:[#allocation260_spill] sm:$0xff] %v12774_v32  ;;  %v12793_v37 = vpop.permute.xlu0 %3352  ;;  %v17365_v5 = vrot.slane %v12855_v43, 7 }
 0x3ad   :  { %v12781_v20 = vpop.permute.xlu1 %3387  ;;  %18017 = vst [vmem:[#allocation263_spill] sm:$0xff] %v12793_v37  ;;  %v3410_v16 = vmul.f32 %v12793_v37, %v12785_v8  ;;  %v12820_v37 = vsel %vm1424_vm1, %v2912_v7, %v2913_v11 }
 0x3ae   :  { %18015 = vst [vmem:[#allocation261_spill] sm:$0xff] %v12781_v20 }
 0x3af   :  { %v9370_v49 = vpack.i.bf16 %v3410_v16, %v3409_v25  ;;  %18019 = vst [vmem:[#allocation265_spill] sm:$0xff] %v12820_v37  ;;  %v12827_v25 = vsel %vm1373_vm0, %v12415_v30, %v12383_v33  ;;  %v3148_v30 = vmul.f32 %v12580_v27, %v12816_v29  ;;  %v2906_v16 = vrot.slane %v12816_v29, 7 }
 0x3b0   :  { %v2914_v15 = vrot.slane %v12827_v25, 7 }
 0x3b1   :  { %3623 = vperm.xlu2 %9347, %v8540_v12   ;;  %3676 = vperm.xlu0 %9348, %v8544_v63   ;;  %v12845_v63 = vsel %vm1424_vm1, %v2911_v58, %v2912_v7  ;;  %v3147_v58 = vmul.f32 %v12546_v42, %v12841_v51  ;;  %v2907_v7 = vrot.slane %v12836_v57, 7 }
 0x3b2   :  { %18022 = vst [vmem:[#allocation268_spill] sm:$0xff] %v12845_v63  ;;  %v3411_v28 = vmul.f32 %v12728_v47, %v12845_v63  ;;  %v12876_v63 = vsel %vm1373_vm0, %v12355_v6, %v12323_v34  ;;  %v12880_v8 = vsel %vm1424_vm1, %v2913_v11, %v2914_v15  ;;  %v12901_v11 = vsel %vm1424_vm1, %v2914_v15, %v17365_v5 }
 0x3b3   :  { %9371 = vrot.lane.b32.xlu1 %v9370_v49, %s9946_s18  ;;  %v12822_v50 = vpop.permute.xlu2 %3392  ;;  %v3412_v49 = vmul.f32 %v12741_v36, %v12820_v37  ;;  %v17360_v36 = vrot.slane %v12841_v51, 7  ;;  %v9355_v46 = vpack.i.bf16 %v3148_v30, %v3147_v58  ;;  %v12870_v47 = vsel %vm1424_vm1, %v2906_v16, %v2907_v7  ;;  %18025 = vst [vmem:[#allocation271_spill] sm:$0xff] %v12876_v63 }
 0x3b4   :  { %18020 = vst [vmem:[#allocation266_spill] sm:$0xff] %v12822_v50  ;;  %v12849_v33 = vpop.permute.xlu0 %3367 }
 0x3b5   :  { %v12831_v12 = vpop.permute.xlu1 %3402  ;;  %18023 = vst [vmem:[#allocation269_spill] sm:$0xff] %v12849_v33  ;;  %v9380_v37 = vpack.i.bf16 %v3412_v49, %v3411_v28  ;;  %v3406_v49 = vmul.f32 %v12711_v60, %v12870_v47  ;;  %v3413_v6 = vmul.f32 %v12849_v33, %v12880_v8  ;;  %v3150_v28 = vmul.f32 %v12561_v39, %v12876_v63 }
 0x3b6   :  { %18021 = vst [vmem:[#allocation267_spill] sm:$0xff] %v12831_v12 }
 0x3b7   :  { %18024 = vst [vmem:[#allocation270_spill] sm:$0xff] %v12870_v47 }
 0x3b8   :  { %18026 = vst [vmem:[#allocation272_spill] sm:$0xff] %v12880_v8 }
 0x3b9   :  { %3671 = vperm.xlu2 %9347, %v8543_v24   ;;  %9356 = vrot.lane.b32.xlu0 %v9355_v46, %s9946_s18  ;;  %v3414_v46 = vmul.f32 %v12743_v40, %v12901_v11 }
 0x3bb   :  { %9381 = vrot.lane.b32.xlu1 %v9380_v37, %s9946_s18  ;;  %v12885_v30 = vpop.permute.xlu2 %3440  ;;  %v12891_v37 = vsel %vm1424_vm1, %v17360_v36, %v2906_v16  ;;  %v2908_v16 = vrot.slane %v12876_v63, 7  ;;  %v3149_v36 = vmul.f32 %v12548_v9, %v12836_v57  ;;  %v9390_v8 = vpack.i.bf16 %v3414_v46, %v3413_v6 }
 0x3bc   :  { %18027 = vst [vmem:[#allocation273_spill] sm:$0xff] %v12885_v30  ;;  %v3405_v24 = vmul.f32 %v12698_v48, %v12891_v37  ;;  %v12907_v58 = vpop.permute.xlu0 %3382  ;;  %v12943_v6 = vsel %vm1373_vm0, %v12398_v38, %v12411_v17  ;;  %v12960_v38 = vsel %vm1373_vm0, %v12445_v55, %v12413_v31  ;;  %v8547_v17 = vld [vmem:[%s17205_s1 + $0x3a8] sm:$0xff]  ;;  %v3151_v55 = vmul.f32 %v12595_v35, %v12750_v54 }
 0x3bd   :  { %18028 = vst [vmem:[#allocation274_spill] sm:$0xff] %v12891_v37  ;;  %v12895_v34 = vpop.permute.xlu1 %3450  ;;  %v9365_v15 = vpack.i.bf16 %v3150_v28, %v3149_v36  ;;  %v12917_v5 = vsel %vm1424_vm1, %v2907_v7, %v2908_v16  ;;  %v18033_v36 = vrot.slane %v12750_v54, 7  ;;  %v12952_v28 = vsel %vm1373_vm0, %v12428_v26, %v12441_v18 }
 0x3be   :  { %18029 = vst [vmem:[#allocation275_spill] sm:$0xff] %v12895_v34  ;;  %v9350_v33 = vpack.i.bf16 %v3406_v49, %v3405_v24  ;;  %v3407_v48 = vmul.f32 %v12745_v1, %v12917_v5  ;;  %v12928_v49 = vsel %vm1373_vm0, %v12426_v10, %v12460_v2  ;;  %v3158_v24 = vmul.f32 %v12593_v19, %v12943_v6 }
 0x3bf   :  { %18030 = vst [vmem:[#allocation276_spill] sm:$0xff] %v12907_v58  ;;  %v2917_v26 = vrot.slane %v12960_v38, 7  ;;  %v2916_v19 = vrot.slane %v12943_v6, 7 }
 0x3c0   :  { %18032 = vst [vmem:[#allocation278_spill] sm:$0xff] %v12928_v49 }
 0x3c1   :  { %9351 = vrot.lane.b32.xlu2 %v9350_v33, %s9946_s18  ;;  %9366 = vrot.lane.b32.xlu0 %v9365_v15, %s9946_s18  ;;  %v12934_v33 = vsel %vm1424_vm1, %v2908_v16, %v18033_v36  ;;  %18037 = vst [vmem:[#allocation282_spill] sm:$0xff] %v12952_v28  ;;  %v2918_v16 = vrot.slane %v12928_v49, 7  ;;  %v17370_v36 = vrot.slane %v12952_v28, 7 }
 0x3c2   :  { %18034 = vst [vmem:[#allocation279_spill] sm:$0xff] %v12934_v33  ;;  %v3408_v2 = vmul.f32 %v12713_v44, %v12934_v33 }
 0x3c3   :  { %9391 = vrot.lane.b32.xlu1 %v9390_v8, %s9946_s18  ;;  %v12923_v40 = vpop.permute.xlu2 %3455  ;;  %v3157_v8 = vmul.f32 %v12625_v22, %v12855_v43  ;;  %v12973_v18 = vsel %vm1424_vm1, %v2918_v16, %v17370_v36  ;;  %v8548_v36 = vld [vmem:[%s17205_s1 + $0x3b0] sm:$0xff] }
 0x3c4   :  { %18031 = vst [vmem:[#allocation277_spill] sm:$0xff] %v12923_v40  ;;  %v12947_v10 = vpop.permute.xlu0 %3397  ;;  %v9360_v46 = vpack.i.bf16 %v3408_v2, %v3407_v48  ;;  %v3418_v48 = vmul.f32 %v12822_v50, %v12973_v18  ;;  %v12985_v2 = vsel %vm1424_vm1, %v2917_v26, %v2918_v16  ;;  %v3154_v16 = vmul.f32 %v12610_v0, %v12779_v4 }
 0x3c5   :  { %v12938_v7 = vpop.permute.xlu1 %3465  ;;  %18036 = vst [vmem:[#allocation281_spill] sm:$0xff] %v12947_v10  ;;  %v9405_v15 = vpack.i.bf16 %v3158_v24, %v3157_v8  ;;  %v3152_v24 = vmul.f32 %v12563_v3, %v12766_v21 }
 0x3c6   :  { %18035 = vst [vmem:[#allocation280_spill] sm:$0xff] %v12938_v7 }
 0x3c7   :  { %18038 = vst [vmem:[#allocation283_spill] sm:$0xff] %v12973_v18  ;;  %v18048_v18 = vmax.f32 %v11214_v45, 0.0  ;;  %v9213_v45 = vld [vmem:[%s17210_s6 + $0x78] sm:$0xff] }
 0x3c8   :  { %18041 = vst [vmem:[#allocation286_spill] sm:$0xff] %v12985_v2  ;;  %4595 = vmatpush.bf16.msrb.mxu2 %v9213_v45  ;;  %v18060_v45 = vld [vmem:[#allocation202_spill] sm:$0xff] }
 0x3c9   :  { %9361 = vrot.lane.b32.xlu2 %v9360_v46, %s9946_s18  ;;  %3691 = vperm.xlu0 %9348, %v8547_v17   ;;  %v9375_v17 = vpack.i.bf16 %v3152_v24, %v3151_v55  ;;  %v13005_v55 = vsel %vm1424_vm1, %v2916_v19, %v2917_v26 }
 0x3ca   :  { %18044 = vst [vmem:[#allocation289_spill] sm:$0xff] %v13005_v55 }
 0x3cb   :  { %9406 = vrot.lane.b32.xlu1 %v9405_v15, %s9946_s18  ;;  %v12977_v31 = vpop.permute.xlu2 %3470  ;;  %v3417_v15 = vmul.f32 %v12781_v20, %v12985_v2 }
 0x3cc   :  { %18039 = vst [vmem:[#allocation284_spill] sm:$0xff] %v12977_v31  ;;  %v12989_v46 = vpop.permute.xlu0 %3445 }
 0x3cd   :  { %v12981_v8 = vpop.permute.xlu1 %3480  ;;  %18042 = vst [vmem:[#allocation287_spill] sm:$0xff] %v12989_v46  ;;  %v9410_v50 = vpack.i.bf16 %v3418_v48, %v3417_v15  ;;  %v3153_v48 = vmul.f32 %v12576_v14, %v12755_v56  ;;  %v3416_v15 = vmul.f32 %v12907_v58, %v13005_v55  ;;  %v3156_v58 = vmul.f32 %v12591_v13, %v12827_v25 }
 0x3ce   :  { %18040 = vst [vmem:[#allocation285_spill] sm:$0xff] %v12981_v8 }
 0x3cf   :  { %v9385_v20 = vpack.i.bf16 %v3154_v16, %v3153_v48  ;;  %v3155_v16 = vmul.f32 %v12578_v23, %v12798_v61  ;;  %v3164_v23 = vrot.slane %v12836_v57, 1 }
 0x3d1   :  { %9376 = vrot.lane.b32.xlu2 %v9375_v17, %s9946_s18  ;;  %3696 = vperm.xlu0 %9348, %v8548_v36  }
 0x3d3   :  { %9411 = vrot.lane.b32.xlu1 %v9410_v50, %s9946_s18  ;;  %v13001_v22 = vpop.permute.xlu2 %3485  ;;  %v18047_v50 = vrot.slane %v12855_v43, 7 }
 0x3d4   :  { %18043 = vst [vmem:[#allocation288_spill] sm:$0xff] %v13001_v22  ;;  %v13013_v17 = vpop.permute.xlu0 %3460 }
 0x3d5   :  { %v13007_v24 = vpop.permute.xlu1 %3495  ;;  %18046 = vst [vmem:[#allocation291_spill] sm:$0xff] %v13013_v17  ;;  %v13019_v36 = vsel %vm1424_vm1, %v18047_v50, %v2916_v19 }
 0x3d6   :  { %18045 = vst [vmem:[#allocation290_spill] sm:$0xff] %v13007_v24  ;;  %v3415_v26 = vmul.f32 %v12774_v32, %v13019_v36  ;;  %v18063_v32 = vld [vmem:[#allocation238_spill] sm:$0xff] }
 0x3d8   :  { %v9400_v24 = vpack.i.bf16 %v3416_v15, %v3415_v26  ;;  %v9212_v26 = vld [vmem:[%s17210_s6 + $0x70] sm:$0xff] }
 0x3d9   :  { %9386 = vrot.lane.b32.xlu2 %v9385_v20, %s9946_s18  ;;  %v9395_v20 = vpack.i.bf16 %v3156_v58, %v3155_v16  ;;  %4596 = vmatpush.bf16.msrb.mxu2 %v9212_v26  ;;  %v18058_v16 = vld [vmem:[#allocation92_spill] sm:$0xff]  ;;  %v3160_v26 = vmul.f32 %v18063_v32, %v12928_v49 }
 0x3da   :  { %9401 = vrot.lane.b32.xlu0 %v9400_v24, %s9946_s18  ;;  %v18053_v24 = vmax.f32 %v11482_v52, 0.0  ;;  %v18057_v52 = vmax.f32 %v11132_v59, 0.0 }
 0x3db   :  { %4851 = vrot.lane.b32.xlu1 %v18048_v18, %s9947_s24  ;;  %v13030_v0 = vpop.permute.xlu2 %3500  ;;  %v18052_v18 = vmax.f32 %v11247_v62, 0.0  ;;  %v9211_v62 = vld [vmem:[%s17210_s6 + $0x68] sm:$0xff] }
 0x3dc   :  { %18049 = vst [vmem:[#allocation292_spill] sm:$0xff] %v13030_v0  ;;  %v13036_v48 = vpop.permute.xlu0 %3475 }
 0x3dd   :  { %v13032_v19 = vpop.permute.xlu1 %3510  ;;  %18051 = vst [vmem:[#allocation294_spill] sm:$0xff] %v13036_v48  ;;  %4597 = vmatpush.bf16.msrb.mxu2 %v9211_v62  ;;  %v18071_v62 = vld [vmem:[#allocation231_spill] sm:$0xff] }
 0x3de   :  { %18050 = vst [vmem:[#allocation293_spill] sm:$0xff] %v13032_v19  ;;  %v18064_v19 = vld [vmem:[#allocation60_spill] sm:$0xff]  ;;  %v3161_v32 = vmul.f32 %v18071_v62, %v12952_v28  ;;  %v3163_v62 = vrot.slane %v12816_v29, 1 }
 0x3e1   :  { %9396 = vrot.lane.b32.xlu2 %v9395_v20, %s9946_s18  ;;  %v18059_v20 = vmax.f32 %v18058_v16, 0.0 }
 0x3e2   :  { %4877 = vrot.lane.b32.xlu0 %v18053_v24, %s9947_s24 }
 0x3e3   :  { %4853 = vrot.lane.b32.xlu1 %v18052_v18, %s9947_s24  ;;  %v13048_v15 = vpop.permute.xlu2 %3515  ;;  %v18061_v18 = vld [vmem:[#allocation206_spill] sm:$0xff] }
 0x3e4   :  { %18054 = vst [vmem:[#allocation295_spill] sm:$0xff] %v13048_v15  ;;  %v13052_v58 = vpop.permute.xlu0 %3490  ;;  %v13069_v24 = vsel %vm1373_vm0, %v18061_v18, %v18060_v45  ;;  %v18065_v15 = vmax.f32 %v18064_v19, 0.0  ;;  %v9210_v19 = vld [vmem:[%s17210_s6 + $0x60] sm:$0xff] }
 0x3e5   :  { %v13050_v50 = vpop.permute.xlu1 %3558  ;;  %18056 = vst [vmem:[#allocation297_spill] sm:$0xff] %v13052_v58  ;;  %v2920_v18 = vrot.slane %v13069_v24, 7  ;;  %4598 = vmatpush.bf16.msrb.mxu2 %v9210_v19 }
 0x3e6   :  { %18055 = vst [vmem:[#allocation296_spill] sm:$0xff] %v13050_v50 }
 0x3e7   :  { %18062 = vst [vmem:[#allocation92_spill] sm:$0xff] %v13069_v24 }
 0x3e9   :  { %4847 = vrot.lane.b32.xlu2 %v18057_v52, %s9947_s24  ;;  %v18068_v52 = vld [vmem:[#allocation230_spill] sm:$0xff] }
 0x3ea   :  { %4849 = vrot.lane.b32.xlu0 %v18065_v15, %s9947_s24  ;;  %v3159_v16 = vmul.f32 %v18068_v52, %v12960_v38  ;;  %v9205_v15 = vld [vmem:[%s17210_s6 + $0x38] sm:$0xff]  ;;  %v17400_v52 = vrot.slane %v12876_v63, 1 }
 0x3eb   :  { %4875 = vrot.lane.b32.xlu1 %v18059_v20, %s9947_s24  ;;  %v13076_v0 = vpop.permute.xlu2 %3563  ;;  %v18069_v20 = vld [vmem:[#allocation233_spill] sm:$0xff]  ;;  %4546 = vmatpush.bf16.msra.mxu1 %v9205_v15 }
 0x3ec   :  { %18066 = vst [vmem:[#allocation202_spill] sm:$0xff] %v13076_v0  ;;  %v3162_v58 = vmul.f32 %v18069_v20, %v13069_v24  ;;  %v13084_v45 = vpop.permute.xlu0 %3505  ;;  %v8558_v20 = vld [vmem:[%s17205_s1 + $0x400] sm:$0xff] }
 0x3ed   :  { %v13078_v59 = vpop.permute.xlu1 %3573  ;;  %18070 = vst [vmem:[#allocation60_spill] sm:$0xff] %v13084_v45  ;;  %v9209_v45 = vld [vmem:[%s17210_s6 + $0x58] sm:$0xff] }
 0x3ee   :  { %18067 = vst [vmem:[#allocation206_spill] sm:$0xff] %v13078_v59  ;;  %v9415_v59 = vpack.i.bf16 %v3160_v26, %v3159_v16  ;;  %v9425_v13 = vpack.i.bf16 %v3162_v58, %v3161_v32  ;;  %v18072_v26 = vrot.slane %v12952_v28, 7  ;;  %v13120_v32 = vsel %vm1698_vm2, %v3164_v23, %v17400_v52  ;;  %4599 = vmatpush.bf16.msrb.mxu2 %v9209_v45  ;;  %v9208_v45 = vld [vmem:[%s17210_s6 + $0x50] sm:$0xff] }
 0x3ef   :  { %18075 = vst [vmem:[#allocation300_spill] sm:$0xff] %v13120_v32  ;;  %v18076_v58 = vrot.slane %v12841_v51, 7  ;;  %v13138_v52 = vsel %vm1698_vm2, %v3163_v62, %v3164_v23  ;;  %v9207_v23 = vld [vmem:[%s17210_s6 + $0x48] sm:$0xff] }
 0x3f0   :  { %v13109_v16 = vsel %vm1424_vm1, %v18072_v26, %v2920_v18  ;;  %v3519_v26 = vmul.f32 %v12989_v46, %v13120_v32  ;;  %18080 = vst [vmem:[#allocation304_spill] sm:$0xff] %v13138_v52  ;;  %v9203_v46 = vld [vmem:[%s17210_s6 + $0x28] sm:$0xff] }
 0x3f1   :  { %9416 = vrot.lane.b32.xlu2 %v9415_v59, %s9946_s18  ;;  %18073 = vst [vmem:[#allocation298_spill] sm:$0xff] %v13109_v16  ;;  %v3419_v19 = vmul.f32 %v12947_v10, %v13109_v16  ;;  %v13126_v59 = vsel %vm1424_vm1, %v2920_v18, %v18076_v58  ;;  %v9204_v18 = vld [vmem:[%s17210_s6 + $0x30] sm:$0xff]  ;;  %v3518_v58 = vmul.f32 %v12885_v30, %v13138_v52 }
 0x3f2   :  { %9426 = vrot.lane.b32.xlu0 %v9425_v13, %s9946_s18  ;;  %18077 = vst [vmem:[#allocation301_spill] sm:$0xff] %v13126_v59  ;;  %v3420_v13 = vmul.f32 %v12831_v12, %v13126_v59  ;;  %4547 = vmatpush.bf16.msra.mxu1 %v9204_v18 }
 0x3f3   :  { %3779 = vperm.xlu1 %9349, %v8558_v20   ;;  %v13114_v15 = vpop.permute.xlu2 %3578  ;;  %4600 = vmatpush.bf16.msrb.mxu2 %v9208_v45  ;;  %v9202_v45 = vld [vmem:[%s17210_s6 + $0x20] sm:$0xff] }
 0x3f4   :  { %18074 = vst [vmem:[#allocation299_spill] sm:$0xff] %v13114_v15  ;;  %v13134_v10 = vpop.permute.xlu0 %3553  ;;  %v9420_v12 = vpack.i.bf16 %v3420_v13, %v3419_v19  ;;  %v18081_v15 = vld [vmem:[#allocation77_spill] sm:$0xff] }
 0x3f5   :  { %v13128_v20 = vpop.permute.xlu1 %3588  ;;  %18079 = vst [vmem:[#allocation303_spill] sm:$0xff] %v13134_v10  ;;  %v18082_v0 = vmax.f32 %v18081_v15, 0.0 }
 0x3f6   :  { %18078 = vst [vmem:[#allocation302_spill] sm:$0xff] %v13128_v20  ;;  %v9430_v20 = vpack.i.bf16 %v3519_v26, %v3518_v58  ;;  %4548 = vmatpush.bf16.msra.mxu1 %v9203_v46  ;;  %v9201_v46 = vld [vmem:[%s17210_s6 + $0x18] sm:$0xff] }
 0x3f7   :  { %4601 = vmatpush.bf16.msrb.mxu2 %v9207_v23  ;;  %v9200_v23 = vld [vmem:[%s17210_s6 + $0x10] sm:$0xff] }
 0x3f9   :  { %9421 = vrot.lane.b32.xlu2 %v9420_v12, %s9946_s18  ;;  %v9206_v12 = vld [vmem:[%s17210_s6 + $0x40] sm:$0xff] }
 0x3fa   :  { %9431 = vrot.lane.b32.xlu0 %v9430_v20, %s9946_s18  ;;  %4549 = vmatpush.bf16.msra.mxu1 %v9202_v45  ;;  %v9199_v45 = vld [vmem:[%s17210_s6 + $0x8] sm:$0xff] }
 0x3fb   :  { %4859 = vrot.lane.b32.xlu1 %v18082_v0, %s9947_s24  ;;  %v13159_v19 = vpop.permute.xlu2 %3593  ;;  %v18086_v0 = vld [vmem:[#allocation72_spill] sm:$0xff]  ;;  %4602 = vmatpush.bf16.msrb.mxu2 %v9206_v12 }
 0x3fc   :  { %18083 = vst [vmem:[#allocation77_spill] sm:$0xff] %v13159_v19  ;;  %v13163_v18 = vpop.permute.xlu0 %3568  ;;  %v18087_v15 = vmax.f32 %v18086_v0, 0.0 }
 0x3fd   :  { %v13161_v13 = vpop.permute.xlu1 %3603  ;;  %18085 = vst [vmem:[#allocation306_spill] sm:$0xff] %v13163_v18 }
 0x3fe   :  { %18084 = vst [vmem:[#allocation305_spill] sm:$0xff] %v13161_v13  ;;  %4550 = vmatpush.bf16.msra.mxu1 %v9201_v46  ;;  %v9198_v46 = vld [vmem:[%s17210_s6] sm:$0xff] }
 0x401   :  { %4855 = vrot.lane.b32.xlu2 %v18087_v15, %s9947_s24 }
 0x402   :  { %4551 = vmatpush.bf16.msra.mxu1 %v9200_v23 }
 0x403   :  { %v13177_v20 = vpop.permute.xlu2 %3608 }
 0x404   :  { %18088 = vst [vmem:[#allocation72_spill] sm:$0xff] %v13177_v20  ;;  %v13181_v58 = vpop.permute.xlu0 %3583 }
 0x405   :  { %v13179_v26 = vpop.permute.xlu1 %3618  ;;  %18090 = vst [vmem:[#allocation308_spill] sm:$0xff] %v13181_v58 }
 0x406   :  { %18089 = vst [vmem:[#allocation307_spill] sm:$0xff] %v13179_v26  ;;  %4552 = vmatpush.bf16.msra.mxu1 %v9199_v45  ;;  %v17425_v45 = vrot.slane %v12841_v51, 1 }
 0x40a   :  { %4553 = vmatpush.bf16.msra.mxu1 %v9198_v46  ;;  %v13214_v46 = vsel %vm1698_vm2, %v17425_v45, %v3163_v62  ;;  %v3167_v45 = vrot.slane %v12766_v21, 1 }
 0x40b   :  { %v13189_v0 = vpop.permute.xlu2 %3623  ;;  %18097 = vst [vmem:[#allocation315_spill] sm:$0xff] %v13214_v46 }
 0x40c   :  { %18091 = vst [vmem:[#allocation309_spill] sm:$0xff] %v13189_v0  ;;  %v13193_v12 = vpop.permute.xlu0 %3598 }
 0x40d   :  { %v13191_v15 = vpop.permute.xlu1 %3666  ;;  %18093 = vst [vmem:[#allocation311_spill] sm:$0xff] %v13193_v12  ;;  %v18098_v12 = vld [vmem:[#allocation234_spill] sm:$0xff] }
 0x40e   :  { %18092 = vst [vmem:[#allocation310_spill] sm:$0xff] %v13191_v15  ;;  %v3744_v23 = vmul.f32 %v13191_v15, %v12836_v57  ;;  %v3293_v19 = vmul.f32 %v18098_v12, %v13138_v52  ;;  %v18102_v52 = vld [vmem:[#allocation73_spill] sm:$0xff] }
 0x40f   :  { %v18103_v12 = vmax.f32 %v18102_v52, 0.0 }
 0x413   :  { %v13198_v26 = vpop.permute.xlu2 %3671 }
 0x414   :  { %18094 = vst [vmem:[#allocation312_spill] sm:$0xff] %v13198_v26  ;;  %v3745_v0 = vmul.f32 %v13198_v26, %v12876_v63  ;;  %v13206_v13 = vpop.permute.xlu0 %3613  ;;  %v18099_v26 = vld [vmem:[#allocation241_spill] sm:$0xff] }
 0x415   :  { %v13202_v20 = vpop.permute.xlu1 %3681  ;;  %18096 = vst [vmem:[#allocation314_spill] sm:$0xff] %v13206_v13  ;;  %v3292_v58 = vmul.f32 %v18099_v26, %v13214_v46  ;;  %v18109_v46 = vld [vmem:[#allocation244_spill] sm:$0xff] }
 0x416   :  { %18095 = vst [vmem:[#allocation313_spill] sm:$0xff] %v13202_v20  ;;  %v9440_v30 = vpack.i.bf16 %v3745_v0, %v3744_v23 }
 0x418   :  { %9441 = vrot.lane.b32.xlu0 %v9440_v30, %s9946_s18  ;;  %v3166_v30 = vrot.slane %v12750_v54, 1 }
 0x41a   :  { %v13233_v26 = vsel %vm1698_vm2, %v3166_v30, %v3167_v45 }
 0x41b   :  { %v9352_v15 = vpop.permute.xlu2 %9351  ;;  %18104 = vst [vmem:[#allocation73_spill] sm:$0xff] %v13233_v26 }
 0x41c   :  { %v9354_v0 = vunpack.i.h.bf16 %v9352_v15  ;;  %v9353_v23 = vunpack.i.l.bf16 %v9352_v15  ;;  %v13223_v18 = vpop.permute.xlu0 %3628  ;;  %v3521_v15 = vmul.f32 %v12923_v40, %v13233_v26 }
 0x41d   :  { %v13220_v13 = vpop.permute.xlu1 %3686  ;;  %18101 = vst [vmem:[#allocation317_spill] sm:$0xff] %v13223_v18  ;;  %v18105_v18 = vrot.slane %v12876_v63, 1 }
 0x41e   :  { %18100 = vst [vmem:[#allocation316_spill] sm:$0xff] %v13220_v13  ;;  %v4147_v16 = vsel %vm4129_vm3, %v3293_v19, %v9354_v0  ;;  %v4146_v62 = vsel %vm4129_vm3, %v3292_v58, %v9353_v23 }
 0x41f   :  { %v4195_v14 = vpack.c.bf16 %v4147_v16, %v4146_v62  ;;  %v13241_v19 = vsel %vm1698_vm2, %v18105_v18, %v3166_v30 }
 0x420   :  { %4857 = vrot.lane.b32.xlu0 %v18103_v12, %s9947_s24  ;;  %18106 = vst [vmem:[#allocation318_spill] sm:$0xff] %v13241_v19  ;;  %v3520_v16 = vmul.f32 %v12895_v34, %v13241_v19  ;;  %v3295_v63 = vmul.f32 %v18109_v46, %v13241_v19 }
 0x421   :  { %4603 = vmatmul.bf16.vlgmr.msrb.gmra.mxu2 %v4195_v14  ;;  %v18108_v14 = vld [vmem:[#allocation236_spill] sm:$0xff] }
 0x422   :  { %v9445_v0 = vpack.i.bf16 %v3521_v15, %v3520_v16  ;;  %v3294_v40 = vmul.f32 %v18108_v14, %v13120_v32  ;;  %v8560_v15 = vld [vmem:[%s17205_s1 + $0x410] sm:$0xff]  ;;  %v18110_v16 = vld [vmem:[#allocation204_spill] sm:$0xff] }
 0x423   :  { %v9362_v12 = vpop.permute.xlu2 %9361 }
 0x424   :  { %v13245_v52 = vpop.permute.xlu0 %3676  ;;  %v9364_v23 = vunpack.i.h.bf16 %v9362_v12  ;;  %v9363_v62 = vunpack.i.l.bf16 %v9362_v12  ;;  %v3035_v12 = vmul.f32 %v18110_v16, %v12891_v37  ;;  %v3168_v37 = vrot.slane %v12755_v56, 1 }
 0x425   :  { %v9372_v58 = vpop.permute.xlu1 %9371  ;;  %18107 = vst [vmem:[#allocation319_spill] sm:$0xff] %v13245_v52 }
 0x426   :  { %v4148_v30 = vsel %vm4129_vm3, %v3294_v40, %v9363_v62  ;;  %v4149_v34 = vsel %vm4129_vm3, %v3295_v63, %v9364_v23  ;;  %v9221_v23 = vld [vmem:[%s17210_s6 + $0xb8] sm:$0xff] }
 0x427   :  { %v4200_v46 = vpack.c.bf16 %v4149_v34, %v4148_v30  ;;  %4644 = vmatpush.bf16.msrb.mxu3 %v9221_v23  ;;  %v9220_v34 = vld [vmem:[%s17210_s6 + $0xb0] sm:$0xff]  ;;  %v18114_v30 = vld [vmem:[#allocation237_spill] sm:$0xff] }
 0x428   :  { %9446 = vrot.lane.b32.xlu0 %v9445_v0, %s9946_s18  ;;  %v18111_v0 = vld [vmem:[#allocation203_spill] sm:$0xff] }
 0x429   :  { %v3034_v14 = vmul.f32 %v18111_v0, %v13126_v59 }
 0x42b   :  { %v13271_v59 = vpop.permute.xlu2 %9376  ;;  %4645 = vmatpush.bf16.msrb.mxu3 %v9220_v34  ;;  %v18119_v34 = vld [vmem:[#allocation211_spill] sm:$0xff] }
 0x42c   :  { %v9357_v2 = vpop.permute.xlu0 %9356 }
 0x42d   :  { %v13252_v18 = vpop.permute.xlu1 %9381  ;;  %v9359_v32 = vunpack.i.h.bf16 %v9357_v2  ;;  %v9358_v55 = vunpack.i.l.bf16 %v9357_v2 }
 0x42f   :  { %v4131_v19 = vsel %vm4129_vm3, %v3035_v12, %v9359_v32  ;;  %v4130_v40 = vsel %vm4129_vm3, %v3034_v14, %v9358_v55  ;;  %v3169_v55 = vrot.slane %v12779_v4, 1  ;;  %v9374_v32 = vunpack.i.h.bf16 %v9372_v58 }
 0x430   :  { %3789 = vperm.xlu0 %9348, %v8560_v15   ;;  %v4194_v63 = vpack.c.bf16 %v4131_v19, %v4130_v40  ;;  %v18112_v19 = vld [vmem:[#allocation78_spill] sm:$0xff]  ;;  %v3296_v15 = vmul.f32 %v18114_v30, %v13233_v26  ;;  %v13284_v12 = vsel %vm1698_vm2, %v3167_v45, %v3168_v37  ;;  %v18116_v40 = vld [vmem:[#allocation239_spill] sm:$0xff]  ;;  %v3036_v26 = vmul.f32 %v18119_v34, %v12870_v47  ;;  %v9218_v34 = vld [vmem:[%s17210_s6 + $0xa0] sm:$0xff] }
 0x431   :  { %4608 = vmatmul.bf16.gmra.mxu2 %v4200_v46  ;;  %v9373_v46 = vunpack.i.l.bf16 %v9372_v58  ;;  %v18113_v14 = vmax.f32 %v18112_v19, 0.0  ;;  %18115 = vst [vmem:[#allocation78_spill] sm:$0xff] %v13284_v12  ;;  %v3522_v23 = vmul.f32 %v13013_v17, %v13284_v12  ;;  %v9219_v19 = vld [vmem:[%s17210_s6 + $0xa8] sm:$0xff]  ;;  %v13297_v45 = vsel %vm1698_vm2, %v3168_v37, %v3169_v55 }
 0x432   :  { %4554 = vmatmul.bf16.vlgmr.msra.gmra.mxu1 %v4194_v63  ;;  %v3297_v63 = vmul.f32 %v18116_v40, %v13284_v12  ;;  %18118 = vst [vmem:[#allocation320_spill] sm:$0xff] %v13297_v45  ;;  %v3523_v40 = vmul.f32 %v12938_v7, %v13297_v45  ;;  %4646 = vmatpush.bf16.msrb.mxu3 %v9219_v19  ;;  %v18124_v19 = vld [vmem:[#allocation247_spill] sm:$0xff] }
 0x433   :  { %v13314_v47 = vpop.permute.xlu2 %9386 }
 0x434   :  { %v9367_v2 = vpop.permute.xlu0 %9366  ;;  %v4151_v12 = vsel %vm4129_vm3, %v3297_v63, %v9374_v32  ;;  %v9217_v32 = vld [vmem:[%s17210_s6 + $0x98] sm:$0xff] }
 0x435   :  { %v13268_v62 = vpop.permute.xlu1 %9391  ;;  %v9369_v16 = vunpack.i.h.bf16 %v9367_v2  ;;  %v9368_v58 = vunpack.i.l.bf16 %v9367_v2  ;;  %v4150_v2 = vsel %vm4129_vm3, %v3296_v15, %v9373_v46  ;;  %v9384_v15 = vunpack.i.h.bf16 %v13252_v18 }
 0x436   :  { %v4205_v7 = vpack.c.bf16 %v4151_v12, %v4150_v2  ;;  %4647 = vmatpush.bf16.msrb.mxu3 %v9218_v34  ;;  %v9383_v12 = vunpack.i.l.bf16 %v13252_v18  ;;  %v9379_v34 = vunpack.i.h.bf16 %v13271_v59  ;;  %v9378_v2 = vunpack.i.l.bf16 %v13271_v59  ;;  %v9215_v18 = vld [vmem:[%s17210_s6 + $0x88] sm:$0xff] }
 0x437   :  { %v4132_v10 = vsel %vm4129_vm3, %v3036_v26, %v9368_v58 }
 0x438   :  { %4863 = vrot.lane.b32.xlu0 %v18113_v14, %s9947_s24  ;;  %v18117_v14 = vld [vmem:[#allocation205_spill] sm:$0xff] }
 0x439   :  { %v3037_v30 = vmul.f32 %v18117_v14, %v12917_v5  ;;  %v9460_v14 = vpack.i.bf16 %v3523_v40, %v3522_v23  ;;  %v18123_v23 = vld [vmem:[#allocation240_spill] sm:$0xff] }
 0x43a   :  { %4648 = vmatpush.bf16.msrb.mxu3 %v9217_v32 }
 0x43b   :  { %v4133_v37 = vsel %vm4129_vm3, %v3037_v30, %v9369_v16  ;;  %v8562_v30 = vld [vmem:[%s17205_s1 + $0x420] sm:$0xff]  ;;  %v13337_v63 = vpop.permute.xlu2 %9396 }
 0x43c   :  { %v13307_v0 = vpop.permute.xlu0 %3691  ;;  %v4199_v46 = vpack.c.bf16 %v4133_v37, %v4132_v10  ;;  %v9216_v10 = vld [vmem:[%s17210_s6 + $0x90] sm:$0xff] }
 0x43d   :  { %v13303_v17 = vpop.permute.xlu1 %9406  ;;  %18120 = vst [vmem:[#allocation321_spill] sm:$0xff] %v13307_v0 }
 0x43e   :  { %4649 = vmatpush.bf16.msrb.mxu3 %v9216_v10 }
 0x440   :  { %9461 = vrot.lane.b32.xlu0 %v9460_v14, %s9946_s18  ;;  %v3298_v14 = vmul.f32 %v18124_v19, %v13297_v45 }
 0x441   :  { %4613 = vmatmul.bf16.gmra.mxu2 %v4205_v7  ;;  %v3170_v7 = vrot.slane %v12798_v61, 1 }
 0x442   :  { %4559 = vmatmul.bf16.gmra.mxu1 %v4199_v46  ;;  %v18126_v46 = vld [vmem:[#allocation214_spill] sm:$0xff]  ;;  %4650 = vmatpush.bf16.msrb.mxu3 %v9215_v18 }
 0x443   :  { %v13335_v40 = vsel %vm1698_vm2, %v3169_v55, %v3170_v7  ;;  %v18125_v55 = vld [vmem:[#allocation207_spill] sm:$0xff]  ;;  %v3039_v32 = vmul.f32 %v18126_v46, %v12791_v41 }
 0x444   :  { %v13320_v26 = vpop.permute.xlu0 %3696  ;;  %18122 = vst [vmem:[#allocation323_spill] sm:$0xff] %v13335_v40  ;;  %v3299_v58 = vmul.f32 %v18123_v23, %v13335_v40  ;;  %v3038_v37 = vmul.f32 %v18125_v55, %v12934_v33  ;;  %v3171_v23 = vrot.slane %v12827_v25, 1  ;;  %v18128_v55 = vld [vmem:[#allocation81_spill] sm:$0xff] }
 0x445   :  { %18121 = vst [vmem:[#allocation322_spill] sm:$0xff] %v13320_v26  ;;  %v13322_v16 = vpop.permute.xlu1 %9411  ;;  %v4135_v45 = vsel %vm4129_vm3, %v3039_v32, %v9379_v34  ;;  %v18129_v33 = vmax.f32 %v18128_v55, 0.0  ;;  %v13373_v34 = vpop.permute.xlu2 %4847  ;;  %v9394_v32 = vunpack.i.h.bf16 %v13268_v62 }
 0x446   :  { %v4153_v10 = vsel %vm4129_vm3, %v3299_v58, %v9384_v15  ;;  %v4134_v59 = vsel %vm4129_vm3, %v3038_v37, %v9378_v2  ;;  %v9214_v58 = vld [vmem:[%s17210_s6 + $0x80] sm:$0xff]  ;;  %18131 = vst [vmem:[#allocation325_spill] sm:$0xff] %v13373_v34  ;;  %v9228_v2 = vld [vmem:[%s17210_s6 + $0xf0] sm:$0xff]  ;;  %v4944_v37 = vmul.f32 %v13373_v34, %v12580_v27 }
 0x447   :  { %v4204_v15 = vpack.c.bf16 %v4135_v45, %v4134_v59  ;;  %4651 = vmatpush.bf16.msrb.mxu3 %v9214_v58  ;;  %v9388_v58 = vunpack.i.l.bf16 %v13314_v47 }
 0x448   :  { %3799 = vperm.xlu0 %9348, %v8562_v30   ;;  %v4152_v30 = vsel %vm4129_vm3, %v3298_v14, %v9383_v12  ;;  %v13366_v12 = vsel %vm1698_vm2, %v3170_v7, %v3171_v23  ;;  %v3524_v7 = vmul.f32 %v12977_v31, %v13335_v40 }
 0x449   :  { %v4210_v61 = vpack.c.bf16 %v4153_v10, %v4152_v30  ;;  %18130 = vst [vmem:[#allocation81_spill] sm:$0xff] %v13366_v12  ;;  %v3525_v14 = vmul.f32 %v13036_v48, %v13366_v12  ;;  %v9393_v30 = vunpack.i.l.bf16 %v13268_v62  ;;  %v18135_v62 = vld [vmem:[#allocation250_spill] sm:$0xff] }
 0x44b   :  { %v9475_v18 = vpack.i.bf16 %v3525_v14, %v3524_v7 }
 0x44c   :  { %v13355_v19 = vpop.permute.xlu0 %9401 }
 0x44d   :  { %v13359_v26 = vpop.permute.xlu1 %4851  ;;  %v13418_v31 = vpop.permute.xlu2 %9416 }
 0x44e   :  { %18127 = vst [vmem:[#allocation324_spill] sm:$0xff] %v13359_v26 }
 0x450   :  { %4867 = vrot.lane.b32.xlu0 %v18129_v33, %s9947_s24  ;;  %v9229_v33 = vld [vmem:[%s17210_s6 + $0xf8] sm:$0xff] }
 0x451   :  { %4618 = vmatmul.bf16.gmra.mxu2 %v4210_v61  ;;  %v17458_v61 = vrot.slane %v12855_v43, 1  ;;  %4693 = vmatpush.bf16.msrb.mxu0 %v9229_v33  ;;  %v18134_v33 = vld [vmem:[#allocation242_spill] sm:$0xff] }
 0x452   :  { %4564 = vmatmul.bf16.gmra.mxu1 %v4204_v15  ;;  %v9389_v15 = vunpack.i.h.bf16 %v13314_v47  ;;  %v3300_v7 = vmul.f32 %v18134_v33, %v13366_v12  ;;  %v18139_v47 = vld [vmem:[#allocation209_spill] sm:$0xff]  ;;  %v8564_v12 = vld [vmem:[%s17205_s1 + $0x430] sm:$0xff] }
 0x453   :  { %v13397_v59 = vsel %vm1698_vm2, %v3171_v23, %v17458_v61  ;;  %v9227_v23 = vld [vmem:[%s17210_s6 + $0xe8] sm:$0xff] }
 0x454   :  { %v13381_v45 = vpop.permute.xlu0 %4877  ;;  %18133 = vst [vmem:[#allocation327_spill] sm:$0xff] %v13397_v59  ;;  %v4154_v48 = vsel %vm4129_vm3, %v3300_v7, %v9393_v30  ;;  %v9226_v30 = vld [vmem:[%s17210_s6 + $0xe0] sm:$0xff] }
 0x455   :  { %18132 = vst [vmem:[#allocation326_spill] sm:$0xff] %v13381_v45  ;;  %v4943_v55 = vmul.f32 %v13381_v45, %v12546_v42  ;;  %v13401_v14 = vpop.permute.xlu1 %4853  ;;  %4694 = vmatpush.bf16.msrb.mxu0 %v9228_v2  ;;  %v18138_v42 = vld [vmem:[#allocation268_spill] sm:$0xff]  ;;  %v4895_v2 = vrot.slane %v13373_v34, 7 }
 0x456   :  { %v3041_v27 = vmul.f32 %v18139_v47, %v18138_v42 }
 0x457   :  { %v9435_v10 = vpack.i.bf16 %v4944_v37, %v4943_v55  ;;  %v18136_v55 = vld [vmem:[#allocation262_spill] sm:$0xff]  ;;  %v18137_v37 = vld [vmem:[#allocation208_spill] sm:$0xff] }
 0x458   :  { %9476 = vrot.lane.b32.xlu0 %v9475_v18, %s9946_s18  ;;  %v3301_v18 = vmul.f32 %v18135_v62, %v13397_v59  ;;  %v3040_v61 = vmul.f32 %v18137_v37, %v18136_v55  ;;  %v4137_v47 = vsel %vm4129_vm3, %v3041_v27, %v9389_v15  ;;  %v8559_v27 = vld [vmem:[%s17205_s1 + $0x408] sm:$0xff] }
 0x459   :  { %9436 = vrot.lane.b32.xlu2 %v9435_v10, %s9946_s18  ;;  %4695 = vmatpush.bf16.msrb.mxu0 %v9227_v23  ;;  %v4946_v10 = vmul.f32 %v13359_v26, %v12561_v39  ;;  %v18141_v23 = vrot.slane %v13401_v14, 7 }
 0x45a   :  { %v4155_v33 = vsel %vm4129_vm3, %v3301_v18, %v9394_v32  ;;  %v4136_v37 = vsel %vm4129_vm3, %v3040_v61, %v9388_v58  ;;  %v4897_v32 = vrot.slane %v13359_v26, 7 }
 0x45b   :  { %v4215_v61 = vpack.c.bf16 %v4155_v33, %v4154_v48  ;;  %v4209_v58 = vpack.c.bf16 %v4137_v47, %v4136_v37  ;;  %v9225_v33 = vld [vmem:[%s17210_s6 + $0xd8] sm:$0xff]  ;;  %v18148_v37 = vld [vmem:[#allocation249_spill] sm:$0xff] }
 0x45c   :  { %v13421_v62 = vpop.permute.xlu0 %4849  ;;  %v13445_v40 = vsel %vm1424_vm1, %v4897_v32, %v18141_v23  ;;  %v8549_v23 = vld [vmem:[%s17205_s1 + $0x3b8] sm:$0xff] }
 0x45d   :  { %18140 = vst [vmem:[#allocation262_spill] sm:$0xff] %v13421_v62  ;;  %v4896_v7 = vrot.slane %v13421_v62, 7  ;;  %v4945_v18 = vmul.f32 %v13421_v62, %v12548_v9  ;;  %4696 = vmatpush.bf16.msrb.mxu0 %v9226_v30  ;;  %v18143_v9 = vrot.slane %v13381_v45, 7 }
 0x45e   :  { %18142 = vst [vmem:[#allocation268_spill] sm:$0xff] %v13445_v40 }
 0x45f   :  { %v9450_v15 = vpack.i.bf16 %v4946_v10, %v4945_v18  ;;  %v13451_v39 = vsel %vm1424_vm1, %v18143_v9, %v4895_v2  ;;  %v13455_v48 = vsel %vm1424_vm1, %v4896_v7, %v4897_v32  ;;  %v13479_v10 = vmul.f32 %v13445_v40, %v12713_v44 }
 0x460   :  { %3809 = vperm.xlu0 %9348, %v8564_v12   ;;  %18144 = vst [vmem:[#allocation328_spill] sm:$0xff] %v13451_v39  ;;  %v13459_v12 = vsel %vm1424_vm1, %v4895_v2, %v4896_v7  ;;  %v13471_v47 = vmul.f32 %v13451_v39, %v18148_v37  ;;  %v13475_v2 = vmul.f32 %v13455_v48, %v12745_v1  ;;  %v9224_v7 = vld [vmem:[%s17210_s6 + $0xd0] sm:$0xff]  ;;  %v3173_v18 = vrot.slane %v12943_v6, 1  ;;  %v18154_v1 = vld [vmem:[#allocation93_spill] sm:$0xff] }
 0x461   :  { %4623 = vmatmul.bf16.gmra.mxu2 %v4215_v61  ;;  %18145 = vst [vmem:[#allocation329_spill] sm:$0xff] %v13455_v48  ;;  %9451 = vrot.lane.b32.xlu1 %v9450_v15, %s9946_s18  ;;  %v13467_v9 = vmul.f32 %v13459_v12, %v12711_v60  ;;  %v13492_v15 = vpop.permute.xlu2 %9421  ;;  %v9403_v61 = vunpack.i.l.bf16 %v13355_v19  ;;  %v18155_v44 = vmax.f32 %v18154_v1, 0.0  ;;  %v18156_v60 = vrot.slane %v12960_v38, 1 }
 0x462   :  { %18146 = vst [vmem:[#allocation330_spill] sm:$0xff] %v13459_v12  ;;  %3784 = vperm.xlu2 %9347, %v8559_v27   ;;  %4569 = vmatmul.bf16.gmra.mxu1 %v4209_v58  ;;  %v8561_v58 = vld [vmem:[%s17205_s1 + $0x418] sm:$0xff]  ;;  %v9404_v27 = vunpack.i.h.bf16 %v13355_v19  ;;  %v9398_v1 = vunpack.i.l.bf16 %v13337_v63 }
 0x463   :  { %18147 = vst [vmem:[#allocation331_spill] sm:$0xff] %v13467_v9  ;;  %4697 = vmatpush.bf16.msrb.mxu0 %v9225_v33  ;;  %v18152_v33 = vrot.slane %v12855_v43, 1  ;;  %v13515_v37 = vsel %vm1698_vm2, %v3173_v18, %v18156_v60  ;;  %v9399_v9 = vunpack.i.h.bf16 %v13337_v63  ;;  %v9223_v60 = vld [vmem:[%s17210_s6 + $0xc8] sm:$0xff] }
 0x464   :  { %18149 = vst [vmem:[#allocation332_spill] sm:$0xff] %v13471_v47  ;;  %v13482_v32 = vpop.permute.xlu0 %9426  ;;  %v18158_v47 = vld [vmem:[#allocation245_spill] sm:$0xff] }
 0x465   :  { %18150 = vst [vmem:[#allocation333_spill] sm:$0xff] %v13475_v2  ;;  %v13504_v30 = vsel %vm1698_vm2, %v18152_v33, %v3173_v18  ;;  %v18157_v33 = vld [vmem:[#allocation243_spill] sm:$0xff]  ;;  %v3303_v19 = vmul.f32 %v18158_v47, %v13515_v37  ;;  %v18160_v18 = vld [vmem:[#allocation210_spill] sm:$0xff]  ;;  %v3746_v47 = vmul.f32 %v13245_v52, %v12750_v54  ;;  %v9222_v52 = vld [vmem:[%s17210_s6 + $0xc0] sm:$0xff] }
 0x466   :  { %18151 = vst [vmem:[#allocation334_spill] sm:$0xff] %v13479_v10  ;;  %v3527_v2 = vmul.f32 %v13001_v22, %v13504_v30  ;;  %v3302_v10 = vmul.f32 %v18157_v33, %v13504_v30  ;;  %v18161_v33 = vld [vmem:[#allocation265_spill] sm:$0xff] }
 0x467   :  { %18153 = vst [vmem:[#allocation335_spill] sm:$0xff] %v13504_v30  ;;  %4698 = vmatpush.bf16.msrb.mxu0 %v9224_v7  ;;  %v3526_v7 = vmul.f32 %v12981_v8, %v13397_v59  ;;  %v18162_v30 = vld [vmem:[#allocation217_spill] sm:$0xff] }
 0x468   :  { %4871 = vrot.lane.b32.xlu0 %v18155_v44, %s9947_s24  ;;  %v18159_v44 = vld [vmem:[#allocation272_spill] sm:$0xff]  ;;  %v3042_v26 = vmul.f32 %v18162_v30, %v18161_v33  ;;  %v4156_v63 = vsel %vm4129_vm3, %v3302_v10, %v9403_v61  ;;  %v8550_v10 = vld [vmem:[%s17205_s1 + $0x3c0] sm:$0xff] }
 0x469   :  { %3794 = vperm.xlu1 %9349, %v8561_v58   ;;  %v3043_v22 = vmul.f32 %v18160_v18, %v18159_v44  ;;  %v4157_v58 = vsel %vm4129_vm3, %v3303_v19, %v9404_v27  ;;  %v9490_v62 = vpack.i.bf16 %v3527_v2, %v3526_v7  ;;  %v3175_v19 = vrot.slane %v12928_v49, 1  ;;  %v18164_v7 = vld [vmem:[#allocation246_spill] sm:$0xff] }
 0x46a   :  { %3701 = vperm.xlu2 %9347, %v8549_v23   ;;  %v3747_v23 = vmul.f32 %v13202_v20, %v12766_v21  ;;  %v4138_v8 = vsel %vm4129_vm3, %v3042_v26, %v9398_v1  ;;  %v4220_v27 = vpack.c.bf16 %v4157_v58, %v4156_v63  ;;  %v18165_v58 = vld [vmem:[#allocation253_spill] sm:$0xff] }
 0x46b   :  { %4699 = vmatpush.bf16.msrb.mxu0 %v9223_v60  ;;  %v4139_v59 = vsel %vm4129_vm3, %v3043_v22, %v9399_v9 }
 0x46c   :  { %v9432_v34 = vpop.permute.xlu0 %9431  ;;  %v9455_v26 = vpack.i.bf16 %v3747_v23, %v3746_v47  ;;  %v4214_v9 = vpack.c.bf16 %v4139_v59, %v4138_v8  ;;  %v4947_v47 = vmul.f32 %v13401_v14, %v12595_v35  ;;  %v3176_v8 = vrot.slane %v12952_v28, 1 }
 0x46d   :  { %v9434_v18 = vunpack.i.h.bf16 %v9432_v34  ;;  %v9433_v44 = vunpack.i.l.bf16 %v9432_v34  ;;  %v13553_v34 = vpop.permute.xlu2 %4855  ;;  %v9413_v59 = vunpack.i.l.bf16 %v13322_v16 }
 0x46e   :  { %v13569_v60 = vsel %vm1698_vm2, %v3175_v19, %v3176_v8 }
 0x46f   :  { %v4163_v61 = vsel %vm4129_vm3, %v12836_v57, %v9434_v18  ;;  %v4162_v2 = vsel %vm4129_vm3, %v12816_v29, %v9433_v44  ;;  %4700 = vmatpush.bf16.msrb.mxu0 %v9222_v52  ;;  %v4948_v57 = vmul.f32 %v13553_v34, %v12563_v3  ;;  %v9414_v52 = vunpack.i.h.bf16 %v13322_v16 }
 0x470   :  { %9491 = vrot.lane.b32.xlu0 %v9490_v62, %s9946_s18  ;;  %v4196_v22 = vpack.c.bf16 %v4163_v61, %v4162_v2  ;;  %v8566_v62 = vld [vmem:[%s17205_s1 + $0x440] sm:$0xff]  ;;  %v18163_v44 = vrot.slane %v12960_v38, 1  ;;  %v3305_v63 = vmul.f32 %v18164_v7, %v13569_v60  ;;  %v9409_v16 = vunpack.i.h.bf16 %v13303_v17  ;;  %v9241_v2 = vld [vmem:[%s17213_s9 + $0x38] sm:$0xff] }
 0x471   :  { %4628 = vmatmul.bf16.gmra.mxu2 %v4220_v27  ;;  %3706 = vperm.xlu1 %9349, %v8550_v10   ;;  %v9465_v1 = vpack.i.bf16 %v4948_v57, %v4947_v47  ;;  %v9408_v10 = vunpack.i.l.bf16 %v13303_v17  ;;  %v18166_v27 = vld [vmem:[#allocation76_spill] sm:$0xff]  ;;  %v9240_v47 = vld [vmem:[%s17213_s9 + $0x30] sm:$0xff] }
 0x472   :  { %9456 = vrot.lane.b32.xlu2 %v9455_v26, %s9946_s18  ;;  %4574 = vmatmul.bf16.gmra.mxu1 %v4214_v9  ;;  %v13575_v18 = vsel %vm1698_vm2, %v18163_v44, %v3175_v19  ;;  %v18167_v61 = vmax.f32 %v18166_v27, 0.0  ;;  %v18168_v26 = vld [vmem:[#allocation212_spill] sm:$0xff]  ;;  %v13594_v19 = vpop.permute.xlu1 %4875 }
 0x473   :  { %4652 = vmatmul.bf16.vlgmr.msrb.gmra.mxu3 %v4196_v22  ;;  %v3304_v23 = vmul.f32 %v18165_v58, %v13575_v18  ;;  %v3044_v22 = vmul.f32 %v18168_v26, %v12901_v11  ;;  %v18169_v9 = vld [vmem:[#allocation220_spill] sm:$0xff]  ;;  %18170 = vst [vmem:[#allocation93_spill] sm:$0xff] %v13594_v19  ;;  %5759 = vmatpush.bf16.msra.mxu2 %v9241_v2  ;;  %v9238_v2 = vld [vmem:[%s17213_s9 + $0x20] sm:$0xff] }
 0x474   :  { %v3045_v57 = vmul.f32 %v18169_v9, %v13019_v36  ;;  %v18180_v58 = vld [vmem:[#allocation213_spill] sm:$0xff] }
 0x475   :  { %v4158_v17 = vsel %vm4129_vm3, %v3304_v23, %v9413_v59  ;;  %v4140_v44 = vsel %vm4129_vm3, %v3044_v22, %v9408_v10  ;;  %v9239_v23 = vld [vmem:[%s17213_s9 + $0x28] sm:$0xff]  ;;  %v3177_v10 = vrot.slane %v13069_v24, 1  ;;  %v3748_v22 = vmul.f32 %v13220_v13, %v12755_v56  ;;  %v18182_v13 = vld [vmem:[#allocation215_spill] sm:$0xff] }
 0x476   :  { %v4141_v27 = vsel %vm4129_vm3, %v3045_v57, %v9409_v16  ;;  %v3749_v16 = vmul.f32 %v13307_v0, %v12779_v4 }
 0x477   :  { %5760 = vmatpush.bf16.msra.mxu2 %v9240_v47  ;;  %v9423_v47 = vunpack.i.l.bf16 %v13492_v15 }
 0x478   :  { %3819 = vperm.xlu0 %9348, %v8566_v62   ;;  %v4159_v62 = vsel %vm4129_vm3, %v3305_v63, %v9414_v52  ;;  %v8563_v52 = vld [vmem:[%s17205_s1 + $0x428] sm:$0xff]  ;;  %v4219_v63 = vpack.c.bf16 %v4141_v27, %v4140_v44  ;;  %v13632_v44 = vsel %vm1698_vm2, %v3176_v8, %v3177_v10  ;;  %v18173_v27 = vrot.slane %v12841_v51, 1 }
 0x479   :  { %9466 = vrot.lane.b32.xlu1 %v9465_v1, %s9946_s18  ;;  %v8556_v1 = vld [vmem:[%s17205_s1 + $0x3f0] sm:$0xff]  ;;  %v4225_v59 = vpack.c.bf16 %v4159_v62, %v4158_v17  ;;  %v9424_v62 = vunpack.i.h.bf16 %v13492_v15  ;;  %18172 = vst [vmem:[#allocation76_spill] sm:$0xff] %v13632_v44  ;;  %v18176_v15 = vld [vmem:[#allocation256_spill] sm:$0xff]  ;;  %v9419_v8 = vunpack.i.h.bf16 %v13418_v31 }
 0x47a   :  { %4861 = vrot.lane.b32.xlu2 %v18167_v61, %s9947_s24  ;;  %v8551_v61 = vld [vmem:[%s17205_s1 + $0x3c8] sm:$0xff]  ;;  %v13623_v57 = vpop.permute.xlu1 %3779  ;;  %v8552_v17 = vld [vmem:[%s17205_s1 + $0x3d0] sm:$0xff] }
 0x47b   :  { %5761 = vmatpush.bf16.msra.mxu2 %v9239_v23  ;;  %18171 = vst [vmem:[#allocation265_spill] sm:$0xff] %v13623_v57 }
 0x47f   :  { %5762 = vmatpush.bf16.msra.mxu2 %v9238_v2  ;;  %v3632_v2 = vmul.f32 %v13050_v50, %v12917_v5  ;;  %v9236_v50 = vld [vmem:[%s17213_s9 + $0x10] sm:$0xff] }
 0x480   :  { %3736 = vperm.xlu0 %9348, %v8556_v1   ;;  %v9470_v1 = vpack.i.bf16 %v3749_v16, %v3748_v22  ;;  %v9418_v16 = vunpack.i.l.bf16 %v13418_v31  ;;  %v18177_v22 = vld [vmem:[#allocation270_spill] sm:$0xff] }
 0x481   :  { %4633 = vmatmul.bf16.gmra.mxu2 %v4225_v59  ;;  %3804 = vperm.xlu1 %9349, %v8563_v52   ;;  %v9237_v52 = vld [vmem:[%s17213_s9 + $0x18] sm:$0xff] }
 0x482   :  { %3711 = vperm.xlu2 %9347, %v8551_v61   ;;  %4579 = vmatmul.bf16.gmra.mxu1 %v4219_v63  ;;  %v13638_v61 = vsel %vm1698_vm2, %v3177_v10, %v18173_v27  ;;  %v18175_v59 = vld [vmem:[#allocation248_spill] sm:$0xff]  ;;  %v18178_v27 = vld [vmem:[#allocation303_spill] sm:$0xff] }
 0x483   :  { %18174 = vst [vmem:[#allocation336_spill] sm:$0xff] %v13638_v61  ;;  %v3306_v63 = vmul.f32 %v18175_v59, %v13632_v44  ;;  %v3307_v23 = vmul.f32 %v18176_v15, %v13638_v61  ;;  %v3631_v35 = vmul.f32 %v18178_v27, %v18177_v22  ;;  %v18179_v59 = vld [vmem:[#allocation289_spill] sm:$0xff]  ;;  %v18181_v15 = vld [vmem:[#allocation286_spill] sm:$0xff]  ;;  %5763 = vmatpush.bf16.msra.mxu2 %v9237_v52  ;;  %v18186_v52 = vld [vmem:[#allocation224_spill] sm:$0xff] }
 0x484   :  { %v3046_v0 = vmul.f32 %v18180_v58, %v18179_v59  ;;  %v3047_v9 = vmul.f32 %v18182_v13, %v18181_v15  ;;  %v4899_v13 = vrot.slane %v13553_v34, 7 }
 0x485   :  { %v4160_v31 = vsel %vm4129_vm3, %v3306_v63, %v9423_v47  ;;  %v13668_v47 = vpop.permute.xlu1 %4859 }
 0x486   :  { %v4142_v22 = vsel %vm4129_vm3, %v3046_v0, %v9418_v16  ;;  %18183 = vst [vmem:[#allocation270_spill] sm:$0xff] %v13668_v47  ;;  %v18188_v16 = vrot.slane %v13401_v14, 7 }
 0x487   :  { %5764 = vmatpush.bf16.msra.mxu2 %v9236_v50 }
 0x489   :  { %3716 = vperm.xlu1 %9349, %v8552_v17  }
 0x48a   :  { %9471 = vrot.lane.b32.xlu2 %v9470_v1, %s9946_s18  ;;  %v9442_v10 = vpop.permute.xlu0 %9441  ;;  %v4161_v1 = vsel %vm4129_vm3, %v3307_v23, %v9424_v62  ;;  %v18187_v23 = vld [vmem:[#allocation232_spill] sm:$0xff] }
 0x48b   :  { %v9444_v3 = vunpack.i.h.bf16 %v9442_v10  ;;  %v9443_v7 = vunpack.i.l.bf16 %v9442_v10  ;;  %v4143_v10 = vsel %vm4129_vm3, %v3047_v9, %v9419_v8  ;;  %v4230_v27 = vpack.c.bf16 %v4161_v1, %v4160_v31  ;;  %v8553_v31 = vld [vmem:[%s17205_s1 + $0x3d8] sm:$0xff]  ;;  %v18191_v1 = vld [vmem:[#allocation254_spill] sm:$0xff] }
 0x48c   :  { %v4224_v62 = vpack.c.bf16 %v4143_v10, %v4142_v22  ;;  %v4950_v8 = vmul.f32 %v13668_v47, %v18187_v23  ;;  %v9232_v10 = vld [vmem:[%s17210_s6 + $0x110] sm:$0xff] }
 0x48d   :  { %v4179_v17 = vsel %vm4129_vm3, %v3632_v2, %v9444_v3  ;;  %v4178_v26 = vsel %vm4129_vm3, %v3631_v35, %v9443_v7  ;;  %v9233_v35 = vld [vmem:[%s17210_s6 + $0x118] sm:$0xff]  ;;  %v18184_v3 = vld [vmem:[#allocation83_spill] sm:$0xff]  ;;  %v13690_v2 = vsel %vm1424_vm1, %v18188_v16, %v4899_v13  ;;  %v18194_v16 = vld [vmem:[#allocation298_spill] sm:$0xff] }
 0x48e   :  { %v4197_v5 = vpack.c.bf16 %v4179_v17, %v4178_v26  ;;  %v18185_v0 = vmax.f32 %v18184_v3, 0.0  ;;  %v9235_v26 = vld [vmem:[%s17213_s9 + $0x8] sm:$0xff]  ;;  %4746 = vmatpush.bf16.msrb.mxu1 %v9233_v35  ;;  %18189 = vst [vmem:[#allocation289_spill] sm:$0xff] %v13690_v2  ;;  %v13704_v17 = vmul.f32 %v13690_v2, %v18191_v1  ;;  %v9429_v35 = vunpack.i.h.bf16 %v13482_v32  ;;  %v18197_v23 = vld [vmem:[#allocation223_spill] sm:$0xff] }
 0x48f   :  { %5765 = vmatpush.bf16.msra.mxu2 %v9235_v26  ;;  %v9428_v3 = vunpack.i.l.bf16 %v13482_v32  ;;  %v9231_v26 = vld [vmem:[%s17210_s6 + $0x108] sm:$0xff]  ;;  %v8565_v32 = vld [vmem:[%s17205_s1 + $0x438] sm:$0xff] }
 0x490   :  { %4701 = vmatmul.bf16.vlgmr.msrb.gmra.mxu0 %v4197_v5  ;;  %18192 = vst [vmem:[#allocation83_spill] sm:$0xff] %v13704_v17  ;;  %v18193_v5 = vld [vmem:[#allocation263_spill] sm:$0xff] }
 0x491   :  { %4638 = vmatmul.bf16.gmra.mxu2 %v4230_v27 }
 0x492   :  { %4865 = vrot.lane.b32.xlu2 %v18185_v0, %s9947_s24  ;;  %v13676_v7 = vpop.permute.xlu0 %4857  ;;  %4584 = vmatmul.bf16.gmra.mxu1 %v4224_v62 }
 0x493   :  { %v17498_v9 = vrot.slane %v13676_v7, 7  ;;  %v4949_v63 = vmul.f32 %v13676_v7, %v18186_v52  ;;  %4747 = vmatpush.bf16.msrb.mxu1 %v9232_v10  ;;  %v18196_v52 = vld [vmem:[#allocation283_spill] sm:$0xff] }
 0x494   :  { %v3048_v62 = vmul.f32 %v18197_v23, %v18196_v52 }
 0x495   :  { %v9480_v50 = vpack.i.bf16 %v4950_v8, %v4949_v63  ;;  %v13696_v27 = vsel %vm1424_vm1, %v4899_v13, %v17498_v9  ;;  %v9234_v13 = vld [vmem:[%s17213_s9] sm:$0xff] }
 0x496   :  { %18190 = vst [vmem:[#allocation286_spill] sm:$0xff] %v13696_v27  ;;  %v13708_v22 = vmul.f32 %v13696_v27, %v18193_v5  ;;  %5766 = vmatpush.bf16.msra.mxu2 %v9234_v13 }
 0x497   :  { %9481 = vrot.lane.b32.xlu1 %v9480_v50, %s9946_s18  ;;  %v18195_v50 = vld [vmem:[#allocation216_spill] sm:$0xff]  ;;  %4748 = vmatpush.bf16.msrb.mxu1 %v9231_v26 }
 0x498   :  { %v3049_v9 = vmul.f32 %v18195_v50, %v18194_v16  ;;  %v9230_v50 = vld [vmem:[%s17210_s6 + $0x100] sm:$0xff] }
 0x49a   :  { %3721 = vperm.xlu2 %9347, %v8553_v31   ;;  %v9447_v0 = vpop.permute.xlu0 %9446  ;;  %v18198_v31 = vld [vmem:[#allocation271_spill] sm:$0xff]  ;;  %v4145_v13 = vsel %vm4129_vm3, %v3049_v9, %v9429_v35 }
 0x49b   :  { %v9449_v63 = vunpack.i.h.bf16 %v9447_v0  ;;  %v9448_v8 = vunpack.i.l.bf16 %v9447_v0  ;;  %v4144_v0 = vsel %vm4129_vm3, %v3048_v62, %v9428_v3  ;;  %4749 = vmatpush.bf16.msrb.mxu1 %v9230_v50  ;;  %v17499_v62 = vrot.slane %v13594_v19, 7 }
 0x49c   :  { %v4229_v23 = vpack.c.bf16 %v4145_v13, %v4144_v0 }
 0x49d   :  { %v4164_v10 = vsel %vm4129_vm3, %v18198_v31, %v9448_v8  ;;  %v4165_v1 = vsel %vm4129_vm3, %v12750_v54, %v9449_v63  ;;  %v8554_v54 = vld [vmem:[%s17205_s1 + $0x3e0] sm:$0xff] }
 0x49e   :  { %v4201_v5 = vpack.c.bf16 %v4165_v1, %v4164_v10  ;;  %v18204_v10 = vld [vmem:[#allocation204_spill] sm:$0xff] }
 0x49f   :  { %3814 = vperm.xlu1 %9349, %v8565_v32   ;;  %v18203_v32 = vld [vmem:[#allocation203_spill] sm:$0xff]  ;;  %v4928_v0 = vmul.f32 %v13451_v39, %v18204_v10 }
 0x4a0   :  { %4657 = vmatmul.bf16.gmra.mxu3 %v4201_v5  ;;  %v18201_v5 = vrot.slane %v13381_v45, 7 }
 0x4a2   :  { %v13739_v52 = vpop.permute.xlu0 %3789  ;;  %4589 = vmatmul.bf16.gmra.mxu1 %v4229_v23  ;;  %v13757_v23 = vsel %vm1424_vm1, %v17499_v62, %v18201_v5 }
 0x4a3   :  { %18199 = vst [vmem:[#allocation271_spill] sm:$0xff] %v13739_v52  ;;  %v4927_v31 = vmul.f32 %v13757_v23, %v18203_v32 }
 0x4a4   :  { %v4604_v8 = vpop.f32.mrf.mxu2  ;;  %18202 = vst [vmem:[#allocation338_spill] sm:$0xff] %v13757_v23 }
 0x4a7   :  { %3726 = vperm.xlu1 %9349, %v8554_v54  }
 0x4aa   :  { %v13744_v1 = vpop.permute.xlu0 %4863 }
 0x4ac   :  { %v13746_v9 = vpop.f32.mrf.mxu2 }
 0x4ad   :  { %18200 = vst [vmem:[#allocation337_spill] sm:$0xff] %v13746_v9 }
 0x4af   :  { %v4555_v35 = vpop.f32.mrf.mxu1 }
 0x4b0   :  { %v13749_v3 = vadd.f32 %v4604_v8, %v4555_v35 }
 0x4b2   :  { %v9462_v26 = vpop.permute.xlu0 %9461 }
 0x4b3   :  { %v9464_v63 = vunpack.i.h.bf16 %v9462_v26  ;;  %v9463_v50 = vunpack.i.l.bf16 %v9462_v26  ;;  %v9437_v13 = vpop.permute.xlu2 %9436 }
 0x4b4   :  { %v4609_v8 = vpop.f32.mrf.mxu2  ;;  %v9439_v54 = vunpack.i.h.bf16 %v9437_v13  ;;  %v9438_v35 = vunpack.i.l.bf16 %v9437_v13 }
 0x4b5   :  { %v4166_v9 = vsel %vm4129_vm3, %v12766_v21, %v9463_v50  ;;  %v4167_v5 = vsel %vm4129_vm3, %v12755_v56, %v9464_v63  ;;  %v18209_v21 = vld [vmem:[#allocation300_spill] sm:$0xff]  ;;  %v18210_v56 = vld [vmem:[#allocation318_spill] sm:$0xff] }
 0x4b6   :  { %v4206_v62 = vpack.c.bf16 %v4167_v5, %v4166_v9  ;;  %v5344_v16 = vsel %vm4129_vm3, %v4928_v0, %v9439_v54  ;;  %v5343_v26 = vsel %vm4129_vm3, %v4927_v31, %v9438_v35  ;;  %v3857_v50 = vmul.f32 %v13623_v57, %v18209_v21  ;;  %v18212_v54 = vld [vmem:[#allocation264_spill] sm:$0xff]  ;;  %v18213_v35 = vld [vmem:[#allocation322_spill] sm:$0xff] }
 0x4b7   :  { %v5407_v58 = vpack.c.bf16 %v5344_v16, %v5343_v26  ;;  %v13769_v32 = vpop.f32.mrf.mxu1  ;;  %v3750_v5 = vmul.f32 %v18213_v35, %v18212_v54 }
 0x4b8   :  { %18205 = vst [vmem:[#allocation339_spill] sm:$0xff] %v13769_v32  ;;  %4662 = vmatmul.bf16.gmra.mxu3 %v4206_v62  ;;  %v18217_v32 = vld [vmem:[#allocation306_spill] sm:$0xff] }
 0x4b9   :  { %5767 = vmatmul.bf16.vlgmr.msra.gmra.mxu2 %v5407_v58  ;;  %v3634_v57 = vmul.f32 %v18217_v32, %v12791_v41 }
 0x4ba   :  { %v13771_v10 = vpop.permute.xlu0 %3799 }
 0x4bb   :  { %18206 = vst [vmem:[#allocation340_spill] sm:$0xff] %v13771_v10 }
 0x4bc   :  { %v13773_v39 = vpop.permute.xlu2 %3784  ;;  %v13775_v13 = vpop.f32.mrf.mxu2 }
 0x4bd   :  { %18207 = vst [vmem:[#allocation341_spill] sm:$0xff] %v13773_v39  ;;  %v3858_v9 = vmul.f32 %v13773_v39, %v18210_v56 }
 0x4be   :  { %18208 = vst [vmem:[#allocation342_spill] sm:$0xff] %v13775_v13 }
 0x4bf   :  { %v4198_v63 = vpack.c.bf16 %v3858_v9, %v3857_v50  ;;  %v4560_v0 = vpop.f32.mrf.mxu1  ;;  %v18215_v9 = vld [vmem:[#allocation279_spill] sm:$0xff] }
 0x4c0   :  { %v13781_v31 = vadd.f32 %v4609_v8, %v4560_v0 }
 0x4c1   :  { %8718 = vmatmul.msk.bf16.vlgmr.msrb.gmra.mxu1 %vm4129_vm3, %v4198_v63  ;;  %v18216_v63 = vld [vmem:[#allocation202_spill] sm:$0xff] }
 0x4c2   :  { %v13784_v16 = vpop.permute.xlu0 %4867  ;;  %v3633_v0 = vmul.f32 %v18216_v63, %v18215_v9 }
 0x4c4   :  { %v13786_v58 = vpop.permute.xlu2 %3701  ;;  %v4614_v62 = vpop.f32.mrf.mxu2 }
 0x4c5   :  { %18211 = vst [vmem:[#allocation300_spill] sm:$0xff] %v13786_v58  ;;  %v3751_v26 = vmul.f32 %v13786_v58, %v12827_v25 }
 0x4c7   :  { %v9485_v21 = vpack.i.bf16 %v3751_v26, %v3750_v5  ;;  %v13792_v13 = vpop.f32.mrf.mxu1 }
 0x4c8   :  { %18214 = vst [vmem:[#allocation318_spill] sm:$0xff] %v13792_v13 }
 0x4c9   :  { %9486 = vrot.lane.b32.xlu2 %v9485_v21, %s9946_s18 }
 0x4ca   :  { %v9477_v8 = vpop.permute.xlu0 %9476 }
 0x4cb   :  { %v9479_v50 = vunpack.i.h.bf16 %v9477_v8  ;;  %v9478_v56 = vunpack.i.l.bf16 %v9477_v8 }
 0x4cc   :  { %v9457_v39 = vpop.permute.xlu2 %9456  ;;  %v13799_v23 = vpop.f32.mrf.mxu2 }
 0x4cd   :  { %18218 = vst [vmem:[#allocation264_spill] sm:$0xff] %v13799_v23  ;;  %v9459_v45 = vunpack.i.h.bf16 %v9457_v39  ;;  %v9458_v17 = vunpack.i.l.bf16 %v9457_v39  ;;  %v4168_v5 = vsel %vm4129_vm3, %v12779_v4, %v9478_v56  ;;  %v4169_v26 = vsel %vm4129_vm3, %v18212_v54, %v9479_v50  ;;  %v18219_v23 = vld [vmem:[#allocation84_spill] sm:$0xff] }
 0x4ce   :  { %v4211_v21 = vpack.c.bf16 %v4169_v26, %v4168_v5  ;;  %v18220_v32 = vmax.f32 %v18219_v23, 0.0  ;;  %v8555_v23 = vld [vmem:[%s17205_s1 + $0x3e8] sm:$0xff] }
 0x4cf   :  { %v4180_v8 = vsel %vm4129_vm3, %v3633_v0, %v9458_v17  ;;  %v4181_v13 = vsel %vm4129_vm3, %v3634_v57, %v9459_v45  ;;  %v4565_v9 = vpop.f32.mrf.mxu1  ;;  %v18222_v0 = vld [vmem:[#allocation211_spill] sm:$0xff]  ;;  %v18223_v57 = vld [vmem:[#allocation205_spill] sm:$0xff] }
 0x4d0   :  { %4667 = vmatmul.bf16.gmra.mxu3 %v4211_v21  ;;  %v4202_v63 = vpack.c.bf16 %v4181_v13, %v4180_v8  ;;  %v13807_v41 = vadd.f32 %v4614_v62, %v4565_v9  ;;  %v4929_v45 = vmul.f32 %v13459_v12, %v18222_v0  ;;  %v4930_v13 = vmul.f32 %v13455_v48, %v18223_v57  ;;  %v18229_v48 = vld [vmem:[#allocation73_spill] sm:$0xff] }
 0x4d1   :  { %4869 = vrot.lane.b32.xlu2 %v18220_v32, %s9947_s24  ;;  %v18224_v32 = vld [vmem:[#allocation225_spill] sm:$0xff] }
 0x4d2   :  { %4706 = vmatmul.bf16.gmra.mxu0 %v4202_v63  ;;  %v13812_v39 = vpop.permute.xlu0 %3809  ;;  %v18225_v63 = vld [vmem:[#allocation227_spill] sm:$0xff] }
 0x4d3   :  { %18221 = vst [vmem:[#allocation279_spill] sm:$0xff] %v13812_v39  ;;  %v9452_v4 = vpop.permute.xlu1 %9451  ;;  %v4952_v5 = vmul.f32 %v13744_v1, %v18225_v63  ;;  %v3859_v63 = vmul.f32 %v13739_v52, %v18229_v48  ;;  %v18232_v48 = vld [vmem:[#allocation206_spill] sm:$0xff] }
 0x4d4   :  { %v13814_v56 = vpop.permute.xlu2 %4861  ;;  %v9454_v54 = vunpack.i.h.bf16 %v9452_v4  ;;  %v9453_v50 = vunpack.i.l.bf16 %v9452_v4  ;;  %v4619_v17 = vpop.f32.mrf.mxu2 }
 0x4d5   :  { %v4951_v62 = vmul.f32 %v13814_v56, %v18224_v32 }
 0x4d6   :  { %v5345_v26 = vsel %vm4129_vm3, %v4929_v45, %v9453_v50  ;;  %v5346_v21 = vsel %vm4129_vm3, %v4930_v13, %v9454_v54  ;;  %v18230_v50 = vld [vmem:[#allocation78_spill] sm:$0xff] }
 0x4d7   :  { %v13829_v8 = vpop.f32.mrf.mxu1  ;;  %v9495_v9 = vpack.i.bf16 %v4952_v5, %v4951_v62  ;;  %v5412_v4 = vpack.c.bf16 %v5346_v21, %v5345_v26  ;;  %v8567_v13 = vld [vmem:[%s17205_s1 + $0x448] sm:$0xff] }
 0x4d8   :  { %18226 = vst [vmem:[#allocation84_spill] sm:$0xff] %v13829_v8 }
 0x4d9   :  { %3731 = vperm.xlu2 %9347, %v8555_v23   ;;  %9496 = vrot.lane.b32.xlu1 %v9495_v9, %s9946_s18 }
 0x4da   :  { %5772 = vmatmul.bf16.gmra.mxu2 %v5412_v4  ;;  %v13832_v57 = vpop.permute.xlu0 %4871  ;;  %v3635_v4 = vmul.f32 %v18232_v48, %v18136_v55 }
 0x4db   :  { %v13834_v0 = vpop.permute.xlu1 %3794 }
 0x4dc   :  { %18227 = vst [vmem:[#allocation343_spill] sm:$0xff] %v13834_v0  ;;  %v13836_v32 = vpop.permute.xlu2 %3711  ;;  %v3860_v54 = vmul.f32 %v13834_v0, %v18230_v50  ;;  %v13842_v45 = vpop.f32.mrf.mxu2  ;;  %v18233_v50 = vld [vmem:[#allocation299_spill] sm:$0xff] }
 0x4dd   :  { %18228 = vst [vmem:[#allocation344_spill] sm:$0xff] %v13836_v32  ;;  %v3753_v8 = vmul.f32 %v13836_v32, %v12943_v6  ;;  %v18236_v32 = vld [vmem:[#allocation207_spill] sm:$0xff] }
 0x4de   :  { %18231 = vst [vmem:[#allocation73_spill] sm:$0xff] %v13842_v45  ;;  %v4203_v23 = vpack.c.bf16 %v3860_v54, %v3859_v63  ;;  %v3636_v45 = vmul.f32 %v18233_v50, %v18138_v42  ;;  %v8557_v42 = vld [vmem:[%s17205_s1 + $0x3f8] sm:$0xff] }
 0x4df   :  { %v4570_v62 = vpop.f32.mrf.mxu1 }
 0x4e0   :  { %v13847_v5 = vadd.f32 %v4619_v17, %v4570_v62  ;;  %8719 = vmatmul.msk.bf16.gmra.mxu1 %vm4129_vm3, %v4203_v23 }
 0x4e1   :  { %3824 = vperm.xlu1 %9349, %v8567_v13  }
 0x4e2   :  { %v9492_v26 = vpop.permute.xlu0 %9491 }
 0x4e3   :  { %v9494_v21 = vunpack.i.h.bf16 %v9492_v26  ;;  %v9493_v9 = vunpack.i.l.bf16 %v9492_v26  ;;  %v13856_v0 = vpop.permute.xlu1 %3706 }
 0x4e4   :  { %18234 = vst [vmem:[#allocation78_spill] sm:$0xff] %v13856_v0  ;;  %v9472_v63 = vpop.permute.xlu2 %9471  ;;  %v3752_v17 = vmul.f32 %v13856_v0, %v12855_v43  ;;  %v4624_v23 = vpop.f32.mrf.mxu2 }
 0x4e5   :  { %v9474_v54 = vunpack.i.h.bf16 %v9472_v63  ;;  %v9473_v13 = vunpack.i.l.bf16 %v9472_v63  ;;  %v4170_v62 = vsel %vm4129_vm3, %v12827_v25, %v9493_v9  ;;  %v4171_v55 = vsel %vm4129_vm3, %v12855_v43, %v9494_v21 }
 0x4e6   :  { %v9500_v26 = vpack.i.bf16 %v3753_v8, %v3752_v17  ;;  %v4216_v50 = vpack.c.bf16 %v4171_v55, %v4170_v62  ;;  %v4931_v8 = vmul.f32 %v13445_v40, %v18236_v32  ;;  %v18238_v17 = vld [vmem:[#allocation235_spill] sm:$0xff]  ;;  %v17519_v62 = vrot.slane %v13676_v7, 1 }
 0x4e7   :  { %v4182_v48 = vsel %vm4129_vm3, %v3635_v4, %v9473_v13  ;;  %v4183_v52 = vsel %vm4129_vm3, %v3636_v45, %v9474_v54  ;;  %v13869_v12 = vpop.f32.mrf.mxu1  ;;  %v4932_v4 = vmul.f32 %v13690_v2, %v18126_v46  ;;  %v17520_v55 = vrot.slane %v13814_v56, 1 }
 0x4e8   :  { %18235 = vst [vmem:[#allocation345_spill] sm:$0xff] %v13869_v12  ;;  %v4207_v63 = vpack.c.bf16 %v4183_v52, %v4182_v48  ;;  %9501 = vrot.lane.b32.xlu2 %v9500_v26, %s9946_s18  ;;  %4672 = vmatmul.bf16.gmra.mxu3 %v4216_v50  ;;  %v18239_v48 = vld [vmem:[#allocation228_spill] sm:$0xff]  ;;  %v4965_v46 = vrot.slane %v13668_v47, 1 }
 0x4e9   :  { %3741 = vperm.xlu1 %9349, %v8557_v42   ;;  %v4954_v50 = vmul.f32 %v13784_v16, %v18239_v48 }
 0x4ea   :  { %4711 = vmatmul.bf16.gmra.mxu0 %v4207_v63 }
 0x4eb   :  { %v9467_v25 = vpop.permute.xlu1 %9466 }
 0x4ec   :  { %v13872_v43 = vpop.permute.xlu2 %4865  ;;  %v9469_v21 = vunpack.i.h.bf16 %v9467_v25  ;;  %v9468_v9 = vunpack.i.l.bf16 %v9467_v25  ;;  %v13878_v45 = vpop.f32.mrf.mxu2 }
 0x4ed   :  { %18237 = vst [vmem:[#allocation346_spill] sm:$0xff] %v13878_v45  ;;  %v4953_v52 = vmul.f32 %v13872_v43, %v18238_v17  ;;  %v18240_v45 = vld [vmem:[#allocation88_spill] sm:$0xff] }
 0x4ee   :  { %v5347_v54 = vsel %vm4129_vm3, %v4931_v8, %v9468_v9  ;;  %v5348_v13 = vsel %vm4129_vm3, %v4932_v4, %v9469_v21  ;;  %v18241_v12 = vmax.f32 %v18240_v45, 0.0  ;;  %v18242_v21 = vld [vmem:[#allocation297_spill] sm:$0xff]  ;;  %v18243_v8 = vld [vmem:[#allocation290_spill] sm:$0xff]  ;;  %v18245_v45 = vld [vmem:[#allocation320_spill] sm:$0xff] }
 0x4ef   :  { %v4575_v42 = vpop.f32.mrf.mxu1  ;;  %v9510_v26 = vpack.i.bf16 %v4954_v50, %v4953_v52  ;;  %v5417_v63 = vpack.c.bf16 %v5348_v13, %v5347_v54  ;;  %v3528_v9 = vmul.f32 %v18242_v21, %v13515_v37  ;;  %v3529_v4 = vmul.f32 %v18243_v8, %v13575_v18  ;;  %v18247_v13 = vld [vmem:[#allocation323_spill] sm:$0xff] }
 0x4f0   :  { %v13888_v25 = vadd.f32 %v4624_v23, %v4575_v42  ;;  %4873 = vrot.lane.b32.xlu2 %v18241_v12, %s9947_s24  ;;  %v13903_v23 = vsel %vm1698_vm2, %v17519_v62, %v4965_v46  ;;  %v13911_v12 = vsel %vm1698_vm2, %v4965_v46, %v17520_v55  ;;  %v3861_v50 = vmul.f32 %v13771_v10, %v18245_v45  ;;  %v8569_v46 = vld [vmem:[%s17205_s1 + $0x458] sm:$0xff] }
 0x4f1   :  { %9511 = vrot.lane.b32.xlu0 %v9510_v26, %s9946_s18  ;;  %5777 = vmatmul.bf16.gmra.mxu2 %v5417_v63  ;;  %v13917_v54 = vmul.f32 %v13903_v23, %v13771_v10  ;;  %v9505_v32 = vpack.i.bf16 %v3529_v4, %v3528_v9  ;;  %v17527_v10 = vrot.slane %v13668_v47, 7 }
 0x4f3   :  { %v13905_v52 = vpop.permute.xlu1 %3804  ;;  %18246 = vst [vmem:[#allocation320_spill] sm:$0xff] %v13917_v54 }
 0x4f4   :  { %18244 = vst [vmem:[#allocation88_spill] sm:$0xff] %v13905_v52  ;;  %v3862_v42 = vmul.f32 %v13905_v52, %v18247_v13  ;;  %v13923_v26 = vmul.f32 %v13911_v12, %v13905_v52  ;;  %v4629_v17 = vpop.f32.mrf.mxu2  ;;  %v13935_v13 = vpop.permute.xlu2 %3721 }
 0x4f5   :  { %18250 = vst [vmem:[#allocation348_spill] sm:$0xff] %v13935_v13  ;;  %v3755_v9 = vmul.f32 %v13935_v13, %v12928_v49 }
 0x4f6   :  { %18248 = vst [vmem:[#allocation323_spill] sm:$0xff] %v13923_v26  ;;  %v4653_v63 = vpop.f32.mrf.mxu3  ;;  %v4208_v45 = vpack.c.bf16 %v3862_v42, %v3861_v50  ;;  %v8568_v50 = vld [vmem:[%s17205_s1 + $0x450] sm:$0xff] }
 0x4f7   :  { %v4654_v62 = vadd.f32 %v4653_v63, %v13749_v3  ;;  %v13931_v48 = vpop.f32.mrf.mxu1 }
 0x4f8   :  { %18249 = vst [vmem:[#allocation347_spill] sm:$0xff] %v13931_v48  ;;  %9506 = vrot.lane.b32.xlu2 %v9505_v32, %s9946_s18  ;;  %8720 = vmatmul.msk.bf16.gmra.mxu1 %vm4129_vm3, %v4208_v45  ;;  %v18254_v45 = vld [vmem:[#allocation60_spill] sm:$0xff] }
 0x4f9   :  { %3834 = vperm.xlu0 %9348, %v8569_v46   ;;  %v3531_v55 = vmul.f32 %v18254_v45, %v13632_v44  ;;  %v18255_v48 = vld [vmem:[#allocation292_spill] sm:$0xff] }
 0x4fa   :  { %v3530_v52 = vmul.f32 %v18255_v48, %v13569_v60 }
 0x4fb   :  { %v13937_v3 = vpop.permute.xlu1 %3716 }
 0x4fc   :  { %18251 = vst [vmem:[#allocation349_spill] sm:$0xff] %v13937_v3  ;;  %v3754_v4 = vmul.f32 %v13937_v3, %v12960_v38  ;;  %v13949_v46 = vpop.f32.mrf.mxu2  ;;  %v9520_v54 = vpack.i.bf16 %v3531_v55, %v3530_v52 }
 0x4fd   :  { %18253 = vst [vmem:[#allocation351_spill] sm:$0xff] %v13949_v46  ;;  %v18258_v46 = vld [vmem:[#allocation208_spill] sm:$0xff] }
 0x4fe   :  { %v9515_v42 = vpack.i.bf16 %v3755_v9, %v3754_v4  ;;  %v18256_v9 = vrot.slane %v13676_v7, 7  ;;  %v4933_v26 = vmul.f32 %v13696_v27, %v18258_v46  ;;  %v18260_v46 = vrot.slane %v13814_v56, 1  ;;  %v18272_v27 = vld [vmem:[#allocation302_spill] sm:$0xff] }
 0x4ff   :  { %v4580_v63 = vpop.f32.mrf.mxu1 }
 0x500   :  { %v13946_v32 = vadd.f32 %v4629_v17, %v4580_v63  ;;  %3829 = vperm.xlu2 %9347, %v8568_v50   ;;  %9516 = vrot.lane.b32.xlu1 %v9515_v42, %s9946_s18  ;;  %v13962_v17 = vsel %vm1424_vm1, %v18256_v9, %v17527_v10  ;;  %v4967_v9 = vrot.slane %v13744_v1, 1  ;;  %v17529_v10 = vrot.slane %v13872_v43, 1 }
 0x502   :  { %18252 = vst [vmem:[#allocation350_spill] sm:$0xff] %v13946_v32  ;;  %v18259_v32 = vld [vmem:[#allocation209_spill] sm:$0xff] }
 0x503   :  { %v4934_v55 = vmul.f32 %v13962_v17, %v18259_v32  ;;  %v13982_v32 = vsel %vm1698_vm2, %v18260_v46, %v4967_v9 }
 0x504   :  { %v4634_v52 = vpop.f32.mrf.mxu2 }
 0x507   :  { %v13964_v4 = vpop.f32.mrf.mxu1 }
 0x508   :  { %18257 = vst [vmem:[#allocation352_spill] sm:$0xff] %v13964_v4  ;;  %9521 = vrot.lane.b32.xlu1 %v9520_v54, %s9946_s18 }
 0x509   :  { %v9482_v50 = vpop.permute.xlu1 %9481 }
 0x50a   :  { %v9484_v42 = vunpack.i.h.bf16 %v9482_v50  ;;  %v9483_v63 = vunpack.i.l.bf16 %v9482_v50  ;;  %v8570_v50 = vld [vmem:[%s17205_s1 + $0x460] sm:$0xff] }
 0x50c   :  { %v5349_v2 = vsel %vm4129_vm3, %v4933_v26, %v9483_v63  ;;  %v5350_v40 = vsel %vm4129_vm3, %v4934_v55, %v9484_v42 }
 0x50d   :  { %v4702_v4 = vpop.f32.mrf.mxu0  ;;  %v5422_v54 = vpack.c.bf16 %v5350_v40, %v5349_v2  ;;  %v13992_v40 = vsel %vm1698_vm2, %v4967_v9, %v17529_v10  ;;  %v18263_v2 = vld [vmem:[#allocation81_spill] sm:$0xff]  ;;  %v14008_v9 = vpop.f32.mrf.mxu2 }
 0x50e   :  { %v4703_v44 = vadd.f32 %v4702_v4, %v4654_v62  ;;  %v3863_v62 = vmul.f32 %v13812_v39, %v18263_v2  ;;  %v18264_v4 = vld [vmem:[#allocation327_spill] sm:$0xff]  ;;  %18267 = vst [vmem:[#allocation355_spill] sm:$0xff] %v14008_v9  ;;  %v14013_v2 = vpop.f32.mrf.mxu3 }
 0x50f   :  { %5782 = vmatmul.bf16.gmra.mxu2 %v5422_v54  ;;  %v4585_v26 = vpop.f32.mrf.mxu1  ;;  %18269 = vst [vmem:[#allocation357_spill] sm:$0xff] %v14013_v2 }
 0x510   :  { %v13984_v42 = vadd.f32 %v4634_v52, %v4585_v26  ;;  %3839 = vperm.xlu1 %9349, %v8570_v50   ;;  %v14004_v52 = vmul.f32 %v13982_v32, %v13812_v39 }
 0x511   :  { %v13986_v63 = vpop.permute.xlu1 %3814 }
 0x512   :  { %18261 = vst [vmem:[#allocation353_spill] sm:$0xff] %v13984_v42  ;;  %v3864_v55 = vmul.f32 %v13986_v63, %v18264_v4  ;;  %v14000_v46 = vmul.f32 %v13992_v40, %v13986_v63  ;;  %v18271_v42 = vld [vmem:[#allocation272_spill] sm:$0xff] }
 0x513   :  { %18262 = vst [vmem:[#allocation354_spill] sm:$0xff] %v13986_v63  ;;  %v3638_v39 = vmul.f32 %v18272_v27, %v18271_v42 }
 0x514   :  { %18265 = vst [vmem:[#allocation81_spill] sm:$0xff] %v14000_v46  ;;  %v4213_v54 = vpack.c.bf16 %v3864_v55, %v3863_v62  ;;  %v18273_v55 = vld [vmem:[#allocation308_spill] sm:$0xff] }
 0x515   :  { %18266 = vst [vmem:[#allocation327_spill] sm:$0xff] %v14004_v52  ;;  %v4639_v4 = vpop.f32.mrf.mxu2  ;;  %v3637_v50 = vmul.f32 %v18273_v55, %v18161_v33 }
 0x516   :  { %8721 = vmatmul.msk.bf16.gmra.mxu1 %vm4129_vm3, %v4213_v54 }
 0x517   :  { %v14011_v26 = vpop.f32.mrf.mxu1 }
 0x518   :  { %18268 = vst [vmem:[#allocation356_spill] sm:$0xff] %v14011_v26 }
 0x51f   :  { %v4590_v10 = vpop.f32.mrf.mxu1 }
 0x520   :  { %v14015_v63 = vadd.f32 %v4639_v4, %v4590_v10  ;;  %v18274_v4 = vld [vmem:[#allocation238_spill] sm:$0xff] }
 0x521   :  { %v4956_v42 = vmul.f32 %v13832_v57, %v18274_v4 }
 0x522   :  { %18270 = vst [vmem:[#allocation358_spill] sm:$0xff] %v14015_v63  ;;  %v18275_v63 = vld [vmem:[#allocation230_spill] sm:$0xff] }
 0x523   :  { %v9487_v13 = vpop.permute.xlu2 %9486  ;;  %v4658_v62 = vpop.f32.mrf.mxu3 }
 0x524   :  { %v9489_v52 = vunpack.i.h.bf16 %v9487_v13  ;;  %v9488_v9 = vunpack.i.l.bf16 %v9487_v13  ;;  %v14022_v54 = vadd.f32 %v4658_v62, %v13781_v31  ;;  %v14033_v13 = vpop.permute.xlu1 %3726  ;;  %v18281_v62 = vld [vmem:[#allocation295_spill] sm:$0xff] }
 0x525   :  { %18276 = vst [vmem:[#allocation272_spill] sm:$0xff] %v14033_v13 }
 0x526   :  { %v4184_v26 = vsel %vm4129_vm3, %v3637_v50, %v9488_v9  ;;  %v4185_v2 = vsel %vm4129_vm3, %v3638_v39, %v9489_v52  ;;  %v3756_v39 = vmul.f32 %v14033_v13, %v12952_v28  ;;  %v8571_v52 = vld [vmem:[%s17205_s1 + $0x468] sm:$0xff] }
 0x527   :  { %v4212_v46 = vpack.c.bf16 %v4185_v2, %v4184_v26  ;;  %v14046_v9 = vpop.f32.mrf.mxu1  ;;  %v9249_v26 = vld [vmem:[%s17213_s9 + $0x78] sm:$0xff]  ;;  %v18280_v2 = vld [vmem:[#allocation315_spill] sm:$0xff] }
 0x528   :  { %18279 = vst [vmem:[#allocation361_spill] sm:$0xff] %v14046_v9  ;;  %5808 = vmatpush.bf16.msra.mxu3 %v9249_v26  ;;  %v18284_v26 = vld [vmem:[#allocation262_spill] sm:$0xff] }
 0x529   :  { %4716 = vmatmul.bf16.gmra.mxu0 %v4212_v46  ;;  %v4960_v55 = vrot.slane %v18284_v26, 1 }
 0x52b   :  { %v14026_v10 = vpop.permute.xlu2 %4869  ;;  %v14035_v31 = vpop.f32.mrf.mxu3 }
 0x52c   :  { %v4955_v27 = vmul.f32 %v14026_v10, %v18275_v63  ;;  %18277 = vst [vmem:[#allocation359_spill] sm:$0xff] %v14035_v31  ;;  %v18282_v31 = vld [vmem:[#allocation293_spill] sm:$0xff] }
 0x52d   :  { %v3532_v63 = vmul.f32 %v18282_v31, %v13638_v61  ;;  %v18288_v61 = vld [vmem:[#allocation324_spill] sm:$0xff]  ;;  %v17543_v31 = vrot.slane %v13744_v1, 7 }
 0x52e   :  { %v9525_v33 = vpack.i.bf16 %v4956_v42, %v4955_v27  ;;  %v3533_v42 = vmul.f32 %v18281_v62, %v18280_v2  ;;  %v18287_v2 = vld [vmem:[#allocation325_spill] sm:$0xff] }
 0x52f   :  { %v18291_v13 = vrot.slane %v18287_v2, 1 }
 0x530   :  { %9526 = vrot.lane.b32.xlu2 %v9525_v33, %s9946_s18 }
 0x531   :  { %v14097_v62 = vsel %vm1698_vm2, %v18291_v13, %v4960_v55 }
 0x532   :  { %18292 = vst [vmem:[#allocation363_spill] sm:$0xff] %v14097_v62 }
 0x533   :  { %v14037_v50 = vpop.permute.xlu2 %3731 }
 0x534   :  { %18278 = vst [vmem:[#allocation360_spill] sm:$0xff] %v14037_v50  ;;  %v3757_v46 = vmul.f32 %v14037_v50, %v13069_v24  ;;  %v4961_v50 = vrot.slane %v18288_v61, 1 }
 0x536   :  { %v9530_v27 = vpack.i.bf16 %v3757_v46, %v3756_v39  ;;  %v9535_v39 = vpack.i.bf16 %v3533_v42, %v3532_v63  ;;  %v14089_v24 = vsel %vm1698_vm2, %v4960_v55, %v4961_v50  ;;  %v18295_v55 = vrot.slane %v13668_v47, 7 }
 0x537   :  { %18289 = vst [vmem:[#allocation262_spill] sm:$0xff] %v14089_v24 }
 0x538   :  { %3844 = vperm.xlu2 %9347, %v8571_v52   ;;  %9531 = vrot.lane.b32.xlu0 %v9530_v27, %s9946_s18  ;;  %v9269_v52 = vld [vmem:[%s17213_s9 + $0x118] sm:$0xff] }
 0x539   :  { %v9257_v27 = vld [vmem:[%s17213_s9 + $0xb8] sm:$0xff]  ;;  %5959 = vmatpush.bf16.msrb.mxu2 %v9269_v52 }
 0x53a   :  { %5857 = vmatpush.bf16.msra.mxu0 %v9257_v27  ;;  %v9265_v52 = vld [vmem:[%s17213_s9 + $0xf8] sm:$0xff] }
 0x53b   :  { %v4663_v33 = vpop.f32.mrf.mxu3  ;;  %5906 = vmatpush.bf16.msra.mxu1 %v9265_v52 }
 0x53c   :  { %v14057_v4 = vadd.f32 %v4663_v33, %v13807_v41  ;;  %v18285_v33 = vld [vmem:[#allocation77_spill] sm:$0xff] }
 0x53d   :  { %v3639_v63 = vmul.f32 %v18285_v33, %v12901_v11  ;;  %v9248_v11 = vld [vmem:[%s17213_s9 + $0x70] sm:$0xff] }
 0x53e   :  { %v4751_v9 = vpop.f32.mrf.mxu1  ;;  %5809 = vmatpush.bf16.msra.mxu3 %v9248_v11 }
 0x53f   :  { %v14059_v46 = vadd.f32 %v4751_v9, %v4703_v44  ;;  %v18286_v44 = vld [vmem:[#allocation311_spill] sm:$0xff] }
 0x540   :  { %9536 = vrot.lane.b32.xlu0 %v9535_v39, %s9946_s18  ;;  %v3640_v9 = vmul.f32 %v18286_v44, %v13019_v36  ;;  %v8572_v39 = vld [vmem:[%s17205_s1 + $0x470] sm:$0xff]  ;;  %v4902_v36 = vrot.slane %v13814_v56, 7  ;;  %v14091_v44 = vpop.f32.mrf.mxu0 }
 0x541   :  { %18283 = vst [vmem:[#allocation362_spill] sm:$0xff] %v14059_v46 }
 0x542   :  { %v9502_v41 = vpop.permute.xlu2 %9501  ;;  %18290 = vst [vmem:[#allocation324_spill] sm:$0xff] %v14091_v44  ;;  %v14114_v13 = vsel %vm1424_vm1, %v18295_v55, %v4902_v36  ;;  %v18297_v44 = vld [vmem:[#allocation231_spill] sm:$0xff]  ;;  %v18299_v55 = vld [vmem:[#allocation210_spill] sm:$0xff] }
 0x543   :  { %v9504_v42 = vunpack.i.h.bf16 %v9502_v41  ;;  %v9503_v46 = vunpack.i.l.bf16 %v9502_v41  ;;  %v14118_v52 = vpop.f32.mrf.mxu3 }
 0x544   :  { %18296 = vst [vmem:[#allocation364_spill] sm:$0xff] %v14118_v52 }
 0x545   :  { %v4186_v27 = vsel %vm4129_vm3, %v3639_v63, %v9503_v46  ;;  %v4187_v41 = vsel %vm4129_vm3, %v3640_v9, %v9504_v42  ;;  %v18293_v46 = vld [vmem:[#allocation273_spill] sm:$0xff]  ;;  %v18294_v9 = vld [vmem:[#allocation287_spill] sm:$0xff] }
 0x546   :  { %v4217_v33 = vpack.c.bf16 %v4187_v41, %v4186_v27  ;;  %v5023_v63 = vmul.f32 %v14097_v62, %v18293_v46  ;;  %v5024_v42 = vmul.f32 %v14089_v24, %v18294_v9  ;;  %v14108_v27 = vsel %vm1424_vm1, %v4902_v36, %v17543_v31  ;;  %v18298_v31 = vld [vmem:[#allocation233_spill] sm:$0xff] }
 0x547   :  { %v4958_v9 = vmul.f32 %v13594_v19, %v18298_v31  ;;  %v4935_v36 = vmul.f32 %v14114_v13, %v18162_v30  ;;  %v4936_v3 = vmul.f32 %v14108_v27, %v18299_v55  ;;  %v9256_v30 = vld [vmem:[%s17213_s9 + $0xb0] sm:$0xff]  ;;  %v14143_v55 = vpop.permute.xlu0 %3819 }
 0x548   :  { %3849 = vperm.xlu0 %9348, %v8572_v39   ;;  %4721 = vmatmul.bf16.gmra.mxu0 %v4217_v33  ;;  %v4962_v33 = vrot.slane %v13401_v14, 1  ;;  %v4963_v39 = vrot.slane %v13553_v34, 1  ;;  %v9555_v2 = vpack.i.bf16 %v5024_v42, %v5023_v63  ;;  %18302 = vst [vmem:[#allocation367_spill] sm:$0xff] %v14143_v55 }
 0x549   :  { %5858 = vmatpush.bf16.msra.mxu0 %v9256_v30 }
 0x54a   :  { %v14120_v11 = vpop.permute.xlu2 %4873  ;;  %v14132_v52 = vsel %vm1698_vm2, %v4962_v33, %v4963_v39 }
 0x54b   :  { %v9497_v41 = vpop.permute.xlu1 %9496  ;;  %v4957_v46 = vmul.f32 %v14120_v11, %v18297_v44  ;;  %18300 = vst [vmem:[#allocation365_spill] sm:$0xff] %v14132_v52  ;;  %v14136_v44 = vsel %vm1698_vm2, %v4961_v50, %v4962_v33 }
 0x54c   :  { %v9499_v24 = vunpack.i.h.bf16 %v9497_v41  ;;  %v9498_v62 = vunpack.i.l.bf16 %v9497_v41  ;;  %18301 = vst [vmem:[#allocation366_spill] sm:$0xff] %v14136_v44 }
 0x54d   :  { %v9540_v28 = vpack.i.bf16 %v4958_v9, %v4957_v46  ;;  %v17556_v46 = vrot.slane %v14026_v10, 1  ;;  %v4969_v9 = vrot.slane %v13784_v16, 1 }
 0x54e   :  { %v5351_v31 = vsel %vm4129_vm3, %v4935_v36, %v9498_v62  ;;  %v5352_v41 = vsel %vm4129_vm3, %v4936_v3, %v9499_v24  ;;  %v9264_v24 = vld [vmem:[%s17213_s9 + $0xf0] sm:$0xff]  ;;  %v18303_v3 = vrot.slane %v13872_v43, 1 }
 0x54f   :  { %v4707_v49 = vpop.f32.mrf.mxu0  ;;  %9541 = vrot.lane.b32.xlu1 %v9540_v28, %s9946_s18  ;;  %v5427_v50 = vpack.c.bf16 %v5352_v41, %v5351_v31  ;;  %5907 = vmatpush.bf16.msra.mxu1 %v9264_v24  ;;  %v14169_v30 = vsel %vm1698_vm2, %v4969_v9, %v17556_v46  ;;  %v18312_v46 = vrot.slane %v13676_v7, 1 }
 0x550   :  { %v4708_v63 = vadd.f32 %v4707_v49, %v14022_v54  ;;  %9556 = vrot.lane.b32.xlu0 %v9555_v2, %s9946_s18  ;;  %v14157_v62 = vsel %vm1698_vm2, %v18303_v3, %v4969_v9  ;;  %v18304_v49 = vld [vmem:[#allocation277_spill] sm:$0xff]  ;;  %v18305_v2 = vld [vmem:[#allocation275_spill] sm:$0xff]  ;;  %v8573_v9 = vld [vmem:[%s17205_s1 + $0x478] sm:$0xff] }
 0x551   :  { %5787 = vmatmul.bf16.gmra.mxu2 %v5427_v50  ;;  %v5026_v54 = vmul.f32 %v14132_v52, %v18304_v49  ;;  %v5025_v42 = vmul.f32 %v14136_v44, %v18305_v2  ;;  %v18308_v3 = vld [vmem:[#allocation335_spill] sm:$0xff]  ;;  %v14180_v2 = vmul.f32 %v14157_v62, %v14143_v55 }
 0x552   :  { %v9507_v28 = vpop.permute.xlu2 %9506  ;;  %v3865_v24 = vmul.f32 %v14143_v55, %v18308_v3 }
 0x553   :  { %v4668_v31 = vpop.f32.mrf.mxu3  ;;  %v14163_v33 = vpop.permute.xlu1 %3824  ;;  %v9509_v36 = vunpack.i.h.bf16 %v9507_v28  ;;  %v9508_v41 = vunpack.i.l.bf16 %v9507_v28  ;;  %18309 = vst [vmem:[#allocation335_spill] sm:$0xff] %v14180_v2  ;;  %v4971_v2 = vrot.slane %v13832_v57, 1 }
 0x554   :  { %18306 = vst [vmem:[#allocation368_spill] sm:$0xff] %v14163_v33  ;;  %v14172_v50 = vadd.f32 %v4668_v31, %v13847_v5  ;;  %v3866_v49 = vmul.f32 %v14163_v33, %v13515_v37  ;;  %v14184_v52 = vmul.f32 %v14169_v30, %v14163_v33  ;;  %v9247_v5 = vld [vmem:[%s17213_s9 + $0x68] sm:$0xff]  ;;  %v14192_v28 = vpop.f32.mrf.mxu1  ;;  %v9570_v31 = vpack.i.bf16 %v5026_v54, %v5025_v42  ;;  %v18315_v42 = vld [vmem:[#allocation280_spill] sm:$0xff] }
 0x555   :  { %18311 = vst [vmem:[#allocation371_spill] sm:$0xff] %v14192_v28  ;;  %v4172_v37 = vsel %vm4129_vm3, %v12943_v6, %v9508_v41  ;;  %v4173_v3 = vsel %vm4129_vm3, %v12960_v38, %v9509_v36  ;;  %v14202_v33 = vsel %vm1698_vm2, %v4963_v39, %v18312_v46  ;;  %5810 = vmatpush.bf16.msra.mxu3 %v9247_v5  ;;  %v14208_v6 = vpop.permute.xlu0 %3736  ;;  %v18314_v38 = vld [vmem:[#allocation291_spill] sm:$0xff]  ;;  %v18316_v46 = vld [vmem:[#allocation310_spill] sm:$0xff]  ;;  %v18318_v41 = vld [vmem:[#allocation312_spill] sm:$0xff] }
 0x556   :  { %18307 = vst [vmem:[#allocation369_spill] sm:$0xff] %v14172_v50  ;;  %v4218_v55 = vpack.c.bf16 %v3866_v49, %v3865_v24  ;;  %v4221_v50 = vpack.c.bf16 %v4173_v3, %v4172_v37  ;;  %v5027_v54 = vmul.f32 %v14202_v33, %v18314_v38  ;;  %v5028_v39 = vmul.f32 %v13903_v23, %v18315_v42  ;;  %v9255_v5 = vld [vmem:[%s17213_s9 + $0xa8] sm:$0xff] }
 0x557   :  { %18310 = vst [vmem:[#allocation370_spill] sm:$0xff] %v14184_v52  ;;  %3854 = vperm.xlu1 %9349, %v8573_v9   ;;  %v5055_v49 = vmul.f32 %v18284_v26, %v18316_v46  ;;  %v5056_v24 = vmul.f32 %v18288_v61, %v18318_v41  ;;  %v9268_v9 = vld [vmem:[%s17213_s9 + $0x110] sm:$0xff]  ;;  %v14231_v28 = vpop.f32.mrf.mxu0  ;;  %5859 = vmatpush.bf16.msra.mxu0 %v9255_v5 }
 0x558   :  { %9571 = vrot.lane.b32.xlu0 %v9570_v31, %s9946_s18  ;;  %8722 = vmatmul.msk.bf16.gmra.mxu1 %vm4129_vm3, %v4218_v55  ;;  %18313 = vst [vmem:[#allocation372_spill] sm:$0xff] %v14208_v6  ;;  %v3758_v55 = vmul.f32 %v14208_v6, %v12841_v51  ;;  %v4904_v31 = vrot.slane %v13872_v43, 7  ;;  %v9585_v3 = vpack.i.bf16 %v5028_v39, %v5027_v54  ;;  %v18321_v54 = vld [vmem:[#allocation284_spill] sm:$0xff] }
 0x559   :  { %4677 = vmatmul.bf16.gmra.mxu3 %v4221_v50  ;;  %v9560_v44 = vpack.i.bf16 %v5056_v24, %v5055_v49  ;;  %18319 = vst [vmem:[#allocation374_spill] sm:$0xff] %v14231_v28  ;;  %5960 = vmatpush.bf16.msrb.mxu2 %v9268_v9  ;;  %v5058_v46 = vmul.f32 %v13553_v34, %v13202_v20  ;;  %v18322_v49 = vld [vmem:[#allocation294_spill] sm:$0xff]  ;;  %v18325_v9 = vld [vmem:[#allocation319_spill] sm:$0xff] }
 0x55a   :  { %v5029_v39 = vmul.f32 %v13911_v12, %v18321_v54  ;;  %v5057_v5 = vmul.f32 %v13401_v14, %v18325_v9  ;;  %v18327_v54 = vld [vmem:[#allocation220_spill] sm:$0xff] }
 0x55b   :  { %v14216_v36 = vpop.permute.xlu1 %3741 }
 0x55c   :  { %18317 = vst [vmem:[#allocation373_spill] sm:$0xff] %v14216_v36  ;;  %v3759_v50 = vmul.f32 %v14216_v36, %v12816_v29  ;;  %v17561_v29 = vrot.slane %v13784_v16, 7 }
 0x55d   :  { %v4756_v37 = vpop.f32.mrf.mxu1 }
 0x55e   :  { %v9545_v38 = vpack.i.bf16 %v3759_v50, %v3758_v55  ;;  %v14233_v42 = vadd.f32 %v4756_v37, %v4708_v63  ;;  %v5030_v63 = vmul.f32 %v13982_v32, %v18322_v49  ;;  %v14249_v24 = vsel %vm1424_vm1, %v4904_v31, %v17561_v29  ;;  %v9263_v49 = vld [vmem:[%s17213_s9 + $0xe8] sm:$0xff] }
 0x55f   :  { %9561 = vrot.lane.b32.xlu1 %v9560_v44, %s9946_s18  ;;  %v18323_v55 = vrot.slane %v13744_v1, 7  ;;  %v4938_v29 = vmul.f32 %v14249_v24, %v18327_v54  ;;  %5908 = vmatpush.bf16.msra.mxu1 %v9263_v49 }
 0x560   :  { %18320 = vst [vmem:[#allocation375_spill] sm:$0xff] %v14233_v42  ;;  %9586 = vrot.lane.b32.xlu0 %v9585_v3, %s9946_s18  ;;  %9546 = vrot.lane.b32.xlu2 %v9545_v38, %s9946_s18  ;;  %v14257_v38 = vpop.f32.mrf.mxu3  ;;  %v18326_v42 = vld [vmem:[#allocation212_spill] sm:$0xff] }
 0x561   :  { %v14255_v44 = vsel %vm1424_vm1, %v18323_v55, %v4904_v31  ;;  %18324 = vst [vmem:[#allocation376_spill] sm:$0xff] %v14257_v38  ;;  %v9246_v31 = vld [vmem:[%s17213_s9 + $0x60] sm:$0xff]  ;;  %v9600_v55 = vpack.i.bf16 %v5030_v63, %v5029_v39  ;;  %v9575_v38 = vpack.i.bf16 %v5058_v46, %v5057_v5  ;;  %v14278_v39 = vpop.permute.xlu2 %3829  ;;  %v18329_v46 = vld [vmem:[#allocation331_spill] sm:$0xff]  ;;  %v18333_v5 = vld [vmem:[#allocation288_spill] sm:$0xff] }
 0x562   :  { %v4937_v28 = vmul.f32 %v14255_v44, %v18326_v42  ;;  %5811 = vmatpush.bf16.msra.mxu3 %v9246_v31  ;;  %v4972_v42 = vrot.slane %v14120_v11, 1  ;;  %18328 = vst [vmem:[#allocation377_spill] sm:$0xff] %v14278_v39  ;;  %v3867_v31 = vmul.f32 %v14278_v39, %v13575_v18 }
 0x563   :  { %v9512_v50 = vpop.permute.xlu0 %9511 }
 0x564   :  { %v9514_v37 = vunpack.i.h.bf16 %v9512_v50  ;;  %v9513_v3 = vunpack.i.l.bf16 %v9512_v50 }
 0x566   :  { %v5353_v9 = vsel %vm4129_vm3, %v4937_v28, %v9513_v3  ;;  %v5354_v50 = vsel %vm4129_vm3, %v4938_v29, %v9514_v37  ;;  %v18330_v28 = vld [vmem:[#allocation332_spill] sm:$0xff]  ;;  %v18332_v29 = vld [vmem:[#allocation285_spill] sm:$0xff] }
 0x567   :  { %v4712_v20 = vpop.f32.mrf.mxu0  ;;  %9576 = vrot.lane.b32.xlu1 %v9575_v38, %s9946_s18  ;;  %v5432_v41 = vpack.c.bf16 %v5354_v50, %v5353_v9  ;;  %v18331_v63 = vpack.i.bf16 %v18329_v46, %v18330_v28  ;;  %v5031_v49 = vmul.f32 %v13992_v40, %v18332_v29  ;;  %v18335_v9 = vrot.slane %v14026_v10, 1  ;;  %v9254_v3 = vld [vmem:[%s17213_s9 + $0xa0] sm:$0xff] }
 0x568   :  { %v4713_v54 = vadd.f32 %v4712_v20, %v14057_v4  ;;  %9601 = vrot.lane.b32.xlu0 %v9600_v55, %s9946_s18  ;;  %v5032_v20 = vmul.f32 %v14157_v62, %v18333_v5  ;;  %v18334_v4 = vld [vmem:[#allocation316_spill] sm:$0xff]  ;;  %v14312_v46 = vsel %vm1698_vm2, %v4971_v2, %v4972_v42  ;;  %5860 = vmatpush.bf16.msra.mxu0 %v9254_v3 }
 0x569   :  { %9551 = vrot.lane.b32.xlu2 %v18331_v63, %s9946_s18  ;;  %5792 = vmatmul.bf16.gmra.mxu2 %v5432_v41  ;;  %v5059_v38 = vmul.f32 %v13676_v7, %v18334_v4  ;;  %v14294_v37 = vsel %vm1698_vm2, %v18335_v9, %v4971_v2  ;;  %v9262_v41 = vld [vmem:[%s17213_s9 + $0xe0] sm:$0xff]  ;;  %v14325_v4 = vpop.f32.mrf.mxu1  ;;  %v18343_v3 = vld [vmem:[#allocation72_spill] sm:$0xff] }
 0x56a   :  { %v14306_v55 = vmul.f32 %v14294_v37, %v14278_v39  ;;  %v18337_v63 = vld [vmem:[#allocation321_spill] sm:$0xff]  ;;  %5909 = vmatpush.bf16.msra.mxu1 %v9262_v41  ;;  %18338 = vst [vmem:[#allocation332_spill] sm:$0xff] %v14325_v4  ;;  %v9615_v2 = vpack.i.bf16 %v5032_v20, %v5031_v49  ;;  %v5061_v49 = vmul.f32 %v13814_v56, %v18213_v35  ;;  %v18370_v35 = vld [vmem:[#allocation260_spill] sm:$0xff] }
 0x56b   :  { %v14308_v50 = vpop.permute.xlu0 %3834  ;;  %v4673_v28 = vpop.f32.mrf.mxu3  ;;  %v5060_v9 = vmul.f32 %v13668_v47, %v18337_v63  ;;  %v18342_v20 = vld [vmem:[#allocation305_spill] sm:$0xff]  ;;  %v3642_v41 = vmul.f32 %v18343_v3, %v18181_v15 }
 0x56c   :  { %18336 = vst [vmem:[#allocation331_spill] sm:$0xff] %v14308_v50  ;;  %v3868_v29 = vmul.f32 %v14308_v50, %v13569_v60  ;;  %v14320_v18 = vmul.f32 %v14312_v46, %v14308_v50  ;;  %v14323_v5 = vadd.f32 %v4673_v28, %v13888_v25  ;;  %v18339_v60 = vld [vmem:[#allocation334_spill] sm:$0xff]  ;;  %v18340_v50 = vld [vmem:[#allocation333_spill] sm:$0xff]  ;;  %v5033_v25 = vmul.f32 %v14169_v30, %v18242_v21  ;;  %v9245_v28 = vld [vmem:[%s17213_s9 + $0x58] sm:$0xff] }
 0x56d   :  { %v9590_v39 = vpack.i.bf16 %v5060_v9, %v5059_v38  ;;  %v18341_v47 = vpack.i.bf16 %v18339_v60, %v18340_v50  ;;  %v3641_v38 = vmul.f32 %v18342_v20, %v18179_v59  ;;  %v4973_v50 = vrot.slane %v13594_v19, 1  ;;  %5812 = vmatpush.bf16.msra.mxu3 %v9245_v28 }
 0x56e   :  { %v4223_v52 = vpack.c.bf16 %v3868_v29, %v3867_v31  ;;  %v5034_v29 = vmul.f32 %v14294_v37, %v18243_v8 }
 0x56f   :  { %9591 = vrot.lane.b32.xlu1 %v9590_v39, %s9946_s18  ;;  %v14358_v21 = vsel %vm1698_vm2, %v4972_v42, %v4973_v50 }
 0x570   :  { %9616 = vrot.lane.b32.xlu0 %v9615_v2, %s9946_s18  ;;  %8723 = vmatmul.msk.bf16.gmra.mxu1 %vm4129_vm3, %v4223_v52  ;;  %v9630_v2 = vpack.i.bf16 %v5034_v29, %v5033_v25  ;;  %18345 = vst [vmem:[#allocation333_spill] sm:$0xff] %v14358_v21  ;;  %v18346_v25 = vld [vmem:[#allocation83_spill] sm:$0xff]  ;;  %v5036_v42 = vmul.f32 %v14358_v21, %v18254_v45 }
 0x571   :  { %9566 = vrot.lane.b32.xlu2 %v18341_v47, %s9946_s18  ;;  %v5062_v47 = vmul.f32 %v13744_v1, %v13786_v58  ;;  %v18347_v29 = vpack.i.bf16 %v13708_v22, %v18346_v25  ;;  %v9253_v22 = vld [vmem:[%s17213_s9 + $0x98] sm:$0xff]  ;;  %v18400_v21 = vld [vmem:[#allocation363_spill] sm:$0xff] }
 0x572   :  { %v9517_v39 = vpop.permute.xlu1 %9516  ;;  %5861 = vmatpush.bf16.msra.mxu0 %v9253_v22  ;;  %v4906_v22 = vrot.slane %v14026_v10, 7 }
 0x573   :  { %v9519_v52 = vunpack.i.h.bf16 %v9517_v39  ;;  %v9518_v31 = vunpack.i.l.bf16 %v9517_v39  ;;  %v9605_v60 = vpack.i.bf16 %v5062_v47, %v5061_v49  ;;  %v5063_v49 = vmul.f32 %v13872_v43, %v13856_v0  ;;  %v18348_v39 = vld [vmem:[#allocation257_spill] sm:$0xff]  ;;  %v9261_v47 = vld [vmem:[%s17213_s9 + $0xd8] sm:$0xff] }
 0x574   :  { %5910 = vmatpush.bf16.msra.mxu1 %v9261_v47  ;;  %v18361_v47 = vld [vmem:[#allocation348_spill] sm:$0xff] }
 0x575   :  { %v4761_v9 = vpop.f32.mrf.mxu1  ;;  %v4188_v59 = vsel %vm4129_vm3, %v3641_v38, %v9518_v31  ;;  %v4189_v63 = vsel %vm4129_vm3, %v3642_v41, %v9519_v52  ;;  %v5014_v41 = vmul.f32 %v14114_v13, %v18348_v39  ;;  %v18349_v52 = vld [vmem:[#allocation344_spill] sm:$0xff] }
 0x576   :  { %v14354_v4 = vadd.f32 %v4761_v9, %v4713_v54  ;;  %v4222_v15 = vpack.c.bf16 %v4189_v63, %v4188_v59  ;;  %v9267_v54 = vld [vmem:[%s17213_s9 + $0x108] sm:$0xff]  ;;  %v5035_v63 = vmul.f32 %v14312_v46, %v18255_v48  ;;  %v5064_v31 = vmul.f32 %v13784_v16, %v18349_v52  ;;  %v18351_v59 = vld [vmem:[#allocation255_spill] sm:$0xff]  ;;  %v18369_v52 = vld [vmem:[#allocation360_spill] sm:$0xff] }
 0x577   :  { %9606 = vrot.lane.b32.xlu1 %v9605_v60, %s9946_s18  ;;  %5961 = vmatpush.bf16.msrb.mxu2 %v9267_v54  ;;  %v18352_v54 = vld [vmem:[#allocation278_spill] sm:$0xff] }
 0x578   :  { %18344 = vst [vmem:[#allocation334_spill] sm:$0xff] %v14354_v4  ;;  %9631 = vrot.lane.b32.xlu0 %v9630_v2, %s9946_s18  ;;  %4726 = vmatmul.bf16.gmra.mxu0 %v4222_v15  ;;  %v18350_v2 = vld [vmem:[#allocation326_spill] sm:$0xff]  ;;  %v5013_v15 = vmul.f32 %v13962_v17, %v18351_v59  ;;  %v9645_v25 = vpack.i.bf16 %v5036_v42, %v5035_v63  ;;  %v18355_v63 = vld [vmem:[#allocation325_spill] sm:$0xff] }
 0x579   :  { %9581 = vrot.lane.b32.xlu2 %v18347_v29, %s9946_s18  ;;  %v4974_v60 = vrot.slane %v18350_v2, 1  ;;  %v9620_v29 = vpack.i.bf16 %v5064_v31, %v5063_v49  ;;  %v18353_v48 = vld [vmem:[#allocation282_spill] sm:$0xff]  ;;  %v18356_v42 = vrot.slane %v18355_v63, 1  ;;  %v5066_v31 = vmul.f32 %v13832_v57, %v18361_v47  ;;  %v18368_v47 = vld [vmem:[#allocation215_spill] sm:$0xff] }
 0x57a   :  { %v9522_v38 = vpop.permute.xlu1 %9521  ;;  %v9595_v8 = vpack.i.bf16 %v5014_v41, %v5013_v15  ;;  %v18393_v59 = vld [vmem:[#allocation274_spill] sm:$0xff] }
 0x57b   :  { %v9524_v28 = vunpack.i.h.bf16 %v9522_v38  ;;  %v9523_v9 = vunpack.i.l.bf16 %v9522_v38  ;;  %v14394_v38 = vsel %vm1698_vm2, %v4973_v50, %v4974_v60  ;;  %v14403_v49 = vsel %vm1698_vm2, %v4974_v60, %v18356_v42  ;;  %v18359_v50 = vld [vmem:[#allocation293_spill] sm:$0xff] }
 0x57c   :  { %18354 = vst [vmem:[#allocation83_spill] sm:$0xff] %v14394_v38  ;;  %v5037_v41 = vmul.f32 %v14394_v38, %v18359_v50  ;;  %v18363_v60 = vld [vmem:[#allocation269_spill] sm:$0xff]  ;;  %v18364_v50 = vrot.slane %v13784_v16, 7 }
 0x57d   :  { %v4174_v4 = vsel %vm4129_vm3, %v18352_v54, %v9523_v9  ;;  %v4175_v45 = vsel %vm4129_vm3, %v18353_v48, %v9524_v28  ;;  %18357 = vst [vmem:[#allocation278_spill] sm:$0xff] %v14403_v49  ;;  %v9244_v48 = vld [vmem:[%s17213_s9 + $0x50] sm:$0xff]  ;;  %v5015_v15 = vmul.f32 %v14108_v27, %v18363_v60 }
 0x57e   :  { %v4226_v0 = vpack.c.bf16 %v4175_v45, %v4174_v4  ;;  %v18358_v45 = vld [vmem:[#allocation349_spill] sm:$0xff]  ;;  %5813 = vmatpush.bf16.msra.mxu3 %v9244_v48  ;;  %v18362_v28 = vld [vmem:[#allocation295_spill] sm:$0xff] }
 0x57f   :  { %9621 = vrot.lane.b32.xlu1 %v9620_v29, %s9946_s18  ;;  %v5065_v4 = vmul.f32 %v14026_v10, %v18358_v45  ;;  %v5038_v9 = vmul.f32 %v14403_v49, %v18362_v28  ;;  %v14426_v45 = vsel %vm1424_vm1, %v18364_v50, %v4906_v22  ;;  %v18365_v28 = vld [vmem:[#allocation272_spill] sm:$0xff] }
 0x580   :  { %9646 = vrot.lane.b32.xlu0 %v9645_v25, %s9946_s18  ;;  %4682 = vmatmul.bf16.gmra.mxu3 %v4226_v0  ;;  %v4907_v25 = vrot.slane %v13832_v57, 7 }
 0x581   :  { %9596 = vrot.lane.b32.xlu2 %v9595_v8, %s9946_s18  ;;  %v18360_v8 = vld [vmem:[#allocation258_spill] sm:$0xff]  ;;  %v9660_v29 = vpack.i.bf16 %v5038_v9, %v5037_v41  ;;  %v9635_v54 = vpack.i.bf16 %v5066_v31, %v5065_v4  ;;  %v5067_v4 = vmul.f32 %v14120_v11, %v18365_v28  ;;  %v5017_v28 = vmul.f32 %v14249_v24, %v18370_v35 }
 0x582   :  { %v5016_v0 = vmul.f32 %v14255_v44, %v18360_v8  ;;  %v14432_v48 = vsel %vm1424_vm1, %v4906_v22, %v4907_v25  ;;  %v5068_v22 = vmul.f32 %v13594_v19, %v18369_v52 }
 0x584   :  { %v9610_v42 = vpack.i.bf16 %v5016_v0, %v5015_v15  ;;  %v18366_v0 = vld [vmem:[#allocation276_spill] sm:$0xff]  ;;  %v18367_v15 = vld [vmem:[#allocation213_spill] sm:$0xff]  ;;  %v9650_v60 = vpack.i.bf16 %v5068_v22, %v5067_v4  ;;  %v9243_v22 = vld [vmem:[%s17213_s9 + $0x48] sm:$0xff] }
 0x585   :  { %v5018_v31 = vmul.f32 %v14426_v45, %v18366_v0  ;;  %v18373_v4 = vld [vmem:[#allocation76_spill] sm:$0xff]  ;;  %5814 = vmatpush.bf16.msra.mxu3 %v9243_v22 }
 0x587   :  { %9636 = vrot.lane.b32.xlu1 %v9635_v54, %s9946_s18  ;;  %v4940_v54 = vmul.f32 %v14432_v48, %v18368_v47  ;;  %v9625_v8 = vpack.i.bf16 %v5018_v31, %v5017_v28  ;;  %v14453_v47 = vpop.permute.xlu1 %3839  ;;  %v18374_v31 = vld [vmem:[#allocation336_spill] sm:$0xff] }
 0x588   :  { %9661 = vrot.lane.b32.xlu0 %v9660_v29, %s9946_s18  ;;  %v4939_v29 = vmul.f32 %v14426_v45, %v18367_v15  ;;  %v9252_v15 = vld [vmem:[%s17213_s9 + $0x90] sm:$0xff]  ;;  %18371 = vst [vmem:[#allocation282_spill] sm:$0xff] %v14453_v47 }
 0x589   :  { %9611 = vrot.lane.b32.xlu2 %v9610_v42, %s9946_s18  ;;  %v4908_v42 = vrot.slane %v14120_v11, 7  ;;  %5862 = vmatpush.bf16.msra.mxu0 %v9252_v15 }
 0x58a   :  { %v9527_v41 = vpop.permute.xlu2 %9526 }
 0x58b   :  { %v9529_v9 = vunpack.i.h.bf16 %v9527_v41  ;;  %v9528_v50 = vunpack.i.l.bf16 %v9527_v41  ;;  %v14458_v52 = vsel %vm1424_vm1, %v4907_v25, %v4908_v42  ;;  %v5069_v25 = vmul.f32 %v18350_v2, %v14208_v6  ;;  %v18396_v2 = vld [vmem:[#allocation223_spill] sm:$0xff] }
 0x58d   :  { %v5355_v58 = vsel %vm4129_vm3, %v4939_v29, %v9528_v50  ;;  %v5356_v0 = vsel %vm4129_vm3, %v4940_v54, %v9529_v9  ;;  %v9260_v54 = vld [vmem:[%s17213_s9 + $0xd0] sm:$0xff] }
 0x58e   :  { %v5437_v41 = vpack.c.bf16 %v5356_v0, %v5355_v58  ;;  %v5070_v58 = vmul.f32 %v18355_v63, %v14216_v36  ;;  %v3869_v0 = vmul.f32 %v14453_v47, %v18373_v4  ;;  %5911 = vmatpush.bf16.msra.mxu1 %v9260_v54  ;;  %v14503_v54 = vpop.f32.mrf.mxu0  ;;  %v18398_v47 = vld [vmem:[#allocation241_spill] sm:$0xff] }
 0x58f   :  { %9651 = vrot.lane.b32.xlu1 %v9650_v60, %s9946_s18  ;;  %v18375_v60 = vld [vmem:[#allocation266_spill] sm:$0xff]  ;;  %18381 = vst [vmem:[#allocation76_spill] sm:$0xff] %v14503_v54 }
 0x590   :  { %5797 = vmatmul.bf16.gmra.mxu2 %v5437_v41  ;;  %v5020_v50 = vmul.f32 %v14458_v52, %v18375_v60  ;;  %v9665_v41 = vpack.i.bf16 %v5070_v58, %v5069_v25  ;;  %v9266_v58 = vld [vmem:[%s17213_s9 + $0x100] sm:$0xff]  ;;  %v9259_v25 = vld [vmem:[%s17213_s9 + $0xc8] sm:$0xff] }
 0x591   :  { %9626 = vrot.lane.b32.xlu2 %v9625_v8, %s9946_s18  ;;  %v18376_v8 = vld [vmem:[#allocation261_spill] sm:$0xff]  ;;  %5962 = vmatpush.bf16.msrb.mxu2 %v9266_v58  ;;  %v18385_v58 = vld [vmem:[#allocation298_spill] sm:$0xff] }
 0x592   :  { %v14463_v28 = vpop.permute.xlu2 %3844  ;;  %v5019_v15 = vmul.f32 %v14432_v48, %v18376_v8  ;;  %5912 = vmatpush.bf16.msra.mxu1 %v9259_v25  ;;  %v18387_v25 = vld [vmem:[#allocation283_spill] sm:$0xff] }
 0x593   :  { %18372 = vst [vmem:[#allocation325_spill] sm:$0xff] %v14463_v28  ;;  %v3870_v9 = vmul.f32 %v14463_v28, %v18374_v31 }
 0x594   :  { %v9640_v4 = vpack.i.bf16 %v5020_v50, %v5019_v15  ;;  %v9251_v50 = vld [vmem:[%s17213_s9 + $0x88] sm:$0xff] }
 0x595   :  { %v4228_v29 = vpack.c.bf16 %v3870_v9, %v3869_v0  ;;  %v18377_v0 = vrot.slane %v13594_v19, 7  ;;  %v18378_v9 = vld [vmem:[#allocation281_spill] sm:$0xff]  ;;  %5863 = vmatpush.bf16.msra.mxu0 %v9251_v50  ;;  %v18386_v50 = vld [vmem:[#allocation307_spill] sm:$0xff]  ;;  %v18397_v19 = vld [vmem:[#allocation216_spill] sm:$0xff] }
 0x597   :  { %8724 = vmatmul.msk.bf16.gmra.mxu1 %vm4129_vm3, %v4228_v29  ;;  %9666 = vrot.lane.b32.xlu1 %v9665_v41, %s9946_s18  ;;  %v14487_v31 = vsel %vm1424_vm1, %v4908_v42, %v18377_v0  ;;  %v18379_v42 = vld [vmem:[#allocation267_spill] sm:$0xff]  ;;  %v18380_v29 = vld [vmem:[#allocation338_spill] sm:$0xff]  ;;  %v14505_v41 = vpop.f32.mrf.mxu1  ;;  %v18383_v0 = vld [vmem:[#allocation369_spill] sm:$0xff] }
 0x598   :  { %v5021_v36 = vmul.f32 %v14487_v31, %v18378_v9  ;;  %v5022_v15 = vmul.f32 %v18380_v29, %v18379_v42  ;;  %18382 = vst [vmem:[#allocation336_spill] sm:$0xff] %v14505_v41  ;;  %v9242_v9 = vld [vmem:[%s17213_s9 + $0x40] sm:$0xff] }
 0x599   :  { %9641 = vrot.lane.b32.xlu2 %v9640_v4, %s9946_s18  ;;  %5815 = vmatpush.bf16.msra.mxu3 %v9242_v9 }
 0x59a   :  { %v9655_v22 = vpack.i.bf16 %v5022_v15, %v5021_v36  ;;  %v3644_v36 = vmul.f32 %v18386_v50, %v18385_v58  ;;  %v18388_v15 = vld [vmem:[#allocation314_spill] sm:$0xff] }
 0x59b   :  { %v3643_v41 = vmul.f32 %v18388_v15, %v18387_v25 }
 0x59f   :  { %v4766_v8 = vpop.f32.mrf.mxu1 }
 0x5a1   :  { %9656 = vrot.lane.b32.xlu2 %v9655_v22, %s9946_s18 }
 0x5a6   :  { %v4717_v4 = vpop.f32.mrf.mxu0 }
 0x5a7   :  { %v4718_v6 = vadd.f32 %v4717_v4, %v18383_v0  ;;  %v9250_v0 = vld [vmem:[%s17213_s9 + $0x80] sm:$0xff] }
 0x5a8   :  { %5864 = vmatpush.bf16.msra.mxu0 %v9250_v0  ;;  %v18392_v0 = vld [vmem:[#allocation309_spill] sm:$0xff] }
 0x5a9   :  { %v14512_v60 = vadd.f32 %v4766_v8, %v4718_v6  ;;  %v9258_v8 = vld [vmem:[%s17213_s9 + $0xc0] sm:$0xff] }
 0x5aa   :  { %v9532_v54 = vpop.permute.xlu0 %9531  ;;  %5913 = vmatpush.bf16.msra.mxu1 %v9258_v8 }
 0x5ab   :  { %18384 = vst [vmem:[#allocation338_spill] sm:$0xff] %v14512_v60  ;;  %v9534_v42 = vunpack.i.h.bf16 %v9532_v54  ;;  %v9533_v22 = vunpack.i.l.bf16 %v9532_v54  ;;  %v18389_v54 = vld [vmem:[#allocation92_spill] sm:$0xff] }
 0x5ad   :  { %v4190_v35 = vsel %vm4129_vm3, %v3643_v41, %v9533_v22  ;;  %v4191_v4 = vsel %vm4129_vm3, %v3644_v36, %v9534_v42 }
 0x5ae   :  { %v4227_v6 = vpack.c.bf16 %v4191_v4, %v4190_v35  ;;  %v18391_v4 = vld [vmem:[#allocation301_spill] sm:$0xff] }
 0x5af   :  { %v3645_v60 = vmul.f32 %v18392_v0, %v18391_v4  ;;  %v4941_v4 = vmul.f32 %v14458_v52, %v18396_v2 }
 0x5b0   :  { %4731 = vmatmul.bf16.gmra.mxu0 %v4227_v6  ;;  %v18394_v6 = vld [vmem:[#allocation317_spill] sm:$0xff] }
 0x5b1   :  { %v3646_v8 = vmul.f32 %v18394_v6, %v18393_v59  ;;  %v4942_v59 = vmul.f32 %v14487_v31, %v18397_v19 }
 0x5b2   :  { %v9537_v9 = vpop.permute.xlu0 %9536 }
 0x5b3   :  { %v9539_v58 = vunpack.i.h.bf16 %v9537_v9  ;;  %v9538_v25 = vunpack.i.l.bf16 %v9537_v9  ;;  %v14536_v9 = vpop.f32.mrf.mxu0 }
 0x5b4   :  { %18395 = vst [vmem:[#allocation298_spill] sm:$0xff] %v14536_v9  ;;  %v18399_v9 = vld [vmem:[#allocation234_spill] sm:$0xff] }
 0x5b5   :  { %v4176_v41 = vsel %vm4129_vm3, %v18389_v54, %v9538_v25  ;;  %v4177_v42 = vsel %vm4129_vm3, %v12841_v51, %v9539_v58 }
 0x5b6   :  { %v4231_v36 = vpack.c.bf16 %v4177_v42, %v4176_v41 }
 0x5b8   :  { %4687 = vmatmul.bf16.gmra.mxu3 %v4231_v36 }
 0x5ba   :  { %v14530_v22 = vpop.permute.xlu0 %3849  ;;  %v9547_v35 = vpop.permute.xlu2 %9546 }
 0x5bb   :  { %18390 = vst [vmem:[#allocation369_spill] sm:$0xff] %v14530_v22  ;;  %v9549_v39 = vunpack.i.h.bf16 %v9547_v35  ;;  %v9548_v53 = vunpack.i.l.bf16 %v9547_v35  ;;  %v4991_v35 = vmul.f32 %v14403_v49, %v18398_v47 }
 0x5bd   :  { %v4192_v25 = vsel %vm4129_vm3, %v3645_v60, %v9548_v53  ;;  %v4193_v54 = vsel %vm4129_vm3, %v3646_v8, %v9549_v39  ;;  %v4992_v53 = vmul.f32 %v18400_v21, %v18399_v9  ;;  %v14548_v8 = vpop.f32.mrf.mxu2 }
 0x5be   :  { %v4232_v51 = vpack.c.bf16 %v4193_v54, %v4192_v25  ;;  %18401 = vst [vmem:[#allocation283_spill] sm:$0xff] %v14548_v8  ;;  %v18403_v8 = vld [vmem:[#allocation315_spill] sm:$0xff] }
 0x5c0   :  { %4736 = vmatmul.bf16.gmra.mxu0 %v4232_v51 }
 0x5c1   :  { %v9542_v58 = vpop.permute.xlu1 %9541 }
 0x5c2   :  { %v9544_v41 = vunpack.i.h.bf16 %v9542_v58  ;;  %v9543_v42 = vunpack.i.l.bf16 %v9542_v58  ;;  %v9557_v25 = vpop.permute.xlu0 %9556 }
 0x5c3   :  { %v9552_v36 = vpop.permute.xlu2 %9551  ;;  %v9559_v49 = vunpack.i.h.bf16 %v9557_v25  ;;  %v9558_v9 = vunpack.i.l.bf16 %v9557_v25 }
 0x5c4   :  { %v9554_v60 = vunpack.i.h.bf16 %v9552_v36  ;;  %v9553_v39 = vunpack.i.l.bf16 %v9552_v36  ;;  %v5357_v54 = vsel %vm4129_vm3, %v4941_v4, %v9543_v42  ;;  %v5358_v51 = vsel %vm4129_vm3, %v4942_v59, %v9544_v41  ;;  %v18404_v4 = vld [vmem:[#allocation304_spill] sm:$0xff] }
 0x5c5   :  { %v4722_v19 = vpop.f32.mrf.mxu0  ;;  %v5442_v38 = vpack.c.bf16 %v5358_v51, %v5357_v54  ;;  %v3871_v42 = vmul.f32 %v14530_v22, %v18403_v8  ;;  %v18408_v8 = vld [vmem:[#allocation366_spill] sm:$0xff]  ;;  %v18409_v51 = vld [vmem:[#allocation236_spill] sm:$0xff] }
 0x5c6   :  { %v5360_v58 = vsel %vm4129_vm3, %v4992_v53, %v9554_v60  ;;  %v5359_v2 = vsel %vm4129_vm3, %v4991_v35, %v9553_v39  ;;  %v4723_v47 = vadd.f32 %v4722_v19, %v14323_v5  ;;  %v5376_v35 = vsel %vm4129_vm3, %v18284_v26, %v9559_v49  ;;  %v14565_v19 = vpop.f32.mrf.mxu2  ;;  %v18407_v39 = vld [vmem:[#allocation341_spill] sm:$0xff]  ;;  %v18410_v26 = vld [vmem:[#allocation262_spill] sm:$0xff] }
 0x5c7   :  { %v5408_v28 = vpack.c.bf16 %v5360_v58, %v5359_v2  ;;  %5802 = vmatmul.bf16.gmra.mxu2 %v5442_v38  ;;  %v5375_v2 = vsel %vm4129_vm3, %v18355_v63, %v9558_v9  ;;  %18405 = vst [vmem:[#allocation301_spill] sm:$0xff] %v14565_v19  ;;  %v14567_v38 = vpop.f32.mrf.mxu1  ;;  %v5072_v25 = vmul.f32 %v18408_v8, %v18407_v39  ;;  %v18411_v58 = vld [vmem:[#allocation244_spill] sm:$0xff]  ;;  %v18412_v9 = vld [vmem:[#allocation303_spill] sm:$0xff]  ;;  %v14582_v39 = vpop.f32.mrf.mxu3 }
 0x5c8   :  { %18406 = vst [vmem:[#allocation309_spill] sm:$0xff] %v14567_v38  ;;  %v4993_v49 = vmul.f32 %v18410_v26, %v18409_v51  ;;  %v4994_v63 = vmul.f32 %v18408_v8, %v18411_v58 }
 0x5c9   :  { %5816 = vmatmul.bf16.vlgmr.msra.gmra.mxu3 %v5408_v28  ;;  %v14555_v36 = vpop.permute.xlu1 %3854  ;;  %v5409_v28 = vpack.c.bf16 %v5376_v35, %v5375_v2  ;;  %v18415_v35 = vld [vmem:[#allocation329_spill] sm:$0xff]  ;;  %18417 = vst [vmem:[#allocation274_spill] sm:$0xff] %v14582_v39 }
 0x5ca   :  { %18402 = vst [vmem:[#allocation92_spill] sm:$0xff] %v14555_v36  ;;  %v3872_v41 = vmul.f32 %v14555_v36, %v18404_v4  ;;  %v9572_v22 = vpop.permute.xlu0 %9571 }
 0x5cb   :  { %v9567_v59 = vpop.permute.xlu2 %9566 }
 0x5cc   :  { %v4233_v5 = vpack.c.bf16 %v3872_v41, %v3871_v42  ;;  %v9569_v53 = vunpack.i.h.bf16 %v9567_v59  ;;  %v9568_v60 = vunpack.i.l.bf16 %v9567_v59  ;;  %v18413_v42 = vld [vmem:[#allocation330_spill] sm:$0xff]  ;;  %v18414_v41 = vld [vmem:[#allocation296_spill] sm:$0xff] }
 0x5cd   :  { %v5039_v4 = vmul.f32 %v18413_v42, %v18412_v9  ;;  %v5040_v2 = vmul.f32 %v18415_v35, %v18414_v41 }
 0x5ce   :  { %8725 = vmatmul.msk.bf16.gmra.mxu1 %vm4129_vm3, %v4233_v5  ;;  %v5361_v51 = vsel %vm4129_vm3, %v4993_v49, %v9568_v60  ;;  %v5362_v21 = vsel %vm4129_vm3, %v4994_v63, %v9569_v53  ;;  %v14588_v41 = vpop.f32.mrf.mxu2  ;;  %v18419_v49 = vld [vmem:[#allocation202_spill] sm:$0xff]  ;;  %v18420_v53 = vld [vmem:[#allocation268_spill] sm:$0xff] }
 0x5cf   :  { %v5041_v63 = vmul.f32 %v18420_v53, %v18419_v49  ;;  %v18425_v53 = vld [vmem:[#allocation350_spill] sm:$0xff] }
 0x5d0   :  { %5865 = vmatmul.bf16.vlgmr.msra.gmra.mxu0 %v5409_v28  ;;  %v18416_v28 = vld [vmem:[#allocation265_spill] sm:$0xff]  ;;  %v18434_v49 = vld [vmem:[#allocation242_spill] sm:$0xff] }
 0x5d1   :  { %v9562_v54 = vpop.permute.xlu1 %9561  ;;  %v5071_v19 = vmul.f32 %v18410_v26, %v18416_v28  ;;  %v5413_v26 = vpack.c.bf16 %v5362_v21, %v5361_v51  ;;  %v9574_v28 = vunpack.i.h.bf16 %v9572_v22  ;;  %v18424_v21 = vld [vmem:[#allocation240_spill] sm:$0xff] }
 0x5d2   :  { %v9564_v5 = vunpack.i.h.bf16 %v9562_v54  ;;  %v9563_v38 = vunpack.i.l.bf16 %v9562_v54  ;;  %v9573_v54 = vunpack.i.l.bf16 %v9572_v22  ;;  %v4998_v22 = vmul.f32 %v13911_v12, %v18424_v21 }
 0x5d3   :  { %v9582_v59 = vpop.permute.xlu2 %9581  ;;  %v5411_v9 = vpack.c.bf16 %v5072_v25, %v5071_v19 }
 0x5d4   :  { %v5392_v8 = vsel %vm4129_vm3, %v5040_v2, %v9564_v5  ;;  %v5391_v42 = vsel %vm4129_vm3, %v5039_v4, %v9563_v38  ;;  %v18421_v2 = vld [vmem:[#allocation306_spill] sm:$0xff]  ;;  %v18422_v5 = vld [vmem:[#allocation289_spill] sm:$0xff]  ;;  %v5377_v4 = vsel %vm4129_vm3, %v18288_v61, %v9573_v54 }
 0x5d5   :  { %v5410_v58 = vpack.c.bf16 %v5392_v8, %v5391_v42  ;;  %v4771_v35 = vpop.f32.mrf.mxu1  ;;  %v5042_v38 = vmul.f32 %v18422_v5, %v18421_v2  ;;  %v18423_v8 = vld [vmem:[#allocation247_spill] sm:$0xff]  ;;  %v4999_v2 = vmul.f32 %v13982_v32, %v18434_v49 }
 0x5d6   :  { %v14590_v36 = vadd.f32 %v4771_v35, %v4723_v47  ;;  %v4997_v47 = vmul.f32 %v13903_v23, %v18423_v8  ;;  %v14616_v12 = vpop.f32.mrf.mxu2  ;;  %v18435_v8 = vld [vmem:[#allocation250_spill] sm:$0xff] }
 0x5d7   :  { %8870 = vmatmul.msk.bf16.vlgmr.msrb.gmra.mxu2 %vm4129_vm3, %v5411_v9 }
 0x5d8   :  { %18418 = vst [vmem:[#allocation317_spill] sm:$0xff] %v14590_v36 }
 0x5d9   :  { %5821 = vmatmul.bf16.gmra.mxu3 %v5413_v26  ;;  %v9577_v60 = vpop.permute.xlu1 %9576  ;;  %v5378_v26 = vsel %vm4129_vm3, %v13401_v14, %v9574_v28  ;;  %v9584_v28 = vunpack.i.h.bf16 %v9582_v59 }
 0x5da   :  { %v9579_v19 = vunpack.i.h.bf16 %v9577_v60  ;;  %v9578_v51 = vunpack.i.l.bf16 %v9577_v60  ;;  %v9583_v60 = vunpack.i.l.bf16 %v9582_v59 }
 0x5db   :  { %v9597_v25 = vpop.permute.xlu2 %9596 }
 0x5dc   :  { %v9599_v9 = vunpack.i.h.bf16 %v9597_v25  ;;  %v9598_v42 = vunpack.i.l.bf16 %v9597_v25  ;;  %v4678_v35 = vpop.f32.mrf.mxu3  ;;  %v5394_v36 = vsel %vm4129_vm3, %v5042_v38, %v9579_v19  ;;  %v5393_v61 = vsel %vm4129_vm3, %v5041_v63, %v9578_v51  ;;  %v18426_v38 = vld [vmem:[#allocation237_spill] sm:$0xff]  ;;  %v18428_v51 = vld [vmem:[#allocation239_spill] sm:$0xff] }
 0x5dd   :  { %v14606_v5 = vadd.f32 %v4678_v35, %v18425_v53  ;;  %v5414_v25 = vpack.c.bf16 %v5378_v26, %v5377_v4  ;;  %v5415_v39 = vpack.c.bf16 %v5394_v36, %v5393_v61  ;;  %v18427_v19 = vld [vmem:[#allocation365_spill] sm:$0xff]  ;;  %v18431_v4 = vld [vmem:[#allocation206_spill] sm:$0xff]  ;;  %v18433_v53 = vld [vmem:[#allocation299_spill] sm:$0xff] }
 0x5de   :  { %v14611_v54 = vsel %vm4129_vm3, %v4997_v47, %v9598_v42  ;;  %v14614_v23 = vsel %vm4129_vm3, %v4998_v22, %v9599_v9  ;;  %5914 = vmatmul.bf16.vlgmr.msra.gmra.mxu1 %v5410_v58  ;;  %v4995_v63 = vmul.f32 %v18427_v19, %v18426_v38  ;;  %v4996_v47 = vmul.f32 %v14202_v33, %v18428_v51  ;;  %v18429_v42 = vld [vmem:[#allocation271_spill] sm:$0xff]  ;;  %v18432_v36 = vld [vmem:[#allocation286_spill] sm:$0xff] }
 0x5df   :  { %v5073_v22 = vmul.f32 %v18427_v19, %v18429_v42  ;;  %v18430_v9 = vld [vmem:[#allocation343_spill] sm:$0xff]  ;;  %v5043_v26 = vmul.f32 %v18432_v36, %v18431_v4  ;;  %v5044_v59 = vmul.f32 %v13962_v17, %v18433_v53  ;;  %v5000_v19 = vmul.f32 %v13992_v40, %v18435_v8 }
 0x5e0   :  { %5870 = vmatmul.bf16.gmra.mxu0 %v5414_v25  ;;  %v5074_v35 = vmul.f32 %v14202_v33, %v18430_v9  ;;  %v5363_v14 = vsel %vm4129_vm3, %v4995_v63, %v9583_v60  ;;  %v5364_v51 = vsel %vm4129_vm3, %v4996_v47, %v9584_v28  ;;  %v9587_v9 = vpop.permute.xlu0 %9586 }
 0x5e1   :  { %v9592_v58 = vpop.permute.xlu1 %9591  ;;  %v5418_v40 = vpack.c.bf16 %v5364_v51, %v5363_v14  ;;  %v9589_v47 = vunpack.i.h.bf16 %v9587_v9  ;;  %v18438_v51 = vld [vmem:[#allocation245_spill] sm:$0xff] }
 0x5e2   :  { %v9594_v61 = vunpack.i.h.bf16 %v9592_v58  ;;  %v9593_v21 = vunpack.i.l.bf16 %v9592_v58  ;;  %v5416_v17 = vpack.c.bf16 %v5074_v35, %v5073_v22  ;;  %v9588_v58 = vunpack.i.l.bf16 %v9587_v9  ;;  %v14655_v22 = vpop.f32.mrf.mxu2 }
 0x5e3   :  { %v9612_v25 = vpop.permute.xlu2 %9611 }
 0x5e4   :  { %v9614_v38 = vunpack.i.h.bf16 %v9612_v25  ;;  %v9613_v33 = vunpack.i.l.bf16 %v9612_v25  ;;  %v14639_v36 = vsel %vm4129_vm3, %v5044_v59, %v9594_v61  ;;  %v14642_v4 = vsel %vm4129_vm3, %v5043_v26, %v9593_v21 }
 0x5e5   :  { %v5002_v26 = vmul.f32 %v14169_v30, %v18438_v51  ;;  %v14675_v30 = vpop.f32.mrf.mxu0 }
 0x5e6   :  { %v14645_v60 = vsel %vm4129_vm3, %v4999_v2, %v9613_v33  ;;  %v14648_v32 = vsel %vm4129_vm3, %v5000_v19, %v9614_v38  ;;  %v18436_v2 = vld [vmem:[#allocation308_spill] sm:$0xff]  ;;  %v18437_v38 = vld [vmem:[#allocation302_spill] sm:$0xff]  ;;  %v18439_v19 = vld [vmem:[#allocation243_spill] sm:$0xff]  ;;  %18440 = vst [vmem:[#allocation315_spill] sm:$0xff] %v14675_v30 }
 0x5e7   :  { %8871 = vmatmul.msk.bf16.gmra.mxu2 %vm4129_vm3, %v5416_v17  ;;  %v5045_v35 = vmul.f32 %v14114_v13, %v18436_v2  ;;  %v5046_v14 = vmul.f32 %v14108_v27, %v18437_v38  ;;  %v5001_v9 = vmul.f32 %v14157_v62, %v18439_v19  ;;  %v5380_v13 = vsel %vm4129_vm3, %v13676_v7, %v9589_v47  ;;  %v14687_v47 = vpop.f32.mrf.mxu1  ;;  %v18542_v38 = vld [vmem:[#allocation249_spill] sm:$0xff] }
 0x5e8   :  { %18441 = vst [vmem:[#allocation304_spill] sm:$0xff] %v14687_v47  ;;  %v9602_v47 = vpop.permute.xlu0 %9601 }
 0x5e9   :  { %5826 = vmatmul.bf16.gmra.mxu3 %v5418_v40  ;;  %v9607_v21 = vpop.permute.xlu1 %9606  ;;  %v5379_v40 = vsel %vm4129_vm3, %v13553_v34, %v9588_v58 }
 0x5ea   :  { %v9609_v59 = vunpack.i.h.bf16 %v9607_v21  ;;  %v9608_v61 = vunpack.i.l.bf16 %v9607_v21  ;;  %v5419_v34 = vpack.c.bf16 %v5380_v13, %v5379_v40  ;;  %v14689_v58 = vpop.f32.mrf.mxu2  ;;  %v18442_v21 = vld [vmem:[#allocation77_spill] sm:$0xff]  ;;  %v18445_v40 = vld [vmem:[#allocation246_spill] sm:$0xff] }
 0x5eb   :  { %v9627_v25 = vpop.permute.xlu2 %9626  ;;  %v5004_v13 = vmul.f32 %v14312_v46, %v18445_v40 }
 0x5ec   :  { %v9629_v33 = vunpack.i.h.bf16 %v9627_v25  ;;  %v9628_v17 = vunpack.i.l.bf16 %v9627_v25  ;;  %v14670_v28 = vsel %vm4129_vm3, %v5045_v35, %v9608_v61  ;;  %v14673_v27 = vsel %vm4129_vm3, %v5046_v14, %v9609_v59 }
 0x5ee   :  { %v14680_v62 = vsel %vm4129_vm3, %v5001_v9, %v9628_v17  ;;  %v14683_v25 = vsel %vm4129_vm3, %v5002_v26, %v9629_v33  ;;  %5919 = vmatmul.bf16.gmra.mxu1 %v5415_v39  ;;  %v5047_v9 = vmul.f32 %v14255_v44, %v18442_v21  ;;  %v18443_v17 = vld [vmem:[#allocation311_spill] sm:$0xff]  ;;  %v18444_v39 = vld [vmem:[#allocation253_spill] sm:$0xff] }
 0x5ef   :  { %v5048_v26 = vmul.f32 %v14249_v24, %v18443_v17  ;;  %v5003_v33 = vmul.f32 %v14294_v37, %v18444_v39  ;;  %v4776_v21 = vpop.f32.mrf.mxu1 }
 0x5f0   :  { %5875 = vmatmul.bf16.gmra.mxu0 %v5419_v34 }
 0x5f1   :  { %v9622_v35 = vpop.permute.xlu1 %9621 }
 0x5f2   :  { %v9624_v14 = vunpack.i.h.bf16 %v9622_v35  ;;  %v9623_v59 = vunpack.i.l.bf16 %v9622_v35 }
 0x5f3   :  { %v9642_v61 = vpop.permute.xlu2 %9641 }
 0x5f4   :  { %v9644_v7 = vunpack.i.h.bf16 %v9642_v61  ;;  %v9643_v63 = vunpack.i.l.bf16 %v9642_v61  ;;  %v14700_v34 = vsel %vm4129_vm3, %v5047_v9, %v9623_v59  ;;  %v14703_v35 = vsel %vm4129_vm3, %v5048_v26, %v9624_v14  ;;  %v18446_v14 = vld [vmem:[#allocation323_spill] sm:$0xff]  ;;  %v18447_v26 = vld [vmem:[#allocation320_spill] sm:$0xff]  ;;  %v18452_v61 = vld [vmem:[#allocation270_spill] sm:$0xff] }
 0x5f5   :  { %v4727_v30 = vpop.f32.mrf.mxu0  ;;  %v9604_v59 = vunpack.i.h.bf16 %v9602_v47  ;;  %v9603_v9 = vunpack.i.l.bf16 %v9602_v47  ;;  %v18448_v17 = vpack.c.bf16 %v18446_v14, %v18447_v26  ;;  %v14729_v47 = vpop.f32.mrf.mxu3 }
 0x5f6   :  { %v14708_v24 = vsel %vm4129_vm3, %v5003_v33, %v9643_v63  ;;  %v14711_v37 = vsel %vm4129_vm3, %v5004_v13, %v9644_v7  ;;  %v4728_v46 = vadd.f32 %v4727_v30, %v14606_v5  ;;  %v18450_v63 = vpack.c.bf16 %v14614_v23, %v14611_v54  ;;  %v14725_v33 = vpop.f32.mrf.mxu2  ;;  %18451 = vst [vmem:[#allocation262_spill] sm:$0xff] %v14729_v47 }
 0x5f7   :  { %8872 = vmatmul.msk.bf16.gmra.mxu2 %vm4129_vm3, %v18448_v17  ;;  %v5050_v30 = vmul.f32 %v14432_v48, %v18343_v3  ;;  %v5381_v14 = vsel %vm4129_vm3, %v18452_v61, %v9603_v9  ;;  %v5049_v54 = vmul.f32 %v14426_v45, %v18342_v20  ;;  %v5052_v45 = vmul.f32 %v14487_v31, %v18386_v50 }
 0x5f8   :  { %v14720_v44 = vadd.f32 %v4776_v21, %v4728_v46  ;;  %v5382_v21 = vsel %vm4129_vm3, %v13814_v56, %v9604_v59  ;;  %v18453_v46 = vpack.c.bf16 %v14639_v36, %v14642_v4  ;;  %v5051_v56 = vmul.f32 %v14458_v52, %v18388_v15  ;;  %v18456_v52 = vld [vmem:[#allocation327_spill] sm:$0xff] }
 0x5f9   :  { %5831 = vmatmul.bf16.gmra.mxu3 %v18450_v63  ;;  %v9637_v7 = vpop.permute.xlu1 %9636  ;;  %v5424_v48 = vpack.c.bf16 %v5382_v21, %v5381_v14  ;;  %v18458_v31 = vpack.c.bf16 %v14648_v32, %v14645_v60 }
 0x5fa   :  { %18449 = vst [vmem:[#allocation366_spill] sm:$0xff] %v14720_v44  ;;  %v9639_v5 = vunpack.i.h.bf16 %v9637_v7  ;;  %v9638_v13 = vunpack.i.l.bf16 %v9637_v7 }
 0x5fc   :  { %v5402_v23 = vsel %vm4129_vm3, %v5050_v30, %v9639_v5  ;;  %v5401_v17 = vsel %vm4129_vm3, %v5049_v54, %v9638_v13  ;;  %v9617_v5 = vpop.permute.xlu0 %9616  ;;  %v18454_v30 = vld [vmem:[#allocation353_spill] sm:$0xff] }
 0x5fd   :  { %v5435_v26 = vpack.c.bf16 %v5402_v23, %v5401_v17  ;;  %v9619_v21 = vunpack.i.h.bf16 %v9617_v5  ;;  %v9618_v54 = vunpack.i.l.bf16 %v9617_v5  ;;  %v18455_v23 = vld [vmem:[#allocation81_spill] sm:$0xff] }
 0x5fe   :  { %5924 = vmatmul.bf16.gmra.mxu1 %v18453_v46  ;;  %v14742_v7 = vpop.f32.mrf.mxu2  ;;  %v18457_v17 = vpack.c.bf16 %v18455_v23, %v18456_v52  ;;  %v18461_v52 = vld [vmem:[#allocation370_spill] sm:$0xff] }
 0x600   :  { %5880 = vmatmul.bf16.gmra.mxu0 %v5424_v48 }
 0x601   :  { %v9652_v63 = vpop.permute.xlu1 %9651 }
 0x602   :  { %v9654_v61 = vunpack.i.h.bf16 %v9652_v63  ;;  %v9653_v9 = vunpack.i.l.bf16 %v9652_v63 }
 0x603   :  { %v4683_v59 = vpop.f32.mrf.mxu3 }
 0x604   :  { %v4684_v13 = vadd.f32 %v4683_v59, %v18454_v30  ;;  %v14750_v4 = vsel %vm4129_vm3, %v5051_v56, %v9653_v9  ;;  %v14753_v36 = vsel %vm4129_vm3, %v5052_v45, %v9654_v61  ;;  %v5053_v61 = vmul.f32 %v18380_v29, %v18392_v0  ;;  %v18459_v9 = vld [vmem:[#allocation328_spill] sm:$0xff] }
 0x605   :  { %v5440_v14 = vpack.c.bf16 %v14753_v36, %v14750_v4  ;;  %v5054_v56 = vmul.f32 %v18459_v9, %v18394_v6  ;;  %v5383_v45 = vsel %vm4129_vm3, %v13744_v1, %v9618_v54  ;;  %v5384_v59 = vsel %vm4129_vm3, %v13872_v43, %v9619_v21  ;;  %v9632_v43 = vpop.permute.xlu0 %9631 }
 0x606   :  { %v14772_v5 = vpop.f32.mrf.mxu2  ;;  %v18460_v30 = vpack.c.bf16 %v14673_v27, %v14670_v28  ;;  %v5429_v23 = vpack.c.bf16 %v5384_v59, %v5383_v45  ;;  %v9634_v21 = vunpack.i.h.bf16 %v9632_v43  ;;  %v9633_v54 = vunpack.i.l.bf16 %v9632_v43 }
 0x607   :  { %8873 = vmatmul.msk.bf16.gmra.mxu2 %vm4129_vm3, %v18457_v17  ;;  %v18462_v17 = vld [vmem:[#allocation335_spill] sm:$0xff] }
 0x608   :  { %v5385_v28 = vsel %vm4129_vm3, %v13784_v16, %v9633_v54  ;;  %v5386_v27 = vsel %vm4129_vm3, %v14026_v10, %v9634_v21  ;;  %v18468_v10 = vpack.c.bf16 %v14320_v18, %v14306_v55 }
 0x609   :  { %5836 = vmatmul.bf16.gmra.mxu3 %v18458_v31  ;;  %v9667_v46 = vpop.permute.xlu1 %9666  ;;  %v18463_v31 = vpack.c.bf16 %v18461_v52, %v18462_v17 }
 0x60a   :  { %v9669_v48 = vunpack.i.h.bf16 %v9667_v46  ;;  %v9668_v63 = vunpack.i.l.bf16 %v9667_v46  ;;  %v18464_v46 = vpack.c.bf16 %v14683_v25, %v14680_v62  ;;  %v14807_v62 = vpop.f32.mrf.mxu1 }
 0x60b   :  { %18467 = vst [vmem:[#allocation329_spill] sm:$0xff] %v14807_v62 }
 0x60c   :  { %v14775_v60 = vsel %vm4129_vm3, %v5053_v61, %v9668_v63  ;;  %v14778_v32 = vsel %vm4129_vm3, %v5054_v56, %v9669_v48  ;;  %v18465_v63 = vpack.c.bf16 %v14703_v35, %v14700_v34  ;;  %v5434_v61 = vpack.c.bf16 %v5386_v27, %v5385_v28  ;;  %v14803_v56 = vpop.f32.mrf.mxu0 }
 0x60d   :  { %v5445_v29 = vpack.c.bf16 %v14778_v32, %v14775_v60  ;;  %v9647_v9 = vpop.permute.xlu0 %9646  ;;  %18466 = vst [vmem:[#allocation330_spill] sm:$0xff] %v14803_v56  ;;  %v18469_v34 = vpack.c.bf16 %v14711_v37, %v14708_v24  ;;  %v18471_v24 = vld [vmem:[#allocation325_spill] sm:$0xff]  ;;  %v18472_v37 = vld [vmem:[#allocation83_spill] sm:$0xff] }
 0x60e   :  { %5929 = vmatmul.bf16.gmra.mxu1 %v18460_v30  ;;  %v14785_v1 = vpop.f32.mrf.mxu2  ;;  %v9649_v25 = vunpack.i.h.bf16 %v9647_v9  ;;  %v9648_v16 = vunpack.i.l.bf16 %v9647_v9  ;;  %v9657_v30 = vpop.permute.xlu2 %9656 }
 0x60f   :  { %v9659_v52 = vunpack.i.h.bf16 %v9657_v30  ;;  %v9658_v55 = vunpack.i.l.bf16 %v9657_v30 }
 0x610   :  { %5885 = vmatmul.bf16.gmra.mxu0 %v5429_v23  ;;  %v5387_v35 = vsel %vm4129_vm3, %v13832_v57, %v9648_v16  ;;  %v5388_v59 = vsel %vm4129_vm3, %v14120_v11, %v9649_v25  ;;  %v18473_v57 = vld [vmem:[#allocation248_spill] sm:$0xff] }
 0x611   :  { %v5439_v54 = vpack.c.bf16 %v5388_v59, %v5387_v35  ;;  %v18475_v11 = vld [vmem:[#allocation256_spill] sm:$0xff] }
 0x612   :  { %v5006_v27 = vmul.f32 %v18472_v37, %v18475_v11 }
 0x614   :  { %v4781_v21 = vpop.f32.mrf.mxu1  ;;  %v5374_v9 = vsel %vm4129_vm3, %v5006_v27, %v9659_v52  ;;  %v18482_v27 = vld [vmem:[#allocation92_spill] sm:$0xff] }
 0x615   :  { %v9662_v25 = vpop.permute.xlu0 %9661 }
 0x616   :  { %v14798_v48 = vpop.f32.mrf.mxu2  ;;  %v9664_v35 = vunpack.i.h.bf16 %v9662_v25  ;;  %v9663_v59 = vunpack.i.l.bf16 %v9662_v25 }
 0x617   :  { %8874 = vmatmul.msk.bf16.gmra.mxu2 %vm4129_vm3, %v18463_v31  ;;  %v5084_v31 = vmul.f32 %v18472_v37, %v18471_v24  ;;  %v18481_v37 = vld [vmem:[#allocation326_spill] sm:$0xff] }
 0x618   :  { %v5390_v52 = vsel %vm4129_vm3, %v18481_v37, %v9664_v35 }
 0x619   :  { %5841 = vmatmul.bf16.gmra.mxu3 %v18464_v46  ;;  %v18474_v46 = vld [vmem:[#allocation333_spill] sm:$0xff] }
 0x61a   :  { %v5005_v28 = vmul.f32 %v18474_v46, %v18473_v57 }
 0x61e   :  { %5934 = vmatmul.bf16.gmra.mxu1 %v18465_v63  ;;  %v14805_v45 = vpop.f32.mrf.mxu2 }
 0x620   :  { %5890 = vmatmul.bf16.gmra.mxu0 %v5434_v61  ;;  %v5373_v61 = vsel %vm4129_vm3, %v5005_v28, %v9658_v55 }
 0x626   :  { %v14822_v17 = vpop.f32.mrf.mxu2 }
 0x627   :  { %8875 = vmatmul.msk.bf16.gmra.mxu2 %vm4129_vm3, %v18468_v10 }
 0x629   :  { %5846 = vmatmul.bf16.gmra.mxu3 %v18469_v34  ;;  %v5443_v34 = vpack.c.bf16 %v5374_v9, %v5373_v61 }
 0x62d   :  { %v4732_v23 = vpop.f32.mrf.mxu0 }
 0x62e   :  { %v4733_v43 = vadd.f32 %v4732_v23, %v4684_v13  ;;  %5939 = vmatmul.bf16.gmra.mxu1 %v5435_v26  ;;  %v14830_v13 = vpop.f32.mrf.mxu3  ;;  %v18477_v26 = vld [vmem:[#allocation282_spill] sm:$0xff]  ;;  %v14839_v30 = vpop.f32.mrf.mxu2 }
 0x62f   :  { %18476 = vst [vmem:[#allocation289_spill] sm:$0xff] %v14830_v13  ;;  %v5083_v63 = vmul.f32 %v18474_v46, %v18477_v26 }
 0x630   :  { %v14820_v18 = vadd.f32 %v4781_v21, %v4733_v43  ;;  %5895 = vmatmul.bf16.gmra.mxu0 %v5439_v54  ;;  %v18479_v43 = vld [vmem:[#allocation358_spill] sm:$0xff]  ;;  %v18480_v54 = vld [vmem:[#allocation93_spill] sm:$0xff] }
 0x631   :  { %v5441_v10 = vpack.c.bf16 %v5084_v31, %v5083_v63  ;;  %v5389_v55 = vsel %vm4129_vm3, %v18480_v54, %v9663_v59  ;;  %v18483_v63 = vld [vmem:[#allocation363_spill] sm:$0xff] }
 0x632   :  { %18470 = vst [vmem:[#allocation268_spill] sm:$0xff] %v14820_v18  ;;  %v5444_v31 = vpack.c.bf16 %v5390_v52, %v5389_v55  ;;  %v5086_v61 = vmul.f32 %v18483_v63, %v18482_v27 }
 0x635   :  { %v14836_v16 = vpop.f32.mrf.mxu0 }
 0x636   :  { %18478 = vst [vmem:[#allocation350_spill] sm:$0xff] %v14836_v16  ;;  %v14851_v9 = vpop.f32.mrf.mxu2 }
 0x637   :  { %8876 = vmatmul.msk.bf16.gmra.mxu2 %vm4129_vm3, %v5441_v10  ;;  %v18485_v10 = vld [vmem:[#allocation369_spill] sm:$0xff] }
 0x639   :  { %5851 = vmatmul.bf16.gmra.mxu3 %v5443_v34  ;;  %v18486_v34 = vld [vmem:[#allocation278_spill] sm:$0xff] }
 0x63a   :  { %v5085_v59 = vmul.f32 %v18486_v34, %v18485_v10 }
 0x63b   :  { %v4688_v23 = vpop.f32.mrf.mxu3 }
 0x63c   :  { %v4689_v21 = vadd.f32 %v4688_v23, %v18479_v43  ;;  %v14857_v23 = vpop.f32.mrf.mxu1  ;;  %v5446_v35 = vpack.c.bf16 %v5086_v61, %v5085_v59 }
 0x63d   :  { %v4737_v46 = vpop.f32.mrf.mxu0  ;;  %18487 = vst [vmem:[#allocation271_spill] sm:$0xff] %v14857_v23 }
 0x63e   :  { %v4738_v28 = vadd.f32 %v4737_v46, %v4689_v21  ;;  %5944 = vmatmul.bf16.gmra.mxu1 %v5440_v14  ;;  %v18489_v21 = vld [vmem:[#allocation301_spill] sm:$0xff] }
 0x640   :  { %5900 = vmatmul.bf16.gmra.mxu0 %v5444_v31 }
 0x643   :  { %v14853_v25 = vpop.f32.mrf.mxu3 }
 0x644   :  { %18484 = vst [vmem:[#allocation365_spill] sm:$0xff] %v14853_v25 }
 0x645   :  { %v14859_v43 = vpop.f32.mrf.mxu0 }
 0x646   :  { %18488 = vst [vmem:[#allocation286_spill] sm:$0xff] %v14859_v43 }
 0x647   :  { %8877 = vmatmul.msk.bf16.gmra.mxu2 %vm4129_vm3, %v5446_v35 }
 0x64a   :  { %v14862_v4 = vpop.f32.mrf.mxu2 }
 0x64b   :  { %v4786_v14 = vpop.f32.mrf.mxu1 }
 0x64c   :  { %v5817_v36 = vpop.f32.mrf.mxu3  ;;  %v14865_v55 = vadd.f32 %v4786_v14, %v4738_v28 }
 0x64d   :  { %v5818_v54 = vadd.f32 %v5817_v36, %v18489_v21  ;;  %v5866_v37 = vpop.f32.mrf.mxu0 }
 0x64e   :  { %18490 = vst [vmem:[#allocation242_spill] sm:$0xff] %v14865_v55  ;;  %5949 = vmatmul.bf16.gmra.mxu1 %v5445_v29 }
 0x64f   :  { %v5867_v52 = vadd.f32 %v5866_v37, %v5818_v54 }
 0x652   :  { %v14870_v46 = vpop.f32.mrf.mxu2 }
 0x653   :  { %v14872_v63 = vpop.f32.mrf.mxu1 }
 0x654   :  { %v5819_v31 = vpop.f32.mrf.mxu3  ;;  %18491 = vst [vmem:[#allocation250_spill] sm:$0xff] %v14872_v63 }
 0x655   :  { %v5868_v61 = vpop.f32.mrf.mxu0  ;;  %v5820_v54 = vadd.f32 %v5819_v31, %v14588_v41 }
 0x657   :  { %v5869_v55 = vadd.f32 %v5868_v61, %v5820_v54 }
 0x65a   :  { %v5964_v34 = vpop.f32.mrf.mxu2 }
 0x65b   :  { %v5915_v35 = vpop.f32.mrf.mxu1 }
 0x65c   :  { %v5822_v59 = vpop.f32.mrf.mxu3  ;;  %v5916_v36 = vadd.f32 %v5915_v35, %v5867_v52 }
 0x65d   :  { %v5823_v43 = vadd.f32 %v5822_v59, %v14616_v12  ;;  %v5871_v28 = vpop.f32.mrf.mxu0 }
 0x65e   :  { %v14875_v14 = vadd.f32 %v5964_v34, %v5916_v36 }
 0x65f   :  { %v5872_v21 = vadd.f32 %v5871_v28, %v5823_v43  ;;  %v14882_v43 = vld [vmem:[%s17214_s10] ss:$0 sm:$0xff]  ;;  %s7938_s10 = sshll.u32 %s17219_s15, 4  ;;  %s7939_s10 = int_to_ptr.hbm [resolvable:$true] %s7938_s10 }
 0x662   :  { %v5966_v60 = vpop.f32.mrf.mxu2 }
 0x663   :  { %v5917_v29 = vpop.f32.mrf.mxu1 }
 0x664   :  { %v5824_v32 = vpop.f32.mrf.mxu3  ;;  %v5918_v18 = vadd.f32 %v5917_v29, %v5869_v55  ;;  %v14888_v55 = vld [vmem:[%s17215_s11] ss:$0 sm:$0xff]  ;;  %s9949_s11 = smov 384  }
 0x665   :  { %v5873_v37 = vpop.f32.mrf.mxu0  ;;  %v5825_v41 = vadd.f32 %v5824_v32, %v14655_v22 }
 0x666   :  { %v5967_v16 = vadd.f32 %v5966_v60, %v5918_v18 }
 0x668   :  { %v6009_v18 = vmul.f32 %v14882_v43, %v5967_v16 }
 0x66a   :  { %v5969_v63 = vpop.f32.mrf.mxu2  ;;  %v6029_v36 = vadd.f32 %v14888_v55, %v6009_v18 }
 0x66b   :  { %v5920_v23 = vpop.f32.mrf.mxu1 }
 0x66c   :  { %v5827_v25 = vpop.f32.mrf.mxu3  ;;  %v5921_v12 = vadd.f32 %v5920_v23, %v5872_v21  ;;  %v14896_v21 = vmax.f32 %v6029_v36, 0.0 }
 0x66d   :  { %v5828_v44 = vadd.f32 %v5827_v25, %v14689_v58  ;;  %v5876_v52 = vpop.f32.mrf.mxu0  ;;  %v5874_v25 = vadd.f32 %v5873_v37, %v5825_v41 }
 0x66e   :  { %v5970_v31 = vadd.f32 %v5969_v63, %v5921_v12 }
 0x66f   :  { %v5877_v34 = vadd.f32 %v5876_v52, %v5828_v44 }
 0x670   :  { %v6010_v58 = vmul.f32 %v14882_v43, %v5970_v31  ;;  %v17594_v31 = vrot.slane %v14896_v21, 1 }
 0x672   :  { %v6030_v23 = vadd.f32 %v14888_v55, %v6010_v58  ;;  %v5971_v61 = vpop.f32.mrf.mxu2 }
 0x673   :  { %v5922_v35 = vpop.f32.mrf.mxu1 }
 0x674   :  { %v5829_v59 = vpop.f32.mrf.mxu3  ;;  %v5923_v22 = vadd.f32 %v5922_v35, %v5874_v25  ;;  %v14894_v44 = vmax.f32 %v6030_v23, 0.0 }
 0x675   :  { %v5878_v63 = vpop.f32.mrf.mxu0  ;;  %v5830_v18 = vadd.f32 %v5829_v59, %v14725_v33  ;;  %v18497_v59 = vld [vmem:[#allocation341_spill] sm:$0xff] }
 0x676   :  { %18492 = vst [vmem:[#allocation245_spill] sm:$0xff] %v14894_v44  ;;  %v5972_v28 = vadd.f32 %v5971_v61, %v5923_v22  ;;  %v6126_v32 = vrot.slane %v14894_v44, 1 }
 0x678   :  { %v6011_v54 = vmul.f32 %v14882_v43, %v5972_v28  ;;  %v14911_v36 = vsel %vm1698_vm2, %v17594_v31, %v6126_v32 }
 0x67a   :  { %v6031_v16 = vadd.f32 %v14888_v55, %v6011_v54  ;;  %v5974_v60 = vpop.f32.mrf.mxu2  ;;  %v5879_v54 = vadd.f32 %v5878_v63, %v5830_v18 }
 0x67b   :  { %v5925_v37 = vpop.f32.mrf.mxu1 }
 0x67c   :  { %v5832_v29 = vpop.f32.mrf.mxu3  ;;  %v14901_v12 = vmax.f32 %v6031_v16, 0.0  ;;  %v5926_v41 = vadd.f32 %v5925_v37, %v5877_v34  ;;  %v18495_v34 = vld [vmem:[#allocation265_spill] sm:$0xff] }
 0x67d   :  { %v5833_v52 = vadd.f32 %v5832_v29, %v14742_v7  ;;  %v5881_v58 = vpop.f32.mrf.mxu0  ;;  %v14920_v33 = vmul.f32 %v14911_v36, %v18495_v34 }
 0x67e   :  { %18493 = vst [vmem:[#allocation243_spill] sm:$0xff] %v14901_v12  ;;  %v5975_v25 = vadd.f32 %v5974_v60, %v5926_v41  ;;  %v6127_v61 = vrot.slane %v14901_v12, 1  ;;  %v6063_v3 = vrot.slane %v14901_v12, 7 }
 0x67f   :  { %v5882_v23 = vadd.f32 %v5881_v58, %v5833_v52  ;;  %18496 = vst [vmem:[#allocation253_spill] sm:$0xff] %v14920_v33 }
 0x680   :  { %v6012_v22 = vmul.f32 %v14882_v43, %v5975_v25  ;;  %v14916_v7 = vsel %vm1698_vm2, %v6126_v32, %v6127_v61 }
 0x681   :  { %v14924_v28 = vmul.f32 %v14916_v7, %v18497_v59 }
 0x682   :  { %v5976_v16 = vpop.f32.mrf.mxu2  ;;  %v6032_v60 = vadd.f32 %v14888_v55, %v6012_v22 }
 0x683   :  { %18498 = vst [vmem:[#allocation246_spill] sm:$0xff] %v14924_v28  ;;  %v5927_v37 = vpop.f32.mrf.mxu1 }
 0x684   :  { %v5834_v29 = vpop.f32.mrf.mxu3  ;;  %v5928_v41 = vadd.f32 %v5927_v37, %v5879_v54  ;;  %v14929_v25 = vmax.f32 %v6032_v60, 0.0 }
 0x685   :  { %v5883_v32 = vpop.f32.mrf.mxu0  ;;  %v5835_v54 = vadd.f32 %v5834_v29, %v14772_v5  ;;  %v18502_v5 = vld [vmem:[#allocation343_spill] sm:$0xff] }
 0x686   :  { %v5977_v58 = vadd.f32 %v5976_v16, %v5928_v41  ;;  %18499 = vst [vmem:[#allocation323_spill] sm:$0xff] %v14929_v25  ;;  %v6128_v18 = vrot.slane %v14929_v25, 1 }
 0x688   :  { %v6013_v34 = vmul.f32 %v14882_v43, %v5977_v58  ;;  %v14941_v41 = vsel %vm1698_vm2, %v6127_v61, %v6128_v18 }
 0x68a   :  { %v6033_v31 = vadd.f32 %v14888_v55, %v6013_v34  ;;  %v5979_v59 = vpop.f32.mrf.mxu2  ;;  %v5884_v34 = vadd.f32 %v5883_v32, %v5835_v54 }
 0x68b   :  { %v5930_v63 = vpop.f32.mrf.mxu1 }
 0x68c   :  { %v5837_v13 = vpop.f32.mrf.mxu3  ;;  %v14934_v22 = vmax.f32 %v6033_v31, 0.0  ;;  %v5931_v56 = vadd.f32 %v5930_v63, %v5882_v23 }
 0x68d   :  { %v5838_v62 = vadd.f32 %v5837_v13, %v14785_v1  ;;  %v5886_v52 = vpop.f32.mrf.mxu0  ;;  %v14950_v13 = vmul.f32 %v14941_v41, %v18429_v42 }
 0x68e   :  { %18500 = vst [vmem:[#allocation320_spill] sm:$0xff] %v14934_v22  ;;  %v5980_v16 = vadd.f32 %v5979_v59, %v5931_v56  ;;  %v6129_v37 = vrot.slane %v14934_v22, 1 }
 0x68f   :  { %v5887_v60 = vadd.f32 %v5886_v52, %v5838_v62  ;;  %18501 = vst [vmem:[#allocation270_spill] sm:$0xff] %v14950_v13 }
 0x690   :  { %v6014_v58 = vmul.f32 %v14882_v43, %v5980_v16  ;;  %v14946_v31 = vsel %vm1698_vm2, %v6128_v18, %v6129_v37 }
 0x691   :  { %v14954_v56 = vmul.f32 %v14946_v31, %v18502_v5 }
 0x692   :  { %v5981_v1 = vpop.f32.mrf.mxu2  ;;  %v6034_v62 = vadd.f32 %v14888_v55, %v6014_v58 }
 0x693   :  { %18503 = vst [vmem:[#allocation353_spill] sm:$0xff] %v14954_v56  ;;  %v5932_v61 = vpop.f32.mrf.mxu1 }
 0x694   :  { %v5839_v23 = vpop.f32.mrf.mxu3  ;;  %v5933_v29 = vadd.f32 %v5932_v61, %v5884_v34  ;;  %v14959_v32 = vmax.f32 %v6034_v62, 0.0 }
 0x695   :  { %v5888_v59 = vpop.f32.mrf.mxu0  ;;  %v5840_v52 = vadd.f32 %v5839_v23, %v14798_v48  ;;  %v18508_v48 = vld [vmem:[#allocation88_spill] sm:$0xff] }
 0x696   :  { %v5982_v63 = vadd.f32 %v5981_v1, %v5933_v29  ;;  %18504 = vst [vmem:[#allocation81_spill] sm:$0xff] %v14959_v32  ;;  %v6130_v33 = vrot.slane %v14959_v32, 1 }
 0x697   :  { %v5889_v13 = vadd.f32 %v5888_v59, %v5840_v52 }
 0x698   :  { %v6015_v18 = vmul.f32 %v14882_v43, %v5982_v63  ;;  %v14971_v63 = vsel %vm1698_vm2, %v6129_v37, %v6130_v33 }
 0x69a   :  { %v6035_v42 = vadd.f32 %v14888_v55, %v6015_v18  ;;  %v5984_v54 = vpop.f32.mrf.mxu2 }
 0x69b   :  { %v5935_v5 = vpop.f32.mrf.mxu1 }
 0x69c   :  { %v5842_v16 = vpop.f32.mrf.mxu3  ;;  %v14964_v58 = vmax.f32 %v6035_v42, 0.0  ;;  %v5936_v61 = vadd.f32 %v5935_v5, %v5887_v60  ;;  %v18506_v60 = vld [vmem:[#allocation340_spill] sm:$0xff] }
 0x69d   :  { %v5843_v34 = vadd.f32 %v5842_v16, %v14805_v45  ;;  %v5891_v28 = vpop.f32.mrf.mxu0  ;;  %v14980_v16 = vmul.f32 %v14971_v63, %v18506_v60 }
 0x69e   :  { %18505 = vst [vmem:[#allocation327_spill] sm:$0xff] %v14964_v58  ;;  %v5985_v1 = vadd.f32 %v5984_v54, %v5936_v61  ;;  %v6131_v29 = vrot.slane %v14964_v58, 1 }
 0x69f   :  { %v5892_v62 = vadd.f32 %v5891_v28, %v5843_v34  ;;  %18507 = vst [vmem:[#allocation328_spill] sm:$0xff] %v14980_v16 }
 0x6a0   :  { %v6016_v18 = vmul.f32 %v14882_v43, %v5985_v1  ;;  %v14976_v42 = vsel %vm1698_vm2, %v6130_v33, %v6131_v29 }
 0x6a1   :  { %v14984_v28 = vmul.f32 %v14976_v42, %v18508_v48 }
 0x6a2   :  { %v5986_v45 = vpop.f32.mrf.mxu2  ;;  %v6036_v23 = vadd.f32 %v14888_v55, %v6016_v18 }
 0x6a3   :  { %18509 = vst [vmem:[#allocation370_spill] sm:$0xff] %v14984_v28  ;;  %v5937_v54 = vpop.f32.mrf.mxu1 }
 0x6a4   :  { %v5844_v37 = vpop.f32.mrf.mxu3  ;;  %v5938_v5 = vadd.f32 %v5937_v54, %v5889_v13  ;;  %v14989_v52 = vmax.f32 %v6036_v23, 0.0 }
 0x6a5   :  { %v5893_v33 = vpop.f32.mrf.mxu0  ;;  %v5845_v34 = vadd.f32 %v5844_v37, %v14822_v17  ;;  %v18515_v17 = vld [vmem:[#allocation354_spill] sm:$0xff] }
 0x6a6   :  { %v5987_v61 = vadd.f32 %v5986_v45, %v5938_v5  ;;  %18510 = vst [vmem:[#allocation335_spill] sm:$0xff] %v14989_v52  ;;  %v6132_v47 = vrot.slane %v14989_v52, 1 }
 0x6a7   :  { %v5894_v16 = vadd.f32 %v5893_v33, %v5845_v34 }
 0x6a8   :  { %v6017_v59 = vmul.f32 %v14882_v43, %v5987_v61  ;;  %v15001_v61 = vsel %vm1698_vm2, %v6131_v29, %v6132_v47 }
 0x6aa   :  { %v6037_v1 = vadd.f32 %v14888_v55, %v6017_v59  ;;  %v5989_v60 = vpop.f32.mrf.mxu2 }
 0x6ab   :  { %v5940_v48 = vpop.f32.mrf.mxu1 }
 0x6ac   :  { %v5847_v56 = vpop.f32.mrf.mxu3  ;;  %v14994_v18 = vmax.f32 %v6037_v1, 0.0  ;;  %v5941_v54 = vadd.f32 %v5940_v48, %v5892_v62 }
 0x6ad   :  { %v5848_v13 = vadd.f32 %v5847_v56, %v14839_v30  ;;  %v5896_v15 = vpop.f32.mrf.mxu0  ;;  %v18513_v56 = vld [vmem:[#allocation279_spill] sm:$0xff] }
 0x6ae   :  { %18511 = vst [vmem:[#allocation325_spill] sm:$0xff] %v14994_v18  ;;  %v5990_v45 = vadd.f32 %v5989_v60, %v5941_v54  ;;  %v6133_v5 = vrot.slane %v14994_v18, 1  ;;  %v15010_v62 = vmul.f32 %v15001_v61, %v18513_v56 }
 0x6af   :  { %v5897_v23 = vadd.f32 %v5896_v15, %v5848_v13 }
 0x6b0   :  { %v6018_v59 = vmul.f32 %v14882_v43, %v5990_v45  ;;  %v15006_v1 = vsel %vm1698_vm2, %v6132_v47, %v6133_v5  ;;  %18514 = vst [vmem:[#allocation248_spill] sm:$0xff] %v15010_v62 }
 0x6b1   :  { %18512 = vst [vmem:[#allocation83_spill] sm:$0xff] %v15006_v1  ;;  %v15014_v15 = vmul.f32 %v15006_v1, %v18515_v17 }
 0x6b2   :  { %v5991_v30 = vpop.f32.mrf.mxu2  ;;  %v6038_v37 = vadd.f32 %v14888_v55, %v6018_v59 }
 0x6b3   :  { %18516 = vst [vmem:[#allocation333_spill] sm:$0xff] %v15014_v15  ;;  %v5942_v60 = vpop.f32.mrf.mxu1 }
 0x6b4   :  { %v5849_v29 = vpop.f32.mrf.mxu3  ;;  %v5943_v48 = vadd.f32 %v5942_v60, %v5894_v16  ;;  %v15019_v34 = vmax.f32 %v6038_v37, 0.0  ;;  %v9285_v37 = vld [vmem:[%s17216_s12 + $0x78] sm:$0xff] }
 0x6b5   :  { %v5898_v47 = vpop.f32.mrf.mxu0  ;;  %7294 = vmatpush.bf16.msrb.mxu0 %v9285_v37 }
 0x6b6   :  { %v5992_v54 = vadd.f32 %v5991_v30, %v5943_v48  ;;  %18517 = vst [vmem:[#allocation256_spill] sm:$0xff] %v15019_v34  ;;  %v6134_v50 = vrot.slane %v15019_v34, 1  ;;  %v9277_v30 = vld [vmem:[%s17216_s12 + $0x38] sm:$0xff] }
 0x6b7   :  { %v9293_v48 = vld [vmem:[%s17216_s12 + $0xb8] sm:$0xff]  ;;  %7245 = vmatpush.bf16.msrb.mxu3 %v9277_v30 }
 0x6b8   :  { %v6019_v33 = vmul.f32 %v14882_v43, %v5992_v54  ;;  %7343 = vmatpush.bf16.msrb.mxu1 %v9293_v48 }
 0x6ba   :  { %v6039_v45 = vadd.f32 %v14888_v55, %v6019_v33  ;;  %v5994_v56 = vpop.f32.mrf.mxu2  ;;  %v5850_v33 = vadd.f32 %v5849_v29, %v14851_v9  ;;  %v9276_v9 = vld [vmem:[%s17216_s12 + $0x30] sm:$0xff] }
 0x6bb   :  { %v5945_v17 = vpop.f32.mrf.mxu1  ;;  %v18520_v29 = vld [vmem:[#allocation367_spill] sm:$0xff]  ;;  %7246 = vmatpush.bf16.msrb.mxu3 %v9276_v9 }
 0x6bc   :  { %v5852_v28 = vpop.f32.mrf.mxu3  ;;  %v15024_v59 = vmax.f32 %v6039_v45, 0.0  ;;  %v5946_v60 = vadd.f32 %v5945_v17, %v5897_v23  ;;  %v5899_v62 = vadd.f32 %v5898_v47, %v5850_v33 }
 0x6bd   :  { %v5853_v16 = vadd.f32 %v5852_v28, %v14862_v4  ;;  %v5901_v54 = vpop.f32.mrf.mxu0  ;;  %v15040_v28 = vsel %vm1698_vm2, %v6133_v5, %v6134_v50 }
 0x6be   :  { %18518 = vst [vmem:[#allocation282_spill] sm:$0xff] %v15024_v59  ;;  %v5995_v45 = vadd.f32 %v5994_v56, %v5946_v60  ;;  %v6135_v4 = vrot.slane %v15024_v59, 1  ;;  %v15052_v56 = vmul.f32 %v15040_v28, %v18520_v29  ;;  %v9284_v29 = vld [vmem:[%s17216_s12 + $0x70] sm:$0xff] }
 0x6bf   :  { %v5902_v13 = vadd.f32 %v5901_v54, %v5853_v16  ;;  %v18522_v16 = vld [vmem:[#allocation368_spill] sm:$0xff]  ;;  %7295 = vmatpush.bf16.msrb.mxu0 %v9284_v29 }
 0x6c0   :  { %v6020_v23 = vmul.f32 %v14882_v43, %v5995_v45  ;;  %v15045_v17 = vsel %vm1698_vm2, %v6134_v50, %v6135_v4  ;;  %18521 = vst [vmem:[#allocation93_spill] sm:$0xff] %v15052_v56 }
 0x6c1   :  { %18519 = vst [vmem:[#allocation358_spill] sm:$0xff] %v15045_v17  ;;  %v15056_v5 = vmul.f32 %v15045_v17, %v18522_v16 }
 0x6c2   :  { %v5996_v15 = vpop.f32.mrf.mxu2  ;;  %v6040_v60 = vadd.f32 %v14888_v55, %v6020_v23 }
 0x6c3   :  { %18523 = vst [vmem:[#allocation326_spill] sm:$0xff] %v15056_v5  ;;  %v5947_v30 = vpop.f32.mrf.mxu1 }
 0x6c4   :  { %v5948_v37 = vadd.f32 %v5947_v30, %v5899_v62  ;;  %v15061_v48 = vmax.f32 %v6040_v60, 0.0  ;;  %v5854_v33 = vpop.f32.mrf.mxu3  ;;  %v9292_v60 = vld [vmem:[%s17216_s12 + $0xb0] sm:$0xff] }
 0x6c5   :  { %v5903_v50 = vpop.f32.mrf.mxu0  ;;  %7344 = vmatpush.bf16.msrb.mxu1 %v9292_v60 }
 0x6c6   :  { %v5997_v47 = vadd.f32 %v5996_v15, %v5948_v37  ;;  %18524 = vst [vmem:[#allocation92_spill] sm:$0xff] %v15061_v48  ;;  %v6136_v62 = vrot.slane %v15061_v48, 1  ;;  %v6008_v15 = vmul.f32 %v14882_v43, %v14875_v14  ;;  %v5855_v37 = vadd.f32 %v5854_v33, %v14870_v46  ;;  %v9275_v46 = vld [vmem:[%s17216_s12 + $0x28] sm:$0xff]  ;;  %v18527_v33 = vld [vmem:[#allocation377_spill] sm:$0xff] }
 0x6c7   :  { %7247 = vmatpush.bf16.msrb.mxu3 %v9275_v46  ;;  %v9283_v46 = vld [vmem:[%s17216_s12 + $0x68] sm:$0xff] }
 0x6c8   :  { %v6021_v54 = vmul.f32 %v14882_v43, %v5997_v47  ;;  %v6028_v14 = vadd.f32 %v14888_v55, %v6008_v15  ;;  %v5904_v29 = vadd.f32 %v5903_v50, %v5855_v37  ;;  %7296 = vmatpush.bf16.msrb.mxu0 %v9283_v46  ;;  %v18538_v50 = vld [vmem:[#allocation234_spill] sm:$0xff] }
 0x6ca   :  { %v6041_v45 = vadd.f32 %v14888_v55, %v6021_v54  ;;  %v5999_v16 = vpop.f32.mrf.mxu2  ;;  %v15101_v37 = vmax.f32 %v6028_v14, 0.0 }
 0x6cb   :  { %v5950_v23 = vpop.f32.mrf.mxu1 }
 0x6cc   :  { %v15069_v9 = vmax.f32 %v6041_v45, 0.0  ;;  %v5951_v30 = vadd.f32 %v5950_v23, %v5902_v13  ;;  %v15080_v45 = vsel %vm1698_vm2, %v6135_v4, %v6136_v62  ;;  %18531 = vst [vmem:[#allocation162_spill] sm:$0xff] %v15101_v37  ;;  %v6060_v14 = vrot.slane %v15101_v37, 7 }
 0x6ce   :  { %18525 = vst [vmem:[#allocation363_spill] sm:$0xff] %v15069_v9  ;;  %v6000_v47 = vadd.f32 %v5999_v16, %v5951_v30  ;;  %v6137_v54 = vrot.slane %v15069_v9, 1  ;;  %v15093_v16 = vmul.f32 %v15080_v45, %v18527_v33  ;;  %v18529_v30 = vld [vmem:[#allocation331_spill] sm:$0xff]  ;;  %v6061_v33 = vrot.slane %v14896_v21, 7 }
 0x6d0   :  { %v15084_v13 = vsel %vm1698_vm2, %v6136_v62, %v6137_v54  ;;  %v6022_v23 = vmul.f32 %v14882_v43, %v6000_v47  ;;  %18528 = vst [vmem:[#allocation278_spill] sm:$0xff] %v15093_v16 }
 0x6d1   :  { %18526 = vst [vmem:[#allocation369_spill] sm:$0xff] %v15084_v13  ;;  %v15097_v4 = vmul.f32 %v15084_v13, %v18529_v30 }
 0x6d2   :  { %v6001_v15 = vpop.f32.mrf.mxu2  ;;  %v6042_v47 = vadd.f32 %v14888_v55, %v6022_v23  ;;  %v18534_v23 = vrot.slane %v14896_v21, 1 }
 0x6d3   :  { %18530 = vst [vmem:[#allocation301_spill] sm:$0xff] %v15097_v4  ;;  %v5952_v60 = vpop.f32.mrf.mxu1 }
 0x6d4   :  { %v5953_v62 = vadd.f32 %v5952_v60, %v5904_v29  ;;  %v15106_v20 = vmax.f32 %v6042_v47, 0.0  ;;  %v6124_v29 = vrot.slane %v15101_v37, 1 }
 0x6d6   :  { %v6002_v56 = vadd.f32 %v6001_v15, %v5953_v62  ;;  %18532 = vst [vmem:[#allocation265_spill] sm:$0xff] %v15106_v20  ;;  %v9291_v62 = vld [vmem:[%s17216_s12 + $0xa8] sm:$0xff]  ;;  %v6138_v46 = vrot.slane %v15106_v20, 1 }
 0x6d7   :  { %v18537_v15 = vld [vmem:[#allocation218_spill] sm:$0xff]  ;;  %7345 = vmatpush.bf16.msrb.mxu1 %v9291_v62  ;;  %v18543_v62 = vld [vmem:[#allocation251_spill] sm:$0xff] }
 0x6d8   :  { %v6023_v5 = vmul.f32 %v14882_v43, %v6002_v56  ;;  %v15120_v43 = vsel %vm1698_vm2, %v6124_v29, %v18534_v23  ;;  %v18535_v56 = vld [vmem:[#allocation226_spill] sm:$0xff] }
 0x6da   :  { %v6043_v30 = vadd.f32 %v14888_v55, %v6023_v5  ;;  %v6109_v55 = vmul.f32 %v15101_v37, %v18535_v56  ;;  %v15126_v5 = vsel %vm1424_vm1, %v6060_v14, %v6061_v33  ;;  %v6157_v56 = vmul.f32 %v15120_v43, %v18538_v50 }
 0x6db   :  { %18536 = vst [vmem:[#allocation343_spill] sm:$0xff] %v15126_v5  ;;  %v6173_v16 = vmul.f32 %v15126_v5, %v18543_v62 }
 0x6dc   :  { %v15114_v60 = vmax.f32 %v6043_v30, 0.0 }
 0x6de   :  { %18533 = vst [vmem:[#allocation341_spill] sm:$0xff] %v15114_v60  ;;  %v6108_v47 = vmul.f32 %v15114_v60, %v18537_v15  ;;  %v6139_v30 = vrot.slane %v15114_v60, 1  ;;  %v6075_v23 = vrot.slane %v15114_v60, 7  ;;  %v18541_v60 = vld [vmem:[#allocation241_spill] sm:$0xff] }
 0x6e0   :  { %v9670_v4 = vpack.i.bf16 %v6109_v55, %v6108_v47  ;;  %v15141_v37 = vsel %vm1698_vm2, %v6139_v30, %v6124_v29  ;;  %v15145_v15 = vsel %vm1424_vm1, %v6075_v23, %v6060_v14  ;;  %v18544_v55 = vrot.slane %v15106_v20, 7 }
 0x6e1   :  { %18539 = vst [vmem:[#allocation340_spill] sm:$0xff] %v15141_v37  ;;  %v6156_v2 = vmul.f32 %v15141_v37, %v18541_v60  ;;  %v6172_v50 = vmul.f32 %v15145_v15, %v18542_v38  ;;  %v6062_v14 = vrot.slane %v14894_v44, 7  ;;  %v9274_v60 = vld [vmem:[%s17216_s12 + $0x20] sm:$0xff]  ;;  %v15167_v38 = vsel %vm1698_vm2, %v6138_v46, %v6139_v30 }
 0x6e2   :  { %18540 = vst [vmem:[#allocation88_spill] sm:$0xff] %v15145_v15  ;;  %v15158_v29 = vsel %vm1424_vm1, %v18544_v55, %v6075_v23  ;;  %9671 = vrot.lane.b32.xlu2 %v9670_v4, %s9947_s24  ;;  %v15171_v47 = vsel %vm1698_vm2, %v6137_v54, %v6138_v46  ;;  %v15175_v23 = vmul.f32 %v15120_v43, %v18482_v27  ;;  %v18548_v4 = vld [vmem:[#allocation221_spill] sm:$0xff] }
 0x6e3   :  { %18545 = vst [vmem:[#allocation279_spill] sm:$0xff] %v15167_v38  ;;  %v9675_v62 = vpack.i.bf16 %v6157_v56, %v6156_v2  ;;  %v9680_v53 = vpack.i.bf16 %v6173_v16, %v6172_v50  ;;  %v6111_v55 = vmul.f32 %v14894_v44, %v18548_v4  ;;  %v15181_v5 = vsel %vm1424_vm1, %v6062_v14, %v6063_v3  ;;  %v18554_v16 = vld [vmem:[#allocation219_spill] sm:$0xff]  ;;  %v18556_v50 = vld [vmem:[#allocation252_spill] sm:$0xff] }
 0x6e4   :  { %18546 = vst [vmem:[#allocation354_spill] sm:$0xff] %v15171_v47  ;;  %7248 = vmatpush.bf16.msrb.mxu3 %v9274_v60  ;;  %v15185_v30 = vmul.f32 %v15158_v29, %v18392_v0  ;;  %v15189_v2 = vmul.f32 %v15145_v15, %v18394_v6  ;;  %v15195_v27 = vmul.f32 %v15171_v47, %v18477_v26  ;;  %v18555_v26 = vld [vmem:[#allocation244_spill] sm:$0xff]  ;;  %v6065_v4 = vrot.slane %v14934_v22, 7  ;;  %v18559_v60 = vld [vmem:[#allocation222_spill] sm:$0xff] }
 0x6e5   :  { %18547 = vst [vmem:[#allocation367_spill] sm:$0xff] %v15175_v23  ;;  %9676 = vrot.lane.b32.xlu0 %v9675_v62, %s9946_s18  ;;  %9681 = vrot.lane.b32.xlu1 %v9680_v53, %s9945_s22  ;;  %v15199_v54 = vmul.f32 %v15167_v38, %v18471_v24  ;;  %v15203_v0 = vmul.f32 %v15141_v37, %v18485_v10  ;;  %v18564_v23 = vld [vmem:[#allocation254_spill] sm:$0xff] }
 0x6e6   :  { %18549 = vst [vmem:[#allocation368_spill] sm:$0xff] %v15185_v30  ;;  %v6110_v6 = vmul.f32 %v14896_v21, %v18554_v16  ;;  %v15209_v46 = vsel %vm1424_vm1, %v6061_v33, %v6062_v14  ;;  %v6159_v56 = vmul.f32 %v14916_v7, %v18555_v26  ;;  %v6175_v24 = vmul.f32 %v15181_v5, %v18556_v50  ;;  %v18557_v33 = vld [vmem:[#allocation236_spill] sm:$0xff]  ;;  %v18558_v16 = vld [vmem:[#allocation259_spill] sm:$0xff]  ;;  %v9282_v50 = vld [vmem:[%s17216_s12 + $0x60] sm:$0xff] }
 0x6e7   :  { %18550 = vst [vmem:[#allocation377_spill] sm:$0xff] %v15189_v2  ;;  %v6158_v14 = vmul.f32 %v14911_v36, %v18557_v33  ;;  %v6174_v53 = vmul.f32 %v15209_v46, %v18558_v16  ;;  %v6064_v26 = vrot.slane %v14929_v25, 7  ;;  %7297 = vmatpush.bf16.msrb.mxu0 %v9282_v50  ;;  %v18560_v33 = vld [vmem:[#allocation229_spill] sm:$0xff]  ;;  %v18598_v15 = vld [vmem:[#allocation138_spill] sm:$0xff] }
 0x6e8   :  { %18551 = vst [vmem:[#allocation331_spill] sm:$0xff] %v15195_v27  ;;  %v9685_v62 = vpack.i.bf16 %v6111_v55, %v6110_v6  ;;  %v6113_v55 = vmul.f32 %v14929_v25, %v18559_v60  ;;  %v18563_v50 = vld [vmem:[#allocation237_spill] sm:$0xff] }
 0x6e9   :  { %18552 = vst [vmem:[#allocation226_spill] sm:$0xff] %v15199_v54  ;;  %v9690_v10 = vpack.i.bf16 %v6159_v56, %v6158_v14  ;;  %v9695_v27 = vpack.i.bf16 %v6175_v24, %v6174_v53  ;;  %v15235_v6 = vsel %vm1424_vm1, %v6064_v26, %v6065_v4  ;;  %v6112_v56 = vmul.f32 %v14901_v12, %v18560_v33  ;;  %v18561_v24 = vld [vmem:[#allocation239_spill] sm:$0xff]  ;;  %v18579_v2 = vld [vmem:[#allocation137_spill] sm:$0xff] }
 0x6ea   :  { %18553 = vst [vmem:[#allocation218_spill] sm:$0xff] %v15203_v0  ;;  %9686 = vrot.lane.b32.xlu2 %v9685_v62, %s9947_s24  ;;  %v9290_v62 = vld [vmem:[%s17216_s12 + $0xa0] sm:$0xff]  ;;  %v15246_v53 = vsel %vm1424_vm1, %v6063_v3, %v6064_v26  ;;  %v6161_v60 = vmul.f32 %v14946_v31, %v18561_v24  ;;  %v18562_v14 = vld [vmem:[#allocation263_spill] sm:$0xff]  ;;  %v6160_v0 = vmul.f32 %v14941_v41, %v18563_v50  ;;  %v6066_v3 = vrot.slane %v14959_v32, 7  ;;  %v9273_v26 = vld [vmem:[%s17216_s12 + $0x18] sm:$0xff] }
 0x6eb   :  { %v6177_v16 = vmul.f32 %v15235_v6, %v18562_v14  ;;  %7346 = vmatpush.bf16.msrb.mxu1 %v9290_v62  ;;  %v6176_v33 = vmul.f32 %v15246_v53, %v18564_v23  ;;  %v18565_v62 = vld [vmem:[#allocation232_spill] sm:$0xff]  ;;  %7249 = vmatpush.bf16.msrb.mxu3 %v9273_v26  ;;  %v6069_v26 = vrot.slane %v14994_v18, 7  ;;  %v18569_v54 = vld [vmem:[#allocation247_spill] sm:$0xff] }
 0x6ec   :  { %v9705_v24 = vpack.i.bf16 %v6161_v60, %v6160_v0  ;;  %v18566_v23 = vld [vmem:[#allocation224_spill] sm:$0xff]  ;;  %v15274_v50 = vsel %vm1424_vm1, %v6065_v4, %v6066_v3  ;;  %v6068_v4 = vrot.slane %v14989_v52, 7 }
 0x6ed   :  { %9691 = vrot.lane.b32.xlu0 %v9690_v10, %s9946_s18  ;;  %9696 = vrot.lane.b32.xlu1 %v9695_v27, %s9945_s22  ;;  %v9700_v10 = vpack.i.bf16 %v6113_v55, %v6112_v56  ;;  %v6067_v27 = vrot.slane %v14964_v58, 7  ;;  %v9710_v14 = vpack.i.bf16 %v6177_v16, %v6176_v33  ;;  %v6115_v55 = vmul.f32 %v14959_v32, %v18565_v62  ;;  %v18567_v0 = vld [vmem:[#allocation240_spill] sm:$0xff]  ;;  %v18568_v16 = vld [vmem:[#allocation257_spill] sm:$0xff] }
 0x6ee   :  { %v6163_v60 = vmul.f32 %v14976_v42, %v18567_v0 }
 0x6ef   :  { %v15266_v56 = vsel %vm1424_vm1, %v6066_v3, %v6067_v27  ;;  %v9281_v3 = vld [vmem:[%s17216_s12 + $0x58] sm:$0xff] }
 0x6f0   :  { %v6179_v33 = vmul.f32 %v15266_v56, %v18568_v16  ;;  %v18571_v16 = vld [vmem:[#allocation227_spill] sm:$0xff]  ;;  %7298 = vmatpush.bf16.msrb.mxu0 %v9281_v3 }
 0x6f2   :  { %9701 = vrot.lane.b32.xlu2 %v9700_v10, %s9947_s24  ;;  %v6114_v10 = vmul.f32 %v14934_v22, %v18566_v23 }
 0x6f4   :  { %v9715_v62 = vpack.i.bf16 %v6115_v55, %v6114_v10  ;;  %v6117_v55 = vmul.f32 %v14989_v52, %v18571_v16  ;;  %v15294_v10 = vsel %vm1424_vm1, %v6068_v4, %v6069_v26  ;;  %v18575_v16 = vld [vmem:[#allocation269_spill] sm:$0xff] }
 0x6f5   :  { %9706 = vrot.lane.b32.xlu0 %v9705_v24, %s9946_s18  ;;  %9711 = vrot.lane.b32.xlu1 %v9710_v14, %s9945_s22  ;;  %v6162_v24 = vmul.f32 %v14971_v63, %v18569_v54  ;;  %v18570_v14 = vld [vmem:[#allocation255_spill] sm:$0xff]  ;;  %18572 = vst [vmem:[#allocation234_spill] sm:$0xff] %v15294_v10  ;;  %v9289_v54 = vld [vmem:[%s17216_s12 + $0x98] sm:$0xff] }
 0x6f6   :  { %v6178_v30 = vmul.f32 %v15274_v50, %v18570_v14  ;;  %7347 = vmatpush.bf16.msrb.mxu1 %v9289_v54  ;;  %v18576_v54 = vld [vmem:[#allocation134_spill] sm:$0xff] }
 0x6f7   :  { %v9720_v23 = vpack.i.bf16 %v6163_v60, %v6162_v24  ;;  %v18574_v24 = vld [vmem:[#allocation258_spill] sm:$0xff] }
 0x6f8   :  { %v9725_v0 = vpack.i.bf16 %v6179_v33, %v6178_v30  ;;  %v15305_v30 = vsel %vm1424_vm1, %v6067_v27, %v6068_v4  ;;  %v6165_v33 = vmul.f32 %v15006_v1, %v18435_v8  ;;  %v6181_v14 = vmul.f32 %v15294_v10, %v18574_v24  ;;  %v9272_v8 = vld [vmem:[%s17216_s12 + $0x10] sm:$0xff] }
 0x6f9   :  { %v6070_v27 = vrot.slane %v15019_v34, 7  ;;  %7250 = vmatpush.bf16.msrb.mxu3 %v9272_v8 }
 0x6fa   :  { %9716 = vrot.lane.b32.xlu2 %v9715_v62, %s9947_s24  ;;  %v18573_v62 = vld [vmem:[#allocation225_spill] sm:$0xff] }
 0x6fb   :  { %v6116_v60 = vmul.f32 %v14964_v58, %v18573_v62  ;;  %v6180_v62 = vmul.f32 %v15305_v30, %v18575_v16  ;;  %v18581_v16 = vld [vmem:[#allocation228_spill] sm:$0xff] }
 0x6fd   :  { %9721 = vrot.lane.b32.xlu0 %v9720_v23, %s9946_s18  ;;  %9726 = vrot.lane.b32.xlu1 %v9725_v0, %s9945_s22  ;;  %v9730_v3 = vpack.i.bf16 %v6117_v55, %v6116_v60  ;;  %v6071_v23 = vrot.slane %v15024_v59, 7  ;;  %v6164_v0 = vmul.f32 %v15001_v61, %v18434_v49  ;;  %v9740_v24 = vpack.i.bf16 %v6181_v14, %v6180_v62  ;;  %v18577_v55 = vld [vmem:[#allocation97_spill] sm:$0xff]  ;;  %v18580_v49 = vld [vmem:[#allocation102_spill] sm:$0xff]  ;;  %v18588_v62 = vld [vmem:[#allocation260_spill] sm:$0xff] }
 0x6fe   :  { %v15324_v60 = vsel %vm1373_vm0, %v18577_v55, %v18576_v54  ;;  %v15329_v37 = vsel %vm1373_vm0, %v18580_v49, %v18579_v2  ;;  %v6167_v54 = vmul.f32 %v15045_v17, %v18438_v51  ;;  %v18585_v55 = vld [vmem:[#allocation276_spill] sm:$0xff]  ;;  %v6072_v51 = vrot.slane %v15061_v48, 7 }
 0x6ff   :  { %v9735_v4 = vpack.i.bf16 %v6165_v33, %v6164_v0  ;;  %18578 = vst [vmem:[#allocation241_spill] sm:$0xff] %v15324_v60  ;;  %v15335_v10 = vsel %vm1424_vm1, %v6070_v27, %v6071_v23  ;;  %v18583_v33 = vld [vmem:[#allocation235_spill] sm:$0xff]  ;;  %v15343_v0 = vsel %vm1424_vm1, %v6069_v26, %v6070_v27  ;;  %v1407_v2 = vrot.slane %v15324_v60, 7 }
 0x700   :  { %18582 = vst [vmem:[#allocation249_spill] sm:$0xff] %v15335_v10  ;;  %v6118_v14 = vmul.f32 %v14994_v18, %v18583_v33  ;;  %v6183_v8 = vmul.f32 %v15335_v10, %v18585_v55  ;;  %v1683_v49 = vrot.slane %v15324_v60, 1  ;;  %v6166_v27 = vmul.f32 %v15040_v28, %v18439_v19  ;;  %v18591_v19 = vld [vmem:[#allocation8_spill] sm:$0xff] }
 0x701   :  { %18584 = vst [vmem:[#allocation251_spill] sm:$0xff] %v15343_v0  ;;  %v6182_v18 = vmul.f32 %v15343_v0, %v18588_v62  ;;  %v1408_v0 = vrot.slane %v15329_v37, 7 }
 0x702   :  { %9731 = vrot.lane.b32.xlu2 %v9730_v3, %s9947_s24  ;;  %v6119_v3 = vmul.f32 %v15019_v34, %v18581_v16  ;;  %v18586_v16 = vld [vmem:[#allocation70_spill] sm:$0xff] }
 0x703   :  { %v18587_v33 = vrot.slane %v18586_v16, 7  ;;  %v9755_v10 = vpack.i.bf16 %v6183_v8, %v6182_v18  ;;  %v18592_v34 = vld [vmem:[#allocation238_spill] sm:$0xff]  ;;  %v9288_v18 = vld [vmem:[%s17216_s12 + $0x90] sm:$0xff] }
 0x704   :  { %v6121_v62 = vmul.f32 %v15061_v48, %v18592_v34  ;;  %v18595_v34 = vld [vmem:[#allocation40_spill] sm:$0xff]  ;;  %7348 = vmatpush.bf16.msrb.mxu1 %v9288_v18 }
 0x705   :  { %9736 = vrot.lane.b32.xlu0 %v9735_v4, %s9946_s18  ;;  %9741 = vrot.lane.b32.xlu1 %v9740_v24, %s9945_s22  ;;  %v9745_v4 = vpack.i.bf16 %v6119_v3, %v6118_v14  ;;  %v6073_v24 = vrot.slane %v15069_v9, 7  ;;  %v1439_v26 = vsel %vm1424_vm1, %v18587_v33, %v1407_v2  ;;  %v9280_v3 = vld [vmem:[%s17216_s12 + $0x50] sm:$0xff]  ;;  %v18589_v14 = vrot.slane %v15329_v37, 1 }
 0x706   :  { %v9750_v33 = vpack.i.bf16 %v6167_v54, %v6166_v27  ;;  %v1539_v17 = vmul.f32 %v18591_v19, %v1439_v26  ;;  %7299 = vmatpush.bf16.msrb.mxu0 %v9280_v3  ;;  %v18594_v54 = vld [vmem:[#allocation22_spill] sm:$0xff]  ;;  %v15393_v3 = vsel %vm1424_vm1, %v6071_v23, %v6072_v51  ;;  %v6168_v23 = vmul.f32 %v15080_v45, %v18444_v39 }
 0x707   :  { %v15370_v55 = vsel %vm1698_vm2, %v1683_v49, %v18589_v14  ;;  %v1652_v8 = vmul.f32 %v18594_v54, %v15324_v60  ;;  %v18596_v14 = vld [vmem:[#allocation230_spill] sm:$0xff]  ;;  %v18599_v54 = vld [vmem:[#allocation109_spill] sm:$0xff] }
 0x708   :  { %18590 = vst [vmem:[#allocation221_spill] sm:$0xff] %v15370_v55  ;;  %v1814_v27 = vmul.f32 %v18595_v34, %v15370_v55  ;;  %v6120_v19 = vmul.f32 %v15024_v59, %v18596_v14  ;;  %v15402_v60 = vsel %vm1373_vm0, %v18599_v54, %v18598_v15  ;;  %v1438_v14 = vsel %vm1424_vm1, %v1407_v2, %v1408_v0  ;;  %v18603_v59 = vld [vmem:[#allocation106_spill] sm:$0xff] }
 0x709   :  { %v1668_v1 = vadd.f32 %v1652_v8, %v1539_v17  ;;  %18600 = vst [vmem:[#allocation244_spill] sm:$0xff] %v15402_v60  ;;  %v18604_v17 = vrot.slane %v18586_v16, 1  ;;  %v18607_v8 = vld [vmem:[#allocation100_spill] sm:$0xff]  ;;  %v9271_v39 = vld [vmem:[%s17216_s12 + $0x8] sm:$0xff] }
 0x70a   :  { %9746 = vrot.lane.b32.xlu2 %v9745_v4, %s9947_s24  ;;  %v15377_v4 = vsel %vm1424_vm1, %v6072_v51, %v6073_v24  ;;  %v9760_v34 = vpack.i.bf16 %v6121_v62, %v6120_v19  ;;  %v18601_v51 = vld [vmem:[#allocation261_spill] sm:$0xff]  ;;  %v18606_v62 = vld [vmem:[#allocation135_spill] sm:$0xff]  ;;  %7251 = vmatpush.bf16.msrb.mxu3 %v9271_v39 }
 0x70b   :  { %18593 = vst [vmem:[#allocation219_spill] sm:$0xff] %v15377_v4  ;;  %v15417_v15 = vsel %vm1698_vm2, %v18604_v17, %v1683_v49  ;;  %v15422_v2 = vsel %vm1373_vm0, %v18607_v8, %v18606_v62  ;;  %v1830_v19 = vadd.f32 %v1814_v27, %v1668_v1  ;;  %v18611_v17 = vld [vmem:[#allocation6_spill] sm:$0xff]  ;;  %v18612_v8 = vld [vmem:[#allocation53_spill] sm:$0xff] }
 0x70c   :  { %18605 = vst [vmem:[#allocation252_spill] sm:$0xff] %v15417_v15  ;;  %v1540_v62 = vmul.f32 %v18611_v17, %v1438_v14  ;;  %v1943_v1 = vmul.f32 %v18612_v8, %v1438_v14  ;;  %v18613_v27 = vld [vmem:[#allocation233_spill] sm:$0xff]  ;;  %v18622_v8 = vld [vmem:[#allocation231_spill] sm:$0xff] }
 0x70d   :  { %9751 = vrot.lane.b32.xlu0 %v9750_v33, %s9946_s18  ;;  %9756 = vrot.lane.b32.xlu1 %v9755_v10, %s9945_s22  ;;  %v6169_v10 = vmul.f32 %v15084_v13, %v18445_v40  ;;  %v18597_v33 = vld [vmem:[#allocation266_spill] sm:$0xff]  ;;  %v6184_v40 = vmul.f32 %v15393_v3, %v18601_v51  ;;  %v18602_v13 = vld [vmem:[#allocation136_spill] sm:$0xff]  ;;  %18608 = vst [vmem:[#allocation236_spill] sm:$0xff] %v15422_v2  ;;  %v1685_v51 = vrot.slane %v15402_v60, 1 }
 0x70e   :  { %v6185_v48 = vmul.f32 %v15377_v4, %v18597_v33  ;;  %v2200_v18 = vsel %vm1373_vm0, %v18603_v59, %v18602_v13  ;;  %v18609_v59 = vld [vmem:[#allocation18_spill] sm:$0xff]  ;;  %v1409_v33 = vrot.slane %v15402_v60, 7  ;;  %v1959_v39 = vadd.f32 %v1943_v1, %v1830_v19  ;;  %v18629_v19 = vld [vmem:[#allocation267_spill] sm:$0xff] }
 0x70f   :  { %v15430_v13 = vmul.f32 %v18609_v59, %v18586_v16  ;;  %v9765_v49 = vpack.i.bf16 %v6169_v10, %v6168_v23  ;;  %v18614_v2 = vld [vmem:[#allocation38_spill] sm:$0xff]  ;;  %v18616_v59 = vld [vmem:[#allocation57_spill] sm:$0xff]  ;;  %v18618_v10 = vld [vmem:[#allocation24_spill] sm:$0xff]  ;;  %v6187_v1 = vmul.f32 %v15158_v29, %v18629_v19 }
 0x710   :  { %v9770_v54 = vpack.i.bf16 %v6185_v48, %v6184_v40  ;;  %v15440_v4 = vmul.f32 %v18614_v2, %v15417_v15  ;;  %v15443_v16 = vmul.f32 %v18616_v59, %v1439_v26  ;;  %v1653_v48 = vmul.f32 %v18618_v10, %v15329_v37  ;;  %v18619_v23 = vld [vmem:[#allocation148_spill] sm:$0xff]  ;;  %v18620_v40 = vld [vmem:[#allocation107_spill] sm:$0xff]  ;;  %v18625_v10 = vld [vmem:[#allocation86_spill] sm:$0xff] }
 0x711   :  { %18610 = vst [vmem:[#allocation259_spill] sm:$0xff] %v15430_v13  ;;  %v15452_v17 = vsel %vm1373_vm0, %v18620_v40, %v18619_v23  ;;  %v6122_v2 = vmul.f32 %v15069_v9, %v18622_v8  ;;  %v6171_v23 = vmul.f32 %v15167_v38, %v18475_v11  ;;  %v18630_v8 = vrot.slane %v15329_v37, 1  ;;  %v18641_v9 = vld [vmem:[#allocation11_spill] sm:$0xff] }
 0x712   :  { %9761 = vrot.lane.b32.xlu2 %v9760_v34, %s9947_s24  ;;  %v6123_v34 = vmul.f32 %v15106_v20, %v18613_v27  ;;  %18615 = vst [vmem:[#allocation222_spill] sm:$0xff] %v15440_v4  ;;  %v18623_v27 = vrot.slane %v15106_v20, 7  ;;  %v1669_v40 = vadd.f32 %v1653_v48, %v1540_v62  ;;  %v6170_v11 = vmul.f32 %v15171_v47, %v18473_v57  ;;  %v18633_v48 = vld [vmem:[#allocation20_spill] sm:$0xff]  ;;  %v18639_v57 = vld [vmem:[#allocation35_spill] sm:$0xff] }
 0x713   :  { %18617 = vst [vmem:[#allocation229_spill] sm:$0xff] %v15443_v16  ;;  %v1654_v19 = vmul.f32 %v18633_v48, %v15402_v60  ;;  %v2232_v4 = vadd.f32 %v2200_v18, %v1959_v39  ;;  %v18644_v47 = vld [vmem:[#allocation287_spill] sm:$0xff] }
 0x714   :  { %18621 = vst [vmem:[#allocation239_spill] sm:$0xff] %v15452_v17  ;;  %v15460_v59 = vsel %vm1424_vm1, %v6073_v24, %v18623_v27  ;;  %v15477_v24 = vsel %vm1698_vm2, %v18630_v8, %v1685_v51  ;;  %v1437_v27 = vsel %vm1424_vm1, %v1408_v0, %v1409_v33  ;;  %v18635_v8 = vld [vmem:[#allocation98_spill] sm:$0xff]  ;;  %v9780_v48 = vpack.i.bf16 %v6171_v23, %v6170_v11 }
 0x715   :  { %9766 = vrot.lane.b32.xlu0 %v9765_v49, %s9946_s18  ;;  %9771 = vrot.lane.b32.xlu1 %v9770_v54, %s9945_s22  ;;  %18624 = vst [vmem:[#allocation263_spill] sm:$0xff] %v15460_v59  ;;  %v15464_v49 = vmul.f32 %v18625_v10, %v15417_v15  ;;  %v18627_v54 = vld [vmem:[#allocation124_spill] sm:$0xff]  ;;  %v9775_v10 = vpack.i.bf16 %v6123_v34, %v6122_v2  ;;  %v18632_v15 = vld [vmem:[#allocation281_spill] sm:$0xff]  ;;  %v18637_v0 = vld [vmem:[#allocation146_spill] sm:$0xff] }
 0x716   :  { %v15467_v16 = vmul.f32 %v18627_v54, %v1439_v26  ;;  %18631 = vst [vmem:[#allocation232_spill] sm:$0xff] %v15477_v24  ;;  %v1410_v26 = vrot.slane %v15452_v17, 7  ;;  %v1686_v54 = vrot.slane %v15452_v17, 1  ;;  %v6186_v62 = vmul.f32 %v15460_v59, %v18632_v15  ;;  %v18638_v34 = vld [vmem:[#allocation108_spill] sm:$0xff]  ;;  %v18640_v15 = vld [vmem:[#allocation91_spill] sm:$0xff] }
 0x717   :  { %18626 = vst [vmem:[#allocation237_spill] sm:$0xff] %v15464_v49  ;;  %v15497_v2 = vsel %vm1373_vm0, %v18638_v34, %v18637_v0  ;;  %v1815_v13 = vmul.f32 %v18639_v57, %v15477_v24  ;;  %v2345_v38 = vmul.f32 %v18640_v15, %v15477_v24  ;;  %v1541_v20 = vmul.f32 %v18641_v9, %v1437_v27  ;;  %v18656_v15 = vld [vmem:[#allocation41_spill] sm:$0xff] }
 0x718   :  { %18628 = vst [vmem:[#allocation254_spill] sm:$0xff] %v15467_v16  ;;  %v18634_v16 = vld [vmem:[#allocation139_spill] sm:$0xff]  ;;  %v9785_v60 = vpack.i.bf16 %v6187_v1, %v6186_v62  ;;  %v6189_v0 = vmul.f32 %v14911_v36, %v18644_v47  ;;  %v15511_v39 = vsel %vm1424_vm1, %v1409_v33, %v1410_v26  ;;  %v1411_v23 = vrot.slane %v15497_v2, 7  ;;  %v18647_v36 = vld [vmem:[#allocation126_spill] sm:$0xff]  ;;  %v18653_v62 = vld [vmem:[#allocation296_spill] sm:$0xff] }
 0x719   :  { %v15492_v49 = vsel %vm1373_vm0, %v18635_v8, %v18634_v16  ;;  %v18642_v16 = vld [vmem:[#allocation58_spill] sm:$0xff]  ;;  %v1831_v18 = vadd.f32 %v1815_v13, %v1669_v40  ;;  %v2361_v9 = vadd.f32 %v2345_v38, %v2232_v4  ;;  %v15525_v47 = vmul.f32 %v18647_v36, %v1438_v14  ;;  %v18649_v13 = vld [vmem:[#allocation273_spill] sm:$0xff]  ;;  %v18650_v40 = vld [vmem:[#allocation147_spill] sm:$0xff] }
 0x71a   :  { %18636 = vst [vmem:[#allocation224_spill] sm:$0xff] %v15492_v49  ;;  %9776 = vrot.lane.b32.xlu2 %v9775_v10, %s9947_s24  ;;  %v1944_v8 = vmul.f32 %v18642_v16, %v1437_v27  ;;  %v18643_v49 = vld [vmem:[#allocation125_spill] sm:$0xff]  ;;  %v15515_v10 = vsel %vm1698_vm2, %v1685_v51, %v1686_v54  ;;  %v6188_v33 = vmul.f32 %v15120_v43, %v18649_v13  ;;  %v18651_v51 = vld [vmem:[#allocation118_spill] sm:$0xff]  ;;  %v1687_v11 = vrot.slane %v15497_v2, 1  ;;  %v18655_v14 = vld [vmem:[#allocation7_spill] sm:$0xff] }
 0x71b   :  { %v2474_v59 = vmul.f32 %v18643_v49, %v1437_v27  ;;  %18645 = vst [vmem:[#allocation240_spill] sm:$0xff] %v15515_v10  ;;  %v18646_v49 = vld [vmem:[#allocation89_spill] sm:$0xff]  ;;  %v15532_v27 = vsel %vm1373_vm0, %v18651_v51, %v18650_v40  ;;  %v6205_v38 = vmul.f32 %v15209_v46, %v18653_v62  ;;  %v1670_v34 = vadd.f32 %v1654_v19, %v1541_v20  ;;  %v9279_v16 = vld [vmem:[%s17216_s12 + $0x48] sm:$0xff]  ;;  %v18657_v13 = vld [vmem:[#allocation303_spill] sm:$0xff] }
 0x71c   :  { %v15522_v1 = vmul.f32 %v18646_v49, %v15370_v55  ;;  %18648 = vst [vmem:[#allocation257_spill] sm:$0xff] %v15525_v47  ;;  %v1542_v57 = vmul.f32 %v18655_v14, %v15511_v39  ;;  %v1816_v43 = vmul.f32 %v18656_v15, %v15515_v10  ;;  %v9270_v49 = vld [vmem:[%s17216_s12] sm:$0xff]  ;;  %v9287_v36 = vld [vmem:[%s17216_s12 + $0x88] sm:$0xff]  ;;  %v1960_v20 = vadd.f32 %v1944_v8, %v1831_v18  ;;  %v18658_v40 = vld [vmem:[#allocation343_spill] sm:$0xff] }
 0x71d   :  { %9781 = vrot.lane.b32.xlu0 %v9780_v48, %s9946_s18  ;;  %9786 = vrot.lane.b32.xlu1 %v9785_v60, %s9945_s22  ;;  %18652 = vst [vmem:[#allocation247_spill] sm:$0xff] %v15532_v27  ;;  %v18654_v60 = vld [vmem:[#allocation312_spill] sm:$0xff]  ;;  %v9790_v48 = vpack.i.bf16 %v6189_v0, %v6188_v33  ;;  %v1435_v19 = vsel %vm1424_vm1, %v1410_v26, %v1411_v23  ;;  %v18659_v0 = vld [vmem:[#allocation310_spill] sm:$0xff]  ;;  %v18660_v62 = vld [vmem:[#allocation145_spill] sm:$0xff] }
 0x71e   :  { %v6221_v4 = vmul.f32 %v14894_v44, %v18654_v60  ;;  %v6204_v51 = vmul.f32 %v18658_v40, %v18657_v13  ;;  %v6220_v33 = vmul.f32 %v14896_v21, %v18659_v0  ;;  %v18661_v60 = vld [vmem:[#allocation104_spill] sm:$0xff]  ;;  %v18662_v44 = vld [vmem:[#allocation25_spill] sm:$0xff]  ;;  %v15564_v47 = vadd.f32 %v2474_v59, %v2361_v9  ;;  %7300 = vmatpush.bf16.msrb.mxu0 %v9279_v16  ;;  %v18668_v26 = vld [vmem:[#allocation143_spill] sm:$0xff] }
 0x71f   :  { %v2201_v14 = vsel %vm1373_vm0, %v18661_v60, %v18660_v62  ;;  %v1655_v24 = vmul.f32 %v18662_v44, %v15452_v17  ;;  %v15570_v8 = vsel %vm1698_vm2, %v1686_v54, %v1687_v11  ;;  %7252 = vmatpush.bf16.msrb.mxu3 %v9270_v49  ;;  %7349 = vmatpush.bf16.msrb.mxu1 %v9287_v36  ;;  %v18664_v62 = vld [vmem:[#allocation12_spill] sm:$0xff]  ;;  %v18665_v44 = vld [vmem:[#allocation277_spill] sm:$0xff]  ;;  %v18674_v36 = vld [vmem:[#allocation275_spill] sm:$0xff] }
 0x720   :  { %18663 = vst [vmem:[#allocation255_spill] sm:$0xff] %v15570_v8  ;;  %v9795_v18 = vpack.i.bf16 %v6205_v38, %v6204_v51  ;;  %v9800_v13 = vpack.i.bf16 %v6221_v4, %v6220_v33  ;;  %v1543_v60 = vmul.f32 %v18664_v62, %v1435_v19  ;;  %v1832_v15 = vadd.f32 %v1816_v43, %v1670_v34  ;;  %v18666_v9 = vld [vmem:[#allocation144_spill] sm:$0xff]  ;;  %v18669_v17 = vld [vmem:[#allocation105_spill] sm:$0xff]  ;;  %v18670_v38 = vld [vmem:[#allocation27_spill] sm:$0xff] }
 0x721   :  { %v1671_v0 = vadd.f32 %v1655_v24, %v1542_v57  ;;  %v6191_v59 = vmul.f32 %v14941_v41, %v18665_v44  ;;  %v2202_v54 = vsel %vm1373_vm0, %v18669_v17, %v18668_v26  ;;  %v1656_v4 = vmul.f32 %v18670_v38, %v15497_v2  ;;  %v18671_v24 = vld [vmem:[#allocation61_spill] sm:$0xff]  ;;  %v18672_v41 = vld [vmem:[#allocation44_spill] sm:$0xff]  ;;  %v18684_v55 = vld [vmem:[#allocation39_spill] sm:$0xff] }
 0x722   :  { %9791 = vrot.lane.b32.xlu2 %v9790_v48, %s9947_s24  ;;  %v18667_v48 = vld [vmem:[#allocation115_spill] sm:$0xff]  ;;  %v1945_v34 = vmul.f32 %v18671_v24, %v15511_v39  ;;  %v1817_v57 = vmul.f32 %v18672_v41, %v15570_v8  ;;  %v18673_v43 = vrot.slane %v15532_v27, 7  ;;  %v6190_v17 = vmul.f32 %v14916_v7, %v18674_v36  ;;  %v18678_v62 = vld [vmem:[#allocation313_spill] sm:$0xff]  ;;  %v18681_v41 = vld [vmem:[#allocation202_spill] sm:$0xff] }
 0x723   :  { %v2203_v16 = vsel %vm1373_vm0, %v18667_v48, %v18666_v9  ;;  %v2233_v51 = vadd.f32 %v2201_v14, %v1960_v20  ;;  %v18675_v33 = vrot.slane %v15532_v27, 1  ;;  %v6223_v44 = vmul.f32 %v14929_v25, %v18678_v62  ;;  %v18679_v24 = vld [vmem:[#allocation23_spill] sm:$0xff]  ;;  %v18680_v20 = vld [vmem:[#allocation14_spill] sm:$0xff]  ;;  %v18691_v25 = vld [vmem:[#allocation280_spill] sm:$0xff] }
 0x724   :  { %v1434_v49 = vsel %vm1424_vm1, %v1411_v23, %v18673_v43  ;;  %v1672_v9 = vadd.f32 %v1656_v4, %v1543_v60  ;;  %v1961_v48 = vadd.f32 %v1945_v34, %v1832_v15  ;;  %v1833_v38 = vadd.f32 %v1817_v57, %v1671_v0  ;;  %v18685_v60 = vld [vmem:[#allocation156_spill] sm:$0xff]  ;;  %v18689_v34 = vld [vmem:[#allocation62_spill] sm:$0xff] }
 0x725   :  { %9796 = vrot.lane.b32.xlu0 %v9795_v18, %s9946_s18  ;;  %9801 = vrot.lane.b32.xlu1 %v9800_v13, %s9945_s22  ;;  %v15599_v26 = vsel %vm1698_vm2, %v1687_v11, %v18675_v33  ;;  %v18677_v18 = vld [vmem:[#allocation306_spill] sm:$0xff]  ;;  %v9805_v23 = vpack.i.bf16 %v6191_v59, %v6190_v17  ;;  %v1657_v7 = vmul.f32 %v18679_v24, %v15532_v27  ;;  %v18682_v11 = vld [vmem:[#allocation319_spill] sm:$0xff]  ;;  %v18683_v33 = vld [vmem:[#allocation56_spill] sm:$0xff] }
 0x726   :  { %18676 = vst [vmem:[#allocation227_spill] sm:$0xff] %v15599_v26  ;;  %v6207_v13 = vmul.f32 %v15246_v53, %v18677_v18  ;;  %v1544_v14 = vmul.f32 %v18680_v20, %v1434_v49  ;;  %v6206_v43 = vmul.f32 %v15181_v5, %v18681_v41  ;;  %v6222_v36 = vmul.f32 %v14901_v12, %v18682_v11  ;;  %v18686_v15 = vld [vmem:[#allocation116_spill] sm:$0xff]  ;;  %v18688_v59 = vld [vmem:[#allocation90_spill] sm:$0xff]  ;;  %v18690_v17 = vld [vmem:[#allocation95_spill] sm:$0xff] }
 0x727   :  { %v1946_v18 = vmul.f32 %v18683_v33, %v1435_v19  ;;  %v1818_v62 = vmul.f32 %v18684_v55, %v15599_v26  ;;  %v15618_v0 = vsel %vm1373_vm0, %v18686_v15, %v18685_v60  ;;  %v2346_v4 = vmul.f32 %v18688_v59, %v15515_v10  ;;  %v18692_v59 = vld [vmem:[#allocation131_spill] sm:$0xff] }
 0x728   :  { %18687 = vst [vmem:[#allocation225_spill] sm:$0xff] %v15618_v0  ;;  %v1947_v57 = vmul.f32 %v18689_v34, %v1434_v49  ;;  %v2347_v24 = vmul.f32 %v18690_v17, %v15570_v8  ;;  %v9810_v20 = vpack.i.bf16 %v6207_v13, %v6206_v43  ;;  %v9815_v41 = vpack.i.bf16 %v6223_v44, %v6222_v36  ;;  %v18695_v13 = vld [vmem:[#allocation117_spill] sm:$0xff]  ;;  %v18700_v36 = vld [vmem:[#allocation299_spill] sm:$0xff]  ;;  %v18863_v8 = vld [vmem:[#allocation298_spill] sm:$0xff] }
 0x729   :  { %v1834_v11 = vadd.f32 %v1818_v62, %v1672_v9  ;;  %v2234_v33 = vadd.f32 %v2202_v54, %v1961_v48  ;;  %v1962_v55 = vadd.f32 %v1946_v18, %v1833_v38  ;;  %v6193_v12 = vmul.f32 %v14971_v63, %v18691_v25  ;;  %v9278_v54 = vld [vmem:[%s17216_s12 + $0x40] sm:$0xff]  ;;  %v18694_v63 = vld [vmem:[#allocation154_spill] sm:$0xff]  ;;  %v18698_v48 = vld [vmem:[#allocation291_spill] sm:$0xff] }
 0x72a   :  { %9806 = vrot.lane.b32.xlu2 %v9805_v23, %s9947_s24  ;;  %v15628_v60 = vadd.f32 %v1657_v7, %v1544_v14  ;;  %v1413_v15 = vrot.slane %v15618_v0, 7  ;;  %v2476_v10 = vmul.f32 %v18692_v59, %v1435_v19  ;;  %v18693_v23 = vld [vmem:[#allocation129_spill] sm:$0xff]  ;;  %v15645_v44 = vsel %vm1373_vm0, %v18695_v13, %v18694_v63  ;;  %v18699_v14 = vld [vmem:[#allocation130_spill] sm:$0xff]  ;;  %7301 = vmatpush.bf16.msrb.mxu0 %v9278_v54  ;;  %v18704_v13 = vld [vmem:[#allocation316_spill] sm:$0xff] }
 0x72b   :  { %v2475_v34 = vmul.f32 %v18693_v23, %v15511_v39  ;;  %v9286_v25 = vld [vmem:[%s17216_s12 + $0x80] sm:$0xff]  ;;  %18696 = vst [vmem:[#allocation258_spill] sm:$0xff] %v15645_v44  ;;  %v2362_v19 = vadd.f32 %v2346_v4, %v2233_v51  ;;  %v18697_v39 = vld [vmem:[#allocation96_spill] sm:$0xff]  ;;  %v6192_v38 = vmul.f32 %v14946_v31, %v18698_v48  ;;  %v1689_v7 = vrot.slane %v15618_v0, 1  ;;  %v18703_v23 = vld [vmem:[#allocation206_spill] sm:$0xff] }
 0x72c   :  { %v2348_v9 = vmul.f32 %v18697_v39, %v15599_v26  ;;  %v2477_v43 = vmul.f32 %v18699_v14, %v1434_v49  ;;  %v6209_v18 = vmul.f32 %v15274_v50, %v18700_v36  ;;  %v18701_v62 = vld [vmem:[#allocation321_spill] sm:$0xff]  ;;  %7350 = vmatpush.bf16.msrb.mxu1 %v9286_v25  ;;  %v2363_v51 = vadd.f32 %v2347_v24, %v2234_v33  ;;  %v18710_v33 = vld [vmem:[#allocation123_spill] sm:$0xff]  ;;  %v18752_v26 = vld [vmem:[#allocation234_spill] sm:$0xff] }
 0x72d   :  { %9811 = vrot.lane.b32.xlu0 %v9810_v20, %s9946_s18  ;;  %9816 = vrot.lane.b32.xlu1 %v9815_v41, %s9945_s22  ;;  %v6225_v17 = vmul.f32 %v14959_v32, %v18701_v62  ;;  %v1963_v20 = vadd.f32 %v1947_v57, %v1834_v11  ;;  %v2235_v4 = vadd.f32 %v2203_v16, %v1962_v55  ;;  %v18702_v59 = vrot.slane %v15532_v27, 7  ;;  %v18705_v54 = vld [vmem:[#allocation153_spill] sm:$0xff]  ;;  %v18707_v16 = vld [vmem:[#allocation151_spill] sm:$0xff] }
 0x72e   :  { %v9820_v41 = vpack.i.bf16 %v6193_v12, %v6192_v38  ;;  %v1414_v49 = vrot.slane %v15645_v44, 7  ;;  %v6208_v63 = vmul.f32 %v15235_v6, %v18703_v23  ;;  %v6224_v39 = vmul.f32 %v14934_v22, %v18704_v13  ;;  %v18706_v25 = vld [vmem:[#allocation113_spill] sm:$0xff]  ;;  %v18708_v12 = vld [vmem:[#allocation114_spill] sm:$0xff]  ;;  %v18709_v11 = vld [vmem:[#allocation155_spill] sm:$0xff] }
 0x72f   :  { %v15661_v31 = vsel %vm1424_vm1, %v18702_v59, %v1413_v15  ;;  %v2204_v57 = vsel %vm1373_vm0, %v18706_v25, %v18705_v54  ;;  %v15674_v24 = vsel %vm1373_vm0, %v18708_v12, %v18707_v16  ;;  %v15679_v55 = vsel %vm1373_vm0, %v18710_v33, %v18709_v11  ;;  %v9301_v38 = vld [vmem:[%s17216_s12 + $0xf8] sm:$0xff]  ;;  %v18715_v13 = vld [vmem:[#allocation10_spill] sm:$0xff]  ;;  %v18718_v12 = vld [vmem:[#allocation121_spill] sm:$0xff] }
 0x730   :  { %18711 = vst [vmem:[#allocation269_spill] sm:$0xff] %v15679_v55  ;;  %v15681_v48 = vadd.f32 %v2475_v34, %v2362_v19  ;;  %v18713_v14 = vrot.slane %v15532_v27, 1  ;;  %v1690_v62 = vrot.slane %v15645_v44, 1  ;;  %v9825_v59 = vpack.i.bf16 %v6209_v18, %v6208_v63  ;;  %v18716_v54 = vld [vmem:[#allocation294_spill] sm:$0xff]  ;;  %7392 = vmatpush.bf16.msra.mxu2 %v9301_v38  ;;  %v18717_v16 = vld [vmem:[#allocation152_spill] sm:$0xff]  ;;  %v18750_v22 = vld [vmem:[#allocation99_spill] sm:$0xff] }
 0x731   :  { %v9830_v23 = vpack.i.bf16 %v6225_v17, %v6224_v39  ;;  %v1545_v34 = vmul.f32 %v18715_v13, %v15661_v31  ;;  %v15696_v19 = vadd.f32 %v2476_v10, %v2363_v51  ;;  %v6195_v25 = vmul.f32 %v15001_v61, %v18716_v54  ;;  %v9309_v61 = vld [vmem:[%s17216_s12 + $0x138] sm:$0xff]  ;;  %v18725_v13 = vld [vmem:[#allocation15_spill] sm:$0xff]  ;;  %v18730_v63 = vld [vmem:[#allocation322_spill] sm:$0xff] }
 0x732   :  { %18712 = vst [vmem:[#allocation134_spill] sm:$0xff] %v15681_v48  ;;  %9821 = vrot.lane.b32.xlu2 %v9820_v41, %s9947_s24  ;;  %v15691_v36 = vsel %vm1698_vm2, %v18713_v14, %v1689_v7  ;;  %v2364_v41 = vadd.f32 %v2348_v9, %v2235_v4  ;;  %v15703_v11 = vsel %vm1373_vm0, %v18718_v12, %v18717_v16  ;;  %v17663_v10 = vrot.slane %v15679_v55, 7  ;;  %v18719_v9 = vld [vmem:[#allocation28_spill] sm:$0xff]  ;;  %v18727_v12 = vld [vmem:[#allocation26_spill] sm:$0xff] }
 0x733   :  { %18714 = vst [vmem:[#allocation97_spill] sm:$0xff] %v15691_v36  ;;  %v15705_v33 = vadd.f32 %v2204_v57, %v1963_v20  ;;  %v15709_v18 = vsel %vm1424_vm1, %v1413_v15, %v1414_v49  ;;  %v1658_v17 = vmul.f32 %v18719_v9, %v15618_v0  ;;  %v18720_v20 = vld [vmem:[#allocation45_spill] sm:$0xff]  ;;  %v18721_v4 = vld [vmem:[#allocation284_spill] sm:$0xff]  ;;  %v15726_v39 = vsel %vm1698_vm2, %v1689_v7, %v1690_v62  ;;  %v18723_v57 = vld [vmem:[#allocation302_spill] sm:$0xff] }
 0x734   :  { %v1819_v51 = vmul.f32 %v18720_v20, %v15691_v36  ;;  %v6194_v15 = vmul.f32 %v14976_v42, %v18721_v4  ;;  %18722 = vst [vmem:[#allocation137_spill] sm:$0xff] %v15726_v39  ;;  %v6211_v38 = vmul.f32 %v15305_v30, %v18723_v57  ;;  %v18724_v14 = vld [vmem:[#allocation300_spill] sm:$0xff]  ;;  %7441 = vmatpush.bf16.msra.mxu3 %v9309_v61  ;;  %v18728_v7 = vld [vmem:[#allocation30_spill] sm:$0xff]  ;;  %v18754_v0 = vld [vmem:[#allocation325_spill] sm:$0xff] }
 0x735   :  { %9826 = vrot.lane.b32.xlu0 %v9825_v59, %s9946_s18  ;;  %9831 = vrot.lane.b32.xlu1 %v9830_v23, %s9945_s22  ;;  %v6227_v59 = vmul.f32 %v14989_v52, %v18724_v14  ;;  %v1674_v23 = vadd.f32 %v1658_v17, %v1545_v34  ;;  %v1546_v54 = vmul.f32 %v18725_v13, %v15709_v18  ;;  %v18729_v4 = vld [vmem:[#allocation308_spill] sm:$0xff]  ;;  %v18732_v17 = vld [vmem:[#allocation47_spill] sm:$0xff] }
 0x736   :  { %v15734_v16 = vadd.f32 %v2477_v43, %v2364_v41  ;;  %v9835_v42 = vpack.i.bf16 %v6195_v25, %v6194_v15  ;;  %v1660_v9 = vmul.f32 %v18727_v12, %v15679_v55  ;;  %v1659_v20 = vmul.f32 %v18728_v7, %v15645_v44  ;;  %v18731_v34 = vld [vmem:[#allocation64_spill] sm:$0xff]  ;;  %v18735_v13 = vld [vmem:[#allocation59_spill] sm:$0xff]  ;;  %v18753_v44 = vld [vmem:[#allocation78_spill] sm:$0xff] }
 0x737   :  { %v6210_v57 = vmul.f32 %v15266_v56, %v18729_v4  ;;  %v6226_v14 = vmul.f32 %v14964_v58, %v18730_v63  ;;  %v1948_v61 = vmul.f32 %v18731_v34, %v15661_v31  ;;  %v1820_v43 = vmul.f32 %v18732_v17, %v15726_v39  ;;  %v18737_v52 = vld [vmem:[#allocation203_spill] sm:$0xff]  ;;  %v18739_v58 = vld [vmem:[#allocation88_spill] sm:$0xff] }
 0x738   :  { %18726 = vst [vmem:[#allocation102_spill] sm:$0xff] %v15734_v16  ;;  %v15752_v41 = vsel %vm1424_vm1, %v1414_v49, %v17663_v10  ;;  %v1835_v25 = vadd.f32 %v1819_v51, %v15628_v60  ;;  %v18733_v15 = vrot.slane %v15679_v55, 1  ;;  %v1949_v12 = vmul.f32 %v18735_v13, %v15709_v18  ;;  %v18736_v10 = vld [vmem:[#allocation288_spill] sm:$0xff]  ;;  %v18837_v16 = vld [vmem:[#allocation373_spill] sm:$0xff] }
 0x739   :  { %v9840_v7 = vpack.i.bf16 %v6211_v38, %v6210_v57  ;;  %v9845_v4 = vpack.i.bf16 %v6227_v59, %v6226_v14  ;;  %v1675_v34 = vadd.f32 %v1659_v20, %v1546_v54  ;;  %v1836_v17 = vadd.f32 %v1820_v43, %v1674_v23  ;;  %v9317_v38 = vld [vmem:[%s17216_s12 + $0x178] sm:$0xff]  ;;  %v18741_v59 = vld [vmem:[#allocation42_spill] sm:$0xff]  ;;  %v18742_v20 = vld [vmem:[#allocation285_spill] sm:$0xff] }
 0x73a   :  { %9836 = vrot.lane.b32.xlu2 %v9835_v42, %s9947_s24  ;;  %v15760_v63 = vsel %vm1698_vm2, %v1690_v62, %v18733_v15  ;;  %v6197_v60 = vmul.f32 %v15040_v28, %v18736_v10  ;;  %v6092_v62 = vmul.f32 %v15158_v29, %v18737_v52  ;;  %v18738_v15 = vld [vmem:[#allocation204_spill] sm:$0xff]  ;;  %v1964_v54 = vadd.f32 %v1948_v61, %v1835_v25  ;;  %v18743_v52 = vld [vmem:[#allocation83_spill] sm:$0xff] }
 0x73b   :  { %18734 = vst [vmem:[#allocation228_spill] sm:$0xff] %v15760_v63  ;;  %v6093_v13 = vmul.f32 %v18739_v58, %v18738_v15  ;;  %v18740_v28 = vld [vmem:[#allocation16_spill] sm:$0xff]  ;;  %v1821_v23 = vmul.f32 %v18741_v59, %v15760_v63  ;;  %v6196_v29 = vmul.f32 %v18743_v52, %v18742_v20  ;;  %v9323_v58 = vld [vmem:[%s17216_s12 + $0x1a8] sm:$0xff]  ;;  %v18744_v43 = vld [vmem:[#allocation311_spill] sm:$0xff]  ;;  %7490 = vmatpush.bf16.msra.mxu0 %v9317_v38 }
 0x73c   :  { %v15764_v49 = vpop.permute.xlu2 %9671  ;;  %v1547_v10 = vmul.f32 %v18740_v28, %v15752_v41  ;;  %v18746_v15 = vld [vmem:[#allocation344_spill] sm:$0xff]  ;;  %v18748_v28 = vld [vmem:[#allocation94_spill] sm:$0xff]  ;;  %v1965_v20 = vadd.f32 %v1949_v12, %v1836_v17  ;;  %7541 = vmatpush.bf16.msra.mxu1 %v9323_v58  ;;  %v2237_v17 = vadd.f32 %v15674_v24, %v1964_v54 }
 0x73d   :  { %v17669_v51 = vunpack.i.h.bf16 %v15764_v49  ;;  %v17667_v42 = vunpack.i.l.bf16 %v15764_v49  ;;  %9841 = vrot.lane.b32.xlu0 %v9840_v7, %s9946_s18  ;;  %9846 = vrot.lane.b32.xlu1 %v9845_v4, %s9945_s22  ;;  %v18745_v7 = vld [vmem:[#allocation251_spill] sm:$0xff]  ;;  %v18747_v61 = vld [vmem:[#allocation256_spill] sm:$0xff]  ;;  %v2349_v59 = vmul.f32 %v18748_v28, %v15691_v36  ;;  %v9850_v32 = vpack.i.bf16 %v6197_v60, %v6196_v29  ;;  %v18755_v38 = vld [vmem:[#allocation158_spill] sm:$0xff] }
 0x73e   :  { %v6213_v4 = vmul.f32 %v18745_v7, %v18744_v43  ;;  %v6229_v25 = vmul.f32 %v18747_v61, %v18746_v15  ;;  %v6228_v15 = vmul.f32 %v18754_v0, %v18753_v44  ;;  %v15810_v61 = vmul.f32 %v18755_v38, %v15329_v37  ;;  %v18769_v38 = vld [vmem:[#allocation92_spill] sm:$0xff] }
 0x73f   :  { %v6637_v57 = vsel %vm6636_vm4, %v6092_v62, %v17667_v42  ;;  %v6638_v14 = vsel %vm6636_vm4, %v6093_v13, %v17669_v51  ;;  %v18749_v62 = vld [vmem:[#allocation65_spill] sm:$0xff]  ;;  %v2350_v13 = vmul.f32 %v18750_v22, %v15726_v39  ;;  %v15812_v12 = vadd.f32 %v1660_v9, %v1547_v10  ;;  %v9300_v22 = vld [vmem:[%s17216_s12 + $0xf0] sm:$0xff]  ;;  %v18758_v9 = vld [vmem:[#allocation132_spill] sm:$0xff] }
 0x740   :  { %v6733_v52 = vpack.c.bf16 %v6638_v14, %v6637_v57  ;;  %v1950_v42 = vmul.f32 %v18749_v62, %v15752_v41  ;;  %v18751_v51 = vld [vmem:[#allocation77_spill] sm:$0xff]  ;;  %18756 = vst [vmem:[#allocation235_spill] sm:$0xff] %v15810_v61  ;;  %v1837_v60 = vadd.f32 %v1821_v23, %v1675_v34  ;;  %v9860_v58 = vpack.i.bf16 %v6229_v25, %v6228_v15  ;;  %v9308_v14 = vld [vmem:[%s17216_s12 + $0x130] sm:$0xff]  ;;  %v18766_v62 = vld [vmem:[#allocation358_spill] sm:$0xff] }
 0x741   :  { %v6212_v43 = vmul.f32 %v18752_v26, %v18751_v51  ;;  %v18757_v51 = vld [vmem:[#allocation142_spill] sm:$0xff]  ;;  %v2365_v37 = vadd.f32 %v2349_v59, %v15705_v33  ;;  %v2478_v10 = vmul.f32 %v18758_v9, %v15661_v31  ;;  %v2238_v24 = vadd.f32 %v15703_v11, %v1965_v20  ;;  %7393 = vmatpush.bf16.msra.mxu2 %v9300_v22  ;;  %v18760_v33 = vld [vmem:[#allocation211_spill] sm:$0xff]  ;;  %v18761_v31 = vld [vmem:[#allocation205_spill] sm:$0xff] }
 0x742   :  { %9851 = vrot.lane.b32.xlu2 %v9850_v32, %s9947_s24  ;;  %7253 = vmatmul.bf16.vlgmr.msrb.gmra.mxu3 %v6733_v52  ;;  %v2479_v29 = vmul.f32 %v18757_v51, %v15709_v18  ;;  %v18759_v32 = vld [vmem:[#allocation290_spill] sm:$0xff]  ;;  %v6094_v18 = vmul.f32 %v18658_v40, %v18760_v33  ;;  %v6095_v11 = vmul.f32 %v15209_v46, %v18761_v31  ;;  %v18764_v59 = vld [vmem:[#allocation101_spill] sm:$0xff]  ;;  %v18767_v40 = vld [vmem:[#allocation72_spill] sm:$0xff] }
 0x743   :  { %v9855_v44 = vpack.i.bf16 %v6213_v4, %v6212_v43  ;;  %v6199_v57 = vmul.f32 %v15080_v45, %v18759_v32  ;;  %v18762_v45 = vld [vmem:[#allocation164_spill] sm:$0xff]  ;;  %v18763_v4 = vld [vmem:[#allocation122_spill] sm:$0xff]  ;;  %v2366_v28 = vadd.f32 %v2350_v13, %v2237_v17  ;;  %v2351_v20 = vmul.f32 %v18764_v59, %v15760_v63  ;;  %v18765_v52 = vld [vmem:[#allocation297_spill] sm:$0xff]  ;;  %7442 = vmatpush.bf16.msra.mxu3 %v9308_v14 }
 0x744   :  { %v15825_v54 = vpop.permute.xlu2 %9686  ;;  %v15843_v25 = vsel %vm1373_vm0, %v18763_v4, %v18762_v45  ;;  %v6198_v43 = vmul.f32 %v18766_v62, %v18765_v52  ;;  %v6215_v15 = vmul.f32 %v15393_v3, %v18767_v40  ;;  %v18768_v46 = vld [vmem:[#allocation348_spill] sm:$0xff]  ;;  %v18770_v17 = vld [vmem:[#allocation161_spill] sm:$0xff]  ;;  %v1966_v31 = vadd.f32 %v1950_v42, %v1837_v60  ;;  %v18776_v40 = vld [vmem:[#allocation282_spill] sm:$0xff] }
 0x745   :  { %v17674_v34 = vunpack.i.h.bf16 %v15825_v54  ;;  %v17673_v23 = vunpack.i.l.bf16 %v15825_v54  ;;  %9856 = vrot.lane.b32.xlu0 %v9855_v44, %s9946_s18  ;;  %9861 = vrot.lane.b32.xlu1 %v9860_v58, %s9945_s22  ;;  %v6231_v22 = vmul.f32 %v18769_v38, %v18768_v46  ;;  %v18771_v44 = vld [vmem:[#allocation119_spill] sm:$0xff]  ;;  %v2367_v9 = vadd.f32 %v2351_v20, %v2238_v24  ;;  %v18772_v45 = vld [vmem:[#allocation133_spill] sm:$0xff]  ;;  %v18782_v42 = vld [vmem:[#allocation160_spill] sm:$0xff] }
 0x746   :  { %v2207_v58 = vsel %vm1373_vm0, %v18771_v44, %v18770_v17  ;;  %v9865_v32 = vpack.i.bf16 %v6199_v57, %v6198_v43  ;;  %v2480_v4 = vmul.f32 %v18772_v45, %v15752_v41  ;;  %v18773_v59 = vld [vmem:[#allocation305_spill] sm:$0xff]  ;;  %v1416_v17 = vrot.slane %v15843_v25, 7  ;;  %v9299_v41 = vld [vmem:[%s17216_s12 + $0xe8] sm:$0xff]  ;;  %v18783_v60 = vld [vmem:[#allocation128_spill] sm:$0xff] }
 0x747   :  { %v6639_v51 = vsel %vm6636_vm4, %v6094_v18, %v17673_v23  ;;  %v6640_v13 = vsel %vm6636_vm4, %v6095_v11, %v17674_v34  ;;  %v18774_v52 = vld [vmem:[#allocation249_spill] sm:$0xff]  ;;  %v18777_v23 = vld [vmem:[#allocation159_spill] sm:$0xff]  ;;  %v18778_v11 = vld [vmem:[#allocation120_spill] sm:$0xff]  ;;  %v15874_v24 = vadd.f32 %v2479_v29, %v2366_v28  ;;  %v15876_v57 = vadd.f32 %v2478_v10, %v2365_v37  ;;  %7394 = vmatpush.bf16.msra.mxu2 %v9299_v41 }
 0x748   :  { %v6740_v33 = vpack.c.bf16 %v6640_v13, %v6639_v51  ;;  %v6214_v62 = vmul.f32 %v18774_v52, %v18773_v59  ;;  %v18775_v18 = vld [vmem:[#allocation349_spill] sm:$0xff]  ;;  %v15871_v14 = vsel %vm1373_vm0, %v18778_v11, %v18777_v23  ;;  %v15885_v20 = vsel %vm1373_vm0, %v18783_v60, %v18782_v42  ;;  %v18790_v45 = vld [vmem:[#allocation354_spill] sm:$0xff]  ;;  %v18795_v11 = vld [vmem:[#allocation31_spill] sm:$0xff] }
 0x749   :  { %v6230_v46 = vmul.f32 %v18776_v40, %v18775_v18  ;;  %18779 = vst [vmem:[#allocation276_spill] sm:$0xff] %v15871_v14  ;;  %v15887_v43 = vadd.f32 %v2207_v58, %v1966_v31  ;;  %v18786_v28 = vld [vmem:[#allocation165_spill] sm:$0xff]  ;;  %v15894_v13 = vadd.f32 %v2480_v4, %v2367_v9  ;;  %v18792_v31 = vld [vmem:[#allocation214_spill] sm:$0xff]  ;;  %v9316_v4 = vld [vmem:[%s17216_s12 + $0x170] sm:$0xff]  ;;  %v15919_v41 = vmul.f32 %v18795_v11, %v15843_v25 }
 0x74a   :  { %18780 = vst [vmem:[#allocation260_spill] sm:$0xff] %v15874_v24  ;;  %9866 = vrot.lane.b32.xlu2 %v9865_v32, %s9947_s24  ;;  %v9870_v23 = vpack.i.bf16 %v6215_v15, %v6214_v62  ;;  %v18787_v37 = vld [vmem:[#allocation33_spill] sm:$0xff]  ;;  %v18789_v32 = vld [vmem:[#allocation60_spill] sm:$0xff]  ;;  %v18791_v15 = vld [vmem:[#allocation207_spill] sm:$0xff]  ;;  %v6097_v9 = vmul.f32 %v15246_v53, %v18792_v31  ;;  %v18793_v62 = vrot.slane %v15679_v55, 7  ;;  %v18796_v42 = vrot.slane %v18786_v28, 7  ;;  %7491 = vmatpush.bf16.msra.mxu0 %v9316_v4 }
 0x74b   :  { %18781 = vst [vmem:[#allocation8_spill] sm:$0xff] %v15876_v57  ;;  %v9875_v51 = vpack.i.bf16 %v6231_v22, %v6230_v46  ;;  %v15892_v10 = vmul.f32 %v18787_v37, %v18786_v28  ;;  %v6201_v59 = vmul.f32 %v18790_v45, %v18789_v32  ;;  %v6096_v22 = vmul.f32 %v15181_v5, %v18791_v15  ;;  %v18797_v53 = vld [vmem:[#allocation292_spill] sm:$0xff]  ;;  %v18798_v60 = vld [vmem:[#allocation369_spill] sm:$0xff]  ;;  %v18799_v37 = vld [vmem:[#allocation307_spill] sm:$0xff] }
 0x74c   :  { %18784 = vst [vmem:[#allocation238_spill] sm:$0xff] %v15885_v20  ;;  %v15896_v44 = vpop.permute.xlu2 %9701  ;;  %v15915_v46 = vsel %vm1424_vm1, %v18793_v62, %v1416_v17  ;;  %v15925_v5 = vsel %vm1424_vm1, %v1416_v17, %v18796_v42  ;;  %v18800_v32 = vld [vmem:[#allocation263_spill] sm:$0xff]  ;;  %v18801_v15 = vld [vmem:[#allocation360_spill] sm:$0xff]  ;;  %v18802_v31 = vld [vmem:[#allocation265_spill] sm:$0xff] }
 0x74d   :  { %18785 = vst [vmem:[#allocation22_spill] sm:$0xff] %v15887_v43  ;;  %v17676_v18 = vunpack.i.h.bf16 %v15896_v44  ;;  %v17675_v58 = vunpack.i.l.bf16 %v15896_v44  ;;  %9871 = vrot.lane.b32.xlu0 %v9870_v23, %s9946_s18  ;;  %9876 = vrot.lane.b32.xlu1 %v9875_v51, %s9945_s22  ;;  %v6200_v23 = vmul.f32 %v18798_v60, %v18797_v53  ;;  %v9298_v51 = vld [vmem:[%s17216_s12 + $0xe0] sm:$0xff]  ;;  %v6217_v45 = vmul.f32 %v18800_v32, %v18799_v37  ;;  %v18803_v42 = vld [vmem:[#allocation339_spill] sm:$0xff]  ;;  %v18805_v34 = vld [vmem:[#allocation318_spill] sm:$0xff] }
 0x74e   :  { %18788 = vst [vmem:[#allocation40_spill] sm:$0xff] %v15894_v13  ;;  %v6233_v62 = vmul.f32 %v18802_v31, %v18801_v15  ;;  %v18804_v53 = vld [vmem:[#allocation337_spill] sm:$0xff]  ;;  %v18806_v29 = vld [vmem:[#allocation342_spill] sm:$0xff]  ;;  %7395 = vmatpush.bf16.msra.mxu2 %v9298_v51  ;;  %v18808_v31 = vrot.slane %v15843_v25, 1  ;;  %v18815_v51 = vld [vmem:[#allocation67_spill] sm:$0xff] }
 0x74f   :  { %18794 = vst [vmem:[#allocation230_spill] sm:$0xff] %v15915_v46  ;;  %v15939_v11 = vsel %vm6636_vm4, %v6096_v22, %v17675_v58  ;;  %v15944_v17 = vsel %vm6636_vm4, %v6097_v9, %v17676_v18  ;;  %v4607_v60 = vadd.f32 %v18804_v53, %v18803_v42  ;;  %v4612_v37 = vadd.f32 %v18806_v29, %v18805_v34  ;;  %v18807_v22 = vld [vmem:[#allocation13_spill] sm:$0xff]  ;;  %v18811_v42 = vld [vmem:[#allocation314_spill] sm:$0xff]  ;;  %v18812_v53 = vld [vmem:[#allocation219_spill] sm:$0xff] }
 0x750   :  { %v9880_v38 = vpack.i.bf16 %v6201_v59, %v6200_v23  ;;  %v15954_v58 = vmul.f32 %v18807_v22, %v15915_v46  ;;  %v18809_v9 = vrot.slane %v15679_v55, 1  ;;  %v6216_v34 = vmul.f32 %v18812_v53, %v18811_v42  ;;  %v18813_v29 = vld [vmem:[#allocation272_spill] sm:$0xff]  ;;  %v18814_v59 = vld [vmem:[#allocation363_spill] sm:$0xff]  ;;  %v18816_v22 = vld [vmem:[#allocation357_spill] sm:$0xff] }
 0x751   :  { %v6232_v23 = vmul.f32 %v18814_v59, %v18813_v29  ;;  %v15970_v18 = vmul.f32 %v18815_v51, %v15915_v46  ;;  %v4656_v15 = vadd.f32 %v18816_v22, %v4607_v60  ;;  %v18817_v40 = vld [vmem:[#allocation359_spill] sm:$0xff]  ;;  %v15977_v63 = vld [vmem:[%s17211_s7] ss:$0 sm:$0xff]  ;;  %v18821_v22 = vld [vmem:[#allocation340_spill] sm:$0xff] }
 0x752   :  { %v15962_v4 = vsel %vm1698_vm2, %v18809_v9, %v18808_v31  ;;  %v4661_v0 = vadd.f32 %v18817_v40, %v4612_v37  ;;  %9881 = vrot.lane.b32.xlu2 %v9880_v38, %s9947_s24  ;;  %7258 = vmatmul.bf16.gmra.mxu3 %v6740_v33  ;;  %v9297_v31 = vld [vmem:[%s17216_s12 + $0xd8] sm:$0xff]  ;;  %v9885_v9 = vpack.i.bf16 %v6217_v45, %v6216_v34  ;;  %v18818_v29 = vld [vmem:[#allocation293_spill] sm:$0xff]  ;;  %v18819_v51 = vld [vmem:[#allocation279_spill] sm:$0xff] }
 0x753   :  { %18810 = vst [vmem:[#allocation266_spill] sm:$0xff] %v15962_v4  ;;  %v9890_v42 = vpack.i.bf16 %v6233_v62, %v6232_v23  ;;  %v6202_v59 = vmul.f32 %v18819_v51, %v18818_v29  ;;  %v18820_v60 = vld [vmem:[#allocation295_spill] sm:$0xff]  ;;  %v18822_v37 = vld [vmem:[#allocation17_spill] sm:$0xff]  ;;  %v18823_v24 = vld [vmem:[#allocation84_spill] sm:$0xff]  ;;  %7396 = vmatpush.bf16.msra.mxu2 %v9297_v31 }
 0x754   :  { %v6203_v40 = vmul.f32 %v18821_v22, %v18820_v60  ;;  %v15989_v13 = vmul.f32 %v18822_v37, %v15925_v5  ;;  %v18824_v57 = vld [vmem:[#allocation264_spill] sm:$0xff]  ;;  %v18826_v55 = vld [vmem:[#allocation374_spill] sm:$0xff]  ;;  %v15995_v43 = vpop.permute.xlu2 %9716  ;;  %v18828_v29 = vld [vmem:[#allocation209_spill] sm:$0xff] }
 0x755   :  { %v4617_v38 = vadd.f32 %v18824_v57, %v18823_v24  ;;  %v18825_v33 = vld [vmem:[#allocation324_spill] sm:$0xff]  ;;  %v4710_v46 = vadd.f32 %v18826_v55, %v4661_v0  ;;  %v17682_v45 = vunpack.i.h.bf16 %v15995_v43  ;;  %v17681_v62 = vunpack.i.l.bf16 %v15995_v43  ;;  %9886 = vrot.lane.b32.xlu0 %v9885_v9, %s9946_s18  ;;  %9891 = vrot.lane.b32.xlu1 %v9890_v42, %s9945_s22  ;;  %v9307_v0 = vld [vmem:[%s17216_s12 + $0x128] sm:$0xff]  ;;  %v9322_v55 = vld [vmem:[%s17216_s12 + $0x1a0] sm:$0xff] }
 0x756   :  { %v4705_v39 = vadd.f32 %v18825_v33, %v4656_v15  ;;  %v18827_v34 = vld [vmem:[#allocation208_spill] sm:$0xff]  ;;  %v6099_v24 = vmul.f32 %v15274_v50, %v18828_v29  ;;  %v18829_v57 = vld [vmem:[#allocation362_spill] sm:$0xff]  ;;  %v18830_v31 = vld [vmem:[#allocation371_spill] sm:$0xff]  ;;  %7443 = vmatpush.bf16.msra.mxu3 %v9307_v0  ;;  %7542 = vmatpush.bf16.msra.mxu1 %v9322_v55  ;;  %v18839_v55 = vunpack.i.l.bf16 %v15764_v49 }
 0x757   :  { %v6098_v23 = vmul.f32 %v15235_v6, %v18827_v34  ;;  %v4795_v15 = vmul.f32 %v15977_v63, %v18829_v57  ;;  %v18831_v42 = vld [vmem:[#allocation332_spill] sm:$0xff]  ;;  %v18833_v6 = vld [vmem:[#allocation341_spill] sm:$0xff]  ;;  %v9296_v50 = vld [vmem:[%s17216_s12 + $0xd0] sm:$0xff]  ;;  %v9677_v37 = vpop.permute.xlu0 %9676  ;;  %v9682_v33 = vpop.permute.xlu1 %9681  ;;  %v9895_v34 = vpack.i.bf16 %v6203_v40, %v6202_v59 }
 0x758   :  { %v4754_v9 = vadd.f32 %v18830_v31, %v4705_v39  ;;  %v4759_v51 = vadd.f32 %v18831_v42, %v4710_v46  ;;  %v18832_v60 = vld [vmem:[#allocation372_spill] sm:$0xff]  ;;  %v16028_v39 = vsel %vm6636_vm4, %v6099_v24, %v17682_v45  ;;  %v16033_v46 = vld [vmem:[%s17212_s8] ss:$0 sm:$0xff]  ;;  %v9679_v57 = vunpack.i.h.bf16 %v9677_v37  ;;  %7397 = vmatpush.bf16.msra.mxu2 %v9296_v50  ;;  %v18838_v24 = vld [vmem:[#allocation162_spill] sm:$0xff] }
 0x759   :  { %v6234_v22 = vmul.f32 %v18833_v6, %v18832_v60  ;;  %v16023_v29 = vsel %vm6636_vm4, %v6098_v23, %v17681_v62  ;;  %v9678_v31 = vunpack.i.l.bf16 %v9677_v37  ;;  %v9684_v59 = vunpack.i.h.bf16 %v9682_v33  ;;  %v18834_v42 = vld [vmem:[#allocation69_spill] sm:$0xff]  ;;  %v18836_v62 = vld [vmem:[#allocation364_spill] sm:$0xff]  ;;  %v18867_v20 = vld [vmem:[#allocation274_spill] sm:$0xff] }
 0x75a   :  { %v9683_v40 = vunpack.i.l.bf16 %v9682_v33  ;;  %v18835_v23 = vld [vmem:[#allocation5_spill] sm:$0xff]  ;;  %v4666_v6 = vadd.f32 %v18836_v62, %v4617_v38  ;;  %v6235_v45 = vmul.f32 %v18838_v24, %v18837_v16  ;;  %v18840_v37 = vunpack.i.h.bf16 %v15764_v49  ;;  %9896 = vrot.lane.b32.xlu2 %v9895_v34, %s9947_s24  ;;  %v9295_v16 = vld [vmem:[%s17216_s12 + $0xc8] sm:$0xff]  ;;  %v18841_v62 = vld [vmem:[#allocation375_spill] sm:$0xff] }
 0x75b   :  { %v1537_v60 = vmul.f32 %v18835_v23, %v18834_v42  ;;  %v6653_v48 = vsel %vm4129_vm3, %v18839_v55, %v9678_v31  ;;  %v6670_v50 = vsel %vm1373_vm0, %v9679_v57, %v9684_v59  ;;  %v4796_v38 = vmul.f32 %v15977_v63, %v4754_v9  ;;  %v18844_v9 = vld [vmem:[#allocation217_spill] sm:$0xff] }
 0x75c   :  { %v6654_v33 = vsel %vm4129_vm3, %v18840_v37, %v9679_v57  ;;  %v6669_v42 = vsel %vm1373_vm0, %v9678_v31, %v9683_v40  ;;  %v4797_v23 = vmul.f32 %v15977_v63, %v18841_v62  ;;  %v4815_v49 = vadd.f32 %v16033_v46, %v4795_v15  ;;  %v18842_v57 = vld [vmem:[#allocation76_spill] sm:$0xff]  ;;  %v16060_v31 = vpop.permute.xlu2 %9731  ;;  %7398 = vmatpush.bf16.msra.mxu2 %v9295_v16  ;;  %v18849_v62 = vld [vmem:[#allocation73_spill] sm:$0xff] }
 0x75d   :  { %v6734_v55 = vpack.c.bf16 %v6654_v33, %v6653_v48  ;;  %v6735_v0 = vpack.c.bf16 %v6670_v50, %v6669_v42  ;;  %v4798_v37 = vmul.f32 %v15977_v63, %v4759_v51  ;;  %v4715_v59 = vadd.f32 %v18842_v57, %v4666_v6  ;;  %18843 = vst [vmem:[#allocation138_spill] sm:$0xff] %v16060_v31  ;;  %v18845_v33 = vld [vmem:[#allocation210_spill] sm:$0xff]  ;;  %v18846_v50 = vld [vmem:[#allocation177_spill] sm:$0xff]  ;;  %v18852_v40 = vld [vmem:[#allocation368_spill] sm:$0xff] }
 0x75e   :  { %v9905_v34 = vpack.i.bf16 %v6235_v45, %v6234_v22  ;;  %v6100_v48 = vmul.f32 %v15266_v56, %v18844_v9  ;;  %v6101_v15 = vmul.f32 %v15305_v30, %v18845_v33  ;;  %v18847_v51 = vld [vmem:[#allocation21_spill] sm:$0xff]  ;;  %v18850_v45 = vld [vmem:[#allocation336_spill] sm:$0xff]  ;;  %v4816_v56 = vadd.f32 %v16033_v46, %v4796_v38 }
 0x75f   :  { %7302 = vmatmul.bf16.vlgmr.msrb.gmra.mxu0 %v6734_v55  ;;  %7351 = vmatmul.bf16.vlgmr.msrb.gmra.mxu1 %v6735_v0  ;;  %v1650_v42 = vmul.f32 %v18847_v51, %v18846_v50  ;;  %v18848_v6 = vld [vmem:[#allocation345_spill] sm:$0xff]  ;;  %v4764_v22 = vadd.f32 %v18850_v45, %v4715_v59  ;;  %v4817_v0 = vadd.f32 %v16033_v46, %v4797_v23  ;;  %v9692_v30 = vpop.permute.xlu0 %9691  ;;  %v9697_v55 = vpop.permute.xlu1 %9696  ;;  %v18854_v9 = vunpack.i.l.bf16 %v16060_v31 }
 0x760   :  { %v4622_v57 = vadd.f32 %v18849_v62, %v18848_v6  ;;  %v18851_v16 = vld [vmem:[#allocation377_spill] sm:$0xff]  ;;  %9906 = vrot.lane.b32.xlu1 %v9905_v34, %s9945_s22  ;;  %v18855_v59 = vunpack.i.h.bf16 %v16060_v31  ;;  %v18857_v34 = vld [vmem:[#allocation75_spill] sm:$0xff]  ;;  %v4831_v23 = vmax.f32 %v4815_v49, 0.0  ;;  %v18859_v6 = vld [vmem:[#allocation376_spill] sm:$0xff]  ;;  %v9698_v14 = vunpack.i.l.bf16 %v9697_v55 }
 0x761   :  { %v18853_v36 = vpack.i.bf16 %v18851_v16, %v18852_v40  ;;  %v16083_v33 = vsel %vm6636_vm4, %v6100_v48, %v18854_v9  ;;  %v18858_v38 = vld [vmem:[#allocation9_spill] sm:$0xff]  ;;  %v9315_v48 = vld [vmem:[%s17216_s12 + $0x168] sm:$0xff]  ;;  %v18860_v16 = vld [vmem:[#allocation347_spill] sm:$0xff]  ;;  %v4800_v31 = vmul.f32 %v15977_v63, %v4764_v22  ;;  %v9699_v22 = vunpack.i.h.bf16 %v9697_v55 }
 0x762   :  { %v16088_v50 = vsel %vm6636_vm4, %v6101_v15, %v18855_v59  ;;  %v1538_v51 = vmul.f32 %v18858_v38, %v18857_v34  ;;  %v4671_v62 = vadd.f32 %v18859_v6, %v4622_v57  ;;  %v9294_v45 = vld [vmem:[%s17216_s12 + $0xc0] sm:$0xff]  ;;  %v1666_v15 = vadd.f32 %v1650_v42, %v1537_v60  ;;  %v18861_v9 = vld [vmem:[#allocation346_spill] sm:$0xff]  ;;  %7660 = vrot.lane.b32.xlu2 %v4831_v23, %s9947_s24  ;;  %v18865_v42 = vld [vmem:[#allocation352_spill] sm:$0xff] }
 0x763   :  { %9901 = vrot.lane.b32.xlu0 %v18853_v36, %s9946_s18  ;;  %v18856_v36 = vld [vmem:[#allocation48_spill] sm:$0xff]  ;;  %v4627_v59 = vadd.f32 %v18861_v9, %v18860_v16  ;;  %v18862_v57 = vld [vmem:[#allocation334_spill] sm:$0xff]  ;;  %v18864_v60 = vpack.c.bf16 %v15944_v17, %v15939_v11  ;;  %v4832_v9 = vmax.f32 %v4816_v56, 0.0  ;;  %v4833_v38 = vmax.f32 %v4817_v0, 0.0  ;;  %7492 = vmatpush.bf16.msra.mxu0 %v9315_v48  ;;  %v9306_v23 = vld [vmem:[%s17216_s12 + $0x120] sm:$0xff] }
 0x764   :  { %v16092_v40 = vmul.f32 %v18856_v36, %v15962_v4  ;;  %v4818_v36 = vadd.f32 %v16033_v46, %v4798_v37  ;;  %v4799_v6 = vmul.f32 %v15977_v63, %v18862_v57  ;;  %v4720_v61 = vadd.f32 %v18863_v8, %v4671_v62  ;;  %v18866_v37 = vld [vmem:[#allocation351_spill] sm:$0xff]  ;;  %7399 = vmatpush.bf16.msra.mxu2 %v9294_v45  ;;  %v16120_v8 = vpop.permute.xlu2 %9746  ;;  %v18869_v56 = vld [vmem:[#allocation212_spill] sm:$0xff]  ;;  %v18871_v45 = vld [vmem:[#allocation309_spill] sm:$0xff] }
 0x765   :  { %7263 = vmatmul.bf16.gmra.mxu3 %v18864_v60  ;;  %v4632_v16 = vadd.f32 %v18866_v37, %v18865_v42  ;;  %v4676_v49 = vadd.f32 %v18867_v20, %v4627_v59  ;;  %v9694_v57 = vunpack.i.h.bf16 %v9692_v30  ;;  %v9693_v4 = vunpack.i.l.bf16 %v9692_v30  ;;  %18868 = vst [vmem:[#allocation109_spill] sm:$0xff] %v16120_v8  ;;  %v18870_v20 = vld [vmem:[#allocation220_spill] sm:$0xff]  ;;  %v18872_v60 = vld [vmem:[#allocation338_spill] sm:$0xff]  ;;  %v18873_v37 = vld [vmem:[#allocation315_spill] sm:$0xff] }
 0x766   :  { %v17689_v17 = vunpack.i.l.bf16 %v16120_v8  ;;  %v6102_v0 = vmul.f32 %v18752_v26, %v18869_v56  ;;  %v6103_v62 = vmul.f32 %v18745_v7, %v18870_v20  ;;  %v4834_v48 = vmax.f32 %v4818_v36, 0.0  ;;  %7444 = vmatpush.bf16.msra.mxu3 %v9306_v23  ;;  %v18878_v20 = vld [vmem:[#allocation166_spill] sm:$0xff] }
 0x767   :  { %v4819_v30 = vadd.f32 %v16033_v46, %v4799_v6  ;;  %v4820_v55 = vadd.f32 %v16033_v46, %v4800_v31  ;;  %v4769_v59 = vadd.f32 %v18871_v45, %v4720_v61  ;;  %v4801_v42 = vmul.f32 %v15977_v63, %v18872_v60  ;;  %v16139_v26 = vpop.permute.xlu0 %9706  ;;  %v16141_v56 = vpop.permute.xlu1 %9711 }
 0x768   :  { %7664 = vrot.lane.b32.xlu1 %v4833_v38, %s9947_s24  ;;  %v4725_v11 = vadd.f32 %v18873_v37, %v4676_v49  ;;  %v16146_v7 = vsel %vm6636_vm4, %v6102_v0, %v17689_v17  ;;  %v18875_v61 = vunpack.i.h.bf16 %v16120_v8  ;;  %v18876_v36 = vunpack.i.l.bf16 %v15825_v54  ;;  %v9321_v0 = vld [vmem:[%s17216_s12 + $0x198] sm:$0xff]  ;;  %v18881_v37 = vld [vmem:[#allocation43_spill] sm:$0xff] }
 0x769   :  { %18874 = vst [vmem:[#allocation261_spill] sm:$0xff] %v16146_v7  ;;  %v18877_v49 = vunpack.i.h.bf16 %v15825_v54  ;;  %v6672_v23 = vsel %vm1373_vm0, %v9694_v57, %v9699_v22  ;;  %v18879_v45 = vrot.slane %v18878_v20, 1  ;;  %v18882_v54 = vld [vmem:[#allocation32_spill] sm:$0xff]  ;;  %v18885_v22 = vld [vmem:[#allocation55_spill] sm:$0xff]  ;;  %v4802_v8 = vmul.f32 %v15977_v63, %v4769_v59  ;;  %7543 = vmatpush.bf16.msra.mxu1 %v9321_v0 }
 0x76a   :  { %v16151_v31 = vsel %vm6636_vm4, %v6103_v62, %v18875_v61  ;;  %v6655_v38 = vsel %vm4129_vm3, %v18876_v36, %v9693_v4  ;;  %v18880_v62 = vrot.slane %v18786_v28, 1  ;;  %v1812_v61 = vmul.f32 %v18882_v54, %v18881_v37  ;;  %v18883_v36 = vld [vmem:[#allocation262_spill] sm:$0xff]  ;;  %v18886_v20 = vld [vmem:[#allocation304_spill] sm:$0xff]  ;;  %7666 = vrot.lane.b32.xlu2 %v4834_v48, %s9947_s24  ;;  %v9314_v48 = vld [vmem:[%s17216_s12 + $0x160] sm:$0xff] }
 0x76b   :  { %7662 = vrot.lane.b32.xlu0 %v4832_v9, %s9947_s24  ;;  %v6656_v6 = vsel %vm4129_vm3, %v18877_v49, %v9694_v57  ;;  %v6671_v9 = vsel %vm1373_vm0, %v9693_v4, %v9698_v14  ;;  %v4681_v49 = vadd.f32 %v18883_v36, %v4632_v16  ;;  %v18884_v4 = vld [vmem:[#allocation259_spill] sm:$0xff]  ;;  %v1941_v17 = vmul.f32 %v18885_v22, %v18857_v34  ;;  %v18888_v54 = vld [vmem:[#allocation330_spill] sm:$0xff] }
 0x76c   :  { %v16170_v60 = vsel %vm1698_vm2, %v18880_v62, %v18879_v45  ;;  %v1667_v57 = vadd.f32 %v18884_v4, %v1538_v51  ;;  %v4774_v27 = vadd.f32 %v18886_v20, %v4725_v11  ;;  %v18887_v45 = vld [vmem:[#allocation317_spill] sm:$0xff]  ;;  %v6741_v16 = vpack.c.bf16 %v6656_v6, %v6655_v38  ;;  %v16187_v34 = vpop.permute.xlu2 %9761  ;;  %7493 = vmatpush.bf16.msra.mxu0 %v9314_v48 }
 0x76d   :  { %v4803_v62 = vmul.f32 %v15977_v63, %v18887_v45  ;;  %v4730_v37 = vadd.f32 %v18888_v54, %v4681_v49  ;;  %v6742_v36 = vpack.c.bf16 %v6672_v23, %v6671_v9  ;;  %v1828_v14 = vadd.f32 %v1812_v61, %v1666_v15  ;;  %v18889_v38 = vld [vmem:[#allocation213_spill] sm:$0xff]  ;;  %v18890_v15 = vld [vmem:[#allocation215_spill] sm:$0xff] }
 0x76e   :  { %v4835_v7 = vmax.f32 %v4819_v30, 0.0  ;;  %v4836_v51 = vmax.f32 %v4820_v55, 0.0  ;;  %v4821_v4 = vadd.f32 %v16033_v46, %v4801_v42  ;;  %v17694_v59 = vunpack.i.h.bf16 %v16187_v34  ;;  %v18891_v55 = vld [vmem:[#allocation356_spill] sm:$0xff]  ;;  %v18892_v42 = vld [vmem:[#allocation355_spill] sm:$0xff]  ;;  %v18893_v61 = vld [vmem:[#allocation329_spill] sm:$0xff] }
 0x76f   :  { %v17695_v11 = vunpack.i.l.bf16 %v16187_v34  ;;  %7307 = vmatmul.bf16.gmra.mxu0 %v6741_v16  ;;  %7356 = vmatmul.bf16.gmra.mxu1 %v6742_v36  ;;  %v6104_v6 = vmul.f32 %v18774_v52, %v18889_v38  ;;  %v6105_v30 = vmul.f32 %v15393_v3, %v18890_v15  ;;  %v4637_v9 = vadd.f32 %v18892_v42, %v18891_v55  ;;  %v16206_v22 = vpop.permute.xlu0 %9721  ;;  %v16208_v52 = vpop.permute.xlu1 %9726  ;;  %v18896_v45 = vld [vmem:[#allocation63_spill] sm:$0xff]  ;;  %v18897_v16 = vld [vmem:[#allocation289_spill] sm:$0xff]  ;;  %v18898_v38 = vld [vmem:[#allocation222_spill] sm:$0xff] }
 0x770   :  { %v4822_v23 = vadd.f32 %v16033_v46, %v4802_v8  ;;  %v4804_v0 = vmul.f32 %v15977_v63, %v4774_v27  ;;  %7670 = vrot.lane.b32.xlu1 %v4836_v51, %s9947_s24  ;;  %v4823_v20 = vadd.f32 %v16033_v46, %v4803_v62  ;;  %v4779_v49 = vadd.f32 %v18893_v61, %v4730_v37  ;;  %v18900_v42 = vld [vmem:[#allocation350_spill] sm:$0xff] }
 0x771   :  { %v16213_v3 = vsel %vm6636_vm4, %v6104_v6, %v17695_v11  ;;  %v16218_v27 = vsel %vm6636_vm4, %v6105_v30, %v17694_v59  ;;  %v18894_v8 = vrot.slane %v18786_v28, 1  ;;  %v16230_v62 = vmul.f32 %v18896_v45, %v15925_v5  ;;  %v18899_v30 = vld [vmem:[#allocation366_spill] sm:$0xff] }
 0x772   :  { %v4837_v54 = vmax.f32 %v4821_v4, 0.0  ;;  %v4686_v36 = vadd.f32 %v18897_v16, %v4637_v9  ;;  %v16235_v51 = vadd.f32 %v15919_v41, %v15954_v58  ;;  %v1957_v48 = vadd.f32 %v1941_v17, %v1828_v14  ;;  %v18902_v58 = vld [vmem:[#allocation361_spill] sm:$0xff]  ;;  %v18903_v41 = vld [vmem:[#allocation283_spill] sm:$0xff] }
 0x773   :  { %7668 = vrot.lane.b32.xlu0 %v4835_v7, %s9947_s24  ;;  %v18895_v7 = vrot.slane %v15843_v25, 1  ;;  %v1829_v6 = vadd.f32 %v18898_v38, %v1667_v57  ;;  %v4824_v35 = vadd.f32 %v16033_v46, %v4804_v0  ;;  %v4805_v55 = vmul.f32 %v15977_v63, %v18899_v30 }
 0x774   :  { %v4735_v61 = vadd.f32 %v18900_v42, %v4686_v36  ;;  %v18901_v4 = vpack.c.bf16 %v16028_v39, %v16023_v29  ;;  %7672 = vrot.lane.b32.xlu2 %v4837_v54, %s9947_s24  ;;  %v4642_v17 = vadd.f32 %v18903_v41, %v18902_v58  ;;  %v4839_v14 = vmax.f32 %v4823_v20, 0.0  ;;  %v16255_v16 = vpop.permute.xlu2 %9776  ;;  %v9305_v20 = vld [vmem:[%s17216_s12 + $0x118] sm:$0xff]  ;;  %v18907_v42 = vld [vmem:[#allocation271_spill] sm:$0xff]  ;;  %v18908_v41 = vld [vmem:[#allocation365_spill] sm:$0xff] }
 0x775   :  { %v16226_v37 = vsel %vm1698_vm2, %v18895_v7, %v18894_v8  ;;  %v4806_v57 = vmul.f32 %v15977_v63, %v4779_v49  ;;  %v4838_v9 = vmax.f32 %v4822_v23, 0.0  ;;  %v9709_v0 = vunpack.i.h.bf16 %v16139_v26  ;;  %v18904_v49 = vld [vmem:[#allocation223_spill] sm:$0xff]  ;;  %v18905_v54 = vld [vmem:[#allocation216_spill] sm:$0xff]  ;;  %7445 = vmatpush.bf16.msra.mxu3 %v9305_v20 }
 0x776   :  { %7268 = vmatmul.bf16.gmra.mxu3 %v18901_v4  ;;  %v9708_v8 = vunpack.i.l.bf16 %v16139_v26  ;;  %v9714_v7 = vunpack.i.h.bf16 %v16141_v56  ;;  %v9713_v45 = vunpack.i.l.bf16 %v16141_v56  ;;  %v17696_v29 = vunpack.i.h.bf16 %v16255_v16  ;;  %v18906_v36 = vld [vmem:[#allocation224_spill] sm:$0xff]  ;;  %v18911_v20 = vld [vmem:[#allocation51_spill] sm:$0xff] }
 0x777   :  { %v17697_v39 = vunpack.i.l.bf16 %v16255_v16  ;;  %v6106_v23 = vmul.f32 %v18812_v53, %v18904_v49  ;;  %v6107_v26 = vmul.f32 %v18800_v32, %v18905_v54  ;;  %v2230_v38 = vadd.f32 %v18906_v36, %v1957_v48  ;;  %v16273_v11 = vpop.permute.xlu0 %9736  ;;  %v16275_v53 = vpop.permute.xlu1 %9741  ;;  %v18913_v36 = vld [vmem:[#allocation244_spill] sm:$0xff] }
 0x778   :  { %v4840_v30 = vmax.f32 %v4824_v35, 0.0  ;;  %v4825_v56 = vadd.f32 %v16033_v46, %v4805_v55  ;;  %v4784_v4 = vadd.f32 %v18907_v42, %v4735_v61  ;;  %7676 = vrot.lane.b32.xlu1 %v4839_v14, %s9947_s24  ;;  %v4826_v58 = vadd.f32 %v16033_v46, %v4806_v57 }
 0x779   :  { %v4691_v59 = vadd.f32 %v18908_v41, %v4642_v17  ;;  %v16280_v32 = vsel %vm6636_vm4, %v6106_v23, %v17697_v39  ;;  %v16285_v48 = vsel %vm6636_vm4, %v6107_v26, %v17696_v29  ;;  %v18909_v35 = vunpack.i.l.bf16 %v15896_v44  ;;  %v18912_v23 = vld [vmem:[#allocation268_spill] sm:$0xff]  ;;  %v18915_v41 = vld [vmem:[#allocation46_spill] sm:$0xff]  ;;  %v18919_v29 = vld [vmem:[#allocation167_spill] sm:$0xff] }
 0x77a   :  { %v18910_v61 = vunpack.i.h.bf16 %v15896_v44  ;;  %v6673_v14 = vsel %vm1373_vm0, %v9708_v8, %v9713_v45  ;;  %v6674_v57 = vsel %vm1373_vm0, %v9709_v0, %v9714_v7  ;;  %v1823_v49 = vmul.f32 %v18911_v20, %v16226_v37  ;;  %v18914_v44 = vld [vmem:[#allocation169_spill] sm:$0xff]  ;;  %v18920_v39 = vld [vmem:[#allocation68_spill] sm:$0xff] }
 0x77b   :  { %7674 = vrot.lane.b32.xlu0 %v4838_v9, %s9947_s24  ;;  %v6657_v55 = vsel %vm4129_vm3, %v18909_v35, %v9708_v8  ;;  %v1678_v9 = vadd.f32 %v15892_v10, %v15989_v13  ;;  %v4807_v54 = vmul.f32 %v15977_v63, %v18912_v23  ;;  %v2603_v42 = vmul.f32 %v18914_v44, %v18913_v36  ;;  %v18916_v45 = vld [vmem:[#allocation229_spill] sm:$0xff]  ;;  %v18917_v10 = vld [vmem:[#allocation286_spill] sm:$0xff] }
 0x77c   :  { %v6658_v17 = vsel %vm4129_vm3, %v18910_v61, %v9709_v0  ;;  %v1824_v8 = vmul.f32 %v18915_v41, %v16170_v60  ;;  %v1958_v0 = vadd.f32 %v18916_v45, %v1829_v6  ;;  %v4808_v7 = vmul.f32 %v15977_v63, %v4784_v4  ;;  %7678 = vrot.lane.b32.xlu2 %v4840_v30, %s9947_s24  ;;  %v18918_v35 = vld [vmem:[#allocation242_spill] sm:$0xff]  ;;  %v18921_v36 = vld [vmem:[#allocation237_spill] sm:$0xff]  ;;  %v16316_v41 = vpop.permute.xlu2 %9791 }
 0x77d   :  { %v4740_v13 = vadd.f32 %v18917_v10, %v4691_v59  ;;  %v4809_v61 = vmul.f32 %v15977_v63, %v18918_v35  ;;  %v6748_v20 = vpack.c.bf16 %v6658_v17, %v6657_v55  ;;  %v6749_v23 = vpack.c.bf16 %v6674_v57, %v6673_v14  ;;  %v18922_v45 = vld [vmem:[#allocation250_spill] sm:$0xff]  ;;  %v18924_v55 = vld [vmem:[#allocation236_spill] sm:$0xff]  ;;  %v9320_v14 = vld [vmem:[%s17216_s12 + $0x190] sm:$0xff] }
 0x77e   :  { %v1953_v26 = vmul.f32 %v18920_v39, %v18919_v29  ;;  %v2359_v44 = vadd.f32 %v18921_v36, %v2230_v38  ;;  %v4841_v15 = vmax.f32 %v4825_v56, 0.0  ;;  %v4842_v6 = vmax.f32 %v4826_v58, 0.0  ;;  %v9313_v39 = vld [vmem:[%s17216_s12 + $0x158] sm:$0xff]  ;;  %v18923_v38 = vld [vmem:[#allocation170_spill] sm:$0xff]  ;;  %7544 = vmatpush.bf16.msra.mxu1 %v9320_v14 }
 0x77f   :  { %v4827_v4 = vadd.f32 %v16033_v46, %v4807_v54  ;;  %v4789_v30 = vadd.f32 %v18922_v45, %v4740_v13  ;;  %v9794_v59 = vunpack.i.h.bf16 %v16316_v41  ;;  %v9793_v10 = vunpack.i.l.bf16 %v16316_v41  ;;  %7312 = vmatmul.bf16.gmra.mxu0 %v6748_v20  ;;  %7361 = vmatmul.bf16.gmra.mxu1 %v6749_v23  ;;  %v18926_v13 = vld [vmem:[#allocation171_spill] sm:$0xff]  ;;  %v18928_v36 = vld [vmem:[#allocation254_spill] sm:$0xff] }
 0x780   :  { %v2605_v56 = vmul.f32 %v18923_v38, %v15497_v2  ;;  %v1838_v58 = vadd.f32 %v16092_v40, %v15812_v12  ;;  %v2231_v17 = vadd.f32 %v18924_v55, %v1958_v0  ;;  %7682 = vrot.lane.b32.xlu1 %v4842_v6, %s9947_s24  ;;  %v4828_v57 = vadd.f32 %v16033_v46, %v4808_v7  ;;  %v16345_v40 = vpop.permute.xlu0 %9751  ;;  %v18925_v0 = vld [vmem:[#allocation241_spill] sm:$0xff] }
 0x781   :  { %v4829_v54 = vadd.f32 %v16033_v46, %v4809_v61  ;;  %v6686_v2 = vsel %vm6636_vm4, %v14896_v21, %v9794_v59  ;;  %v6685_v12 = vsel %vm6636_vm4, %v18838_v24, %v9793_v10  ;;  %7494 = vmatpush.bf16.msra.mxu0 %v9313_v39  ;;  %v2601_v7 = vmul.f32 %v18926_v13, %v18925_v0  ;;  %v18927_v61 = vld [vmem:[#allocation110_spill] sm:$0xff]  ;;  %v18936_v0 = vld [vmem:[#allocation141_spill] sm:$0xff] }
 0x782   :  { %v2619_v35 = vadd.f32 %v2603_v42, %v15564_v47  ;;  %v16354_v20 = vmul.f32 %v18927_v61, %v16226_v37  ;;  %v6736_v21 = vpack.c.bf16 %v6686_v2, %v6685_v12  ;;  %v1840_v23 = vadd.f32 %v1824_v8, %v1678_v9  ;;  %v18930_v42 = vld [vmem:[#allocation221_spill] sm:$0xff]  ;;  %v18931_v2 = vld [vmem:[#allocation182_spill] sm:$0xff]  ;;  %v18932_v9 = vld [vmem:[#allocation240_spill] sm:$0xff] }
 0x783   :  { %7680 = vrot.lane.b32.xlu0 %v4841_v15, %s9947_s24  ;;  %v16347_v15 = vpop.permute.xlu1 %9756  ;;  %v2488_v6 = vadd.f32 %v18928_v36, %v2359_v44  ;;  %v4843_v24 = vmax.f32 %v4827_v4, 0.0  ;;  %v4810_v45 = vmul.f32 %v15977_v63, %v4789_v30  ;;  %v1967_v38 = vadd.f32 %v15970_v18, %v1838_v58  ;;  %v18933_v8 = vld [vmem:[#allocation192_spill] sm:$0xff]  ;;  %v18934_v30 = vld [vmem:[#allocation150_spill] sm:$0xff] }
 0x784   :  { %v1839_v39 = vadd.f32 %v1823_v49, %v16235_v51  ;;  %v2360_v55 = vadd.f32 %v15522_v1, %v2231_v17  ;;  %v18929_v47 = vpack.c.bf16 %v16088_v50, %v16083_v33  ;;  %7400 = vmatmul.bf16.vlgmr.msra.gmra.mxu2 %v6736_v21  ;;  %v2730_v14 = vmul.f32 %v18931_v2, %v18930_v42  ;;  %v16373_v50 = vpop.permute.xlu2 %9806  ;;  %v18935_v12 = vld [vmem:[#allocation112_spill] sm:$0xff]  ;;  %v18942_v42 = vld [vmem:[#allocation239_spill] sm:$0xff]  ;;  %v18943_v2 = vld [vmem:[#allocation181_spill] sm:$0xff] }
 0x785   :  { %v2732_v44 = vmul.f32 %v18933_v8, %v18932_v9  ;;  %v4845_v4 = vmax.f32 %v4829_v54, 0.0  ;;  %7684 = vrot.lane.b32.xlu2 %v4843_v24, %s9947_s24  ;;  %v4844_v63 = vmax.f32 %v4828_v57, 0.0  ;;  %v9724_v18 = vunpack.i.h.bf16 %v16206_v22  ;;  %v18940_v24 = vld [vmem:[#allocation232_spill] sm:$0xff]  ;;  %v18944_v9 = vld [vmem:[#allocation247_spill] sm:$0xff]  ;;  %v18945_v8 = vld [vmem:[#allocation37_spill] sm:$0xff] }
 0x786   :  { %7273 = vmatmul.bf16.gmra.mxu3 %v18929_v47  ;;  %v9723_v51 = vunpack.i.l.bf16 %v16206_v22  ;;  %v9729_v1 = vunpack.i.h.bf16 %v16208_v52  ;;  %v9728_v33 = vunpack.i.l.bf16 %v16208_v52  ;;  %v16376_v49 = vadd.f32 %v2605_v56, %v15696_v19  ;;  %v9304_v22 = vld [vmem:[%s17216_s12 + $0x110] sm:$0xff] }
 0x787   :  { %v16380_v58 = vmul.f32 %v18934_v30, %v15925_v5  ;;  %v2617_v17 = vadd.f32 %v2601_v7, %v2488_v6  ;;  %v4830_v57 = vadd.f32 %v16033_v46, %v4810_v45  ;;  %v1969_v54 = vadd.f32 %v1953_v26, %v1840_v23  ;;  %v18937_v46 = vld [vmem:[#allocation257_spill] sm:$0xff]  ;;  %7446 = vmatpush.bf16.msra.mxu3 %v9304_v22  ;;  %v18941_v45 = vld [vmem:[#allocation186_spill] sm:$0xff]  ;;  %v18950_v30 = vld [vmem:[#allocation235_spill] sm:$0xff] }
 0x788   :  { %v2354_v52 = vmul.f32 %v18935_v12, %v16170_v60  ;;  %v16390_v13 = vmul.f32 %v18936_v0, %v18919_v29  ;;  %7688 = vrot.lane.b32.xlu1 %v4845_v4, %s9947_s24  ;;  %v1968_v19 = vadd.f32 %v16230_v62, %v1839_v39  ;;  %v2489_v56 = vadd.f32 %v18937_v46, %v2360_v55  ;;  %v16396_v61 = vpop.permute.xlu0 %9766  ;;  %v18951_v0 = vld [vmem:[#allocation255_spill] sm:$0xff] }
 0x789   :  { %v2746_v5 = vadd.f32 %v2730_v14, %v2617_v17  ;;  %v2748_v7 = vadd.f32 %v2732_v44, %v2619_v35  ;;  %v18938_v21 = vunpack.i.l.bf16 %v15995_v43  ;;  %v18939_v23 = vunpack.i.h.bf16 %v15995_v43  ;;  %v18946_v44 = vld [vmem:[#allocation276_spill] sm:$0xff]  ;;  %v18952_v46 = vld [vmem:[#allocation187_spill] sm:$0xff] }
 0x78a   :  { %v6675_v6 = vsel %vm1373_vm0, %v9723_v51, %v9728_v33  ;;  %v6676_v62 = vsel %vm1373_vm0, %v9724_v18, %v9729_v1  ;;  %v2731_v35 = vmul.f32 %v18941_v45, %v18940_v24  ;;  %v4846_v39 = vmax.f32 %v4830_v57, 0.0  ;;  %v18953_v24 = vld [vmem:[#allocation97_spill] sm:$0xff]  ;;  %v18954_v45 = vld [vmem:[#allocation196_spill] sm:$0xff] }
 0x78b   :  { %7686 = vrot.lane.b32.xlu0 %v4844_v63, %s9947_s24  ;;  %v16398_v26 = vpop.permute.xlu1 %9771  ;;  %v6659_v29 = vsel %vm4129_vm3, %v18938_v21, %v9723_v51  ;;  %v6660_v36 = vsel %vm4129_vm3, %v18939_v23, %v9724_v18  ;;  %v17698_v55 = vunpack.i.h.bf16 %v16373_v50  ;;  %v9808_v47 = vunpack.i.l.bf16 %v16373_v50  ;;  %v18947_v63 = vld [vmem:[#allocation266_spill] sm:$0xff]  ;;  %v18948_v51 = vld [vmem:[#allocation103_spill] sm:$0xff] }
 0x78c   :  { %v2604_v14 = vmul.f32 %v18943_v2, %v18942_v42  ;;  %v2606_v43 = vmul.f32 %v18945_v8, %v18944_v9  ;;  %v2240_v4 = vadd.f32 %v18946_v44, %v1967_v38  ;;  %v2352_v33 = vmul.f32 %v18948_v51, %v18947_v63  ;;  %v18949_v18 = vld [vmem:[#allocation238_spill] sm:$0xff]  ;;  %v16426_v38 = vpop.permute.xlu2 %9821  ;;  %v18961_v44 = vld [vmem:[#allocation127_spill] sm:$0xff] }
 0x78d   :  { %v2241_v1 = vadd.f32 %v18949_v18, %v1968_v19  ;;  %v2618_v17 = vadd.f32 %v18950_v30, %v2489_v56  ;;  %7690 = vrot.lane.b32.xlu2 %v4846_v39, %s9947_s24  ;;  %v6755_v57 = vpack.c.bf16 %v6660_v36, %v6659_v29  ;;  %v6756_v22 = vpack.c.bf16 %v6676_v62, %v6675_v6  ;;  %v18955_v19 = vld [vmem:[#allocation245_spill] sm:$0xff]  ;;  %v18957_v36 = vld [vmem:[#allocation134_spill] sm:$0xff] }
 0x78e   :  { %v2762_v12 = vmax.f32 %v2746_v5, 0.0  ;;  %v2733_v21 = vmul.f32 %v18952_v46, %v18951_v0  ;;  %v2764_v23 = vmax.f32 %v2748_v7, 0.0  ;;  %v2735_v42 = vmul.f32 %v18954_v45, %v18953_v24  ;;  %v18956_v5 = vld [vmem:[#allocation243_spill] sm:$0xff]  ;;  %v18958_v62 = vld [vmem:[#allocation102_spill] sm:$0xff]  ;;  %v18962_v30 = vld [vmem:[#allocation225_spill] sm:$0xff] }
 0x78f   :  { %v2747_v2 = vadd.f32 %v2731_v35, %v2618_v17  ;;  %7317 = vmatmul.bf16.gmra.mxu0 %v6755_v57  ;;  %7366 = vmatmul.bf16.gmra.mxu1 %v6756_v22  ;;  %v6687_v56 = vsel %vm6636_vm4, %v18955_v19, %v9808_v47  ;;  %v6688_v29 = vsel %vm6636_vm4, %v18956_v5, %v17698_v55  ;;  %v9312_v7 = vld [vmem:[%s17216_s12 + $0x150] sm:$0xff]  ;;  %v18959_v39 = vld [vmem:[#allocation22_spill] sm:$0xff]  ;;  %v18963_v17 = vld [vmem:[#allocation49_spill] sm:$0xff] }
 0x790   :  { %v2620_v6 = vadd.f32 %v2604_v14, %v18957_v36  ;;  %v2622_v35 = vadd.f32 %v2606_v43, %v18958_v62  ;;  %v2368_v9 = vadd.f32 %v2352_v33, %v18959_v39  ;;  %7788 = vrot.lane.b32.xlu1 %v2762_v12, %s9945_s22  ;;  %v18960_v8 = vld [vmem:[#allocation174_spill] sm:$0xff]  ;;  %v16448_v18 = vadd.f32 %v16354_v20, %v2240_v4  ;;  %v18965_v14 = vld [vmem:[#allocation140_spill] sm:$0xff]  ;;  %v16454_v43 = vpop.permute.xlu0 %9781  ;;  %v18968_v20 = vld [vmem:[#allocation269_spill] sm:$0xff] }
 0x791   :  { %v2210_v51 = vsel %vm1373_vm0, %v18961_v44, %v18960_v8  ;;  %v2607_v57 = vmul.f32 %v18963_v17, %v18962_v30  ;;  %v18964_v22 = vld [vmem:[#allocation230_spill] sm:$0xff]  ;;  %7495 = vmatpush.bf16.msra.mxu0 %v9312_v7  ;;  %v2370_v12 = vadd.f32 %v2354_v52, %v2241_v1  ;;  %v6743_v24 = vpack.c.bf16 %v6688_v29, %v6687_v56  ;;  %v18967_v19 = vld [vmem:[#allocation52_spill] sm:$0xff]  ;;  %v18969_v4 = vld [vmem:[#allocation71_spill] sm:$0xff] }
 0x792   :  { %v2481_v0 = vmul.f32 %v18965_v14, %v18964_v22  ;;  %v2749_v46 = vadd.f32 %v2733_v21, %v2620_v6  ;;  %v18966_v45 = vld [vmem:[#allocation258_spill] sm:$0xff]  ;;  %v2609_v36 = vmul.f32 %v18969_v4, %v18968_v20  ;;  %v2763_v62 = vmax.f32 %v2747_v2, 0.0  ;;  %v18970_v39 = vld [vmem:[#allocation227_spill] sm:$0xff]  ;;  %v18971_v8 = vld [vmem:[#allocation85_spill] sm:$0xff] }
 0x793   :  { %7792 = vrot.lane.b32.xlu0 %v2764_v23, %s9945_s22  ;;  %v16456_v33 = vpop.permute.xlu1 %9786  ;;  %v2751_v23 = vadd.f32 %v2735_v42, %v2622_v35  ;;  %v2608_v5 = vmul.f32 %v18967_v19, %v18966_v45  ;;  %v2734_v44 = vmul.f32 %v18971_v8, %v18970_v39  ;;  %v2242_v30 = vadd.f32 %v2210_v51, %v1969_v54  ;;  %v18972_v22 = vld [vmem:[#allocation137_spill] sm:$0xff]  ;;  %v18976_v21 = vld [vmem:[#allocation8_spill] sm:$0xff]  ;;  %v18977_v56 = vld [vmem:[#allocation198_spill] sm:$0xff] }
 0x794   :  { %v2497_v17 = vadd.f32 %v2481_v0, %v2368_v9  ;;  %v18973_v14 = vld [vmem:[#allocation189_spill] sm:$0xff]  ;;  %7405 = vmatmul.bf16.gmra.mxu2 %v6743_v24  ;;  %v2623_v42 = vadd.f32 %v2607_v57, %v18976_v21  ;;  %v2738_v29 = vmul.f32 %v18977_v56, %v18947_v63  ;;  %v9739_v2 = vunpack.i.h.bf16 %v16273_v11  ;;  %v18978_v51 = vld [vmem:[#allocation260_spill] sm:$0xff]  ;;  %v18981_v19 = vld [vmem:[#allocation34_spill] sm:$0xff] }
 0x795   :  { %v2736_v55 = vmul.f32 %v18973_v14, %v18972_v22  ;;  %v18974_v52 = vld [vmem:[#allocation261_spill] sm:$0xff]  ;;  %v9738_v7 = vunpack.i.l.bf16 %v16273_v11  ;;  %7790 = vrot.lane.b32.xlu2 %v2763_v62, %s9945_s22  ;;  %v2765_v54 = vmax.f32 %v2749_v46, 0.0  ;;  %v2767_v6 = vmax.f32 %v2751_v23, 0.0  ;;  %v18979_v57 = vld [vmem:[#allocation40_spill] sm:$0xff]  ;;  %v9303_v11 = vld [vmem:[%s17216_s12 + $0x108] sm:$0xff] }
 0x796   :  { %v18975_v1 = vpack.c.bf16 %v16151_v31, %v18974_v52  ;;  %v9744_v35 = vunpack.i.h.bf16 %v16275_v53  ;;  %v9743_v9 = vunpack.i.l.bf16 %v16275_v53  ;;  %v16477_v31 = vpop.permute.xlu2 %9836  ;;  %v2624_v0 = vadd.f32 %v2608_v5, %v18978_v51  ;;  %v9319_v46 = vld [vmem:[%s17216_s12 + $0x188] sm:$0xff]  ;;  %v18980_v53 = vld [vmem:[#allocation183_spill] sm:$0xff]  ;;  %7447 = vmatpush.bf16.msra.mxu3 %v9303_v11 }
 0x797   :  { %v2625_v24 = vadd.f32 %v2609_v36, %v18979_v57  ;;  %v2499_v63 = vadd.f32 %v16390_v13, %v2370_v12  ;;  %v2750_v45 = vadd.f32 %v2734_v44, %v16376_v49  ;;  %v2610_v23 = vmul.f32 %v18980_v53, %v15843_v25  ;;  %v18982_v20 = vld [vmem:[#allocation111_spill] sm:$0xff]  ;;  %v18983_v36 = vld [vmem:[#allocation138_spill] sm:$0xff]  ;;  %7545 = vmatpush.bf16.msra.mxu1 %v9319_v46  ;;  %v18991_v53 = vld [vmem:[#allocation200_spill] sm:$0xff] }
 0x798   :  { %7278 = vmatmul.bf16.gmra.mxu3 %v18975_v1  ;;  %v2355_v5 = vmul.f32 %v18982_v20, %v18981_v19  ;;  %v2752_v4 = vadd.f32 %v2736_v55, %v2623_v42  ;;  %7794 = vrot.lane.b32.xlu1 %v2765_v54, %s9945_s22  ;;  %v16495_v13 = vpop.permute.xlu0 %9796  ;;  %v18984_v62 = vunpack.i.l.bf16 %v18983_v36  ;;  %v18985_v8 = vunpack.i.h.bf16 %v18983_v36  ;;  %v18986_v1 = vld [vmem:[#allocation228_spill] sm:$0xff]  ;;  %v18987_v21 = vld [vmem:[#allocation50_spill] sm:$0xff] }
 0x799   :  { %v2754_v49 = vadd.f32 %v2738_v29, %v2625_v24  ;;  %v9799_v55 = vunpack.i.h.bf16 %v16495_v13  ;;  %v9798_v44 = vunpack.i.l.bf16 %v16495_v13  ;;  %v6677_v22 = vsel %vm1373_vm0, %v9738_v7, %v9743_v9  ;;  %v18988_v54 = vld [vmem:[#allocation166_spill] sm:$0xff]  ;;  %v18993_v36 = vld [vmem:[#allocation320_spill] sm:$0xff] }
 0x79a   :  { %v6661_v39 = vsel %vm4129_vm3, %v18984_v62, %v9738_v7  ;;  %v6662_v25 = vsel %vm4129_vm3, %v18985_v8, %v9739_v2  ;;  %v6678_v14 = vsel %vm1373_vm0, %v9739_v2, %v9744_v35  ;;  %v2766_v52 = vmax.f32 %v2750_v45, 0.0  ;;  %v18990_v35 = vld [vmem:[#allocation87_spill] sm:$0xff]  ;;  %v18996_v8 = vld [vmem:[#allocation149_spill] sm:$0xff] }
 0x79b   :  { %7798 = vrot.lane.b32.xlu0 %v2767_v6, %s9945_s22  ;;  %v16497_v12 = vpop.permute.xlu1 %9801  ;;  %v2737_v42 = vmul.f32 %v18987_v21, %v18986_v1  ;;  %v9824_v56 = vunpack.i.h.bf16 %v16426_v38  ;;  %v9823_v29 = vunpack.i.l.bf16 %v16426_v38  ;;  %v18989_v6 = vld [vmem:[#allocation82_spill] sm:$0xff]  ;;  %v2371_v57 = vadd.f32 %v2355_v5, %v2242_v30 }
 0x79c   :  { %v2612_v51 = vmul.f32 %v18989_v6, %v18988_v54  ;;  %v16520_v7 = vsel %vm4129_vm3, %v9793_v10, %v9798_v44  ;;  %v16527_v2 = vsel %vm4129_vm3, %v9794_v59, %v9799_v55  ;;  %v2739_v9 = vmul.f32 %v18990_v35, %v16226_v37  ;;  %v18992_v37 = vld [vmem:[#allocation323_spill] sm:$0xff]  ;;  %v18997_v54 = vld [vmem:[#allocation178_spill] sm:$0xff]  ;;  %v18998_v6 = vld [vmem:[#allocation188_spill] sm:$0xff] }
 0x79d   :  { %v6737_v30 = vpack.c.bf16 %v16527_v2, %v16520_v7  ;;  %7796 = vrot.lane.b32.xlu2 %v2766_v52, %s9945_s22  ;;  %v6762_v24 = vpack.c.bf16 %v6662_v25, %v6661_v39  ;;  %v6763_v45 = vpack.c.bf16 %v6678_v14, %v6677_v22  ;;  %v2626_v11 = vadd.f32 %v2610_v23, %v2497_v17  ;;  %v18994_v23 = vld [vmem:[#allocation66_spill] sm:$0xff]  ;;  %v18995_v39 = vld [vmem:[#allocation179_spill] sm:$0xff] }
 0x79e   :  { %v2768_v10 = vmax.f32 %v2752_v4, 0.0  ;;  %v2770_v46 = vmax.f32 %v2754_v49, 0.0  ;;  %v2741_v20 = vmul.f32 %v18991_v53, %v18981_v19  ;;  %v16536_v41 = vpop.permute.xlu2 %9851  ;;  %v2753_v59 = vadd.f32 %v2737_v42, %v2624_v0  ;;  %v9311_v0 = vld [vmem:[%s17216_s12 + $0x148] sm:$0xff]  ;;  %v9302_v19 = vld [vmem:[%s17216_s12 + $0x100] sm:$0xff] }
 0x79f   :  { %7322 = vmatmul.bf16.gmra.mxu0 %v6762_v24  ;;  %7371 = vmatmul.bf16.gmra.mxu1 %v6763_v45  ;;  %v6689_v5 = vsel %vm6636_vm4, %v18992_v37, %v9823_v29  ;;  %v6690_v17 = vsel %vm6636_vm4, %v18993_v36, %v9824_v56  ;;  %v2611_v4 = vmul.f32 %v18994_v23, %v18786_v28 }
 0x7a0   :  { %v2628_v49 = vadd.f32 %v2612_v51, %v2499_v63  ;;  %7800 = vrot.lane.b32.xlu1 %v2768_v10, %s9945_s22  ;;  %v2498_v62 = vadd.f32 %v16380_v58, %v16448_v18  ;;  %v2484_v25 = vmul.f32 %v18996_v8, %v18995_v39  ;;  %v2755_v28 = vadd.f32 %v2739_v9, %v2626_v11  ;;  %v16560_v63 = vpop.permute.xlu0 %9811  ;;  %v18999_v51 = vld [vmem:[#allocation194_spill] sm:$0xff]  ;;  %v19003_v10 = vld [vmem:[#allocation195_spill] sm:$0xff] }
 0x7a1   :  { %v9814_v52 = vunpack.i.h.bf16 %v16560_v63  ;;  %v9813_v1 = vunpack.i.l.bf16 %v16560_v63  ;;  %v6750_v21 = vpack.c.bf16 %v6690_v17, %v6689_v5  ;;  %7496 = vmatpush.bf16.msra.mxu0 %v9311_v0  ;;  %7448 = vmatpush.bf16.msra.mxu3 %v9302_v19  ;;  %v2613_v58 = vmul.f32 %v18998_v6, %v18997_v54 }
 0x7a2   :  { %v2757_v14 = vadd.f32 %v2741_v20, %v2628_v49  ;;  %v2500_v42 = vadd.f32 %v2484_v25, %v2371_v57  ;;  %v2769_v18 = vmax.f32 %v2753_v59, 0.0  ;;  %v2740_v35 = vmul.f32 %v18999_v51, %v16170_v60  ;;  %v19002_v60 = vld [vmem:[#allocation19_spill] sm:$0xff] }
 0x7a3   :  { %7804 = vrot.lane.b32.xlu0 %v2770_v46, %s9945_s22  ;;  %v16562_v22 = vpop.permute.xlu1 %9816  ;;  %v2627_v9 = vadd.f32 %v2611_v4, %v2498_v62  ;;  %v19000_v24 = vpack.c.bf16 %v16218_v27, %v16213_v3  ;;  %v16578_v45 = vsel %vm4129_vm3, %v9808_v47, %v9813_v1  ;;  %v19001_v57 = vunpack.i.h.bf16 %v16373_v50  ;;  %v19004_v4 = vld [vmem:[#allocation109_spill] sm:$0xff] }
 0x7a4   :  { %7410 = vmatmul.bf16.gmra.mxu2 %v6750_v21  ;;  %v2742_v46 = vmul.f32 %v19003_v10, %v19002_v60  ;;  %v9754_v3 = vunpack.i.h.bf16 %v16345_v40  ;;  %v9753_v27 = vunpack.i.l.bf16 %v16345_v40  ;;  %v2771_v53 = vmax.f32 %v2755_v28, 0.0  ;;  %v9318_v28 = vld [vmem:[%s17216_s12 + $0x180] sm:$0xff] }
 0x7a5   :  { %v16585_v11 = vsel %vm4129_vm3, %v19001_v57, %v9814_v52  ;;  %7802 = vrot.lane.b32.xlu2 %v2769_v18, %s9945_s22  ;;  %v2773_v20 = vmax.f32 %v2757_v14, 0.0  ;;  %v9759_v59 = vunpack.i.h.bf16 %v16347_v15  ;;  %v9758_v50 = vunpack.i.l.bf16 %v16347_v15  ;;  %7546 = vmatpush.bf16.msra.mxu1 %v9318_v28 }
 0x7a6   :  { %v6744_v47 = vpack.c.bf16 %v16585_v11, %v16578_v45  ;;  %v16596_v37 = vpop.permute.xlu2 %9866  ;;  %v2629_v5 = vadd.f32 %v2613_v58, %v2500_v42  ;;  %v2756_v36 = vadd.f32 %v2740_v35, %v2627_v9  ;;  %v19005_v49 = vunpack.i.l.bf16 %v19004_v4 }
 0x7a7   :  { %v19006_v19 = vunpack.i.h.bf16 %v19004_v4  ;;  %v6679_v8 = vsel %vm1373_vm0, %v9753_v27, %v9758_v50  ;;  %v6680_v25 = vsel %vm1373_vm0, %v9754_v3, %v9759_v59  ;;  %v9839_v21 = vunpack.i.h.bf16 %v16477_v31 }
 0x7a8   :  { %7283 = vmatmul.bf16.gmra.mxu3 %v19000_v24  ;;  %7806 = vrot.lane.b32.xlu1 %v2771_v53, %s9945_s22  ;;  %v2758_v40 = vadd.f32 %v2742_v46, %v2629_v5  ;;  %v16600_v17 = vpop.permute.xlu0 %9826  ;;  %v6663_v0 = vsel %vm4129_vm3, %v19005_v49, %v9753_v27  ;;  %v2772_v14 = vmax.f32 %v2756_v36, 0.0  ;;  %v9838_v42 = vunpack.i.l.bf16 %v16477_v31  ;;  %v19008_v24 = vld [vmem:[#allocation327_spill] sm:$0xff] }
 0x7a9   :  { %v6664_v15 = vsel %vm4129_vm3, %v19006_v19, %v9754_v3  ;;  %v9829_v62 = vunpack.i.h.bf16 %v16600_v17  ;;  %v9828_v39 = vunpack.i.l.bf16 %v16600_v17  ;;  %v6770_v18 = vpack.c.bf16 %v6680_v25, %v6679_v8 }
 0x7aa   :  { %v6769_v58 = vpack.c.bf16 %v6664_v15, %v6663_v0  ;;  %v2774_v51 = vmax.f32 %v2758_v40, 0.0  ;;  %v6692_v38 = vsel %vm6636_vm4, %v19008_v24, %v9839_v21  ;;  %v9769_v27 = vunpack.i.h.bf16 %v16396_v61 }
 0x7ab   :  { %7810 = vrot.lane.b32.xlu0 %v2773_v20, %s9945_s22  ;;  %v16602_v23 = vpop.permute.xlu1 %9831  ;;  %v16624_v54 = vsel %vm4129_vm3, %v9823_v29, %v9828_v39  ;;  %v16631_v6 = vsel %vm4129_vm3, %v9824_v56, %v9829_v62  ;;  %v19007_v29 = vld [vmem:[#allocation81_spill] sm:$0xff]  ;;  %v9768_v53 = vunpack.i.l.bf16 %v16396_v61  ;;  %v19009_v20 = vpack.c.bf16 %v16285_v48, %v16280_v32 }
 0x7ac   :  { %v6751_v31 = vpack.c.bf16 %v16631_v6, %v16624_v54  ;;  %v6691_v9 = vsel %vm6636_vm4, %v19007_v29, %v9838_v42  ;;  %v9310_v56 = vld [vmem:[%s17216_s12 + $0x140] sm:$0xff]  ;;  %v9774_v5 = vunpack.i.h.bf16 %v16398_v26  ;;  %v9773_v36 = vunpack.i.l.bf16 %v16398_v26 }
 0x7ad   :  { %7808 = vrot.lane.b32.xlu2 %v2772_v14, %s9945_s22  ;;  %v6757_v3 = vpack.c.bf16 %v6692_v38, %v6691_v9  ;;  %7497 = vmatpush.bf16.msra.mxu0 %v9310_v56  ;;  %v19010_v48 = vunpack.i.l.bf16 %v16187_v34  ;;  %v19011_v4 = vunpack.i.h.bf16 %v16187_v34  ;;  %v9854_v0 = vunpack.i.h.bf16 %v16536_v41  ;;  %v19012_v56 = vld [vmem:[#allocation335_spill] sm:$0xff] }
 0x7ae   :  { %v16636_v35 = vpop.permute.xlu2 %9881  ;;  %v9853_v19 = vunpack.i.l.bf16 %v16536_v41  ;;  %v6681_v26 = vsel %vm1373_vm0, %v9768_v53, %v9773_v36  ;;  %v6682_v25 = vsel %vm1373_vm0, %v9769_v27, %v9774_v5  ;;  %v9803_v45 = vunpack.i.l.bf16 %v16497_v12 }
 0x7af   :  { %7327 = vmatmul.bf16.gmra.mxu0 %v6769_v58  ;;  %7376 = vmatmul.bf16.gmra.mxu1 %v6770_v18  ;;  %v6665_v40 = vsel %vm4129_vm3, %v19010_v48, %v9768_v53  ;;  %v6666_v49 = vsel %vm4129_vm3, %v19011_v4, %v9769_v27  ;;  %v6777_v29 = vpack.c.bf16 %v6682_v25, %v6681_v26  ;;  %v19013_v27 = vld [vmem:[#allocation325_spill] sm:$0xff]  ;;  %v9869_v48 = vunpack.i.h.bf16 %v16596_v37 }
 0x7b0   :  { %7812 = vrot.lane.b32.xlu1 %v2774_v51, %s9945_s22  ;;  %v16646_v57 = vpop.permute.xlu0 %9841  ;;  %v6776_v51 = vpack.c.bf16 %v6666_v49, %v6665_v40  ;;  %v6694_v53 = vsel %vm6636_vm4, %v19013_v27, %v9854_v0  ;;  %v9868_v40 = vunpack.i.l.bf16 %v16596_v37 }
 0x7b1   :  { %v17699_v10 = vunpack.i.h.bf16 %v16646_v57  ;;  %v17700_v46 = vunpack.i.l.bf16 %v16646_v57 }
 0x7b3   :  { %v16648_v60 = vpop.permute.xlu1 %9846  ;;  %v16660_v59 = vsel %vm4129_vm3, %v9838_v42, %v17700_v46  ;;  %v16665_v50 = vsel %vm4129_vm3, %v9839_v21, %v17699_v10 }
 0x7b4   :  { %7415 = vmatmul.bf16.gmra.mxu2 %v6757_v3  ;;  %v6758_v61 = vpack.c.bf16 %v16665_v50, %v16660_v59  ;;  %v6693_v3 = vsel %vm6636_vm4, %v19012_v56, %v9853_v19  ;;  %v19056_v50 = vld [vmem:[#allocation190_spill] sm:$0xff] }
 0x7b6   :  { %v16671_v32 = vpop.permute.xlu2 %9896 }
 0x7b8   :  { %7288 = vmatmul.bf16.gmra.mxu3 %v19009_v20  ;;  %v9857_v15 = vpop.permute.xlu0 %9856  ;;  %v19014_v20 = vld [vmem:[#allocation168_spill] sm:$0xff] }
 0x7b9   :  { %v9859_v28 = vunpack.i.h.bf16 %v9857_v15  ;;  %v9858_v14 = vunpack.i.l.bf16 %v9857_v15  ;;  %v19015_v5 = vmax.f32 %v19014_v20, 0.0  ;;  %v6764_v15 = vpack.c.bf16 %v6694_v53, %v6693_v3 }
 0x7ba   :  { %v19019_v20 = vunpack.i.h.bf16 %v16255_v16 }
 0x7bb   :  { %v9862_v8 = vpop.permute.xlu1 %9861  ;;  %v16684_v58 = vsel %vm4129_vm3, %v9853_v19, %v9858_v14  ;;  %v16687_v34 = vsel %vm4129_vm3, %v9854_v0, %v9859_v28  ;;  %v9784_v0 = vunpack.i.h.bf16 %v16454_v43 }
 0x7bc   :  { %v9864_v21 = vunpack.i.h.bf16 %v9862_v8  ;;  %v9863_v42 = vunpack.i.l.bf16 %v9862_v8  ;;  %v6765_v9 = vpack.c.bf16 %v16687_v34, %v16684_v58 }
 0x7be   :  { %v16690_v18 = vsel %vm1373_vm0, %v9858_v14, %v9863_v42  ;;  %v16693_v41 = vsel %vm1373_vm0, %v9859_v28, %v9864_v21  ;;  %v16699_v38 = vpop.permute.xlu2 %7660  ;;  %v9783_v28 = vunpack.i.l.bf16 %v16454_v43  ;;  %v9789_v42 = vunpack.i.h.bf16 %v16456_v33 }
 0x7bf   :  { %v7836_v36 = vsel %vm6636_vm4, %v19015_v5, %v16699_v38  ;;  %7332 = vmatmul.bf16.gmra.mxu0 %v6776_v51  ;;  %7381 = vmatmul.bf16.gmra.mxu1 %v6777_v29  ;;  %v9788_v51 = vunpack.i.l.bf16 %v16456_v33  ;;  %v19018_v33 = vunpack.i.l.bf16 %v16255_v16  ;;  %v6668_v5 = vsel %vm4129_vm3, %v19019_v20, %v9784_v0 }
 0x7c0   :  { %7884 = vst [vmem:[#allocation2] sm:$0xff] %v7836_v36  ;;  %v9872_v4 = vpop.permute.xlu0 %9871  ;;  %v9884_v36 = vunpack.i.h.bf16 %v16636_v35 }
 0x7c1   :  { %v9874_v8 = vunpack.i.h.bf16 %v9872_v4  ;;  %v9873_v19 = vunpack.i.l.bf16 %v9872_v4  ;;  %v6667_v53 = vsel %vm4129_vm3, %v19018_v33, %v9783_v28  ;;  %v9883_v4 = vunpack.i.l.bf16 %v16636_v35  ;;  %v19039_v35 = vld [vmem:[#allocation163_spill] sm:$0xff] }
 0x7c3   :  { %v9877_v49 = vpop.permute.xlu1 %9876  ;;  %v16717_v14 = vsel %vm4129_vm3, %v9868_v40, %v9873_v19  ;;  %v16720_v37 = vsel %vm4129_vm3, %v9869_v48, %v9874_v8 }
 0x7c4   :  { %v9879_v26 = vunpack.i.h.bf16 %v9877_v49  ;;  %v9878_v25 = vunpack.i.l.bf16 %v9877_v49  ;;  %7420 = vmatmul.bf16.gmra.mxu2 %v6764_v15 }
 0x7c5   :  { %v16740_v27 = vpop.f32.mrf.mxu3 }
 0x7c6   :  { %v16723_v21 = vsel %vm1373_vm0, %v9873_v19, %v9878_v25  ;;  %v16730_v29 = vsel %vm1373_vm0, %v9874_v8, %v9879_v26  ;;  %v16732_v7 = vpop.permute.xlu2 %7666  ;;  %v6683_v8 = vsel %vm1373_vm0, %v9783_v28, %v9788_v51  ;;  %v6684_v19 = vsel %vm1373_vm0, %v9784_v0, %v9789_v42 }
 0x7c7   :  { %v6783_v0 = vpack.c.bf16 %v6668_v5, %v6667_v53  ;;  %v6784_v42 = vpack.c.bf16 %v6684_v19, %v6683_v8  ;;  %v19023_v5 = vld [vmem:[#allocation282_spill] sm:$0xff]  ;;  %v9899_v19 = vunpack.i.h.bf16 %v16671_v32 }
 0x7c8   :  { %7449 = vmatmul.bf16.vlgmr.msra.gmra.mxu3 %v6737_v30  ;;  %v19016_v30 = vld [vmem:[#allocation175_spill] sm:$0xff]  ;;  %v9887_v49 = vpop.permute.xlu0 %9886  ;;  %v6696_v8 = vsel %vm6636_vm4, %v19023_v5, %v9869_v48 }
 0x7c9   :  { %v19017_v56 = vmax.f32 %v19016_v30, 0.0  ;;  %v9889_v26 = vunpack.i.h.bf16 %v9887_v49  ;;  %v9888_v25 = vunpack.i.l.bf16 %v9887_v49 }
 0x7cb   :  { %v7839_v3 = vsel %vm6636_vm4, %v19017_v56, %v16732_v7  ;;  %v9892_v15 = vpop.permute.xlu1 %9891  ;;  %v16755_v16 = vsel %vm4129_vm3, %v9883_v4, %v9888_v25 }
 0x7cc   :  { %7893 = vst [vmem:[#allocation2 + $0x48] sm:$0xff] %v7839_v3  ;;  %v9894_v30 = vunpack.i.h.bf16 %v9892_v15  ;;  %v9893_v56 = vunpack.i.l.bf16 %v9892_v15  ;;  %v16760_v3 = vsel %vm4129_vm3, %v9884_v36, %v9889_v26  ;;  %v19020_v15 = vld [vmem:[#allocation54_spill] sm:$0xff] }
 0x7cd   :  { %v19021_v2 = vmax.f32 %v19020_v15, 0.0 }
 0x7ce   :  { %v16763_v33 = vsel %vm1373_vm0, %v9888_v25, %v9893_v56  ;;  %v16766_v28 = vsel %vm1373_vm0, %v9889_v26, %v9894_v30  ;;  %v16772_v49 = vpop.permute.xlu2 %7672  ;;  %v7256_v25 = vpop.f32.mrf.mxu3  ;;  %v19022_v26 = vld [vmem:[#allocation256_spill] sm:$0xff]  ;;  %v9898_v30 = vunpack.i.l.bf16 %v16671_v32 }
 0x7cf   :  { %v7842_v24 = vsel %vm6636_vm4, %v19021_v2, %v16772_v49  ;;  %7337 = vmatmul.bf16.gmra.mxu0 %v6783_v0  ;;  %7386 = vmatmul.bf16.gmra.mxu1 %v6784_v42  ;;  %v6695_v53 = vsel %vm6636_vm4, %v19022_v26, %v9868_v40  ;;  %v9804_v42 = vunpack.i.h.bf16 %v16497_v12  ;;  %v6717_v12 = vsel %vm1373_vm0, %v9798_v44, %v9803_v45 }
 0x7d0   :  { %7902 = vst [vmem:[#allocation2 + $0x90] sm:$0xff] %v7842_v24  ;;  %v6771_v51 = vpack.c.bf16 %v6696_v8, %v6695_v53 }
 0x7d1   :  { %v6718_v53 = vsel %vm1373_vm0, %v9799_v55, %v9804_v42 }
 0x7d2   :  { %v6738_v13 = vpack.c.bf16 %v6718_v53, %v6717_v12  ;;  %v19034_v53 = vld [vmem:[#allocation363_spill] sm:$0xff]  ;;  %v19035_v12 = vld [vmem:[#allocation80_spill] sm:$0xff] }
 0x7d3   :  { %v9907_v20 = vpop.permute.xlu1 %9906 }
 0x7d4   :  { %v9909_v2 = vunpack.i.h.bf16 %v9907_v20  ;;  %v9908_v10 = vunpack.i.l.bf16 %v9907_v20  ;;  %7425 = vmatmul.bf16.gmra.mxu2 %v6771_v51  ;;  %v19024_v20 = vld [vmem:[#allocation79_spill] sm:$0xff] }
 0x7d5   :  { %v9902_v56 = vpop.permute.xlu0 %9901  ;;  %v19025_v26 = vmax.f32 %v19024_v20, 0.0  ;;  %v19028_v20 = vld [vmem:[#allocation157_spill] sm:$0xff] }
 0x7d6   :  { %v9904_v15 = vunpack.i.h.bf16 %v9902_v56  ;;  %v9903_v43 = vunpack.i.l.bf16 %v9902_v56  ;;  %v16805_v11 = vpop.permute.xlu2 %7678  ;;  %v19026_v56 = vld [vmem:[#allocation172_spill] sm:$0xff] }
 0x7d8   :  { %7454 = vmatmul.bf16.gmra.mxu3 %v6744_v47  ;;  %v16790_v24 = vsel %vm4129_vm3, %v9898_v30, %v9903_v43  ;;  %v16795_v48 = vsel %vm4129_vm3, %v9899_v19, %v9904_v15  ;;  %v16798_v40 = vsel %vm1373_vm0, %v9903_v43, %v9908_v10  ;;  %v16801_v0 = vsel %vm1373_vm0, %v9904_v15, %v9909_v2  ;;  %v7259_v43 = vpop.f32.mrf.mxu3 }
 0x7d9   :  { %v7845_v10 = vsel %vm6636_vm4, %v19025_v26, %v16805_v11  ;;  %v19027_v15 = vmax.f32 %v19026_v56, 0.0  ;;  %v19029_v26 = vmax.f32 %v19028_v20, 0.0  ;;  %v19030_v56 = vld [vmem:[#allocation246_spill] sm:$0xff] }
 0x7da   :  { %7911 = vst [vmem:[#allocation2 + $0xd8] sm:$0xff] %v7845_v10 }
 0x7db   :  { %v16821_v5 = vpop.permute.xlu1 %7664 }
 0x7dc   :  { %v7838_v2 = vsel %vm6636_vm4, %v19027_v15, %v16821_v5  ;;  %v7303_v55 = vpop.f32.mrf.mxu0  ;;  %v7352_v42 = vpop.f32.mrf.mxu1  ;;  %v19031_v15 = vld [vmem:[#allocation253_spill] sm:$0xff] }
 0x7dd   :  { %v16823_v8 = vpop.permute.xlu0 %7662  ;;  %7890 = vst [vmem:[#allocation2 + $0x30] sm:$0xff] %v7838_v2  ;;  %v7304_v44 = vadd.f32 %v7303_v55, %v16740_v27  ;;  %v19032_v46 = vpack.c.bf16 %v19030_v56, %v19031_v15  ;;  %v19033_v2 = vld [vmem:[#allocation92_spill] sm:$0xff]  ;;  %v6698_v27 = vsel %vm6636_vm4, %v19034_v53, %v9884_v36  ;;  %v19040_v56 = vmax.f32 %v19039_v35, 0.0 }
 0x7de   :  { %v7837_v10 = vsel %vm6636_vm4, %v19029_v26, %v16823_v8  ;;  %v6697_v20 = vsel %vm6636_vm4, %v19033_v2, %v9883_v4  ;;  %v19036_v26 = vmax.f32 %v19035_v12, 0.0  ;;  %v9819_v53 = vunpack.i.h.bf16 %v16562_v22 }
 0x7df   :  { %7887 = vst [vmem:[#allocation2 + $0x18] sm:$0xff] %v7837_v10  ;;  %v16834_v45 = vadd.f32 %v7352_v42, %v7304_v44  ;;  %v16836_v51 = vpop.permute.xlu2 %7684  ;;  %7498 = vmatmul.bf16.vlgmr.msra.gmra.mxu0 %v6738_v13  ;;  %9094 = vmatmul.msk.bf16.vlgmr.msra.gmra.mxu1 %vm6636_vm4, %v19032_v46  ;;  %v6778_v46 = vpack.c.bf16 %v6698_v27, %v6697_v20  ;;  %v19037_v13 = vld [vmem:[#allocation176_spill] sm:$0xff]  ;;  %v9818_v27 = vunpack.i.l.bf16 %v16562_v22 }
 0x7e0   :  { %v7261_v47 = vpop.f32.mrf.mxu3  ;;  %v7848_v10 = vsel %vm6636_vm4, %v19036_v26, %v16836_v51  ;;  %v19038_v44 = vmax.f32 %v19037_v13, 0.0  ;;  %v19041_v13 = vld [vmem:[#allocation193_spill] sm:$0xff]  ;;  %v6720_v22 = vsel %vm1373_vm0, %v9814_v52, %v9819_v53  ;;  %v19048_v53 = vld [vmem:[#allocation270_spill] sm:$0xff] }
 0x7e1   :  { %7920 = vst [vmem:[#allocation2 + $0x120] sm:$0xff] %v7848_v10  ;;  %v6719_v6 = vsel %vm1373_vm0, %v9813_v1, %v9818_v27  ;;  %v19047_v52 = vld [vmem:[#allocation353_spill] sm:$0xff] }
 0x7e2   :  { %v6745_v1 = vpack.c.bf16 %v6720_v22, %v6719_v6 }
 0x7e3   :  { %v16854_v55 = vpop.permute.xlu1 %7670 }
 0x7e4   :  { %v7841_v4 = vsel %vm6636_vm4, %v19038_v44, %v16854_v55  ;;  %v7305_v15 = vpop.f32.mrf.mxu0  ;;  %v7354_v2 = vpop.f32.mrf.mxu1  ;;  %7430 = vmatmul.bf16.gmra.mxu2 %v6778_v46  ;;  %v19042_v44 = vmax.f32 %v19041_v13, 0.0 }
 0x7e5   :  { %v16856_v42 = vpop.permute.xlu0 %7668  ;;  %7899 = vst [vmem:[#allocation2 + $0x78] sm:$0xff] %v7841_v4  ;;  %v7306_v20 = vadd.f32 %v7305_v15, %v7256_v25 }
 0x7e6   :  { %v7840_v36 = vsel %vm6636_vm4, %v19040_v56, %v16856_v42  ;;  %v19045_v56 = vld [vmem:[#allocation173_spill] sm:$0xff] }
 0x7e7   :  { %7896 = vst [vmem:[#allocation2 + $0x60] sm:$0xff] %v7840_v36  ;;  %v16871_v12 = vadd.f32 %v7354_v2, %v7306_v20  ;;  %v16873_v26 = vpop.permute.xlu2 %7690  ;;  %v19046_v36 = vmax.f32 %v19045_v56, 0.0  ;;  %v19052_v56 = vld [vmem:[#allocation184_spill] sm:$0xff] }
 0x7e8   :  { %7459 = vmatmul.bf16.gmra.mxu3 %v6751_v31  ;;  %v7264_v10 = vpop.f32.mrf.mxu3  ;;  %v7851_v46 = vsel %vm6636_vm4, %v19042_v44, %v16873_v26  ;;  %v19043_v31 = vld [vmem:[#allocation74_spill] sm:$0xff]  ;;  %v19049_v44 = vpack.c.bf16 %v19047_v52, %v19048_v53  ;;  %v9833_v52 = vunpack.i.l.bf16 %v16602_v23 }
 0x7e9   :  { %7929 = vst [vmem:[#allocation2 + $0x168] sm:$0xff] %v7851_v46  ;;  %v19044_v25 = vmax.f32 %v19043_v31, 0.0  ;;  %v19050_v46 = vld [vmem:[#allocation265_spill] sm:$0xff] }
 0x7ea   :  { %v6699_v31 = vsel %vm6636_vm4, %v19050_v46, %v9898_v30 }
 0x7eb   :  { %v16879_v4 = vpop.permute.xlu1 %7676 }
 0x7ec   :  { %v7844_v35 = vsel %vm6636_vm4, %v19044_v25, %v16879_v4  ;;  %v7308_v2 = vpop.f32.mrf.mxu0  ;;  %v7357_v20 = vpop.f32.mrf.mxu1  ;;  %v19051_v25 = vld [vmem:[#allocation341_spill] sm:$0xff] }
 0x7ed   :  { %v16881_v54 = vpop.permute.xlu0 %7674  ;;  %7908 = vst [vmem:[#allocation2 + $0xc0] sm:$0xff] %v7844_v35  ;;  %v7309_v13 = vadd.f32 %v7308_v2, %v7259_v43  ;;  %v6700_v43 = vsel %vm6636_vm4, %v19051_v25, %v9899_v19  ;;  %v19054_v2 = vld [vmem:[#allocation180_spill] sm:$0xff]  ;;  %v6721_v25 = vsel %vm1373_vm0, %v9828_v39, %v9833_v52 }
 0x7ee   :  { %v7843_v15 = vsel %vm6636_vm4, %v19046_v36, %v16881_v54  ;;  %v6785_v35 = vpack.c.bf16 %v6700_v43, %v6699_v31  ;;  %v19053_v36 = vmax.f32 %v19052_v56, 0.0 }
 0x7ef   :  { %7905 = vst [vmem:[#allocation2 + $0xa8] sm:$0xff] %v7843_v15  ;;  %v16897_v27 = vadd.f32 %v7357_v20, %v7309_v13  ;;  %7503 = vmatmul.bf16.gmra.mxu0 %v6745_v1  ;;  %9095 = vmatmul.msk.bf16.gmra.mxu1 %vm6636_vm4, %v19049_v44  ;;  %v19055_v20 = vmax.f32 %v19054_v2, 0.0  ;;  %v9834_v1 = vunpack.i.h.bf16 %v16602_v23 }
 0x7f0   :  { %v7266_v63 = vpop.f32.mrf.mxu3 }
 0x7f1   :  { %v6722_v59 = vsel %vm1373_vm0, %v9829_v62, %v9834_v1  ;;  %v19060_v62 = vld [vmem:[#allocation370_spill] sm:$0xff]  ;;  %v9849_v1 = vunpack.i.h.bf16 %v16648_v60 }
 0x7f2   :  { %v6752_v39 = vpack.c.bf16 %v6722_v59, %v6721_v25  ;;  %v19063_v59 = vunpack.i.l.bf16 %v16646_v57 }
 0x7f3   :  { %v16911_v6 = vpop.permute.xlu1 %7682 }
 0x7f4   :  { %v7847_v15 = vsel %vm6636_vm4, %v19053_v36, %v16911_v6  ;;  %v7310_v32 = vpop.f32.mrf.mxu0  ;;  %v7359_v13 = vpop.f32.mrf.mxu1  ;;  %7435 = vmatmul.bf16.gmra.mxu2 %v6785_v35 }
 0x7f5   :  { %v16913_v22 = vpop.permute.xlu0 %7680  ;;  %7917 = vst [vmem:[#allocation2 + $0x108] sm:$0xff] %v7847_v15  ;;  %v7311_v19 = vadd.f32 %v7310_v32, %v7261_v47  ;;  %v19058_v47 = vld [vmem:[#allocation29_spill] sm:$0xff] }
 0x7f6   :  { %v7846_v30 = vsel %vm6636_vm4, %v19055_v20, %v16913_v22  ;;  %v19059_v43 = vmax.f32 %v19058_v47, 0.0  ;;  %v19061_v20 = vld [vmem:[#allocation328_spill] sm:$0xff] }
 0x7f7   :  { %7914 = vst [vmem:[#allocation2 + $0xf0] sm:$0xff] %v7846_v30  ;;  %v16928_v53 = vadd.f32 %v7359_v13, %v7311_v19  ;;  %v19062_v30 = vpack.c.bf16 %v19060_v62, %v19061_v20 }
 0x7f8   :  { %7464 = vmatmul.bf16.gmra.mxu3 %v6758_v61  ;;  %v19057_v61 = vmax.f32 %v19056_v50, 0.0 }
 0x7f9   :  { %v7269_v44 = vpop.f32.mrf.mxu3 }
 0x7fb   :  { %v16930_v46 = vpop.permute.xlu1 %7688 }
 0x7fc   :  { %v7850_v23 = vsel %vm6636_vm4, %v19057_v61, %v16930_v46  ;;  %v7313_v56 = vpop.f32.mrf.mxu0  ;;  %v7362_v36 = vpop.f32.mrf.mxu1  ;;  %v19064_v61 = vunpack.i.h.bf16 %v16646_v57  ;;  %v19068_v57 = vpack.c.bf16 %v16720_v37, %v16717_v14 }
 0x7fd   :  { %v16932_v31 = vpop.permute.xlu0 %7686  ;;  %7926 = vst [vmem:[#allocation2 + $0x150] sm:$0xff] %v7850_v23  ;;  %v7314_v15 = vadd.f32 %v7313_v56, %v7264_v10  ;;  %v9848_v10 = vunpack.i.l.bf16 %v16648_v60  ;;  %v19065_v60 = vld [vmem:[#allocation333_spill] sm:$0xff] }
 0x7fe   :  { %v7849_v35 = vsel %vm6636_vm4, %v19059_v43, %v16932_v31  ;;  %v6724_v23 = vsel %vm1373_vm0, %v19064_v61, %v9849_v1  ;;  %v19069_v1 = vpack.c.bf16 %v16693_v41, %v16690_v18 }
 0x7ff   :  { %7923 = vst [vmem:[#allocation2 + $0x138] sm:$0xff] %v7849_v35  ;;  %v16948_v2 = vadd.f32 %v7362_v36, %v7314_v15  ;;  %7508 = vmatmul.bf16.gmra.mxu0 %v6752_v39  ;;  %9096 = vmatmul.msk.bf16.gmra.mxu1 %vm6636_vm4, %v19062_v30  ;;  %v6723_v50 = vsel %vm1373_vm0, %v19063_v59, %v9848_v10  ;;  %v19066_v35 = vld [vmem:[#allocation248_spill] sm:$0xff]  ;;  %v19070_v10 = vld [vmem:[#allocation326_spill] sm:$0xff]  ;;  %v19071_v59 = vld [vmem:[#allocation93_spill] sm:$0xff] }
 0x800   :  { %v6759_v34 = vpack.c.bf16 %v6724_v23, %v6723_v50  ;;  %v19067_v56 = vpack.c.bf16 %v19065_v60, %v19066_v35  ;;  %v19072_v50 = vpack.c.bf16 %v19070_v10, %v19071_v59  ;;  %v19075_v60 = vld [vmem:[#allocation301_spill] sm:$0xff]  ;;  %v19076_v35 = vld [vmem:[#allocation278_spill] sm:$0xff]  ;;  %v19081_v10 = vld [vmem:[#allocation331_spill] sm:$0xff] }
 0x801   :  { %v7271_v17 = vpop.f32.mrf.mxu3 }
 0x804   :  { %v7315_v32 = vpop.f32.mrf.mxu0  ;;  %v7364_v13 = vpop.f32.mrf.mxu1 }
 0x805   :  { %v7316_v19 = vadd.f32 %v7315_v32, %v7266_v63 }
 0x807   :  { %v16959_v52 = vadd.f32 %v7364_v13, %v7316_v19 }
 0x808   :  { %7469 = vmatmul.bf16.gmra.mxu3 %v6765_v9 }
 0x809   :  { %v7274_v25 = vpop.f32.mrf.mxu3 }
 0x80c   :  { %v7318_v47 = vpop.f32.mrf.mxu0  ;;  %v7367_v43 = vpop.f32.mrf.mxu1 }
 0x80d   :  { %v7319_v58 = vadd.f32 %v7318_v47, %v7269_v44 }
 0x80f   :  { %v16967_v9 = vadd.f32 %v7367_v43, %v7319_v58  ;;  %7513 = vmatmul.bf16.gmra.mxu0 %v6759_v34  ;;  %9097 = vmatmul.msk.bf16.gmra.mxu1 %vm6636_vm4, %v19067_v56  ;;  %v19074_v34 = vpack.c.bf16 %v16730_v29, %v16723_v21  ;;  %v19077_v56 = vpack.c.bf16 %v19075_v60, %v19076_v35 }
 0x811   :  { %v7276_v63 = vpop.f32.mrf.mxu3 }
 0x814   :  { %v7320_v36 = vpop.f32.mrf.mxu0  ;;  %v7369_v15 = vpop.f32.mrf.mxu1 }
 0x815   :  { %v7321_v39 = vadd.f32 %v7320_v36, %v7271_v17  ;;  %v19073_v17 = vpack.c.bf16 %v16760_v3, %v16755_v16 }
 0x817   :  { %v16976_v62 = vadd.f32 %v7369_v15, %v7321_v39  ;;  %v7401_v15 = vpop.f32.mrf.mxu2 }
 0x818   :  { %7474 = vmatmul.bf16.gmra.mxu3 %v19068_v57 }
 0x81b   :  { %v7279_v44 = vpop.f32.mrf.mxu3 }
 0x81c   :  { %v7323_v20 = vpop.f32.mrf.mxu0  ;;  %v7372_v30 = vpop.f32.mrf.mxu1 }
 0x81d   :  { %v7324_v32 = vadd.f32 %v7323_v20, %v7274_v25 }
 0x81f   :  { %v16978_v13 = vadd.f32 %v7372_v30, %v7324_v32  ;;  %7518 = vmatmul.bf16.gmra.mxu0 %v19069_v1  ;;  %9098 = vmatmul.msk.bf16.gmra.mxu1 %vm6636_vm4, %v19072_v50  ;;  %v19079_v32 = vpack.c.bf16 %v16766_v28, %v16763_v33  ;;  %v19080_v1 = vld [vmem:[#allocation226_spill] sm:$0xff]  ;;  %v19083_v28 = vpack.c.bf16 %v16801_v0, %v16798_v40  ;;  %v17032_v40 = vld [vmem:[%s17217_s13] ss:$0 sm:$0xff]  ;;  %s9948_s13 = smov [#allocation2]  }
 0x820   :  { %v19082_v59 = vpack.c.bf16 %v19080_v1, %v19081_v10 }
 0x823   :  { %v7281_v19 = vpop.f32.mrf.mxu3 }
 0x824   :  { %v7325_v14 = vpop.f32.mrf.mxu0  ;;  %v7374_v37 = vpop.f32.mrf.mxu1 }
 0x825   :  { %v7326_v61 = vadd.f32 %v7325_v14, %v7276_v63  ;;  %v19078_v63 = vpack.c.bf16 %v16795_v48, %v16790_v24  ;;  %v7403_v24 = vpop.f32.mrf.mxu2 }
 0x826   :  { %v7404_v10 = vadd.f32 %v7403_v24, %v16871_v12 }
 0x827   :  { %v16990_v25 = vadd.f32 %v7374_v37, %v7326_v61 }
 0x828   :  { %7479 = vmatmul.bf16.gmra.mxu3 %v19073_v17 }
 0x82b   :  { %v7284_v23 = vpop.f32.mrf.mxu3 }
 0x82c   :  { %v7328_v47 = vpop.f32.mrf.mxu0  ;;  %v7377_v43 = vpop.f32.mrf.mxu1 }
 0x82d   :  { %v7329_v58 = vadd.f32 %v7328_v47, %v7279_v44  ;;  %v7406_v17 = vpop.f32.mrf.mxu2 }
 0x82f   :  { %v16992_v18 = vadd.f32 %v7377_v43, %v7329_v58  ;;  %7523 = vmatmul.bf16.gmra.mxu0 %v19074_v34  ;;  %9099 = vmatmul.msk.bf16.gmra.mxu1 %vm6636_vm4, %v19077_v56  ;;  %v19084_v58 = vld [vmem:[#allocation367_spill] sm:$0xff]  ;;  %v19085_v34 = vld [vmem:[#allocation218_spill] sm:$0xff] }
 0x830   :  { %v19086_v60 = vpack.c.bf16 %v19084_v58, %v19085_v34 }
 0x833   :  { %v7286_v41 = vpop.f32.mrf.mxu3 }
 0x834   :  { %v7330_v16 = vpop.f32.mrf.mxu0  ;;  %v7379_v3 = vpop.f32.mrf.mxu1 }
 0x835   :  { %v7331_v36 = vadd.f32 %v7330_v16, %v7281_v19  ;;  %v7408_v56 = vpop.f32.mrf.mxu2 }
 0x837   :  { %v17004_v57 = vadd.f32 %v7379_v3, %v7331_v36  ;;  %v7402_v36 = vadd.f32 %v7401_v15, %v16834_v45 }
 0x838   :  { %7484 = vmatmul.bf16.gmra.mxu3 %v19078_v63 }
 0x83b   :  { %v7289_v39 = vpop.f32.mrf.mxu3 }
 0x83c   :  { %v7333_v44 = vpop.f32.mrf.mxu0  ;;  %v7382_v20 = vpop.f32.mrf.mxu1 }
 0x83d   :  { %v7334_v21 = vadd.f32 %v7333_v44, %v7284_v23  ;;  %v7411_v0 = vpop.f32.mrf.mxu2 }
 0x83f   :  { %v17006_v29 = vadd.f32 %v7382_v20, %v7334_v21  ;;  %7528 = vmatmul.bf16.gmra.mxu0 %v19079_v32  ;;  %9100 = vmatmul.msk.bf16.gmra.mxu1 %vm6636_vm4, %v19082_v59 }
 0x843   :  { %v7291_v30 = vpop.f32.mrf.mxu3 }
 0x844   :  { %v7335_v48 = vpop.f32.mrf.mxu0  ;;  %v7384_v19 = vpop.f32.mrf.mxu1 }
 0x845   :  { %v7336_v50 = vadd.f32 %v7335_v48, %v7286_v41 }
 0x847   :  { %v17015_v14 = vadd.f32 %v7384_v19, %v7336_v50 }
 0x84b   :  { %v7450_v37 = vpop.f32.mrf.mxu3 }
 0x84c   :  { %v7338_v61 = vpop.f32.mrf.mxu0  ;;  %v7387_v23 = vpop.f32.mrf.mxu1 }
 0x84d   :  { %v7339_v47 = vadd.f32 %v7338_v61, %v7289_v39  ;;  %v7451_v39 = vadd.f32 %v7450_v37, %v7402_v36  ;;  %v7409_v36 = vadd.f32 %v7408_v56, %v16928_v53 }
 0x84f   :  { %v17017_v43 = vadd.f32 %v7387_v23, %v7339_v47  ;;  %7533 = vmatmul.bf16.gmra.mxu0 %v19083_v28  ;;  %9101 = vmatmul.msk.bf16.gmra.mxu1 %vm6636_vm4, %v19086_v60  ;;  %v7407_v47 = vadd.f32 %v7406_v17, %v16897_v27  ;;  %v7413_v28 = vpop.f32.mrf.mxu2 }
 0x853   :  { %v7452_v33 = vpop.f32.mrf.mxu3 }
 0x854   :  { %v7340_v41 = vpop.f32.mrf.mxu0  ;;  %v7389_v35 = vpop.f32.mrf.mxu1  ;;  %v7453_v15 = vadd.f32 %v7452_v33, %v7404_v10 }
 0x855   :  { %v7341_v16 = vadd.f32 %v7340_v41, %v7291_v30  ;;  %v17037_v30 = vld [vmem:[%s17218_s14] ss:$0 sm:$0xff]  ;;  %s7936_s14 = sshll.u32 %s9948_s13, 4  ;;  %s7937_s14 = int_to_ptr.vmem [resolvable:$true] %s7936_s14 }
 0x857   :  { %v17026_v3 = vadd.f32 %v7389_v35, %v7341_v16 }
 0x85b   :  { %v7455_v63 = vpop.f32.mrf.mxu3 }
 0x85c   :  { %v7499_v44 = vpop.f32.mrf.mxu0  ;;  %v7548_v20 = vpop.f32.mrf.mxu1  ;;  %v7456_v34 = vadd.f32 %v7455_v63, %v7407_v47 }
 0x85d   :  { %v7500_v21 = vadd.f32 %v7499_v44, %v7451_v39  ;;  %v7416_v44 = vpop.f32.mrf.mxu2 }
 0x85f   :  { %v7549_v32 = vadd.f32 %v7548_v20, %v7500_v21 }
 0x861   :  { %v7592_v45 = vmul.f32 %v17032_v40, %v7549_v32 }
 0x863   :  { %v7457_v1 = vpop.f32.mrf.mxu3  ;;  %v7612_v59 = vadd.f32 %v17037_v30, %v7592_v45 }
 0x864   :  { %v7501_v48 = vpop.f32.mrf.mxu0  ;;  %v7550_v19 = vpop.f32.mrf.mxu1  ;;  %v7458_v27 = vadd.f32 %v7457_v1, %v7409_v36 }
 0x865   :  { %v7628_v50 = vmax.f32 %v7612_v59, 0.0  ;;  %v7502_v37 = vadd.f32 %v7501_v48, %v7453_v15  ;;  %v7412_v15 = vadd.f32 %v7411_v0, %v16948_v2  ;;  %v7418_v1 = vpop.f32.mrf.mxu2 }
 0x867   :  { %v7551_v61 = vadd.f32 %v7550_v19, %v7502_v37  ;;  %7724 = vrot.lane.b32.xlu0 %v7628_v50, %s9946_s18 }
 0x869   :  { %v7593_v58 = vmul.f32 %v17032_v40, %v7551_v61 }
 0x86b   :  { %v7460_v23 = vpop.f32.mrf.mxu3  ;;  %v7613_v12 = vadd.f32 %v17037_v30, %v7593_v58  ;;  %v7414_v58 = vadd.f32 %v7413_v28, %v16959_v52 }
 0x86c   :  { %v7504_v24 = vpop.f32.mrf.mxu0  ;;  %v7553_v33 = vpop.f32.mrf.mxu1  ;;  %v7461_v48 = vadd.f32 %v7460_v23, %v7412_v15 }
 0x86d   :  { %v7629_v60 = vmax.f32 %v7613_v12, 0.0  ;;  %v7505_v41 = vadd.f32 %v7504_v24, %v7456_v34 }
 0x86f   :  { %v7554_v35 = vadd.f32 %v7553_v33, %v7505_v41  ;;  %7726 = vrot.lane.b32.xlu1 %v7629_v60, %s9946_s18  ;;  %v7421_v60 = vpop.f32.mrf.mxu2 }
 0x871   :  { %v7594_v39 = vmul.f32 %v17032_v40, %v7554_v35  ;;  %v7417_v35 = vadd.f32 %v7416_v44, %v16967_v9 }
 0x873   :  { %v7462_v16 = vpop.f32.mrf.mxu3  ;;  %v7614_v17 = vadd.f32 %v17037_v30, %v7594_v39 }
 0x874   :  { %v7506_v20 = vpop.f32.mrf.mxu0  ;;  %v7555_v63 = vpop.f32.mrf.mxu1  ;;  %v7463_v12 = vadd.f32 %v7462_v16, %v7414_v58 }
 0x875   :  { %v7630_v21 = vmax.f32 %v7614_v17, 0.0  ;;  %v7507_v32 = vadd.f32 %v7506_v20, %v7458_v27 }
 0x877   :  { %v7556_v10 = vadd.f32 %v7555_v63, %v7507_v32  ;;  %7728 = vrot.lane.b32.xlu2 %v7630_v21, %s9946_s18  ;;  %v7419_v21 = vadd.f32 %v7418_v1, %v16976_v62  ;;  %v7423_v32 = vpop.f32.mrf.mxu2 }
 0x879   :  { %v7595_v59 = vmul.f32 %v17032_v40, %v7556_v10 }
 0x87b   :  { %v7465_v45 = vpop.f32.mrf.mxu3  ;;  %v7615_v53 = vadd.f32 %v17037_v30, %v7595_v59 }
 0x87c   :  { %v7509_v56 = vpop.f32.mrf.mxu0  ;;  %v7558_v19 = vpop.f32.mrf.mxu1  ;;  %v7466_v27 = vadd.f32 %v7465_v45, %v7417_v35 }
 0x87d   :  { %v7631_v50 = vmax.f32 %v7615_v53, 0.0  ;;  %v7510_v37 = vadd.f32 %v7509_v56, %v7461_v48 }
 0x87f   :  { %v7559_v61 = vadd.f32 %v7558_v19, %v7510_v37  ;;  %7730 = vrot.lane.b32.xlu0 %v7631_v50, %s9946_s18  ;;  %v7422_v19 = vadd.f32 %v7421_v60, %v16978_v13  ;;  %v7426_v37 = vpop.f32.mrf.mxu2 }
 0x881   :  { %v7596_v34 = vmul.f32 %v17032_v40, %v7559_v61 }
 0x883   :  { %v7467_v47 = vpop.f32.mrf.mxu3  ;;  %v7616_v2 = vadd.f32 %v17037_v30, %v7596_v34 }
 0x884   :  { %v7511_v0 = vpop.f32.mrf.mxu0  ;;  %v7560_v23 = vpop.f32.mrf.mxu1  ;;  %v7468_v15 = vadd.f32 %v7467_v47, %v7419_v21 }
 0x885   :  { %v7632_v24 = vmax.f32 %v7616_v2, 0.0  ;;  %v7512_v33 = vadd.f32 %v7511_v0, %v7463_v12  ;;  %v7424_v0 = vadd.f32 %v7423_v32, %v16990_v25 }
 0x887   :  { %v7561_v41 = vadd.f32 %v7560_v23, %v7512_v33  ;;  %7732 = vrot.lane.b32.xlu1 %v7632_v24, %s9946_s18 }
 0x889   :  { %v7597_v36 = vmul.f32 %v17032_v40, %v7561_v41  ;;  %v7428_v41 = vpop.f32.mrf.mxu2 }
 0x88b   :  { %v7470_v39 = vpop.f32.mrf.mxu3  ;;  %v7617_v52 = vadd.f32 %v17037_v30, %v7597_v36 }
 0x88c   :  { %v7514_v28 = vpop.f32.mrf.mxu0  ;;  %v7563_v16 = vpop.f32.mrf.mxu1  ;;  %v7471_v62 = vadd.f32 %v7470_v39, %v7422_v19 }
 0x88d   :  { %v7633_v17 = vmax.f32 %v7617_v52, 0.0  ;;  %v7515_v20 = vadd.f32 %v7514_v28, %v7466_v27  ;;  %v7427_v52 = vadd.f32 %v7426_v37, %v16992_v18 }
 0x88f   :  { %v7564_v63 = vadd.f32 %v7563_v16, %v7515_v20  ;;  %7734 = vrot.lane.b32.xlu2 %v7633_v17, %s9946_s18  ;;  %v17077_v16 = vpop.permute.xlu2 %7790 }
 0x891   :  { %v7598_v10 = vmul.f32 %v17032_v40, %v7564_v63 }
 0x893   :  { %v7618_v9 = vadd.f32 %v17037_v30, %v7598_v10  ;;  %v7472_v44 = vpop.f32.mrf.mxu3  ;;  %v7431_v10 = vpop.f32.mrf.mxu2 }
 0x894   :  { %v7516_v59 = vpop.f32.mrf.mxu0  ;;  %v7565_v45 = vpop.f32.mrf.mxu1  ;;  %v7473_v24 = vadd.f32 %v7472_v44, %v7424_v0  ;;  %v7429_v44 = vadd.f32 %v7428_v41, %v17004_v57 }
 0x895   :  { %v7634_v48 = vmax.f32 %v7618_v9, 0.0  ;;  %v7517_v53 = vadd.f32 %v7516_v59, %v7468_v15  ;;  %v17081_v9 = vpop.permute.xlu1 %7788 }
 0x897   :  { %v7566_v56 = vadd.f32 %v7565_v45, %v7517_v53  ;;  %7736 = vrot.lane.b32.xlu0 %v7634_v48, %s9946_s18  ;;  %v17085_v45 = vpop.permute.xlu0 %7792 }
 0x899   :  { %v7599_v50 = vmul.f32 %v17032_v40, %v7566_v56 }
 0x89b   :  { %v7619_v1 = vadd.f32 %v17037_v30, %v7599_v50  ;;  %v7475_v34 = vpop.f32.mrf.mxu3  ;;  %v17088_v50 = vpop.permute.xlu2 %7796 }
 0x89c   :  { %v7519_v61 = vpop.f32.mrf.mxu0  ;;  %v7568_v47 = vpop.f32.mrf.mxu1  ;;  %v7476_v25 = vadd.f32 %v7475_v34, %v7427_v52 }
 0x89d   :  { %v7635_v58 = vmax.f32 %v7619_v1, 0.0  ;;  %v7520_v12 = vadd.f32 %v7519_v61, %v7471_v62  ;;  %v7432_v61 = vadd.f32 %v7431_v10, %v17006_v29  ;;  %v7433_v57 = vpop.f32.mrf.mxu2 }
 0x89e   :  { %v7434_v29 = vadd.f32 %v7433_v57, %v17015_v14 }
 0x89f   :  { %v7569_v2 = vadd.f32 %v7568_v47, %v7520_v12  ;;  %7738 = vrot.lane.b32.xlu1 %v7635_v58, %s9946_s18  ;;  %v17093_v58 = vpop.permute.xlu1 %7794 }
 0x8a1   :  { %v7600_v23 = vmul.f32 %v17032_v40, %v7569_v2 }
 0x8a3   :  { %v7620_v13 = vadd.f32 %v17037_v30, %v7600_v23  ;;  %v7477_v39 = vpop.f32.mrf.mxu3 }
 0x8a4   :  { %v7521_v33 = vpop.f32.mrf.mxu0  ;;  %v7570_v60 = vpop.f32.mrf.mxu1  ;;  %v7478_v48 = vadd.f32 %v7477_v39, %v7429_v44  ;;  %v19087_v44 = vld [vmem:[#allocation70_spill] sm:$0xff] }
 0x8a5   :  { %v7636_v35 = vmax.f32 %v7620_v13, 0.0  ;;  %v7522_v36 = vadd.f32 %v7521_v33, %v7473_v24  ;;  %v17096_v24 = vpop.permute.xlu0 %7798 }
 0x8a7   :  { %v7571_v27 = vadd.f32 %v7570_v60, %v7522_v36  ;;  %7740 = vrot.lane.b32.xlu2 %v7636_v35, %s9946_s18  ;;  %v17098_v60 = vpop.permute.xlu2 %7802  ;;  %v7436_v36 = vpop.f32.mrf.mxu2 }
 0x8a8   :  { %v7437_v14 = vadd.f32 %v7436_v36, %v17017_v43 }
 0x8a9   :  { %v7601_v28 = vmul.f32 %v17032_v40, %v7571_v27 }
 0x8ab   :  { %v7621_v17 = vadd.f32 %v17037_v30, %v7601_v28  ;;  %v7480_v18 = vpop.f32.mrf.mxu3 }
 0x8ac   :  { %v7524_v20 = vpop.f32.mrf.mxu0  ;;  %v7573_v63 = vpop.f32.mrf.mxu1  ;;  %v7481_v34 = vadd.f32 %v7480_v18, %v7432_v61  ;;  %v19088_v18 = vld [vmem:[#allocation191_spill] sm:$0xff] }
 0x8ad   :  { %v7637_v21 = vmax.f32 %v7621_v17, 0.0  ;;  %v7525_v32 = vadd.f32 %v7524_v20, %v7476_v25  ;;  %v17104_v25 = vpop.permute.xlu1 %7800 }
 0x8af   :  { %v7574_v15 = vadd.f32 %v7573_v63, %v7525_v32  ;;  %7742 = vrot.lane.b32.xlu0 %v7637_v21, %s9946_s18  ;;  %v17106_v21 = vpop.permute.xlu0 %7804  ;;  %v17109_v10 = vpop.permute.xlu2 %7808 }
 0x8b1   :  { %v7602_v59 = vmul.f32 %v17032_v40, %v7574_v15 }
 0x8b3   :  { %v7622_v53 = vadd.f32 %v17037_v30, %v7602_v59  ;;  %v7482_v12 = vpop.f32.mrf.mxu3  ;;  %v2616_v59 = vmul.f32 %v19088_v18, %v19087_v44  ;;  %v19092_v18 = vld [vmem:[#allocation199_spill] sm:$0xff] }
 0x8b4   :  { %v7526_v56 = vpop.f32.mrf.mxu0  ;;  %v7575_v19 = vpop.f32.mrf.mxu1  ;;  %v7483_v39 = vadd.f32 %v7482_v12, %v7434_v29 }
 0x8b5   :  { %v7638_v37 = vmax.f32 %v7622_v53, 0.0  ;;  %v7527_v62 = vadd.f32 %v7526_v56, %v7478_v48 }
 0x8b7   :  { %v7576_v1 = vadd.f32 %v7575_v19, %v7527_v62  ;;  %7744 = vrot.lane.b32.xlu1 %v7638_v37, %s9946_s18  ;;  %v19089_v37 = vld [vmem:[#allocation252_spill] sm:$0xff]  ;;  %v19090_v62 = vld [vmem:[#allocation197_spill] sm:$0xff] }
 0x8b9   :  { %v7603_v47 = vmul.f32 %v17032_v40, %v7576_v1  ;;  %v2745_v1 = vmul.f32 %v19090_v62, %v19089_v37 }
 0x8bb   :  { %v7623_v2 = vadd.f32 %v17037_v30, %v7603_v47  ;;  %v7485_v63 = vpop.f32.mrf.mxu3  ;;  %v7438_v47 = vpop.f32.mrf.mxu2 }
 0x8bc   :  { %v7529_v0 = vpop.f32.mrf.mxu0  ;;  %v7578_v23 = vpop.f32.mrf.mxu1  ;;  %v7486_v48 = vadd.f32 %v7485_v63, %v7437_v14 }
 0x8bd   :  { %v7639_v13 = vmax.f32 %v7623_v2, 0.0  ;;  %v7530_v33 = vadd.f32 %v7529_v0, %v7481_v34  ;;  %v19091_v34 = vld [vmem:[#allocation36_spill] sm:$0xff]  ;;  %v17119_v2 = vpop.permute.xlu1 %7806 }
 0x8be   :  { %v2632_v12 = vadd.f32 %v2616_v59, %v19091_v34  ;;  %v2775_v59 = vmax.f32 %v19092_v18, 0.0 }
 0x8bf   :  { %v7579_v41 = vadd.f32 %v7578_v23, %v7530_v33  ;;  %7746 = vrot.lane.b32.xlu2 %v7639_v13, %s9946_s18  ;;  %v17122_v13 = vpop.permute.xlu0 %7810  ;;  %v7439_v33 = vadd.f32 %v7438_v47, %v17026_v3 }
 0x8c0   :  { %v2761_v23 = vadd.f32 %v2745_v1, %v2632_v12 }
 0x8c1   :  { %v7604_v35 = vmul.f32 %v17032_v40, %v7579_v41 }
 0x8c3   :  { %v7624_v27 = vadd.f32 %v17037_v30, %v7604_v35  ;;  %v7487_v0 = vpop.f32.mrf.mxu3 }
 0x8c4   :  { %v7531_v52 = vpop.f32.mrf.mxu0  ;;  %v7580_v28 = vpop.f32.mrf.mxu1 }
 0x8c5   :  { %v7640_v17 = vmax.f32 %v7624_v27, 0.0  ;;  %v7532_v20 = vadd.f32 %v7531_v52, %v7483_v39  ;;  %v7488_v39 = vadd.f32 %v7487_v0, %v7439_v33 }
 0x8c7   :  { %v7581_v32 = vadd.f32 %v7580_v28, %v7532_v20  ;;  %7748 = vrot.lane.b32.xlu0 %v7640_v17, %s9946_s18  ;;  %v2777_v28 = vmax.f32 %v2761_v23, 0.0 }
 0x8c9   :  { %v7605_v15 = vmul.f32 %v17032_v40, %v7581_v32  ;;  %v17133_v32 = vpop.permute.xlu1 %7812 }
 0x8cb   :  { %v7625_v53 = vadd.f32 %v17037_v30, %v7605_v15 }
 0x8cc   :  { %v7534_v56 = vpop.f32.mrf.mxu0  ;;  %v7583_v19 = vpop.f32.mrf.mxu1 }
 0x8cd   :  { %v7641_v61 = vmax.f32 %v7625_v53, 0.0  ;;  %v7535_v57 = vadd.f32 %v7534_v56, %v7486_v48  ;;  %v19093_v48 = vld [vmem:[#allocation43_spill] sm:$0xff]  ;;  %v19094_v53 = vld [vmem:[#allocation201_spill] sm:$0xff] }
 0x8ce   :  { %v2744_v56 = vmul.f32 %v19094_v53, %v19093_v48 }
 0x8cf   :  { %v7584_v43 = vadd.f32 %v7583_v19, %v7535_v57  ;;  %7750 = vrot.lane.b32.xlu1 %v7641_v61, %s9946_s18 }
 0x8d1   :  { %v7606_v41 = vmul.f32 %v17032_v40, %v7584_v43  ;;  %v7729_v29 = vpop.permute.xlu2 %7728 }
 0x8d2   :  { %v7854_v35 = vsel %vm4129_vm3, %v16821_v5, %v7729_v29  ;;  %v7870_v36 = vsel %vm1373_vm0, %v7729_v29, %v17085_v45 }
 0x8d3   :  { %v7626_v27 = vadd.f32 %v17037_v30, %v7606_v41  ;;  %7891 = vst [vmem:[#allocation2 + $0x38] sm:$0xff] %v7854_v35 }
 0x8d4   :  { %7892 = vst [vmem:[#allocation2 + $0x40] sm:$0xff] %v7870_v36  ;;  %v7536_v52 = vpop.f32.mrf.mxu0  ;;  %v7585_v63 = vpop.f32.mrf.mxu1 }
 0x8d5   :  { %v7642_v17 = vmax.f32 %v7626_v27, 0.0  ;;  %v7537_v20 = vadd.f32 %v7536_v52, %v7488_v39 }
 0x8d7   :  { %v7586_v3 = vadd.f32 %v7585_v63, %v7537_v20  ;;  %7818 = vrot.lane.b32.xlu1 %v2777_v28, %s9945_s22  ;;  %7752 = vrot.lane.b32.xlu2 %v7642_v17, %s9946_s18 }
 0x8d9   :  { %v7607_v5 = vmul.f32 %v17032_v40, %v7586_v3  ;;  %v7725_v45 = vpop.permute.xlu0 %7724  ;;  %v19095_v40 = vld [vmem:[#allocation185_spill] sm:$0xff] }
 0x8da   :  { %v7852_v14 = vsel %vm4129_vm3, %v16699_v38, %v7725_v45  ;;  %v7868_v15 = vsel %vm1373_vm0, %v7725_v45, %v17081_v9  ;;  %v2760_v37 = vadd.f32 %v2744_v56, %v19095_v40 }
 0x8db   :  { %v7627_v44 = vadd.f32 %v17037_v30, %v7607_v5  ;;  %7885 = vst [vmem:[#allocation2 + $0x8] sm:$0xff] %v7852_v14 }
 0x8dc   :  { %7886 = vst [vmem:[#allocation2 + $0x10] sm:$0xff] %v7868_v15  ;;  %v2776_v62 = vmax.f32 %v2760_v37, 0.0 }
 0x8dd   :  { %v7643_v19 = vmax.f32 %v7627_v44, 0.0 }
 0x8df   :  { %7754 = vrot.lane.b32.xlu0 %v7643_v19, %s9946_s18  ;;  %7814 = vrot.lane.b32.xlu2 %v2775_v59, %s9945_s22 }
 0x8e1   :  { %v7727_v38 = vpop.permute.xlu1 %7726 }
 0x8e2   :  { %v7853_v9 = vsel %vm4129_vm3, %v16823_v8, %v7727_v38  ;;  %v7869_v30 = vsel %vm1373_vm0, %v7727_v38, %v17077_v16 }
 0x8e3   :  { %7888 = vst [vmem:[#allocation2 + $0x20] sm:$0xff] %v7853_v9 }
 0x8e4   :  { %7889 = vst [vmem:[#allocation2 + $0x28] sm:$0xff] %v7869_v30 }
 0x8e7   :  { %7816 = vrot.lane.b32.xlu0 %v2776_v62, %s9945_s22 }
 0x8e9   :  { %v7735_v1 = vpop.permute.xlu2 %7734 }
 0x8ea   :  { %v7857_v61 = vsel %vm4129_vm3, %v16854_v55, %v7735_v1  ;;  %v7873_v57 = vsel %vm1373_vm0, %v7735_v1, %v17096_v24 }
 0x8eb   :  { %7900 = vst [vmem:[#allocation2 + $0x80] sm:$0xff] %v7857_v61 }
 0x8ec   :  { %7901 = vst [vmem:[#allocation2 + $0x88] sm:$0xff] %v7873_v57 }
 0x8f1   :  { %v7731_v47 = vpop.permute.xlu0 %7730 }
 0x8f2   :  { %v7855_v8 = vsel %vm4129_vm3, %v16732_v7, %v7731_v47  ;;  %v7871_v16 = vsel %vm1373_vm0, %v7731_v47, %v17093_v58 }
 0x8f3   :  { %7894 = vst [vmem:[#allocation2 + $0x50] sm:$0xff] %v7855_v8 }
 0x8f4   :  { %7895 = vst [vmem:[#allocation2 + $0x58] sm:$0xff] %v7871_v16 }
 0x8f9   :  { %v7733_v34 = vpop.permute.xlu1 %7732 }
 0x8fa   :  { %v7856_v12 = vsel %vm4129_vm3, %v16856_v42, %v7733_v34  ;;  %v7872_v55 = vsel %vm1373_vm0, %v7733_v34, %v17088_v50 }
 0x8fb   :  { %7897 = vst [vmem:[#allocation2 + $0x68] sm:$0xff] %v7856_v12 }
 0x8fc   :  { %7898 = vst [vmem:[#allocation2 + $0x70] sm:$0xff] %v7872_v55 }
 0x901   :  { %v7741_v24 = vpop.permute.xlu2 %7740 }
 0x902   :  { %v7860_v43 = vsel %vm4129_vm3, %v16879_v4, %v7741_v24  ;;  %v7876_v7 = vsel %vm1373_vm0, %v7741_v24, %v17106_v21 }
 0x903   :  { %7909 = vst [vmem:[#allocation2 + $0xc8] sm:$0xff] %v7860_v43 }
 0x904   :  { %7910 = vst [vmem:[#allocation2 + $0xd0] sm:$0xff] %v7876_v7 }
 0x909   :  { %v7737_v58 = vpop.permute.xlu0 %7736 }
 0x90a   :  { %v7858_v0 = vsel %vm4129_vm3, %v16772_v49, %v7737_v58  ;;  %v7874_v42 = vsel %vm1373_vm0, %v7737_v58, %v17104_v25 }
 0x90b   :  { %7903 = vst [vmem:[#allocation2 + $0x98] sm:$0xff] %v7858_v0 }
 0x90c   :  { %7904 = vst [vmem:[#allocation2 + $0xa0] sm:$0xff] %v7874_v42 }
 0x911   :  { %v7739_v50 = vpop.permute.xlu1 %7738 }
 0x912   :  { %v7859_v23 = vsel %vm4129_vm3, %v16881_v54, %v7739_v50  ;;  %v7875_v4 = vsel %vm1373_vm0, %v7739_v50, %v17098_v60 }
 0x913   :  { %7906 = vst [vmem:[#allocation2 + $0xb0] sm:$0xff] %v7859_v23 }
 0x914   :  { %7907 = vst [vmem:[#allocation2 + $0xb8] sm:$0xff] %v7875_v4 }
 0x919   :  { %v7747_v21 = vpop.permute.xlu2 %7746 }
 0x91a   :  { %v7863_v33 = vsel %vm4129_vm3, %v16911_v6, %v7747_v21  ;;  %v7879_v49 = vsel %vm1373_vm0, %v7747_v21, %v17122_v13 }
 0x91b   :  { %7918 = vst [vmem:[#allocation2 + $0x110] sm:$0xff] %v7863_v33 }
 0x91c   :  { %7919 = vst [vmem:[#allocation2 + $0x118] sm:$0xff] %v7879_v49 }
 0x921   :  { %v7743_v25 = vpop.permute.xlu0 %7742 }
 0x922   :  { %v7861_v41 = vsel %vm4129_vm3, %v16805_v11, %v7743_v25  ;;  %v7877_v54 = vsel %vm1373_vm0, %v7743_v25, %v17119_v2 }
 0x923   :  { %7912 = vst [vmem:[#allocation2 + $0xe0] sm:$0xff] %v7861_v41 }
 0x924   :  { %7913 = vst [vmem:[#allocation2 + $0xe8] sm:$0xff] %v7877_v54 }
 0x929   :  { %v7745_v60 = vpop.permute.xlu1 %7744 }
 0x92a   :  { %v7862_v29 = vsel %vm4129_vm3, %v16913_v22, %v7745_v60  ;;  %v7878_v6 = vsel %vm1373_vm0, %v7745_v60, %v17109_v10 }
 0x92b   :  { %7915 = vst [vmem:[#allocation2 + $0xf8] sm:$0xff] %v7862_v29 }
 0x92c   :  { %7916 = vst [vmem:[#allocation2 + $0x100] sm:$0xff] %v7878_v6 }
 0x931   :  { %v7753_v13 = vpop.permute.xlu2 %7752 }
 0x932   :  { %v7866_v35 = vsel %vm4129_vm3, %v16930_v46, %v7753_v13 }
 0x933   :  { %7927 = vst [vmem:[#allocation2 + $0x158] sm:$0xff] %v7866_v35 }
 0x939   :  { %v7749_v11 = vpop.permute.xlu0 %7748  ;;  %v7815_v22 = vpop.permute.xlu2 %7814 }
 0x93a   :  { %v7864_v2 = vsel %vm4129_vm3, %v16836_v51, %v7749_v11  ;;  %v7880_v36 = vsel %vm1373_vm0, %v7749_v11, %v17133_v32 }
 0x93b   :  { %7921 = vst [vmem:[#allocation2 + $0x128] sm:$0xff] %v7864_v2 }
 0x93c   :  { %7922 = vst [vmem:[#allocation2 + $0x130] sm:$0xff] %v7880_v36 }
 0x941   :  { %v7751_v39 = vpop.permute.xlu1 %7750 }
 0x942   :  { %v7865_v10 = vsel %vm4129_vm3, %v16932_v31, %v7751_v39  ;;  %v7881_v27 = vsel %vm1373_vm0, %v7751_v39, %v7815_v22 }
 0x943   :  { %7924 = vst [vmem:[#allocation2 + $0x140] sm:$0xff] %v7865_v10 }
 0x944   :  { %7925 = vst [vmem:[#allocation2 + $0x148] sm:$0xff] %v7881_v27 }
 0x949   :  { %v7819_v46 = vpop.permute.xlu1 %7818 }
 0x951   :  { %v7755_v52 = vpop.permute.xlu0 %7754 }
 0x952   :  { %v7867_v28 = vsel %vm4129_vm3, %v16873_v26, %v7755_v52  ;;  %v7883_v51 = vsel %vm1373_vm0, %v7755_v52, %v7819_v46 }
 0x953   :  { %7930 = vst [vmem:[#allocation2 + $0x170] sm:$0xff] %v7867_v28 }
 0x954   :  { %7931 = vst [vmem:[#allocation2 + $0x178] sm:$0xff] %v7883_v51 }
 0x959   :  { %v7817_v31 = vpop.permute.xlu0 %7816 }
 0x95a   :  { %v7882_v17 = vsel %vm1373_vm0, %v7753_v13, %v7817_v31 }
 0x95b   :  { %7928 = vst [vmem:[#allocation2 + $0x160] sm:$0xff] %v7882_v17 }
 0x95c   :  { %7944 = dma.vmem_to_hbm [thread:$0]  %s7937_s14, 6144, %s7939_s10, [#allocation3], %s9949_s11, %s9949_s11, %s9950_s26  }
 0x95d   :  { %9942 = dma.done.wait [#allocation3], 6144  }
 0x95e   :  { %9943 = vsyncadd [#allocation3], 4294961152 }
 0x95f   :  { %7949 = vsyncpa [#allocation3], 1 }

</bundles_post_ra>
